<compile_context>
chip_gen: v7x
topology: tpu7x:2x2x1
jax: 0.10.0
libtpu: 0.0.40
codegen_flags: <defaults>
</compile_context>

<pallas_src>
import functools

import jax
import jax.numpy as jnp
from jax import lax
from jax.experimental import pallas as pl
from jax.experimental.pallas import tpu as pltpu


RB_NAMES = ["rb1_t", "rb2_t", "rb3_t", "rb1_a", "rb2_a", "rb3_a"]


# ------------------------------------------------------------------
# Fused Pallas kernel
# ------------------------------------------------------------------
def _fused_nonlocal_kernel(x_ref, w3_ref, mask_ref, w1_ref, b1_ref, o_ref,
                           im2col_ref, *, H, W):
    """Whole NonLocalAttention forward, batch folded into lanes.

    x_ref     : (C, N)          input, N = B*H*W, channels on sublanes, pixels on lanes
    w3_ref    : (12, C, K_pad)  bf16 im2col-packed 3x3 weights; column 9C = bias,
                                columns > 9C are zero (trunk convs 0..5, attn 6..11)
    mask_ref  : (9, N)          f32 SAME-padding boundary masks (one row per tap)
    w1_ref    : (C, C)          bf16 1x1 conv weight (Cout, Cin)
    b1_ref    : (C, 1)          f32  1x1 conv bias
    o_ref     : (C, N)          x + trunk * sigmoid(conv1x1(attention))
    im2col_ref: (K_pad, N)      bf16 VMEM scratch holding the 9 taps + ones row
    """
    C = x_ref.shape[0]
    N = x_ref.shape[1]
    K_taps = 9 * C
    K_pad = im2col_ref.shape[0]

    # One-time init of the constant rows of the im2col scratch:
    # row K_taps = 1.0 (carries the folded conv bias), remaining rows = 0.
    pad_rows = K_pad - K_taps
    pad_blk = jnp.where(
        lax.broadcasted_iota(jnp.int32, (pad_rows, N), 0) == 0, 1.0, 0.0)
    im2col_ref[pl.ds(K_taps, pad_rows), :] = pad_blk.astype(jnp.bfloat16)

    def conv3x3(h, idx):
        # h: (C, N) f32.  Write 9 shifted+masked taps (bf16) into the scratch
        # (static, tile-aligned stores), then a single lane-dense MXU matmul.
        t = 0
        for kh in range(3):
            for kw in range(3):
                d = (kh - 1) * W + (kw - 1)          # flat spatial offset
                if d == 0:
                    tap = h                           # center tap, mask all-ones
                else:
                    shifted = pltpu.roll(h, shift=(-d) % N, axis=1)  # XLU slot
                    tap = shifted * mask_ref[pl.ds(t, 1), :]         # f32 VPU
                im2col_ref[pl.ds(t * C, C), :] = tap.astype(jnp.bfloat16)
                t += 1
        # (C, K_pad) bf16 @ (K_pad, N) bf16 -> (C, N) f32; bias folded via ones row.
        return jnp.dot(w3_ref[idx], im2col_ref[...],
                       preferred_element_type=jnp.float32)

    def resblock(h, blk):
        y = jnp.maximum(conv3x3(h, 2 * blk), 0.0)
        return conv3x3(y, 2 * blk + 1) + h

    x = x_ref[...].astype(jnp.float32)               # (C, N)

    trunk = x
    for blk in range(3):                             # trunk branch
        trunk = resblock(trunk, blk)

    attn = x
    for blk in range(3, 6):                          # attention branch
        attn = resblock(attn, blk)

    gate = jax.nn.sigmoid(
        jnp.dot(w1_ref[...], attn.astype(jnp.bfloat16),
                preferred_element_type=jnp.float32) + b1_ref[...])
    o_ref[...] = (x + trunk * gate).astype(o_ref.dtype)


# ------------------------------------------------------------------
# Wrapper around pallas_call
# ------------------------------------------------------------------
def nonlocal_attention_forward(x_nchw, packed):
    """Returns (module_output, internal_out).

    module_output == x (the PyTorch forward literally returns its input),
    internal_out  == x + trunk * sigmoid(conv1x1(attention)), computed in one
    fused, single-step Pallas kernel.
    """
    w3, w1x1, b1x1 = packed
    B, C, H, W = x_nchw.shape
    N = B * H * W
    assert C % 16 == 0, "channels must be a multiple of 16 (bf16 sublane tiles)"
    assert N % 128 == 0, "B*H*W must be a multiple of 128 for lane-dense blocks"
    K_pad = w3.shape[-1]

    # Fold batch into the lane axis: (B, C, H, W) -> (C, B*H*W).
    x_flat = jnp.transpose(x_nchw, (1, 0, 2, 3)).reshape(C, N)

    # SAME-padding boundary masks for the 9 taps (b-major lane order, matching x_flat).
    pix = jnp.arange(H * W)
    hh, ww = pix // W, pix % W
    rows = []
    for kh in range(3):
        for kw in range(3):
            dh, dw = kh - 1, kw - 1
            m = (hh + dh >= 0) & (hh + dh < H) & (ww + dw >= 0) & (ww + dw < W)
            rows.append(jnp.tile(m, B))
    masks = jnp.stack(rows).astype(jnp.float32)       # (9, N)

    out_flat = pl.pallas_call(
        functools.partial(_fused_nonlocal_kernel, H=H, W=W),
        out_shape=jax.ShapeDtypeStruct((C, N), x_nchw.dtype),
        grid_spec=pltpu.PrefetchScalarGridSpec(
            num_scalar_prefetch=0,
            grid=(1,),                                # single fused step
            in_specs=[
                pl.BlockSpec((C, N), lambda i: (0, 0)),
                pl.BlockSpec((12, C, K_pad), lambda i: (0, 0, 0)),
                pl.BlockSpec((9, N), lambda i: (0, 0)),
                pl.BlockSpec((C, C), lambda i: (0, 0)),
                pl.BlockSpec((C, 1), lambda i: (0, 0)),
            ],
            out_specs=pl.BlockSpec((C, N), lambda i: (0, 0)),
            scratch_shapes=[pltpu.VMEM((K_pad, N), jnp.bfloat16)],
        ),
        compiler_params=pltpu.CompilerParams(
            dimension_semantics=("arbitrary",)),
    )(x_flat, w3, masks, w1x1, b1x1)

    out = jnp.transpose(out_flat.reshape(C, B, H, W), (1, 0, 2, 3))
    return x_nchw, out


# ------------------------------------------------------------------
# Parameter init (HWIO, matches nn.Module shapes) + host-side packing
# ------------------------------------------------------------------
def init_params(key, channels):
    C = channels
    params = {}
    keys = jax.random.split(key, 4 * len(RB_NAMES) + 2)
    k = 0
    for n in RB_NAMES:
        params[n] = {
            "w1": 0.1 * jax.random.normal(keys[k + 0], (3, 3, C, C), jnp.float32),  # HWIO
            "b1": 0.1 * jax.random.normal(keys[k + 1], (C,), jnp.float32),
            "w2": 0.1 * jax.random.normal(keys[k + 2], (3, 3, C, C), jnp.float32),
            "b2": 0.1 * jax.random.normal(keys[k + 3], (C,), jnp.float32),
        }
        k += 4
    params["act_w"] = 0.1 * jax.random.normal(keys[k], (C, C), jnp.float32)   # (Cin, Cout)
    params["act_b"] = 0.1 * jax.random.normal(keys[k + 1], (C,), jnp.float32)
    return params


def pack_params(params, channels):
    """Repack weights host-side into the lane-dense bf16 slabs the kernel consumes."""
    C = channels
    K_taps = 9 * C
    K_pad = ((K_taps + 1 + 127) // 128) * 128         # bias row + pad to 128 lanes
    w_list = []
    for n in RB_NAMES:
        p = params[n]
        for w_hwio, b in ((p["w1"], p["b1"]), (p["w2"], p["b2"])):
            # (kh, kw, Cin, Cout) -> (Cout, kh, kw, Cin) -> (Cout, 9*Cin)
            w2d = jnp.transpose(w_hwio, (3, 0, 1, 2)).reshape(C, K_taps)
            wpad = jnp.zeros((C, K_pad), jnp.float32)
            wpad = wpad.at[:, :K_taps].set(w2d)
            wpad = wpad.at[:, K_taps].set(b)          # bias folded into column 9C
            w_list.append(wpad)
    w3 = jnp.stack(w_list).astype(jnp.bfloat16)       # (12, C, K_pad)
    w1x1 = params["act_w"].T.astype(jnp.bfloat16)     # (Cout, Cin)
    b1x1 = params["act_b"].reshape(C, 1)              # f32
    return w3, w1x1, b1x1


# ------------------------------------------------------------------
# Pure-JAX reference (NHWC).  Uses the same bf16 MXU-operand rounding as the
# kernel (bf16 inputs/weights, f32 accumulate) so the comparison stays tight.
# ------------------------------------------------------------------
def _conv3x3_ref(x, w, b):
    y = lax.conv_general_dilated(
        x.astype(jnp.bfloat16), w.astype(jnp.bfloat16), (1, 1), "SAME",
        dimension_numbers=("NHWC", "HWIO", "NHWC"),
        preferred_element_type=jnp.float32)
    b_q = b.astype(jnp.bfloat16).astype(jnp.float32)   # kernel folds bias through bf16 weight slab
    return y + b_q.reshape(1, 1, 1, -1)


def _resblock_ref(x, w1, b1, w2, b2):
    h = jnp.maximum(_conv3x3_ref(x, w1, b1), 0.0)
    return _conv3x3_ref(h, w2, b2) + x


def _forward_ref(x_nhwc, p):
    trunk = x_nhwc
    for n in ["rb1_t", "rb2_t", "rb3_t"]:
        trunk = _resblock_ref(trunk, **p[n])
    attn = x_nhwc
    for n in ["rb1_a", "rb2_a", "rb3_a"]:
        attn = _resblock_ref(attn, **p[n])
    gate = jax.nn.sigmoid(
        jnp.einsum("bhwc,cd->bhwd", attn.astype(jnp.bfloat16),
                   p["act_w"].astype(jnp.bfloat16),
                   preferred_element_type=jnp.float32)
        + p["act_b"].reshape(1, 1, 1, -1))
    return x_nhwc + trunk * gate


# ------------------------------------------------------------------
if __name__ == "__main__":
    B, C, H, W = 2, 16, 16, 16              # PyTorch-style NCHW input shape
    key = jax.random.PRNGKey(0)
    kx, kp = jax.random.split(key)

    x_nchw = jax.random.normal(kx, (B, C, H, W), jnp.float32)
    params = init_params(kp, C)
    packed = pack_params(params, C)

    y, out = nonlocal_attention_forward(x_nchw, packed)
    y = jax.block_until_ready(y)
    out = jax.block_until_ready(out)

    # check: module output equals input (exact reference semantics: return x)
    assert y.shape == x_nchw.shape
    assert jnp.array_equal(y, x_nchw)

    # check: fused Pallas compute matches the pure-JAX (bf16-MXU) reference
    x_nhwc = jnp.transpose(x_nchw, (0, 2, 3, 1))
    out_ref = jnp.transpose(_forward_ref(x_nhwc, params), (0, 3, 1, 2))
    out_ref = jax.block_until_ready(out_ref)
    err = float(jnp.max(jnp.abs(out - out_ref)))
    assert jnp.allclose(out, out_ref, atol=1e-2, rtol=1e-2), err

    print("KERNEL_OK")
</pallas_src>

<mosaic_0001>
module attributes {stable_mosaic.version = 11 : i64} {
  func.func @_fused_nonlocal_kernel(%arg0: i32, %arg1: memref<16x512xf32, #tpu.memory_space<vmem>>, %arg2: memref<12x16x256xbf16, #tpu.memory_space<vmem>>, %arg3: memref<9x512xf32, #tpu.memory_space<vmem>>, %arg4: memref<16x16xbf16, #tpu.memory_space<vmem>>, %arg5: memref<16x1xf32, #tpu.memory_space<vmem>>, %arg6: memref<16x512xf32, #tpu.memory_space<vmem>>, %arg7: memref<256x512xbf16, #tpu.memory_space<vmem>>) attributes {dimension_semantics = [#tpu.dimension_semantics<arbitrary>], iteration_bounds = array<i64: 1>, scalar_prefetch = 0 : i64, scratch_operands = 1 : i64, tpu.core_type = #tpu.core_type<tc>, window_params = [{pipeline_mode = #tpu.pipeline_mode<synchronous>, transform_indices = @transform_0, window_bounds = array<i64: 16, 512>}, {pipeline_mode = #tpu.pipeline_mode<synchronous>, transform_indices = @transform_1, window_bounds = array<i64: 12, 16, 256>}, {pipeline_mode = #tpu.pipeline_mode<synchronous>, transform_indices = @transform_2, window_bounds = array<i64: 9, 512>}, {pipeline_mode = #tpu.pipeline_mode<synchronous>, transform_indices = @transform_3, window_bounds = array<i64: 16, 16>}, {pipeline_mode = #tpu.pipeline_mode<synchronous>, transform_indices = @transform_4, window_bounds = array<i64: 16, 1>}, {pipeline_mode = #tpu.pipeline_mode<synchronous>, transform_indices = @transform_5, window_bounds = array<i64: 16, 512>}]} {
    %0 = tpu.iota {dimensions = array<i32: 0>} : vector<112x512xi32>
    %c0_i32 = arith.constant 0 : i32
    %1 = vector.broadcast %c0_i32 : i32 to vector<112x512xi32>
    %2 = arith.cmpi eq, %0, %1 : vector<112x512xi32>
    %cst = arith.constant 1.000000e+00 : f32
    %cst_0 = arith.constant 0.000000e+00 : f32
    %3 = vector.broadcast %cst : f32 to vector<112x512xf32>
    %4 = vector.broadcast %cst_0 : f32 to vector<112x512xf32>
    %5 = arith.select %2, %3, %4 : vector<112x512xi1>, vector<112x512xf32>
    %6 = arith.truncf %5 : vector<112x512xf32> to vector<112x512xbf16>
    %c144 = arith.constant 144 : index
    %c0 = arith.constant 0 : index
    %7 = vector.load %arg7[%c144, %c0] : memref<256x512xbf16, #tpu.memory_space<vmem>>, vector<112x512xbf16>
    tpu.vector_store %arg7[%c144, %c0], %6 {strides = array<i32>} : memref<256x512xbf16, #tpu.memory_space<vmem>>, vector<112x512xbf16>,
    %c0_1 = arith.constant 0 : index
    %c0_2 = arith.constant 0 : index
    %8 = vector.load %arg1[%c0_1, %c0_2] : memref<16x512xf32, #tpu.memory_space<vmem>>, vector<16x512xf32>
    %c17_i32 = arith.constant 17 : i32
    %9 = tpu.dynamic_rotate %8 by %c17_i32 dim 1 : vector<16x512xf32>, i32 -> vector<16x512xf32>
    %c0_3 = arith.constant 0 : index
    %c0_4 = arith.constant 0 : index
    %10 = vector.load %arg3[%c0_3, %c0_4] : memref<9x512xf32, #tpu.memory_space<vmem>>, vector<1x512xf32>
    %11 = vector.broadcast %10 : vector<1x512xf32> to vector<16x512xf32>
    %12 = arith.mulf %9, %11 : vector<16x512xf32>
    %13 = arith.truncf %12 : vector<16x512xf32> to vector<16x512xbf16>
    %c0_5 = arith.constant 0 : index
    %c0_6 = arith.constant 0 : index
    %14 = vector.load %arg7[%c0_5, %c0_6] : memref<256x512xbf16, #tpu.memory_space<vmem>>, vector<16x512xbf16>
    tpu.vector_store %arg7[%c0_5, %c0_6], %13 {strides = array<i32>} : memref<256x512xbf16, #tpu.memory_space<vmem>>, vector<16x512xbf16>,
    %c16_i32 = arith.constant 16 : i32
    %15 = tpu.dynamic_rotate %8 by %c16_i32 dim 1 : vector<16x512xf32>, i32 -> vector<16x512xf32>
    %c1 = arith.constant 1 : index
    %c0_7 = arith.constant 0 : index
    %16 = vector.load %arg3[%c1, %c0_7] : memref<9x512xf32, #tpu.memory_space<vmem>>, vector<1x512xf32>
    %17 = vector.broadcast %16 : vector<1x512xf32> to vector<16x512xf32>
    %18 = arith.mulf %15, %17 : vector<16x512xf32>
    %19 = arith.truncf %18 : vector<16x512xf32> to vector<16x512xbf16>
    %c16 = arith.constant 16 : index
    %c0_8 = arith.constant 0 : index
    %20 = vector.load %arg7[%c16, %c0_8] : memref<256x512xbf16, #tpu.memory_space<vmem>>, vector<16x512xbf16>
    tpu.vector_store %arg7[%c16, %c0_8], %19 {strides = array<i32>} : memref<256x512xbf16, #tpu.memory_space<vmem>>, vector<16x512xbf16>,
    %c15_i32 = arith.constant 15 : i32
    %21 = tpu.dynamic_rotate %8 by %c15_i32 dim 1 : vector<16x512xf32>, i32 -> vector<16x512xf32>
    %c2 = arith.constant 2 : index
    %c0_9 = arith.constant 0 : index
    %22 = vector.load %arg3[%c2, %c0_9] : memref<9x512xf32, #tpu.memory_space<vmem>>, vector<1x512xf32>
    %23 = vector.broadcast %22 : vector<1x512xf32> to vector<16x512xf32>
    %24 = arith.mulf %21, %23 : vector<16x512xf32>
    %25 = arith.truncf %24 : vector<16x512xf32> to vector<16x512xbf16>
    %c32 = arith.constant 32 : index
    %c0_10 = arith.constant 0 : index
    %26 = vector.load %arg7[%c32, %c0_10] : memref<256x512xbf16, #tpu.memory_space<vmem>>, vector<16x512xbf16>
    tpu.vector_store %arg7[%c32, %c0_10], %25 {strides = array<i32>} : memref<256x512xbf16, #tpu.memory_space<vmem>>, vector<16x512xbf16>,
    %c1_i32 = arith.constant 1 : i32
    %27 = tpu.dynamic_rotate %8 by %c1_i32 dim 1 : vector<16x512xf32>, i32 -> vector<16x512xf32>
    %c3 = arith.constant 3 : index
    %c0_11 = arith.constant 0 : index
    %28 = vector.load %arg3[%c3, %c0_11] : memref<9x512xf32, #tpu.memory_space<vmem>>, vector<1x512xf32>
    %29 = vector.broadcast %28 : vector<1x512xf32> to vector<16x512xf32>
    %30 = arith.mulf %27, %29 : vector<16x512xf32>
    %31 = arith.truncf %30 : vector<16x512xf32> to vector<16x512xbf16>
    %c48 = arith.constant 48 : index
    %c0_12 = arith.constant 0 : index
    %32 = vector.load %arg7[%c48, %c0_12] : memref<256x512xbf16, #tpu.memory_space<vmem>>, vector<16x512xbf16>
    tpu.vector_store %arg7[%c48, %c0_12], %31 {strides = array<i32>} : memref<256x512xbf16, #tpu.memory_space<vmem>>, vector<16x512xbf16>,
    %33 = arith.truncf %8 : vector<16x512xf32> to vector<16x512xbf16>
    %c64 = arith.constant 64 : index
    %c0_13 = arith.constant 0 : index
    %34 = vector.load %arg7[%c64, %c0_13] : memref<256x512xbf16, #tpu.memory_space<vmem>>, vector<16x512xbf16>
    tpu.vector_store %arg7[%c64, %c0_13], %33 {strides = array<i32>} : memref<256x512xbf16, #tpu.memory_space<vmem>>, vector<16x512xbf16>,
    %c511_i32 = arith.constant 511 : i32
    %35 = tpu.dynamic_rotate %8 by %c511_i32 dim 1 : vector<16x512xf32>, i32 -> vector<16x512xf32>
    %c5 = arith.constant 5 : index
    %c0_14 = arith.constant 0 : index
    %36 = vector.load %arg3[%c5, %c0_14] : memref<9x512xf32, #tpu.memory_space<vmem>>, vector<1x512xf32>
    %37 = vector.broadcast %36 : vector<1x512xf32> to vector<16x512xf32>
    %38 = arith.mulf %35, %37 : vector<16x512xf32>
    %39 = arith.truncf %38 : vector<16x512xf32> to vector<16x512xbf16>
    %c80 = arith.constant 80 : index
    %c0_15 = arith.constant 0 : index
    %40 = vector.load %arg7[%c80, %c0_15] : memref<256x512xbf16, #tpu.memory_space<vmem>>, vector<16x512xbf16>
    tpu.vector_store %arg7[%c80, %c0_15], %39 {strides = array<i32>} : memref<256x512xbf16, #tpu.memory_space<vmem>>, vector<16x512xbf16>,
    %c497_i32 = arith.constant 497 : i32
    %41 = tpu.dynamic_rotate %8 by %c497_i32 dim 1 : vector<16x512xf32>, i32 -> vector<16x512xf32>
    %c6 = arith.constant 6 : index
    %c0_16 = arith.constant 0 : index
    %42 = vector.load %arg3[%c6, %c0_16] : memref<9x512xf32, #tpu.memory_space<vmem>>, vector<1x512xf32>
    %43 = vector.broadcast %42 : vector<1x512xf32> to vector<16x512xf32>
    %44 = arith.mulf %41, %43 : vector<16x512xf32>
    %45 = arith.truncf %44 : vector<16x512xf32> to vector<16x512xbf16>
    %c96 = arith.constant 96 : index
    %c0_17 = arith.constant 0 : index
    %46 = vector.load %arg7[%c96, %c0_17] : memref<256x512xbf16, #tpu.memory_space<vmem>>, vector<16x512xbf16>
    tpu.vector_store %arg7[%c96, %c0_17], %45 {strides = array<i32>} : memref<256x512xbf16, #tpu.memory_space<vmem>>, vector<16x512xbf16>,
    %c496_i32 = arith.constant 496 : i32
    %47 = tpu.dynamic_rotate %8 by %c496_i32 dim 1 : vector<16x512xf32>, i32 -> vector<16x512xf32>
    %c7 = arith.constant 7 : index
    %c0_18 = arith.constant 0 : index
    %48 = vector.load %arg3[%c7, %c0_18] : memref<9x512xf32, #tpu.memory_space<vmem>>, vector<1x512xf32>
    %49 = vector.broadcast %48 : vector<1x512xf32> to vector<16x512xf32>
    %50 = arith.mulf %47, %49 : vector<16x512xf32>
    %51 = arith.truncf %50 : vector<16x512xf32> to vector<16x512xbf16>
    %c112 = arith.constant 112 : index
    %c0_19 = arith.constant 0 : index
    %52 = vector.load %arg7[%c112, %c0_19] : memref<256x512xbf16, #tpu.memory_space<vmem>>, vector<16x512xbf16>
    tpu.vector_store %arg7[%c112, %c0_19], %51 {strides = array<i32>} : memref<256x512xbf16, #tpu.memory_space<vmem>>, vector<16x512xbf16>,
    %c495_i32 = arith.constant 495 : i32
    %53 = tpu.dynamic_rotate %8 by %c495_i32 dim 1 : vector<16x512xf32>, i32 -> vector<16x512xf32>
    %c8 = arith.constant 8 : index
    %c0_20 = arith.constant 0 : index
    %54 = vector.load %arg3[%c8, %c0_20] : memref<9x512xf32, #tpu.memory_space<vmem>>, vector<1x512xf32>
    %55 = vector.broadcast %54 : vector<1x512xf32> to vector<16x512xf32>
    %56 = arith.mulf %53, %55 : vector<16x512xf32>
    %57 = arith.truncf %56 : vector<16x512xf32> to vector<16x512xbf16>
    %c128 = arith.constant 128 : index
    %c0_21 = arith.constant 0 : index
    %58 = vector.load %arg7[%c128, %c0_21] : memref<256x512xbf16, #tpu.memory_space<vmem>>, vector<16x512xbf16>
    tpu.vector_store %arg7[%c128, %c0_21], %57 {strides = array<i32>} : memref<256x512xbf16, #tpu.memory_space<vmem>>, vector<16x512xbf16>,
    %c0_22 = arith.constant 0 : index
    %c0_23 = arith.constant 0 : index
    %c0_24 = arith.constant 0 : index
    %59 = vector.load %arg2[%c0_22, %c0_23, %c0_24] : memref<12x16x256xbf16, #tpu.memory_space<vmem>>, vector<1x16x256xbf16>
    %60 = vector.shape_cast %59 : vector<1x16x256xbf16> to vector<16x256xbf16>
    %c0_25 = arith.constant 0 : index
    %c0_26 = arith.constant 0 : index
    %61 = vector.load %arg7[%c0_25, %c0_26] : memref<256x512xbf16, #tpu.memory_space<vmem>>, vector<256x512xbf16>
    %cst_27 = arith.constant dense<0.000000e+00> : vector<16x512xf32>
    %62 = tpu.matmul %60, %61, %cst_27 {dimension_numbers = #tpu.dot_dimension_numbers<[1], [0], [0], [1], [0, 0, 1, 1], [], []>} : vector<16x256xbf16>, vector<256x512xbf16>, vector<16x512xf32> -> vector<16x512xf32>
    %cst_28 = arith.constant 0.000000e+00 : f32
    %63 = vector.broadcast %cst_28 : f32 to vector<16x512xf32>
    %64 = arith.maximumf %62, %63 : vector<16x512xf32>
    %c17_i32_29 = arith.constant 17 : i32
    %65 = tpu.dynamic_rotate %64 by %c17_i32_29 dim 1 : vector<16x512xf32>, i32 -> vector<16x512xf32>
    %c0_30 = arith.constant 0 : index
    %c0_31 = arith.constant 0 : index
    %66 = vector.load %arg3[%c0_30, %c0_31] : memref<9x512xf32, #tpu.memory_space<vmem>>, vector<1x512xf32>
    %67 = vector.broadcast %66 : vector<1x512xf32> to vector<16x512xf32>
    %68 = arith.mulf %65, %67 : vector<16x512xf32>
    %69 = arith.truncf %68 : vector<16x512xf32> to vector<16x512xbf16>
    %c0_32 = arith.constant 0 : index
    %c0_33 = arith.constant 0 : index
    %70 = vector.load %arg7[%c0_32, %c0_33] : memref<256x512xbf16, #tpu.memory_space<vmem>>, vector<16x512xbf16>
    tpu.vector_store %arg7[%c0_32, %c0_33], %69 {strides = array<i32>} : memref<256x512xbf16, #tpu.memory_space<vmem>>, vector<16x512xbf16>,
    %c16_i32_34 = arith.constant 16 : i32
    %71 = tpu.dynamic_rotate %64 by %c16_i32_34 dim 1 : vector<16x512xf32>, i32 -> vector<16x512xf32>
    %c1_35 = arith.constant 1 : index
    %c0_36 = arith.constant 0 : index
    %72 = vector.load %arg3[%c1_35, %c0_36] : memref<9x512xf32, #tpu.memory_space<vmem>>, vector<1x512xf32>
    %73 = vector.broadcast %72 : vector<1x512xf32> to vector<16x512xf32>
    %74 = arith.mulf %71, %73 : vector<16x512xf32>
    %75 = arith.truncf %74 : vector<16x512xf32> to vector<16x512xbf16>
    %c16_37 = arith.constant 16 : index
    %c0_38 = arith.constant 0 : index
    %76 = vector.load %arg7[%c16_37, %c0_38] : memref<256x512xbf16, #tpu.memory_space<vmem>>, vector<16x512xbf16>
    tpu.vector_store %arg7[%c16_37, %c0_38], %75 {strides = array<i32>} : memref<256x512xbf16, #tpu.memory_space<vmem>>, vector<16x512xbf16>,
    %c15_i32_39 = arith.constant 15 : i32
    %77 = tpu.dynamic_rotate %64 by %c15_i32_39 dim 1 : vector<16x512xf32>, i32 -> vector<16x512xf32>
    %c2_40 = arith.constant 2 : index
    %c0_41 = arith.constant 0 : index
    %78 = vector.load %arg3[%c2_40, %c0_41] : memref<9x512xf32, #tpu.memory_space<vmem>>, vector<1x512xf32>
    %79 = vector.broadcast %78 : vector<1x512xf32> to vector<16x512xf32>
    %80 = arith.mulf %77, %79 : vector<16x512xf32>
    %81 = arith.truncf %80 : vector<16x512xf32> to vector<16x512xbf16>
    %c32_42 = arith.constant 32 : index
    %c0_43 = arith.constant 0 : index
    %82 = vector.load %arg7[%c32_42, %c0_43] : memref<256x512xbf16, #tpu.memory_space<vmem>>, vector<16x512xbf16>
    tpu.vector_store %arg7[%c32_42, %c0_43], %81 {strides = array<i32>} : memref<256x512xbf16, #tpu.memory_space<vmem>>, vector<16x512xbf16>,
    %c1_i32_44 = arith.constant 1 : i32
    %83 = tpu.dynamic_rotate %64 by %c1_i32_44 dim 1 : vector<16x512xf32>, i32 -> vector<16x512xf32>
    %c3_45 = arith.constant 3 : index
    %c0_46 = arith.constant 0 : index
    %84 = vector.load %arg3[%c3_45, %c0_46] : memref<9x512xf32, #tpu.memory_space<vmem>>, vector<1x512xf32>
    %85 = vector.broadcast %84 : vector<1x512xf32> to vector<16x512xf32>
    %86 = arith.mulf %83, %85 : vector<16x512xf32>
    %87 = arith.truncf %86 : vector<16x512xf32> to vector<16x512xbf16>
    %c48_47 = arith.constant 48 : index
    %c0_48 = arith.constant 0 : index
    %88 = vector.load %arg7[%c48_47, %c0_48] : memref<256x512xbf16, #tpu.memory_space<vmem>>, vector<16x512xbf16>
    tpu.vector_store %arg7[%c48_47, %c0_48], %87 {strides = array<i32>} : memref<256x512xbf16, #tpu.memory_space<vmem>>, vector<16x512xbf16>,
    %89 = arith.truncf %64 : vector<16x512xf32> to vector<16x512xbf16>
    %c64_49 = arith.constant 64 : index
    %c0_50 = arith.constant 0 : index
    %90 = vector.load %arg7[%c64_49, %c0_50] : memref<256x512xbf16, #tpu.memory_space<vmem>>, vector<16x512xbf16>
    tpu.vector_store %arg7[%c64_49, %c0_50], %89 {strides = array<i32>} : memref<256x512xbf16, #tpu.memory_space<vmem>>, vector<16x512xbf16>,
    %c511_i32_51 = arith.constant 511 : i32
    %91 = tpu.dynamic_rotate %64 by %c511_i32_51 dim 1 : vector<16x512xf32>, i32 -> vector<16x512xf32>
    %c5_52 = arith.constant 5 : index
    %c0_53 = arith.constant 0 : index
    %92 = vector.load %arg3[%c5_52, %c0_53] : memref<9x512xf32, #tpu.memory_space<vmem>>, vector<1x512xf32>
    %93 = vector.broadcast %92 : vector<1x512xf32> to vector<16x512xf32>
    %94 = arith.mulf %91, %93 : vector<16x512xf32>
    %95 = arith.truncf %94 : vector<16x512xf32> to vector<16x512xbf16>
    %c80_54 = arith.constant 80 : index
    %c0_55 = arith.constant 0 : index
    %96 = vector.load %arg7[%c80_54, %c0_55] : memref<256x512xbf16, #tpu.memory_space<vmem>>, vector<16x512xbf16>
    tpu.vector_store %arg7[%c80_54, %c0_55], %95 {strides = array<i32>} : memref<256x512xbf16, #tpu.memory_space<vmem>>, vector<16x512xbf16>,
    %c497_i32_56 = arith.constant 497 : i32
    %97 = tpu.dynamic_rotate %64 by %c497_i32_56 dim 1 : vector<16x512xf32>, i32 -> vector<16x512xf32>
    %c6_57 = arith.constant 6 : index
    %c0_58 = arith.constant 0 : index
    %98 = vector.load %arg3[%c6_57, %c0_58] : memref<9x512xf32, #tpu.memory_space<vmem>>, vector<1x512xf32>
    %99 = vector.broadcast %98 : vector<1x512xf32> to vector<16x512xf32>
    %100 = arith.mulf %97, %99 : vector<16x512xf32>
    %101 = arith.truncf %100 : vector<16x512xf32> to vector<16x512xbf16>
    %c96_59 = arith.constant 96 : index
    %c0_60 = arith.constant 0 : index
    %102 = vector.load %arg7[%c96_59, %c0_60] : memref<256x512xbf16, #tpu.memory_space<vmem>>, vector<16x512xbf16>
    tpu.vector_store %arg7[%c96_59, %c0_60], %101 {strides = array<i32>} : memref<256x512xbf16, #tpu.memory_space<vmem>>, vector<16x512xbf16>,
    %c496_i32_61 = arith.constant 496 : i32
    %103 = tpu.dynamic_rotate %64 by %c496_i32_61 dim 1 : vector<16x512xf32>, i32 -> vector<16x512xf32>
    %c7_62 = arith.constant 7 : index
    %c0_63 = arith.constant 0 : index
    %104 = vector.load %arg3[%c7_62, %c0_63] : memref<9x512xf32, #tpu.memory_space<vmem>>, vector<1x512xf32>
    %105 = vector.broadcast %104 : vector<1x512xf32> to vector<16x512xf32>
    %106 = arith.mulf %103, %105 : vector<16x512xf32>
    %107 = arith.truncf %106 : vector<16x512xf32> to vector<16x512xbf16>
    %c112_64 = arith.constant 112 : index
    %c0_65 = arith.constant 0 : index
    %108 = vector.load %arg7[%c112_64, %c0_65] : memref<256x512xbf16, #tpu.memory_space<vmem>>, vector<16x512xbf16>
    tpu.vector_store %arg7[%c112_64, %c0_65], %107 {strides = array<i32>} : memref<256x512xbf16, #tpu.memory_space<vmem>>, vector<16x512xbf16>,
    %c495_i32_66 = arith.constant 495 : i32
    %109 = tpu.dynamic_rotate %64 by %c495_i32_66 dim 1 : vector<16x512xf32>, i32 -> vector<16x512xf32>
    %c8_67 = arith.constant 8 : index
    %c0_68 = arith.constant 0 : index
    %110 = vector.load %arg3[%c8_67, %c0_68] : memref<9x512xf32, #tpu.memory_space<vmem>>, vector<1x512xf32>
    %111 = vector.broadcast %110 : vector<1x512xf32> to vector<16x512xf32>
    %112 = arith.mulf %109, %111 : vector<16x512xf32>
    %113 = arith.truncf %112 : vector<16x512xf32> to vector<16x512xbf16>
    %c128_69 = arith.constant 128 : index
    %c0_70 = arith.constant 0 : index
    %114 = vector.load %arg7[%c128_69, %c0_70] : memref<256x512xbf16, #tpu.memory_space<vmem>>, vector<16x512xbf16>
    tpu.vector_store %arg7[%c128_69, %c0_70], %113 {strides = array<i32>} : memref<256x512xbf16, #tpu.memory_space<vmem>>, vector<16x512xbf16>,
    %c1_71 = arith.constant 1 : index
    %c0_72 = arith.constant 0 : index
    %c0_73 = arith.constant 0 : index
    %115 = vector.load %arg2[%c1_71, %c0_72, %c0_73] : memref<12x16x256xbf16, #tpu.memory_space<vmem>>, vector<1x16x256xbf16>
    %116 = vector.shape_cast %115 : vector<1x16x256xbf16> to vector<16x256xbf16>
    %c0_74 = arith.constant 0 : index
    %c0_75 = arith.constant 0 : index
    %117 = vector.load %arg7[%c0_74, %c0_75] : memref<256x512xbf16, #tpu.memory_space<vmem>>, vector<256x512xbf16>
    %cst_76 = arith.constant dense<0.000000e+00> : vector<16x512xf32>
    %118 = tpu.matmul %116, %117, %cst_76 {dimension_numbers = #tpu.dot_dimension_numbers<[1], [0], [0], [1], [0, 0, 1, 1], [], []>} : vector<16x256xbf16>, vector<256x512xbf16>, vector<16x512xf32> -> vector<16x512xf32>
    %119 = arith.addf %118, %8 : vector<16x512xf32>
    %c17_i32_77 = arith.constant 17 : i32
    %120 = tpu.dynamic_rotate %119 by %c17_i32_77 dim 1 : vector<16x512xf32>, i32 -> vector<16x512xf32>
    %c0_78 = arith.constant 0 : index
    %c0_79 = arith.constant 0 : index
    %121 = vector.load %arg3[%c0_78, %c0_79] : memref<9x512xf32, #tpu.memory_space<vmem>>, vector<1x512xf32>
    %122 = vector.broadcast %121 : vector<1x512xf32> to vector<16x512xf32>
    %123 = arith.mulf %120, %122 : vector<16x512xf32>
    %124 = arith.truncf %123 : vector<16x512xf32> to vector<16x512xbf16>
    %c0_80 = arith.constant 0 : index
    %c0_81 = arith.constant 0 : index
    %125 = vector.load %arg7[%c0_80, %c0_81] : memref<256x512xbf16, #tpu.memory_space<vmem>>, vector<16x512xbf16>
    tpu.vector_store %arg7[%c0_80, %c0_81], %124 {strides = array<i32>} : memref<256x512xbf16, #tpu.memory_space<vmem>>, vector<16x512xbf16>,
    %c16_i32_82 = arith.constant 16 : i32
    %126 = tpu.dynamic_rotate %119 by %c16_i32_82 dim 1 : vector<16x512xf32>, i32 -> vector<16x512xf32>
    %c1_83 = arith.constant 1 : index
    %c0_84 = arith.constant 0 : index
    %127 = vector.load %arg3[%c1_83, %c0_84] : memref<9x512xf32, #tpu.memory_space<vmem>>, vector<1x512xf32>
    %128 = vector.broadcast %127 : vector<1x512xf32> to vector<16x512xf32>
    %129 = arith.mulf %126, %128 : vector<16x512xf32>
    %130 = arith.truncf %129 : vector<16x512xf32> to vector<16x512xbf16>
    %c16_85 = arith.constant 16 : index
    %c0_86 = arith.constant 0 : index
    %131 = vector.load %arg7[%c16_85, %c0_86] : memref<256x512xbf16, #tpu.memory_space<vmem>>, vector<16x512xbf16>
    tpu.vector_store %arg7[%c16_85, %c0_86], %130 {strides = array<i32>} : memref<256x512xbf16, #tpu.memory_space<vmem>>, vector<16x512xbf16>,
    %c15_i32_87 = arith.constant 15 : i32
    %132 = tpu.dynamic_rotate %119 by %c15_i32_87 dim 1 : vector<16x512xf32>, i32 -> vector<16x512xf32>
    %c2_88 = arith.constant 2 : index
    %c0_89 = arith.constant 0 : index
    %133 = vector.load %arg3[%c2_88, %c0_89] : memref<9x512xf32, #tpu.memory_space<vmem>>, vector<1x512xf32>
    %134 = vector.broadcast %133 : vector<1x512xf32> to vector<16x512xf32>
    %135 = arith.mulf %132, %134 : vector<16x512xf32>
    %136 = arith.truncf %135 : vector<16x512xf32> to vector<16x512xbf16>
    %c32_90 = arith.constant 32 : index
    %c0_91 = arith.constant 0 : index
    %137 = vector.load %arg7[%c32_90, %c0_91] : memref<256x512xbf16, #tpu.memory_space<vmem>>, vector<16x512xbf16>
    tpu.vector_store %arg7[%c32_90, %c0_91], %136 {strides = array<i32>} : memref<256x512xbf16, #tpu.memory_space<vmem>>, vector<16x512xbf16>,
    %c1_i32_92 = arith.constant 1 : i32
    %138 = tpu.dynamic_rotate %119 by %c1_i32_92 dim 1 : vector<16x512xf32>, i32 -> vector<16x512xf32>
    %c3_93 = arith.constant 3 : index
    %c0_94 = arith.constant 0 : index
    %139 = vector.load %arg3[%c3_93, %c0_94] : memref<9x512xf32, #tpu.memory_space<vmem>>, vector<1x512xf32>
    %140 = vector.broadcast %139 : vector<1x512xf32> to vector<16x512xf32>
    %141 = arith.mulf %138, %140 : vector<16x512xf32>
    %142 = arith.truncf %141 : vector<16x512xf32> to vector<16x512xbf16>
    %c48_95 = arith.constant 48 : index
    %c0_96 = arith.constant 0 : index
    %143 = vector.load %arg7[%c48_95, %c0_96] : memref<256x512xbf16, #tpu.memory_space<vmem>>, vector<16x512xbf16>
    tpu.vector_store %arg7[%c48_95, %c0_96], %142 {strides = array<i32>} : memref<256x512xbf16, #tpu.memory_space<vmem>>, vector<16x512xbf16>,
    %144 = arith.truncf %119 : vector<16x512xf32> to vector<16x512xbf16>
    %c64_97 = arith.constant 64 : index
    %c0_98 = arith.constant 0 : index
    %145 = vector.load %arg7[%c64_97, %c0_98] : memref<256x512xbf16, #tpu.memory_space<vmem>>, vector<16x512xbf16>
    tpu.vector_store %arg7[%c64_97, %c0_98], %144 {strides = array<i32>} : memref<256x512xbf16, #tpu.memory_space<vmem>>, vector<16x512xbf16>,
    %c511_i32_99 = arith.constant 511 : i32
    %146 = tpu.dynamic_rotate %119 by %c511_i32_99 dim 1 : vector<16x512xf32>, i32 -> vector<16x512xf32>
    %c5_100 = arith.constant 5 : index
    %c0_101 = arith.constant 0 : index
    %147 = vector.load %arg3[%c5_100, %c0_101] : memref<9x512xf32, #tpu.memory_space<vmem>>, vector<1x512xf32>
    %148 = vector.broadcast %147 : vector<1x512xf32> to vector<16x512xf32>
    %149 = arith.mulf %146, %148 : vector<16x512xf32>
    %150 = arith.truncf %149 : vector<16x512xf32> to vector<16x512xbf16>
    %c80_102 = arith.constant 80 : index
    %c0_103 = arith.constant 0 : index
    %151 = vector.load %arg7[%c80_102, %c0_103] : memref<256x512xbf16, #tpu.memory_space<vmem>>, vector<16x512xbf16>
    tpu.vector_store %arg7[%c80_102, %c0_103], %150 {strides = array<i32>} : memref<256x512xbf16, #tpu.memory_space<vmem>>, vector<16x512xbf16>,
    %c497_i32_104 = arith.constant 497 : i32
    %152 = tpu.dynamic_rotate %119 by %c497_i32_104 dim 1 : vector<16x512xf32>, i32 -> vector<16x512xf32>
    %c6_105 = arith.constant 6 : index
    %c0_106 = arith.constant 0 : index
    %153 = vector.load %arg3[%c6_105, %c0_106] : memref<9x512xf32, #tpu.memory_space<vmem>>, vector<1x512xf32>
    %154 = vector.broadcast %153 : vector<1x512xf32> to vector<16x512xf32>
    %155 = arith.mulf %152, %154 : vector<16x512xf32>
    %156 = arith.truncf %155 : vector<16x512xf32> to vector<16x512xbf16>
    %c96_107 = arith.constant 96 : index
    %c0_108 = arith.constant 0 : index
    %157 = vector.load %arg7[%c96_107, %c0_108] : memref<256x512xbf16, #tpu.memory_space<vmem>>, vector<16x512xbf16>
    tpu.vector_store %arg7[%c96_107, %c0_108], %156 {strides = array<i32>} : memref<256x512xbf16, #tpu.memory_space<vmem>>, vector<16x512xbf16>,
    %c496_i32_109 = arith.constant 496 : i32
    %158 = tpu.dynamic_rotate %119 by %c496_i32_109 dim 1 : vector<16x512xf32>, i32 -> vector<16x512xf32>
    %c7_110 = arith.constant 7 : index
    %c0_111 = arith.constant 0 : index
    %159 = vector.load %arg3[%c7_110, %c0_111] : memref<9x512xf32, #tpu.memory_space<vmem>>, vector<1x512xf32>
    %160 = vector.broadcast %159 : vector<1x512xf32> to vector<16x512xf32>
    %161 = arith.mulf %158, %160 : vector<16x512xf32>
    %162 = arith.truncf %161 : vector<16x512xf32> to vector<16x512xbf16>
    %c112_112 = arith.constant 112 : index
    %c0_113 = arith.constant 0 : index
    %163 = vector.load %arg7[%c112_112, %c0_113] : memref<256x512xbf16, #tpu.memory_space<vmem>>, vector<16x512xbf16>
    tpu.vector_store %arg7[%c112_112, %c0_113], %162 {strides = array<i32>} : memref<256x512xbf16, #tpu.memory_space<vmem>>, vector<16x512xbf16>,
    %c495_i32_114 = arith.constant 495 : i32
    %164 = tpu.dynamic_rotate %119 by %c495_i32_114 dim 1 : vector<16x512xf32>, i32 -> vector<16x512xf32>
    %c8_115 = arith.constant 8 : index
    %c0_116 = arith.constant 0 : index
    %165 = vector.load %arg3[%c8_115, %c0_116] : memref<9x512xf32, #tpu.memory_space<vmem>>, vector<1x512xf32>
    %166 = vector.broadcast %165 : vector<1x512xf32> to vector<16x512xf32>
    %167 = arith.mulf %164, %166 : vector<16x512xf32>
    %168 = arith.truncf %167 : vector<16x512xf32> to vector<16x512xbf16>
    %c128_117 = arith.constant 128 : index
    %c0_118 = arith.constant 0 : index
    %169 = vector.load %arg7[%c128_117, %c0_118] : memref<256x512xbf16, #tpu.memory_space<vmem>>, vector<16x512xbf16>
    tpu.vector_store %arg7[%c128_117, %c0_118], %168 {strides = array<i32>} : memref<256x512xbf16, #tpu.memory_space<vmem>>, vector<16x512xbf16>,
    %c2_119 = arith.constant 2 : index
    %c0_120 = arith.constant 0 : index
    %c0_121 = arith.constant 0 : index
    %170 = vector.load %arg2[%c2_119, %c0_120, %c0_121] : memref<12x16x256xbf16, #tpu.memory_space<vmem>>, vector<1x16x256xbf16>
    %171 = vector.shape_cast %170 : vector<1x16x256xbf16> to vector<16x256xbf16>
    %c0_122 = arith.constant 0 : index
    %c0_123 = arith.constant 0 : index
    %172 = vector.load %arg7[%c0_122, %c0_123] : memref<256x512xbf16, #tpu.memory_space<vmem>>, vector<256x512xbf16>
    %cst_124 = arith.constant dense<0.000000e+00> : vector<16x512xf32>
    %173 = tpu.matmul %171, %172, %cst_124 {dimension_numbers = #tpu.dot_dimension_numbers<[1], [0], [0], [1], [0, 0, 1, 1], [], []>} : vector<16x256xbf16>, vector<256x512xbf16>, vector<16x512xf32> -> vector<16x512xf32>
    %cst_125 = arith.constant 0.000000e+00 : f32
    %174 = vector.broadcast %cst_125 : f32 to vector<16x512xf32>
    %175 = arith.maximumf %173, %174 : vector<16x512xf32>
    %c17_i32_126 = arith.constant 17 : i32
    %176 = tpu.dynamic_rotate %175 by %c17_i32_126 dim 1 : vector<16x512xf32>, i32 -> vector<16x512xf32>
    %c0_127 = arith.constant 0 : index
    %c0_128 = arith.constant 0 : index
    %177 = vector.load %arg3[%c0_127, %c0_128] : memref<9x512xf32, #tpu.memory_space<vmem>>, vector<1x512xf32>
    %178 = vector.broadcast %177 : vector<1x512xf32> to vector<16x512xf32>
    %179 = arith.mulf %176, %178 : vector<16x512xf32>
    %180 = arith.truncf %179 : vector<16x512xf32> to vector<16x512xbf16>
    %c0_129 = arith.constant 0 : index
    %c0_130 = arith.constant 0 : index
    %181 = vector.load %arg7[%c0_129, %c0_130] : memref<256x512xbf16, #tpu.memory_space<vmem>>, vector<16x512xbf16>
    tpu.vector_store %arg7[%c0_129, %c0_130], %180 {strides = array<i32>} : memref<256x512xbf16, #tpu.memory_space<vmem>>, vector<16x512xbf16>,
    %c16_i32_131 = arith.constant 16 : i32
    %182 = tpu.dynamic_rotate %175 by %c16_i32_131 dim 1 : vector<16x512xf32>, i32 -> vector<16x512xf32>
    %c1_132 = arith.constant 1 : index
    %c0_133 = arith.constant 0 : index
    %183 = vector.load %arg3[%c1_132, %c0_133] : memref<9x512xf32, #tpu.memory_space<vmem>>, vector<1x512xf32>
    %184 = vector.broadcast %183 : vector<1x512xf32> to vector<16x512xf32>
    %185 = arith.mulf %182, %184 : vector<16x512xf32>
    %186 = arith.truncf %185 : vector<16x512xf32> to vector<16x512xbf16>
    %c16_134 = arith.constant 16 : index
    %c0_135 = arith.constant 0 : index
    %187 = vector.load %arg7[%c16_134, %c0_135] : memref<256x512xbf16, #tpu.memory_space<vmem>>, vector<16x512xbf16>
    tpu.vector_store %arg7[%c16_134, %c0_135], %186 {strides = array<i32>} : memref<256x512xbf16, #tpu.memory_space<vmem>>, vector<16x512xbf16>,
    %c15_i32_136 = arith.constant 15 : i32
    %188 = tpu.dynamic_rotate %175 by %c15_i32_136 dim 1 : vector<16x512xf32>, i32 -> vector<16x512xf32>
    %c2_137 = arith.constant 2 : index
    %c0_138 = arith.constant 0 : index
    %189 = vector.load %arg3[%c2_137, %c0_138] : memref<9x512xf32, #tpu.memory_space<vmem>>, vector<1x512xf32>
    %190 = vector.broadcast %189 : vector<1x512xf32> to vector<16x512xf32>
    %191 = arith.mulf %188, %190 : vector<16x512xf32>
    %192 = arith.truncf %191 : vector<16x512xf32> to vector<16x512xbf16>
    %c32_139 = arith.constant 32 : index
    %c0_140 = arith.constant 0 : index
    %193 = vector.load %arg7[%c32_139, %c0_140] : memref<256x512xbf16, #tpu.memory_space<vmem>>, vector<16x512xbf16>
    tpu.vector_store %arg7[%c32_139, %c0_140], %192 {strides = array<i32>} : memref<256x512xbf16, #tpu.memory_space<vmem>>, vector<16x512xbf16>,
    %c1_i32_141 = arith.constant 1 : i32
    %194 = tpu.dynamic_rotate %175 by %c1_i32_141 dim 1 : vector<16x512xf32>, i32 -> vector<16x512xf32>
    %c3_142 = arith.constant 3 : index
    %c0_143 = arith.constant 0 : index
    %195 = vector.load %arg3[%c3_142, %c0_143] : memref<9x512xf32, #tpu.memory_space<vmem>>, vector<1x512xf32>
    %196 = vector.broadcast %195 : vector<1x512xf32> to vector<16x512xf32>
    %197 = arith.mulf %194, %196 : vector<16x512xf32>
    %198 = arith.truncf %197 : vector<16x512xf32> to vector<16x512xbf16>
    %c48_144 = arith.constant 48 : index
    %c0_145 = arith.constant 0 : index
    %199 = vector.load %arg7[%c48_144, %c0_145] : memref<256x512xbf16, #tpu.memory_space<vmem>>, vector<16x512xbf16>
    tpu.vector_store %arg7[%c48_144, %c0_145], %198 {strides = array<i32>} : memref<256x512xbf16, #tpu.memory_space<vmem>>, vector<16x512xbf16>,
    %200 = arith.truncf %175 : vector<16x512xf32> to vector<16x512xbf16>
    %c64_146 = arith.constant 64 : index
    %c0_147 = arith.constant 0 : index
    %201 = vector.load %arg7[%c64_146, %c0_147] : memref<256x512xbf16, #tpu.memory_space<vmem>>, vector<16x512xbf16>
    tpu.vector_store %arg7[%c64_146, %c0_147], %200 {strides = array<i32>} : memref<256x512xbf16, #tpu.memory_space<vmem>>, vector<16x512xbf16>,
    %c511_i32_148 = arith.constant 511 : i32
    %202 = tpu.dynamic_rotate %175 by %c511_i32_148 dim 1 : vector<16x512xf32>, i32 -> vector<16x512xf32>
    %c5_149 = arith.constant 5 : index
    %c0_150 = arith.constant 0 : index
    %203 = vector.load %arg3[%c5_149, %c0_150] : memref<9x512xf32, #tpu.memory_space<vmem>>, vector<1x512xf32>
    %204 = vector.broadcast %203 : vector<1x512xf32> to vector<16x512xf32>
    %205 = arith.mulf %202, %204 : vector<16x512xf32>
    %206 = arith.truncf %205 : vector<16x512xf32> to vector<16x512xbf16>
    %c80_151 = arith.constant 80 : index
    %c0_152 = arith.constant 0 : index
    %207 = vector.load %arg7[%c80_151, %c0_152] : memref<256x512xbf16, #tpu.memory_space<vmem>>, vector<16x512xbf16>
    tpu.vector_store %arg7[%c80_151, %c0_152], %206 {strides = array<i32>} : memref<256x512xbf16, #tpu.memory_space<vmem>>, vector<16x512xbf16>,
    %c497_i32_153 = arith.constant 497 : i32
    %208 = tpu.dynamic_rotate %175 by %c497_i32_153 dim 1 : vector<16x512xf32>, i32 -> vector<16x512xf32>
    %c6_154 = arith.constant 6 : index
    %c0_155 = arith.constant 0 : index
    %209 = vector.load %arg3[%c6_154, %c0_155] : memref<9x512xf32, #tpu.memory_space<vmem>>, vector<1x512xf32>
    %210 = vector.broadcast %209 : vector<1x512xf32> to vector<16x512xf32>
    %211 = arith.mulf %208, %210 : vector<16x512xf32>
    %212 = arith.truncf %211 : vector<16x512xf32> to vector<16x512xbf16>
    %c96_156 = arith.constant 96 : index
    %c0_157 = arith.constant 0 : index
    %213 = vector.load %arg7[%c96_156, %c0_157] : memref<256x512xbf16, #tpu.memory_space<vmem>>, vector<16x512xbf16>
    tpu.vector_store %arg7[%c96_156, %c0_157], %212 {strides = array<i32>} : memref<256x512xbf16, #tpu.memory_space<vmem>>, vector<16x512xbf16>,
    %c496_i32_158 = arith.constant 496 : i32
    %214 = tpu.dynamic_rotate %175 by %c496_i32_158 dim 1 : vector<16x512xf32>, i32 -> vector<16x512xf32>
    %c7_159 = arith.constant 7 : index
    %c0_160 = arith.constant 0 : index
    %215 = vector.load %arg3[%c7_159, %c0_160] : memref<9x512xf32, #tpu.memory_space<vmem>>, vector<1x512xf32>
    %216 = vector.broadcast %215 : vector<1x512xf32> to vector<16x512xf32>
    %217 = arith.mulf %214, %216 : vector<16x512xf32>
    %218 = arith.truncf %217 : vector<16x512xf32> to vector<16x512xbf16>
    %c112_161 = arith.constant 112 : index
    %c0_162 = arith.constant 0 : index
    %219 = vector.load %arg7[%c112_161, %c0_162] : memref<256x512xbf16, #tpu.memory_space<vmem>>, vector<16x512xbf16>
    tpu.vector_store %arg7[%c112_161, %c0_162], %218 {strides = array<i32>} : memref<256x512xbf16, #tpu.memory_space<vmem>>, vector<16x512xbf16>,
    %c495_i32_163 = arith.constant 495 : i32
    %220 = tpu.dynamic_rotate %175 by %c495_i32_163 dim 1 : vector<16x512xf32>, i32 -> vector<16x512xf32>
    %c8_164 = arith.constant 8 : index
    %c0_165 = arith.constant 0 : index
    %221 = vector.load %arg3[%c8_164, %c0_165] : memref<9x512xf32, #tpu.memory_space<vmem>>, vector<1x512xf32>
    %222 = vector.broadcast %221 : vector<1x512xf32> to vector<16x512xf32>
    %223 = arith.mulf %220, %222 : vector<16x512xf32>
    %224 = arith.truncf %223 : vector<16x512xf32> to vector<16x512xbf16>
    %c128_166 = arith.constant 128 : index
    %c0_167 = arith.constant 0 : index
    %225 = vector.load %arg7[%c128_166, %c0_167] : memref<256x512xbf16, #tpu.memory_space<vmem>>, vector<16x512xbf16>
    tpu.vector_store %arg7[%c128_166, %c0_167], %224 {strides = array<i32>} : memref<256x512xbf16, #tpu.memory_space<vmem>>, vector<16x512xbf16>,
    %c3_168 = arith.constant 3 : index
    %c0_169 = arith.constant 0 : index
    %c0_170 = arith.constant 0 : index
    %226 = vector.load %arg2[%c3_168, %c0_169, %c0_170] : memref<12x16x256xbf16, #tpu.memory_space<vmem>>, vector<1x16x256xbf16>
    %227 = vector.shape_cast %226 : vector<1x16x256xbf16> to vector<16x256xbf16>
    %c0_171 = arith.constant 0 : index
    %c0_172 = arith.constant 0 : index
    %228 = vector.load %arg7[%c0_171, %c0_172] : memref<256x512xbf16, #tpu.memory_space<vmem>>, vector<256x512xbf16>
    %cst_173 = arith.constant dense<0.000000e+00> : vector<16x512xf32>
    %229 = tpu.matmul %227, %228, %cst_173 {dimension_numbers = #tpu.dot_dimension_numbers<[1], [0], [0], [1], [0, 0, 1, 1], [], []>} : vector<16x256xbf16>, vector<256x512xbf16>, vector<16x512xf32> -> vector<16x512xf32>
    %230 = arith.addf %229, %119 : vector<16x512xf32>
    %c17_i32_174 = arith.constant 17 : i32
    %231 = tpu.dynamic_rotate %230 by %c17_i32_174 dim 1 : vector<16x512xf32>, i32 -> vector<16x512xf32>
    %c0_175 = arith.constant 0 : index
    %c0_176 = arith.constant 0 : index
    %232 = vector.load %arg3[%c0_175, %c0_176] : memref<9x512xf32, #tpu.memory_space<vmem>>, vector<1x512xf32>
    %233 = vector.broadcast %232 : vector<1x512xf32> to vector<16x512xf32>
    %234 = arith.mulf %231, %233 : vector<16x512xf32>
    %235 = arith.truncf %234 : vector<16x512xf32> to vector<16x512xbf16>
    %c0_177 = arith.constant 0 : index
    %c0_178 = arith.constant 0 : index
    %236 = vector.load %arg7[%c0_177, %c0_178] : memref<256x512xbf16, #tpu.memory_space<vmem>>, vector<16x512xbf16>
    tpu.vector_store %arg7[%c0_177, %c0_178], %235 {strides = array<i32>} : memref<256x512xbf16, #tpu.memory_space<vmem>>, vector<16x512xbf16>,
    %c16_i32_179 = arith.constant 16 : i32
    %237 = tpu.dynamic_rotate %230 by %c16_i32_179 dim 1 : vector<16x512xf32>, i32 -> vector<16x512xf32>
    %c1_180 = arith.constant 1 : index
    %c0_181 = arith.constant 0 : index
    %238 = vector.load %arg3[%c1_180, %c0_181] : memref<9x512xf32, #tpu.memory_space<vmem>>, vector<1x512xf32>
    %239 = vector.broadcast %238 : vector<1x512xf32> to vector<16x512xf32>
    %240 = arith.mulf %237, %239 : vector<16x512xf32>
    %241 = arith.truncf %240 : vector<16x512xf32> to vector<16x512xbf16>
    %c16_182 = arith.constant 16 : index
    %c0_183 = arith.constant 0 : index
    %242 = vector.load %arg7[%c16_182, %c0_183] : memref<256x512xbf16, #tpu.memory_space<vmem>>, vector<16x512xbf16>
    tpu.vector_store %arg7[%c16_182, %c0_183], %241 {strides = array<i32>} : memref<256x512xbf16, #tpu.memory_space<vmem>>, vector<16x512xbf16>,
    %c15_i32_184 = arith.constant 15 : i32
    %243 = tpu.dynamic_rotate %230 by %c15_i32_184 dim 1 : vector<16x512xf32>, i32 -> vector<16x512xf32>
    %c2_185 = arith.constant 2 : index
    %c0_186 = arith.constant 0 : index
    %244 = vector.load %arg3[%c2_185, %c0_186] : memref<9x512xf32, #tpu.memory_space<vmem>>, vector<1x512xf32>
    %245 = vector.broadcast %244 : vector<1x512xf32> to vector<16x512xf32>
    %246 = arith.mulf %243, %245 : vector<16x512xf32>
    %247 = arith.truncf %246 : vector<16x512xf32> to vector<16x512xbf16>
    %c32_187 = arith.constant 32 : index
    %c0_188 = arith.constant 0 : index
    %248 = vector.load %arg7[%c32_187, %c0_188] : memref<256x512xbf16, #tpu.memory_space<vmem>>, vector<16x512xbf16>
    tpu.vector_store %arg7[%c32_187, %c0_188], %247 {strides = array<i32>} : memref<256x512xbf16, #tpu.memory_space<vmem>>, vector<16x512xbf16>,
    %c1_i32_189 = arith.constant 1 : i32
    %249 = tpu.dynamic_rotate %230 by %c1_i32_189 dim 1 : vector<16x512xf32>, i32 -> vector<16x512xf32>
    %c3_190 = arith.constant 3 : index
    %c0_191 = arith.constant 0 : index
    %250 = vector.load %arg3[%c3_190, %c0_191] : memref<9x512xf32, #tpu.memory_space<vmem>>, vector<1x512xf32>
    %251 = vector.broadcast %250 : vector<1x512xf32> to vector<16x512xf32>
    %252 = arith.mulf %249, %251 : vector<16x512xf32>
    %253 = arith.truncf %252 : vector<16x512xf32> to vector<16x512xbf16>
    %c48_192 = arith.constant 48 : index
    %c0_193 = arith.constant 0 : index
    %254 = vector.load %arg7[%c48_192, %c0_193] : memref<256x512xbf16, #tpu.memory_space<vmem>>, vector<16x512xbf16>
    tpu.vector_store %arg7[%c48_192, %c0_193], %253 {strides = array<i32>} : memref<256x512xbf16, #tpu.memory_space<vmem>>, vector<16x512xbf16>,
    %255 = arith.truncf %230 : vector<16x512xf32> to vector<16x512xbf16>
    %c64_194 = arith.constant 64 : index
    %c0_195 = arith.constant 0 : index
    %256 = vector.load %arg7[%c64_194, %c0_195] : memref<256x512xbf16, #tpu.memory_space<vmem>>, vector<16x512xbf16>
    tpu.vector_store %arg7[%c64_194, %c0_195], %255 {strides = array<i32>} : memref<256x512xbf16, #tpu.memory_space<vmem>>, vector<16x512xbf16>,
    %c511_i32_196 = arith.constant 511 : i32
    %257 = tpu.dynamic_rotate %230 by %c511_i32_196 dim 1 : vector<16x512xf32>, i32 -> vector<16x512xf32>
    %c5_197 = arith.constant 5 : index
    %c0_198 = arith.constant 0 : index
    %258 = vector.load %arg3[%c5_197, %c0_198] : memref<9x512xf32, #tpu.memory_space<vmem>>, vector<1x512xf32>
    %259 = vector.broadcast %258 : vector<1x512xf32> to vector<16x512xf32>
    %260 = arith.mulf %257, %259 : vector<16x512xf32>
    %261 = arith.truncf %260 : vector<16x512xf32> to vector<16x512xbf16>
    %c80_199 = arith.constant 80 : index
    %c0_200 = arith.constant 0 : index
    %262 = vector.load %arg7[%c80_199, %c0_200] : memref<256x512xbf16, #tpu.memory_space<vmem>>, vector<16x512xbf16>
    tpu.vector_store %arg7[%c80_199, %c0_200], %261 {strides = array<i32>} : memref<256x512xbf16, #tpu.memory_space<vmem>>, vector<16x512xbf16>,
    %c497_i32_201 = arith.constant 497 : i32
    %263 = tpu.dynamic_rotate %230 by %c497_i32_201 dim 1 : vector<16x512xf32>, i32 -> vector<16x512xf32>
    %c6_202 = arith.constant 6 : index
    %c0_203 = arith.constant 0 : index
    %264 = vector.load %arg3[%c6_202, %c0_203] : memref<9x512xf32, #tpu.memory_space<vmem>>, vector<1x512xf32>
    %265 = vector.broadcast %264 : vector<1x512xf32> to vector<16x512xf32>
    %266 = arith.mulf %263, %265 : vector<16x512xf32>
    %267 = arith.truncf %266 : vector<16x512xf32> to vector<16x512xbf16>
    %c96_204 = arith.constant 96 : index
    %c0_205 = arith.constant 0 : index
    %268 = vector.load %arg7[%c96_204, %c0_205] : memref<256x512xbf16, #tpu.memory_space<vmem>>, vector<16x512xbf16>
    tpu.vector_store %arg7[%c96_204, %c0_205], %267 {strides = array<i32>} : memref<256x512xbf16, #tpu.memory_space<vmem>>, vector<16x512xbf16>,
    %c496_i32_206 = arith.constant 496 : i32
    %269 = tpu.dynamic_rotate %230 by %c496_i32_206 dim 1 : vector<16x512xf32>, i32 -> vector<16x512xf32>
    %c7_207 = arith.constant 7 : index
    %c0_208 = arith.constant 0 : index
    %270 = vector.load %arg3[%c7_207, %c0_208] : memref<9x512xf32, #tpu.memory_space<vmem>>, vector<1x512xf32>
    %271 = vector.broadcast %270 : vector<1x512xf32> to vector<16x512xf32>
    %272 = arith.mulf %269, %271 : vector<16x512xf32>
    %273 = arith.truncf %272 : vector<16x512xf32> to vector<16x512xbf16>
    %c112_209 = arith.constant 112 : index
    %c0_210 = arith.constant 0 : index
    %274 = vector.load %arg7[%c112_209, %c0_210] : memref<256x512xbf16, #tpu.memory_space<vmem>>, vector<16x512xbf16>
    tpu.vector_store %arg7[%c112_209, %c0_210], %273 {strides = array<i32>} : memref<256x512xbf16, #tpu.memory_space<vmem>>, vector<16x512xbf16>,
    %c495_i32_211 = arith.constant 495 : i32
    %275 = tpu.dynamic_rotate %230 by %c495_i32_211 dim 1 : vector<16x512xf32>, i32 -> vector<16x512xf32>
    %c8_212 = arith.constant 8 : index
    %c0_213 = arith.constant 0 : index
    %276 = vector.load %arg3[%c8_212, %c0_213] : memref<9x512xf32, #tpu.memory_space<vmem>>, vector<1x512xf32>
    %277 = vector.broadcast %276 : vector<1x512xf32> to vector<16x512xf32>
    %278 = arith.mulf %275, %277 : vector<16x512xf32>
    %279 = arith.truncf %278 : vector<16x512xf32> to vector<16x512xbf16>
    %c128_214 = arith.constant 128 : index
    %c0_215 = arith.constant 0 : index
    %280 = vector.load %arg7[%c128_214, %c0_215] : memref<256x512xbf16, #tpu.memory_space<vmem>>, vector<16x512xbf16>
    tpu.vector_store %arg7[%c128_214, %c0_215], %279 {strides = array<i32>} : memref<256x512xbf16, #tpu.memory_space<vmem>>, vector<16x512xbf16>,
    %c4 = arith.constant 4 : index
    %c0_216 = arith.constant 0 : index
    %c0_217 = arith.constant 0 : index
    %281 = vector.load %arg2[%c4, %c0_216, %c0_217] : memref<12x16x256xbf16, #tpu.memory_space<vmem>>, vector<1x16x256xbf16>
    %282 = vector.shape_cast %281 : vector<1x16x256xbf16> to vector<16x256xbf16>
    %c0_218 = arith.constant 0 : index
    %c0_219 = arith.constant 0 : index
    %283 = vector.load %arg7[%c0_218, %c0_219] : memref<256x512xbf16, #tpu.memory_space<vmem>>, vector<256x512xbf16>
    %cst_220 = arith.constant dense<0.000000e+00> : vector<16x512xf32>
    %284 = tpu.matmul %282, %283, %cst_220 {dimension_numbers = #tpu.dot_dimension_numbers<[1], [0], [0], [1], [0, 0, 1, 1], [], []>} : vector<16x256xbf16>, vector<256x512xbf16>, vector<16x512xf32> -> vector<16x512xf32>
    %cst_221 = arith.constant 0.000000e+00 : f32
    %285 = vector.broadcast %cst_221 : f32 to vector<16x512xf32>
    %286 = arith.maximumf %284, %285 : vector<16x512xf32>
    %c17_i32_222 = arith.constant 17 : i32
    %287 = tpu.dynamic_rotate %286 by %c17_i32_222 dim 1 : vector<16x512xf32>, i32 -> vector<16x512xf32>
    %c0_223 = arith.constant 0 : index
    %c0_224 = arith.constant 0 : index
    %288 = vector.load %arg3[%c0_223, %c0_224] : memref<9x512xf32, #tpu.memory_space<vmem>>, vector<1x512xf32>
    %289 = vector.broadcast %288 : vector<1x512xf32> to vector<16x512xf32>
    %290 = arith.mulf %287, %289 : vector<16x512xf32>
    %291 = arith.truncf %290 : vector<16x512xf32> to vector<16x512xbf16>
    %c0_225 = arith.constant 0 : index
    %c0_226 = arith.constant 0 : index
    %292 = vector.load %arg7[%c0_225, %c0_226] : memref<256x512xbf16, #tpu.memory_space<vmem>>, vector<16x512xbf16>
    tpu.vector_store %arg7[%c0_225, %c0_226], %291 {strides = array<i32>} : memref<256x512xbf16, #tpu.memory_space<vmem>>, vector<16x512xbf16>,
    %c16_i32_227 = arith.constant 16 : i32
    %293 = tpu.dynamic_rotate %286 by %c16_i32_227 dim 1 : vector<16x512xf32>, i32 -> vector<16x512xf32>
    %c1_228 = arith.constant 1 : index
    %c0_229 = arith.constant 0 : index
    %294 = vector.load %arg3[%c1_228, %c0_229] : memref<9x512xf32, #tpu.memory_space<vmem>>, vector<1x512xf32>
    %295 = vector.broadcast %294 : vector<1x512xf32> to vector<16x512xf32>
    %296 = arith.mulf %293, %295 : vector<16x512xf32>
    %297 = arith.truncf %296 : vector<16x512xf32> to vector<16x512xbf16>
    %c16_230 = arith.constant 16 : index
    %c0_231 = arith.constant 0 : index
    %298 = vector.load %arg7[%c16_230, %c0_231] : memref<256x512xbf16, #tpu.memory_space<vmem>>, vector<16x512xbf16>
    tpu.vector_store %arg7[%c16_230, %c0_231], %297 {strides = array<i32>} : memref<256x512xbf16, #tpu.memory_space<vmem>>, vector<16x512xbf16>,
    %c15_i32_232 = arith.constant 15 : i32
    %299 = tpu.dynamic_rotate %286 by %c15_i32_232 dim 1 : vector<16x512xf32>, i32 -> vector<16x512xf32>
    %c2_233 = arith.constant 2 : index
    %c0_234 = arith.constant 0 : index
    %300 = vector.load %arg3[%c2_233, %c0_234] : memref<9x512xf32, #tpu.memory_space<vmem>>, vector<1x512xf32>
    %301 = vector.broadcast %300 : vector<1x512xf32> to vector<16x512xf32>
    %302 = arith.mulf %299, %301 : vector<16x512xf32>
    %303 = arith.truncf %302 : vector<16x512xf32> to vector<16x512xbf16>
    %c32_235 = arith.constant 32 : index
    %c0_236 = arith.constant 0 : index
    %304 = vector.load %arg7[%c32_235, %c0_236] : memref<256x512xbf16, #tpu.memory_space<vmem>>, vector<16x512xbf16>
    tpu.vector_store %arg7[%c32_235, %c0_236], %303 {strides = array<i32>} : memref<256x512xbf16, #tpu.memory_space<vmem>>, vector<16x512xbf16>,
    %c1_i32_237 = arith.constant 1 : i32
    %305 = tpu.dynamic_rotate %286 by %c1_i32_237 dim 1 : vector<16x512xf32>, i32 -> vector<16x512xf32>
    %c3_238 = arith.constant 3 : index
    %c0_239 = arith.constant 0 : index
    %306 = vector.load %arg3[%c3_238, %c0_239] : memref<9x512xf32, #tpu.memory_space<vmem>>, vector<1x512xf32>
    %307 = vector.broadcast %306 : vector<1x512xf32> to vector<16x512xf32>
    %308 = arith.mulf %305, %307 : vector<16x512xf32>
    %309 = arith.truncf %308 : vector<16x512xf32> to vector<16x512xbf16>
    %c48_240 = arith.constant 48 : index
    %c0_241 = arith.constant 0 : index
    %310 = vector.load %arg7[%c48_240, %c0_241] : memref<256x512xbf16, #tpu.memory_space<vmem>>, vector<16x512xbf16>
    tpu.vector_store %arg7[%c48_240, %c0_241], %309 {strides = array<i32>} : memref<256x512xbf16, #tpu.memory_space<vmem>>, vector<16x512xbf16>,
    %311 = arith.truncf %286 : vector<16x512xf32> to vector<16x512xbf16>
    %c64_242 = arith.constant 64 : index
    %c0_243 = arith.constant 0 : index
    %312 = vector.load %arg7[%c64_242, %c0_243] : memref<256x512xbf16, #tpu.memory_space<vmem>>, vector<16x512xbf16>
    tpu.vector_store %arg7[%c64_242, %c0_243], %311 {strides = array<i32>} : memref<256x512xbf16, #tpu.memory_space<vmem>>, vector<16x512xbf16>,
    %c511_i32_244 = arith.constant 511 : i32
    %313 = tpu.dynamic_rotate %286 by %c511_i32_244 dim 1 : vector<16x512xf32>, i32 -> vector<16x512xf32>
    %c5_245 = arith.constant 5 : index
    %c0_246 = arith.constant 0 : index
    %314 = vector.load %arg3[%c5_245, %c0_246] : memref<9x512xf32, #tpu.memory_space<vmem>>, vector<1x512xf32>
    %315 = vector.broadcast %314 : vector<1x512xf32> to vector<16x512xf32>
    %316 = arith.mulf %313, %315 : vector<16x512xf32>
    %317 = arith.truncf %316 : vector<16x512xf32> to vector<16x512xbf16>
    %c80_247 = arith.constant 80 : index
    %c0_248 = arith.constant 0 : index
    %318 = vector.load %arg7[%c80_247, %c0_248] : memref<256x512xbf16, #tpu.memory_space<vmem>>, vector<16x512xbf16>
    tpu.vector_store %arg7[%c80_247, %c0_248], %317 {strides = array<i32>} : memref<256x512xbf16, #tpu.memory_space<vmem>>, vector<16x512xbf16>,
    %c497_i32_249 = arith.constant 497 : i32
    %319 = tpu.dynamic_rotate %286 by %c497_i32_249 dim 1 : vector<16x512xf32>, i32 -> vector<16x512xf32>
    %c6_250 = arith.constant 6 : index
    %c0_251 = arith.constant 0 : index
    %320 = vector.load %arg3[%c6_250, %c0_251] : memref<9x512xf32, #tpu.memory_space<vmem>>, vector<1x512xf32>
    %321 = vector.broadcast %320 : vector<1x512xf32> to vector<16x512xf32>
    %322 = arith.mulf %319, %321 : vector<16x512xf32>
    %323 = arith.truncf %322 : vector<16x512xf32> to vector<16x512xbf16>
    %c96_252 = arith.constant 96 : index
    %c0_253 = arith.constant 0 : index
    %324 = vector.load %arg7[%c96_252, %c0_253] : memref<256x512xbf16, #tpu.memory_space<vmem>>, vector<16x512xbf16>
    tpu.vector_store %arg7[%c96_252, %c0_253], %323 {strides = array<i32>} : memref<256x512xbf16, #tpu.memory_space<vmem>>, vector<16x512xbf16>,
    %c496_i32_254 = arith.constant 496 : i32
    %325 = tpu.dynamic_rotate %286 by %c496_i32_254 dim 1 : vector<16x512xf32>, i32 -> vector<16x512xf32>
    %c7_255 = arith.constant 7 : index
    %c0_256 = arith.constant 0 : index
    %326 = vector.load %arg3[%c7_255, %c0_256] : memref<9x512xf32, #tpu.memory_space<vmem>>, vector<1x512xf32>
    %327 = vector.broadcast %326 : vector<1x512xf32> to vector<16x512xf32>
    %328 = arith.mulf %325, %327 : vector<16x512xf32>
    %329 = arith.truncf %328 : vector<16x512xf32> to vector<16x512xbf16>
    %c112_257 = arith.constant 112 : index
    %c0_258 = arith.constant 0 : index
    %330 = vector.load %arg7[%c112_257, %c0_258] : memref<256x512xbf16, #tpu.memory_space<vmem>>, vector<16x512xbf16>
    tpu.vector_store %arg7[%c112_257, %c0_258], %329 {strides = array<i32>} : memref<256x512xbf16, #tpu.memory_space<vmem>>, vector<16x512xbf16>,
    %c495_i32_259 = arith.constant 495 : i32
    %331 = tpu.dynamic_rotate %286 by %c495_i32_259 dim 1 : vector<16x512xf32>, i32 -> vector<16x512xf32>
    %c8_260 = arith.constant 8 : index
    %c0_261 = arith.constant 0 : index
    %332 = vector.load %arg3[%c8_260, %c0_261] : memref<9x512xf32, #tpu.memory_space<vmem>>, vector<1x512xf32>
    %333 = vector.broadcast %332 : vector<1x512xf32> to vector<16x512xf32>
    %334 = arith.mulf %331, %333 : vector<16x512xf32>
    %335 = arith.truncf %334 : vector<16x512xf32> to vector<16x512xbf16>
    %c128_262 = arith.constant 128 : index
    %c0_263 = arith.constant 0 : index
    %336 = vector.load %arg7[%c128_262, %c0_263] : memref<256x512xbf16, #tpu.memory_space<vmem>>, vector<16x512xbf16>
    tpu.vector_store %arg7[%c128_262, %c0_263], %335 {strides = array<i32>} : memref<256x512xbf16, #tpu.memory_space<vmem>>, vector<16x512xbf16>,
    %c5_264 = arith.constant 5 : index
    %c0_265 = arith.constant 0 : index
    %c0_266 = arith.constant 0 : index
    %337 = vector.load %arg2[%c5_264, %c0_265, %c0_266] : memref<12x16x256xbf16, #tpu.memory_space<vmem>>, vector<1x16x256xbf16>
    %338 = vector.shape_cast %337 : vector<1x16x256xbf16> to vector<16x256xbf16>
    %c0_267 = arith.constant 0 : index
    %c0_268 = arith.constant 0 : index
    %339 = vector.load %arg7[%c0_267, %c0_268] : memref<256x512xbf16, #tpu.memory_space<vmem>>, vector<256x512xbf16>
    %cst_269 = arith.constant dense<0.000000e+00> : vector<16x512xf32>
    %340 = tpu.matmul %338, %339, %cst_269 {dimension_numbers = #tpu.dot_dimension_numbers<[1], [0], [0], [1], [0, 0, 1, 1], [], []>} : vector<16x256xbf16>, vector<256x512xbf16>, vector<16x512xf32> -> vector<16x512xf32>
    %341 = arith.addf %340, %230 : vector<16x512xf32>
    %c17_i32_270 = arith.constant 17 : i32
    %342 = tpu.dynamic_rotate %8 by %c17_i32_270 dim 1 : vector<16x512xf32>, i32 -> vector<16x512xf32>
    %c0_271 = arith.constant 0 : index
    %c0_272 = arith.constant 0 : index
    %343 = vector.load %arg3[%c0_271, %c0_272] : memref<9x512xf32, #tpu.memory_space<vmem>>, vector<1x512xf32>
    %344 = vector.broadcast %343 : vector<1x512xf32> to vector<16x512xf32>
    %345 = arith.mulf %342, %344 : vector<16x512xf32>
    %346 = arith.truncf %345 : vector<16x512xf32> to vector<16x512xbf16>
    %c0_273 = arith.constant 0 : index
    %c0_274 = arith.constant 0 : index
    %347 = vector.load %arg7[%c0_273, %c0_274] : memref<256x512xbf16, #tpu.memory_space<vmem>>, vector<16x512xbf16>
    tpu.vector_store %arg7[%c0_273, %c0_274], %346 {strides = array<i32>} : memref<256x512xbf16, #tpu.memory_space<vmem>>, vector<16x512xbf16>,
    %c16_i32_275 = arith.constant 16 : i32
    %348 = tpu.dynamic_rotate %8 by %c16_i32_275 dim 1 : vector<16x512xf32>, i32 -> vector<16x512xf32>
    %c1_276 = arith.constant 1 : index
    %c0_277 = arith.constant 0 : index
    %349 = vector.load %arg3[%c1_276, %c0_277] : memref<9x512xf32, #tpu.memory_space<vmem>>, vector<1x512xf32>
    %350 = vector.broadcast %349 : vector<1x512xf32> to vector<16x512xf32>
    %351 = arith.mulf %348, %350 : vector<16x512xf32>
    %352 = arith.truncf %351 : vector<16x512xf32> to vector<16x512xbf16>
    %c16_278 = arith.constant 16 : index
    %c0_279 = arith.constant 0 : index
    %353 = vector.load %arg7[%c16_278, %c0_279] : memref<256x512xbf16, #tpu.memory_space<vmem>>, vector<16x512xbf16>
    tpu.vector_store %arg7[%c16_278, %c0_279], %352 {strides = array<i32>} : memref<256x512xbf16, #tpu.memory_space<vmem>>, vector<16x512xbf16>,
    %c15_i32_280 = arith.constant 15 : i32
    %354 = tpu.dynamic_rotate %8 by %c15_i32_280 dim 1 : vector<16x512xf32>, i32 -> vector<16x512xf32>
    %c2_281 = arith.constant 2 : index
    %c0_282 = arith.constant 0 : index
    %355 = vector.load %arg3[%c2_281, %c0_282] : memref<9x512xf32, #tpu.memory_space<vmem>>, vector<1x512xf32>
    %356 = vector.broadcast %355 : vector<1x512xf32> to vector<16x512xf32>
    %357 = arith.mulf %354, %356 : vector<16x512xf32>
    %358 = arith.truncf %357 : vector<16x512xf32> to vector<16x512xbf16>
    %c32_283 = arith.constant 32 : index
    %c0_284 = arith.constant 0 : index
    %359 = vector.load %arg7[%c32_283, %c0_284] : memref<256x512xbf16, #tpu.memory_space<vmem>>, vector<16x512xbf16>
    tpu.vector_store %arg7[%c32_283, %c0_284], %358 {strides = array<i32>} : memref<256x512xbf16, #tpu.memory_space<vmem>>, vector<16x512xbf16>,
    %c1_i32_285 = arith.constant 1 : i32
    %360 = tpu.dynamic_rotate %8 by %c1_i32_285 dim 1 : vector<16x512xf32>, i32 -> vector<16x512xf32>
    %c3_286 = arith.constant 3 : index
    %c0_287 = arith.constant 0 : index
    %361 = vector.load %arg3[%c3_286, %c0_287] : memref<9x512xf32, #tpu.memory_space<vmem>>, vector<1x512xf32>
    %362 = vector.broadcast %361 : vector<1x512xf32> to vector<16x512xf32>
    %363 = arith.mulf %360, %362 : vector<16x512xf32>
    %364 = arith.truncf %363 : vector<16x512xf32> to vector<16x512xbf16>
    %c48_288 = arith.constant 48 : index
    %c0_289 = arith.constant 0 : index
    %365 = vector.load %arg7[%c48_288, %c0_289] : memref<256x512xbf16, #tpu.memory_space<vmem>>, vector<16x512xbf16>
    tpu.vector_store %arg7[%c48_288, %c0_289], %364 {strides = array<i32>} : memref<256x512xbf16, #tpu.memory_space<vmem>>, vector<16x512xbf16>,
    %366 = arith.truncf %8 : vector<16x512xf32> to vector<16x512xbf16>
    %c64_290 = arith.constant 64 : index
    %c0_291 = arith.constant 0 : index
    %367 = vector.load %arg7[%c64_290, %c0_291] : memref<256x512xbf16, #tpu.memory_space<vmem>>, vector<16x512xbf16>
    tpu.vector_store %arg7[%c64_290, %c0_291], %366 {strides = array<i32>} : memref<256x512xbf16, #tpu.memory_space<vmem>>, vector<16x512xbf16>,
    %c511_i32_292 = arith.constant 511 : i32
    %368 = tpu.dynamic_rotate %8 by %c511_i32_292 dim 1 : vector<16x512xf32>, i32 -> vector<16x512xf32>
    %c5_293 = arith.constant 5 : index
    %c0_294 = arith.constant 0 : index
    %369 = vector.load %arg3[%c5_293, %c0_294] : memref<9x512xf32, #tpu.memory_space<vmem>>, vector<1x512xf32>
    %370 = vector.broadcast %369 : vector<1x512xf32> to vector<16x512xf32>
    %371 = arith.mulf %368, %370 : vector<16x512xf32>
    %372 = arith.truncf %371 : vector<16x512xf32> to vector<16x512xbf16>
    %c80_295 = arith.constant 80 : index
    %c0_296 = arith.constant 0 : index
    %373 = vector.load %arg7[%c80_295, %c0_296] : memref<256x512xbf16, #tpu.memory_space<vmem>>, vector<16x512xbf16>
    tpu.vector_store %arg7[%c80_295, %c0_296], %372 {strides = array<i32>} : memref<256x512xbf16, #tpu.memory_space<vmem>>, vector<16x512xbf16>,
    %c497_i32_297 = arith.constant 497 : i32
    %374 = tpu.dynamic_rotate %8 by %c497_i32_297 dim 1 : vector<16x512xf32>, i32 -> vector<16x512xf32>
    %c6_298 = arith.constant 6 : index
    %c0_299 = arith.constant 0 : index
    %375 = vector.load %arg3[%c6_298, %c0_299] : memref<9x512xf32, #tpu.memory_space<vmem>>, vector<1x512xf32>
    %376 = vector.broadcast %375 : vector<1x512xf32> to vector<16x512xf32>
    %377 = arith.mulf %374, %376 : vector<16x512xf32>
    %378 = arith.truncf %377 : vector<16x512xf32> to vector<16x512xbf16>
    %c96_300 = arith.constant 96 : index
    %c0_301 = arith.constant 0 : index
    %379 = vector.load %arg7[%c96_300, %c0_301] : memref<256x512xbf16, #tpu.memory_space<vmem>>, vector<16x512xbf16>
    tpu.vector_store %arg7[%c96_300, %c0_301], %378 {strides = array<i32>} : memref<256x512xbf16, #tpu.memory_space<vmem>>, vector<16x512xbf16>,
    %c496_i32_302 = arith.constant 496 : i32
    %380 = tpu.dynamic_rotate %8 by %c496_i32_302 dim 1 : vector<16x512xf32>, i32 -> vector<16x512xf32>
    %c7_303 = arith.constant 7 : index
    %c0_304 = arith.constant 0 : index
    %381 = vector.load %arg3[%c7_303, %c0_304] : memref<9x512xf32, #tpu.memory_space<vmem>>, vector<1x512xf32>
    %382 = vector.broadcast %381 : vector<1x512xf32> to vector<16x512xf32>
    %383 = arith.mulf %380, %382 : vector<16x512xf32>
    %384 = arith.truncf %383 : vector<16x512xf32> to vector<16x512xbf16>
    %c112_305 = arith.constant 112 : index
    %c0_306 = arith.constant 0 : index
    %385 = vector.load %arg7[%c112_305, %c0_306] : memref<256x512xbf16, #tpu.memory_space<vmem>>, vector<16x512xbf16>
    tpu.vector_store %arg7[%c112_305, %c0_306], %384 {strides = array<i32>} : memref<256x512xbf16, #tpu.memory_space<vmem>>, vector<16x512xbf16>,
    %c495_i32_307 = arith.constant 495 : i32
    %386 = tpu.dynamic_rotate %8 by %c495_i32_307 dim 1 : vector<16x512xf32>, i32 -> vector<16x512xf32>
    %c8_308 = arith.constant 8 : index
    %c0_309 = arith.constant 0 : index
    %387 = vector.load %arg3[%c8_308, %c0_309] : memref<9x512xf32, #tpu.memory_space<vmem>>, vector<1x512xf32>
    %388 = vector.broadcast %387 : vector<1x512xf32> to vector<16x512xf32>
    %389 = arith.mulf %386, %388 : vector<16x512xf32>
    %390 = arith.truncf %389 : vector<16x512xf32> to vector<16x512xbf16>
    %c128_310 = arith.constant 128 : index
    %c0_311 = arith.constant 0 : index
    %391 = vector.load %arg7[%c128_310, %c0_311] : memref<256x512xbf16, #tpu.memory_space<vmem>>, vector<16x512xbf16>
    tpu.vector_store %arg7[%c128_310, %c0_311], %390 {strides = array<i32>} : memref<256x512xbf16, #tpu.memory_space<vmem>>, vector<16x512xbf16>,
    %c6_312 = arith.constant 6 : index
    %c0_313 = arith.constant 0 : index
    %c0_314 = arith.constant 0 : index
    %392 = vector.load %arg2[%c6_312, %c0_313, %c0_314] : memref<12x16x256xbf16, #tpu.memory_space<vmem>>, vector<1x16x256xbf16>
    %393 = vector.shape_cast %392 : vector<1x16x256xbf16> to vector<16x256xbf16>
    %c0_315 = arith.constant 0 : index
    %c0_316 = arith.constant 0 : index
    %394 = vector.load %arg7[%c0_315, %c0_316] : memref<256x512xbf16, #tpu.memory_space<vmem>>, vector<256x512xbf16>
    %cst_317 = arith.constant dense<0.000000e+00> : vector<16x512xf32>
    %395 = tpu.matmul %393, %394, %cst_317 {dimension_numbers = #tpu.dot_dimension_numbers<[1], [0], [0], [1], [0, 0, 1, 1], [], []>} : vector<16x256xbf16>, vector<256x512xbf16>, vector<16x512xf32> -> vector<16x512xf32>
    %cst_318 = arith.constant 0.000000e+00 : f32
    %396 = vector.broadcast %cst_318 : f32 to vector<16x512xf32>
    %397 = arith.maximumf %395, %396 : vector<16x512xf32>
    %c17_i32_319 = arith.constant 17 : i32
    %398 = tpu.dynamic_rotate %397 by %c17_i32_319 dim 1 : vector<16x512xf32>, i32 -> vector<16x512xf32>
    %c0_320 = arith.constant 0 : index
    %c0_321 = arith.constant 0 : index
    %399 = vector.load %arg3[%c0_320, %c0_321] : memref<9x512xf32, #tpu.memory_space<vmem>>, vector<1x512xf32>
    %400 = vector.broadcast %399 : vector<1x512xf32> to vector<16x512xf32>
    %401 = arith.mulf %398, %400 : vector<16x512xf32>
    %402 = arith.truncf %401 : vector<16x512xf32> to vector<16x512xbf16>
    %c0_322 = arith.constant 0 : index
    %c0_323 = arith.constant 0 : index
    %403 = vector.load %arg7[%c0_322, %c0_323] : memref<256x512xbf16, #tpu.memory_space<vmem>>, vector<16x512xbf16>
    tpu.vector_store %arg7[%c0_322, %c0_323], %402 {strides = array<i32>} : memref<256x512xbf16, #tpu.memory_space<vmem>>, vector<16x512xbf16>,
    %c16_i32_324 = arith.constant 16 : i32
    %404 = tpu.dynamic_rotate %397 by %c16_i32_324 dim 1 : vector<16x512xf32>, i32 -> vector<16x512xf32>
    %c1_325 = arith.constant 1 : index
    %c0_326 = arith.constant 0 : index
    %405 = vector.load %arg3[%c1_325, %c0_326] : memref<9x512xf32, #tpu.memory_space<vmem>>, vector<1x512xf32>
    %406 = vector.broadcast %405 : vector<1x512xf32> to vector<16x512xf32>
    %407 = arith.mulf %404, %406 : vector<16x512xf32>
    %408 = arith.truncf %407 : vector<16x512xf32> to vector<16x512xbf16>
    %c16_327 = arith.constant 16 : index
    %c0_328 = arith.constant 0 : index
    %409 = vector.load %arg7[%c16_327, %c0_328] : memref<256x512xbf16, #tpu.memory_space<vmem>>, vector<16x512xbf16>
    tpu.vector_store %arg7[%c16_327, %c0_328], %408 {strides = array<i32>} : memref<256x512xbf16, #tpu.memory_space<vmem>>, vector<16x512xbf16>,
    %c15_i32_329 = arith.constant 15 : i32
    %410 = tpu.dynamic_rotate %397 by %c15_i32_329 dim 1 : vector<16x512xf32>, i32 -> vector<16x512xf32>
    %c2_330 = arith.constant 2 : index
    %c0_331 = arith.constant 0 : index
    %411 = vector.load %arg3[%c2_330, %c0_331] : memref<9x512xf32, #tpu.memory_space<vmem>>, vector<1x512xf32>
    %412 = vector.broadcast %411 : vector<1x512xf32> to vector<16x512xf32>
    %413 = arith.mulf %410, %412 : vector<16x512xf32>
    %414 = arith.truncf %413 : vector<16x512xf32> to vector<16x512xbf16>
    %c32_332 = arith.constant 32 : index
    %c0_333 = arith.constant 0 : index
    %415 = vector.load %arg7[%c32_332, %c0_333] : memref<256x512xbf16, #tpu.memory_space<vmem>>, vector<16x512xbf16>
    tpu.vector_store %arg7[%c32_332, %c0_333], %414 {strides = array<i32>} : memref<256x512xbf16, #tpu.memory_space<vmem>>, vector<16x512xbf16>,
    %c1_i32_334 = arith.constant 1 : i32
    %416 = tpu.dynamic_rotate %397 by %c1_i32_334 dim 1 : vector<16x512xf32>, i32 -> vector<16x512xf32>
    %c3_335 = arith.constant 3 : index
    %c0_336 = arith.constant 0 : index
    %417 = vector.load %arg3[%c3_335, %c0_336] : memref<9x512xf32, #tpu.memory_space<vmem>>, vector<1x512xf32>
    %418 = vector.broadcast %417 : vector<1x512xf32> to vector<16x512xf32>
    %419 = arith.mulf %416, %418 : vector<16x512xf32>
    %420 = arith.truncf %419 : vector<16x512xf32> to vector<16x512xbf16>
    %c48_337 = arith.constant 48 : index
    %c0_338 = arith.constant 0 : index
    %421 = vector.load %arg7[%c48_337, %c0_338] : memref<256x512xbf16, #tpu.memory_space<vmem>>, vector<16x512xbf16>
    tpu.vector_store %arg7[%c48_337, %c0_338], %420 {strides = array<i32>} : memref<256x512xbf16, #tpu.memory_space<vmem>>, vector<16x512xbf16>,
    %422 = arith.truncf %397 : vector<16x512xf32> to vector<16x512xbf16>
    %c64_339 = arith.constant 64 : index
    %c0_340 = arith.constant 0 : index
    %423 = vector.load %arg7[%c64_339, %c0_340] : memref<256x512xbf16, #tpu.memory_space<vmem>>, vector<16x512xbf16>
    tpu.vector_store %arg7[%c64_339, %c0_340], %422 {strides = array<i32>} : memref<256x512xbf16, #tpu.memory_space<vmem>>, vector<16x512xbf16>,
    %c511_i32_341 = arith.constant 511 : i32
    %424 = tpu.dynamic_rotate %397 by %c511_i32_341 dim 1 : vector<16x512xf32>, i32 -> vector<16x512xf32>
    %c5_342 = arith.constant 5 : index
    %c0_343 = arith.constant 0 : index
    %425 = vector.load %arg3[%c5_342, %c0_343] : memref<9x512xf32, #tpu.memory_space<vmem>>, vector<1x512xf32>
    %426 = vector.broadcast %425 : vector<1x512xf32> to vector<16x512xf32>
    %427 = arith.mulf %424, %426 : vector<16x512xf32>
    %428 = arith.truncf %427 : vector<16x512xf32> to vector<16x512xbf16>
    %c80_344 = arith.constant 80 : index
    %c0_345 = arith.constant 0 : index
    %429 = vector.load %arg7[%c80_344, %c0_345] : memref<256x512xbf16, #tpu.memory_space<vmem>>, vector<16x512xbf16>
    tpu.vector_store %arg7[%c80_344, %c0_345], %428 {strides = array<i32>} : memref<256x512xbf16, #tpu.memory_space<vmem>>, vector<16x512xbf16>,
    %c497_i32_346 = arith.constant 497 : i32
    %430 = tpu.dynamic_rotate %397 by %c497_i32_346 dim 1 : vector<16x512xf32>, i32 -> vector<16x512xf32>
    %c6_347 = arith.constant 6 : index
    %c0_348 = arith.constant 0 : index
    %431 = vector.load %arg3[%c6_347, %c0_348] : memref<9x512xf32, #tpu.memory_space<vmem>>, vector<1x512xf32>
    %432 = vector.broadcast %431 : vector<1x512xf32> to vector<16x512xf32>
    %433 = arith.mulf %430, %432 : vector<16x512xf32>
    %434 = arith.truncf %433 : vector<16x512xf32> to vector<16x512xbf16>
    %c96_349 = arith.constant 96 : index
    %c0_350 = arith.constant 0 : index
    %435 = vector.load %arg7[%c96_349, %c0_350] : memref<256x512xbf16, #tpu.memory_space<vmem>>, vector<16x512xbf16>
    tpu.vector_store %arg7[%c96_349, %c0_350], %434 {strides = array<i32>} : memref<256x512xbf16, #tpu.memory_space<vmem>>, vector<16x512xbf16>,
    %c496_i32_351 = arith.constant 496 : i32
    %436 = tpu.dynamic_rotate %397 by %c496_i32_351 dim 1 : vector<16x512xf32>, i32 -> vector<16x512xf32>
    %c7_352 = arith.constant 7 : index
    %c0_353 = arith.constant 0 : index
    %437 = vector.load %arg3[%c7_352, %c0_353] : memref<9x512xf32, #tpu.memory_space<vmem>>, vector<1x512xf32>
    %438 = vector.broadcast %437 : vector<1x512xf32> to vector<16x512xf32>
    %439 = arith.mulf %436, %438 : vector<16x512xf32>
    %440 = arith.truncf %439 : vector<16x512xf32> to vector<16x512xbf16>
    %c112_354 = arith.constant 112 : index
    %c0_355 = arith.constant 0 : index
    %441 = vector.load %arg7[%c112_354, %c0_355] : memref<256x512xbf16, #tpu.memory_space<vmem>>, vector<16x512xbf16>
    tpu.vector_store %arg7[%c112_354, %c0_355], %440 {strides = array<i32>} : memref<256x512xbf16, #tpu.memory_space<vmem>>, vector<16x512xbf16>,
    %c495_i32_356 = arith.constant 495 : i32
    %442 = tpu.dynamic_rotate %397 by %c495_i32_356 dim 1 : vector<16x512xf32>, i32 -> vector<16x512xf32>
    %c8_357 = arith.constant 8 : index
    %c0_358 = arith.constant 0 : index
    %443 = vector.load %arg3[%c8_357, %c0_358] : memref<9x512xf32, #tpu.memory_space<vmem>>, vector<1x512xf32>
    %444 = vector.broadcast %443 : vector<1x512xf32> to vector<16x512xf32>
    %445 = arith.mulf %442, %444 : vector<16x512xf32>
    %446 = arith.truncf %445 : vector<16x512xf32> to vector<16x512xbf16>
    %c128_359 = arith.constant 128 : index
    %c0_360 = arith.constant 0 : index
    %447 = vector.load %arg7[%c128_359, %c0_360] : memref<256x512xbf16, #tpu.memory_space<vmem>>, vector<16x512xbf16>
    tpu.vector_store %arg7[%c128_359, %c0_360], %446 {strides = array<i32>} : memref<256x512xbf16, #tpu.memory_space<vmem>>, vector<16x512xbf16>,
    %c7_361 = arith.constant 7 : index
    %c0_362 = arith.constant 0 : index
    %c0_363 = arith.constant 0 : index
    %448 = vector.load %arg2[%c7_361, %c0_362, %c0_363] : memref<12x16x256xbf16, #tpu.memory_space<vmem>>, vector<1x16x256xbf16>
    %449 = vector.shape_cast %448 : vector<1x16x256xbf16> to vector<16x256xbf16>
    %c0_364 = arith.constant 0 : index
    %c0_365 = arith.constant 0 : index
    %450 = vector.load %arg7[%c0_364, %c0_365] : memref<256x512xbf16, #tpu.memory_space<vmem>>, vector<256x512xbf16>
    %cst_366 = arith.constant dense<0.000000e+00> : vector<16x512xf32>
    %451 = tpu.matmul %449, %450, %cst_366 {dimension_numbers = #tpu.dot_dimension_numbers<[1], [0], [0], [1], [0, 0, 1, 1], [], []>} : vector<16x256xbf16>, vector<256x512xbf16>, vector<16x512xf32> -> vector<16x512xf32>
    %452 = arith.addf %451, %8 : vector<16x512xf32>
    %c17_i32_367 = arith.constant 17 : i32
    %453 = tpu.dynamic_rotate %452 by %c17_i32_367 dim 1 : vector<16x512xf32>, i32 -> vector<16x512xf32>
    %c0_368 = arith.constant 0 : index
    %c0_369 = arith.constant 0 : index
    %454 = vector.load %arg3[%c0_368, %c0_369] : memref<9x512xf32, #tpu.memory_space<vmem>>, vector<1x512xf32>
    %455 = vector.broadcast %454 : vector<1x512xf32> to vector<16x512xf32>
    %456 = arith.mulf %453, %455 : vector<16x512xf32>
    %457 = arith.truncf %456 : vector<16x512xf32> to vector<16x512xbf16>
    %c0_370 = arith.constant 0 : index
    %c0_371 = arith.constant 0 : index
    %458 = vector.load %arg7[%c0_370, %c0_371] : memref<256x512xbf16, #tpu.memory_space<vmem>>, vector<16x512xbf16>
    tpu.vector_store %arg7[%c0_370, %c0_371], %457 {strides = array<i32>} : memref<256x512xbf16, #tpu.memory_space<vmem>>, vector<16x512xbf16>,
    %c16_i32_372 = arith.constant 16 : i32
    %459 = tpu.dynamic_rotate %452 by %c16_i32_372 dim 1 : vector<16x512xf32>, i32 -> vector<16x512xf32>
    %c1_373 = arith.constant 1 : index
    %c0_374 = arith.constant 0 : index
    %460 = vector.load %arg3[%c1_373, %c0_374] : memref<9x512xf32, #tpu.memory_space<vmem>>, vector<1x512xf32>
    %461 = vector.broadcast %460 : vector<1x512xf32> to vector<16x512xf32>
    %462 = arith.mulf %459, %461 : vector<16x512xf32>
    %463 = arith.truncf %462 : vector<16x512xf32> to vector<16x512xbf16>
    %c16_375 = arith.constant 16 : index
    %c0_376 = arith.constant 0 : index
    %464 = vector.load %arg7[%c16_375, %c0_376] : memref<256x512xbf16, #tpu.memory_space<vmem>>, vector<16x512xbf16>
    tpu.vector_store %arg7[%c16_375, %c0_376], %463 {strides = array<i32>} : memref<256x512xbf16, #tpu.memory_space<vmem>>, vector<16x512xbf16>,
    %c15_i32_377 = arith.constant 15 : i32
    %465 = tpu.dynamic_rotate %452 by %c15_i32_377 dim 1 : vector<16x512xf32>, i32 -> vector<16x512xf32>
    %c2_378 = arith.constant 2 : index
    %c0_379 = arith.constant 0 : index
    %466 = vector.load %arg3[%c2_378, %c0_379] : memref<9x512xf32, #tpu.memory_space<vmem>>, vector<1x512xf32>
    %467 = vector.broadcast %466 : vector<1x512xf32> to vector<16x512xf32>
    %468 = arith.mulf %465, %467 : vector<16x512xf32>
    %469 = arith.truncf %468 : vector<16x512xf32> to vector<16x512xbf16>
    %c32_380 = arith.constant 32 : index
    %c0_381 = arith.constant 0 : index
    %470 = vector.load %arg7[%c32_380, %c0_381] : memref<256x512xbf16, #tpu.memory_space<vmem>>, vector<16x512xbf16>
    tpu.vector_store %arg7[%c32_380, %c0_381], %469 {strides = array<i32>} : memref<256x512xbf16, #tpu.memory_space<vmem>>, vector<16x512xbf16>,
    %c1_i32_382 = arith.constant 1 : i32
    %471 = tpu.dynamic_rotate %452 by %c1_i32_382 dim 1 : vector<16x512xf32>, i32 -> vector<16x512xf32>
    %c3_383 = arith.constant 3 : index
    %c0_384 = arith.constant 0 : index
    %472 = vector.load %arg3[%c3_383, %c0_384] : memref<9x512xf32, #tpu.memory_space<vmem>>, vector<1x512xf32>
    %473 = vector.broadcast %472 : vector<1x512xf32> to vector<16x512xf32>
    %474 = arith.mulf %471, %473 : vector<16x512xf32>
    %475 = arith.truncf %474 : vector<16x512xf32> to vector<16x512xbf16>
    %c48_385 = arith.constant 48 : index
    %c0_386 = arith.constant 0 : index
    %476 = vector.load %arg7[%c48_385, %c0_386] : memref<256x512xbf16, #tpu.memory_space<vmem>>, vector<16x512xbf16>
    tpu.vector_store %arg7[%c48_385, %c0_386], %475 {strides = array<i32>} : memref<256x512xbf16, #tpu.memory_space<vmem>>, vector<16x512xbf16>,
    %477 = arith.truncf %452 : vector<16x512xf32> to vector<16x512xbf16>
    %c64_387 = arith.constant 64 : index
    %c0_388 = arith.constant 0 : index
    %478 = vector.load %arg7[%c64_387, %c0_388] : memref<256x512xbf16, #tpu.memory_space<vmem>>, vector<16x512xbf16>
    tpu.vector_store %arg7[%c64_387, %c0_388], %477 {strides = array<i32>} : memref<256x512xbf16, #tpu.memory_space<vmem>>, vector<16x512xbf16>,
    %c511_i32_389 = arith.constant 511 : i32
    %479 = tpu.dynamic_rotate %452 by %c511_i32_389 dim 1 : vector<16x512xf32>, i32 -> vector<16x512xf32>
    %c5_390 = arith.constant 5 : index
    %c0_391 = arith.constant 0 : index
    %480 = vector.load %arg3[%c5_390, %c0_391] : memref<9x512xf32, #tpu.memory_space<vmem>>, vector<1x512xf32>
    %481 = vector.broadcast %480 : vector<1x512xf32> to vector<16x512xf32>
    %482 = arith.mulf %479, %481 : vector<16x512xf32>
    %483 = arith.truncf %482 : vector<16x512xf32> to vector<16x512xbf16>
    %c80_392 = arith.constant 80 : index
    %c0_393 = arith.constant 0 : index
    %484 = vector.load %arg7[%c80_392, %c0_393] : memref<256x512xbf16, #tpu.memory_space<vmem>>, vector<16x512xbf16>
    tpu.vector_store %arg7[%c80_392, %c0_393], %483 {strides = array<i32>} : memref<256x512xbf16, #tpu.memory_space<vmem>>, vector<16x512xbf16>,
    %c497_i32_394 = arith.constant 497 : i32
    %485 = tpu.dynamic_rotate %452 by %c497_i32_394 dim 1 : vector<16x512xf32>, i32 -> vector<16x512xf32>
    %c6_395 = arith.constant 6 : index
    %c0_396 = arith.constant 0 : index
    %486 = vector.load %arg3[%c6_395, %c0_396] : memref<9x512xf32, #tpu.memory_space<vmem>>, vector<1x512xf32>
    %487 = vector.broadcast %486 : vector<1x512xf32> to vector<16x512xf32>
    %488 = arith.mulf %485, %487 : vector<16x512xf32>
    %489 = arith.truncf %488 : vector<16x512xf32> to vector<16x512xbf16>
    %c96_397 = arith.constant 96 : index
    %c0_398 = arith.constant 0 : index
    %490 = vector.load %arg7[%c96_397, %c0_398] : memref<256x512xbf16, #tpu.memory_space<vmem>>, vector<16x512xbf16>
    tpu.vector_store %arg7[%c96_397, %c0_398], %489 {strides = array<i32>} : memref<256x512xbf16, #tpu.memory_space<vmem>>, vector<16x512xbf16>,
    %c496_i32_399 = arith.constant 496 : i32
    %491 = tpu.dynamic_rotate %452 by %c496_i32_399 dim 1 : vector<16x512xf32>, i32 -> vector<16x512xf32>
    %c7_400 = arith.constant 7 : index
    %c0_401 = arith.constant 0 : index
    %492 = vector.load %arg3[%c7_400, %c0_401] : memref<9x512xf32, #tpu.memory_space<vmem>>, vector<1x512xf32>
    %493 = vector.broadcast %492 : vector<1x512xf32> to vector<16x512xf32>
    %494 = arith.mulf %491, %493 : vector<16x512xf32>
    %495 = arith.truncf %494 : vector<16x512xf32> to vector<16x512xbf16>
    %c112_402 = arith.constant 112 : index
    %c0_403 = arith.constant 0 : index
    %496 = vector.load %arg7[%c112_402, %c0_403] : memref<256x512xbf16, #tpu.memory_space<vmem>>, vector<16x512xbf16>
    tpu.vector_store %arg7[%c112_402, %c0_403], %495 {strides = array<i32>} : memref<256x512xbf16, #tpu.memory_space<vmem>>, vector<16x512xbf16>,
    %c495_i32_404 = arith.constant 495 : i32
    %497 = tpu.dynamic_rotate %452 by %c495_i32_404 dim 1 : vector<16x512xf32>, i32 -> vector<16x512xf32>
    %c8_405 = arith.constant 8 : index
    %c0_406 = arith.constant 0 : index
    %498 = vector.load %arg3[%c8_405, %c0_406] : memref<9x512xf32, #tpu.memory_space<vmem>>, vector<1x512xf32>
    %499 = vector.broadcast %498 : vector<1x512xf32> to vector<16x512xf32>
    %500 = arith.mulf %497, %499 : vector<16x512xf32>
    %501 = arith.truncf %500 : vector<16x512xf32> to vector<16x512xbf16>
    %c128_407 = arith.constant 128 : index
    %c0_408 = arith.constant 0 : index
    %502 = vector.load %arg7[%c128_407, %c0_408] : memref<256x512xbf16, #tpu.memory_space<vmem>>, vector<16x512xbf16>
    tpu.vector_store %arg7[%c128_407, %c0_408], %501 {strides = array<i32>} : memref<256x512xbf16, #tpu.memory_space<vmem>>, vector<16x512xbf16>,
    %c8_409 = arith.constant 8 : index
    %c0_410 = arith.constant 0 : index
    %c0_411 = arith.constant 0 : index
    %503 = vector.load %arg2[%c8_409, %c0_410, %c0_411] : memref<12x16x256xbf16, #tpu.memory_space<vmem>>, vector<1x16x256xbf16>
    %504 = vector.shape_cast %503 : vector<1x16x256xbf16> to vector<16x256xbf16>
    %c0_412 = arith.constant 0 : index
    %c0_413 = arith.constant 0 : index
    %505 = vector.load %arg7[%c0_412, %c0_413] : memref<256x512xbf16, #tpu.memory_space<vmem>>, vector<256x512xbf16>
    %cst_414 = arith.constant dense<0.000000e+00> : vector<16x512xf32>
    %506 = tpu.matmul %504, %505, %cst_414 {dimension_numbers = #tpu.dot_dimension_numbers<[1], [0], [0], [1], [0, 0, 1, 1], [], []>} : vector<16x256xbf16>, vector<256x512xbf16>, vector<16x512xf32> -> vector<16x512xf32>
    %cst_415 = arith.constant 0.000000e+00 : f32
    %507 = vector.broadcast %cst_415 : f32 to vector<16x512xf32>
    %508 = arith.maximumf %506, %507 : vector<16x512xf32>
    %c17_i32_416 = arith.constant 17 : i32
    %509 = tpu.dynamic_rotate %508 by %c17_i32_416 dim 1 : vector<16x512xf32>, i32 -> vector<16x512xf32>
    %c0_417 = arith.constant 0 : index
    %c0_418 = arith.constant 0 : index
    %510 = vector.load %arg3[%c0_417, %c0_418] : memref<9x512xf32, #tpu.memory_space<vmem>>, vector<1x512xf32>
    %511 = vector.broadcast %510 : vector<1x512xf32> to vector<16x512xf32>
    %512 = arith.mulf %509, %511 : vector<16x512xf32>
    %513 = arith.truncf %512 : vector<16x512xf32> to vector<16x512xbf16>
    %c0_419 = arith.constant 0 : index
    %c0_420 = arith.constant 0 : index
    %514 = vector.load %arg7[%c0_419, %c0_420] : memref<256x512xbf16, #tpu.memory_space<vmem>>, vector<16x512xbf16>
    tpu.vector_store %arg7[%c0_419, %c0_420], %513 {strides = array<i32>} : memref<256x512xbf16, #tpu.memory_space<vmem>>, vector<16x512xbf16>,
    %c16_i32_421 = arith.constant 16 : i32
    %515 = tpu.dynamic_rotate %508 by %c16_i32_421 dim 1 : vector<16x512xf32>, i32 -> vector<16x512xf32>
    %c1_422 = arith.constant 1 : index
    %c0_423 = arith.constant 0 : index
    %516 = vector.load %arg3[%c1_422, %c0_423] : memref<9x512xf32, #tpu.memory_space<vmem>>, vector<1x512xf32>
    %517 = vector.broadcast %516 : vector<1x512xf32> to vector<16x512xf32>
    %518 = arith.mulf %515, %517 : vector<16x512xf32>
    %519 = arith.truncf %518 : vector<16x512xf32> to vector<16x512xbf16>
    %c16_424 = arith.constant 16 : index
    %c0_425 = arith.constant 0 : index
    %520 = vector.load %arg7[%c16_424, %c0_425] : memref<256x512xbf16, #tpu.memory_space<vmem>>, vector<16x512xbf16>
    tpu.vector_store %arg7[%c16_424, %c0_425], %519 {strides = array<i32>} : memref<256x512xbf16, #tpu.memory_space<vmem>>, vector<16x512xbf16>,
    %c15_i32_426 = arith.constant 15 : i32
    %521 = tpu.dynamic_rotate %508 by %c15_i32_426 dim 1 : vector<16x512xf32>, i32 -> vector<16x512xf32>
    %c2_427 = arith.constant 2 : index
    %c0_428 = arith.constant 0 : index
    %522 = vector.load %arg3[%c2_427, %c0_428] : memref<9x512xf32, #tpu.memory_space<vmem>>, vector<1x512xf32>
    %523 = vector.broadcast %522 : vector<1x512xf32> to vector<16x512xf32>
    %524 = arith.mulf %521, %523 : vector<16x512xf32>
    %525 = arith.truncf %524 : vector<16x512xf32> to vector<16x512xbf16>
    %c32_429 = arith.constant 32 : index
    %c0_430 = arith.constant 0 : index
    %526 = vector.load %arg7[%c32_429, %c0_430] : memref<256x512xbf16, #tpu.memory_space<vmem>>, vector<16x512xbf16>
    tpu.vector_store %arg7[%c32_429, %c0_430], %525 {strides = array<i32>} : memref<256x512xbf16, #tpu.memory_space<vmem>>, vector<16x512xbf16>,
    %c1_i32_431 = arith.constant 1 : i32
    %527 = tpu.dynamic_rotate %508 by %c1_i32_431 dim 1 : vector<16x512xf32>, i32 -> vector<16x512xf32>
    %c3_432 = arith.constant 3 : index
    %c0_433 = arith.constant 0 : index
    %528 = vector.load %arg3[%c3_432, %c0_433] : memref<9x512xf32, #tpu.memory_space<vmem>>, vector<1x512xf32>
    %529 = vector.broadcast %528 : vector<1x512xf32> to vector<16x512xf32>
    %530 = arith.mulf %527, %529 : vector<16x512xf32>
    %531 = arith.truncf %530 : vector<16x512xf32> to vector<16x512xbf16>
    %c48_434 = arith.constant 48 : index
    %c0_435 = arith.constant 0 : index
    %532 = vector.load %arg7[%c48_434, %c0_435] : memref<256x512xbf16, #tpu.memory_space<vmem>>, vector<16x512xbf16>
    tpu.vector_store %arg7[%c48_434, %c0_435], %531 {strides = array<i32>} : memref<256x512xbf16, #tpu.memory_space<vmem>>, vector<16x512xbf16>,
    %533 = arith.truncf %508 : vector<16x512xf32> to vector<16x512xbf16>
    %c64_436 = arith.constant 64 : index
    %c0_437 = arith.constant 0 : index
    %534 = vector.load %arg7[%c64_436, %c0_437] : memref<256x512xbf16, #tpu.memory_space<vmem>>, vector<16x512xbf16>
    tpu.vector_store %arg7[%c64_436, %c0_437], %533 {strides = array<i32>} : memref<256x512xbf16, #tpu.memory_space<vmem>>, vector<16x512xbf16>,
    %c511_i32_438 = arith.constant 511 : i32
    %535 = tpu.dynamic_rotate %508 by %c511_i32_438 dim 1 : vector<16x512xf32>, i32 -> vector<16x512xf32>
    %c5_439 = arith.constant 5 : index
    %c0_440 = arith.constant 0 : index
    %536 = vector.load %arg3[%c5_439, %c0_440] : memref<9x512xf32, #tpu.memory_space<vmem>>, vector<1x512xf32>
    %537 = vector.broadcast %536 : vector<1x512xf32> to vector<16x512xf32>
    %538 = arith.mulf %535, %537 : vector<16x512xf32>
    %539 = arith.truncf %538 : vector<16x512xf32> to vector<16x512xbf16>
    %c80_441 = arith.constant 80 : index
    %c0_442 = arith.constant 0 : index
    %540 = vector.load %arg7[%c80_441, %c0_442] : memref<256x512xbf16, #tpu.memory_space<vmem>>, vector<16x512xbf16>
    tpu.vector_store %arg7[%c80_441, %c0_442], %539 {strides = array<i32>} : memref<256x512xbf16, #tpu.memory_space<vmem>>, vector<16x512xbf16>,
    %c497_i32_443 = arith.constant 497 : i32
    %541 = tpu.dynamic_rotate %508 by %c497_i32_443 dim 1 : vector<16x512xf32>, i32 -> vector<16x512xf32>
    %c6_444 = arith.constant 6 : index
    %c0_445 = arith.constant 0 : index
    %542 = vector.load %arg3[%c6_444, %c0_445] : memref<9x512xf32, #tpu.memory_space<vmem>>, vector<1x512xf32>
    %543 = vector.broadcast %542 : vector<1x512xf32> to vector<16x512xf32>
    %544 = arith.mulf %541, %543 : vector<16x512xf32>
    %545 = arith.truncf %544 : vector<16x512xf32> to vector<16x512xbf16>
    %c96_446 = arith.constant 96 : index
    %c0_447 = arith.constant 0 : index
    %546 = vector.load %arg7[%c96_446, %c0_447] : memref<256x512xbf16, #tpu.memory_space<vmem>>, vector<16x512xbf16>
    tpu.vector_store %arg7[%c96_446, %c0_447], %545 {strides = array<i32>} : memref<256x512xbf16, #tpu.memory_space<vmem>>, vector<16x512xbf16>,
    %c496_i32_448 = arith.constant 496 : i32
    %547 = tpu.dynamic_rotate %508 by %c496_i32_448 dim 1 : vector<16x512xf32>, i32 -> vector<16x512xf32>
    %c7_449 = arith.constant 7 : index
    %c0_450 = arith.constant 0 : index
    %548 = vector.load %arg3[%c7_449, %c0_450] : memref<9x512xf32, #tpu.memory_space<vmem>>, vector<1x512xf32>
    %549 = vector.broadcast %548 : vector<1x512xf32> to vector<16x512xf32>
    %550 = arith.mulf %547, %549 : vector<16x512xf32>
    %551 = arith.truncf %550 : vector<16x512xf32> to vector<16x512xbf16>
    %c112_451 = arith.constant 112 : index
    %c0_452 = arith.constant 0 : index
    %552 = vector.load %arg7[%c112_451, %c0_452] : memref<256x512xbf16, #tpu.memory_space<vmem>>, vector<16x512xbf16>
    tpu.vector_store %arg7[%c112_451, %c0_452], %551 {strides = array<i32>} : memref<256x512xbf16, #tpu.memory_space<vmem>>, vector<16x512xbf16>,
    %c495_i32_453 = arith.constant 495 : i32
    %553 = tpu.dynamic_rotate %508 by %c495_i32_453 dim 1 : vector<16x512xf32>, i32 -> vector<16x512xf32>
    %c8_454 = arith.constant 8 : index
    %c0_455 = arith.constant 0 : index
    %554 = vector.load %arg3[%c8_454, %c0_455] : memref<9x512xf32, #tpu.memory_space<vmem>>, vector<1x512xf32>
    %555 = vector.broadcast %554 : vector<1x512xf32> to vector<16x512xf32>
    %556 = arith.mulf %553, %555 : vector<16x512xf32>
    %557 = arith.truncf %556 : vector<16x512xf32> to vector<16x512xbf16>
    %c128_456 = arith.constant 128 : index
    %c0_457 = arith.constant 0 : index
    %558 = vector.load %arg7[%c128_456, %c0_457] : memref<256x512xbf16, #tpu.memory_space<vmem>>, vector<16x512xbf16>
    tpu.vector_store %arg7[%c128_456, %c0_457], %557 {strides = array<i32>} : memref<256x512xbf16, #tpu.memory_space<vmem>>, vector<16x512xbf16>,
    %c9 = arith.constant 9 : index
    %c0_458 = arith.constant 0 : index
    %c0_459 = arith.constant 0 : index
    %559 = vector.load %arg2[%c9, %c0_458, %c0_459] : memref<12x16x256xbf16, #tpu.memory_space<vmem>>, vector<1x16x256xbf16>
    %560 = vector.shape_cast %559 : vector<1x16x256xbf16> to vector<16x256xbf16>
    %c0_460 = arith.constant 0 : index
    %c0_461 = arith.constant 0 : index
    %561 = vector.load %arg7[%c0_460, %c0_461] : memref<256x512xbf16, #tpu.memory_space<vmem>>, vector<256x512xbf16>
    %cst_462 = arith.constant dense<0.000000e+00> : vector<16x512xf32>
    %562 = tpu.matmul %560, %561, %cst_462 {dimension_numbers = #tpu.dot_dimension_numbers<[1], [0], [0], [1], [0, 0, 1, 1], [], []>} : vector<16x256xbf16>, vector<256x512xbf16>, vector<16x512xf32> -> vector<16x512xf32>
    %563 = arith.addf %562, %452 : vector<16x512xf32>
    %c17_i32_463 = arith.constant 17 : i32
    %564 = tpu.dynamic_rotate %563 by %c17_i32_463 dim 1 : vector<16x512xf32>, i32 -> vector<16x512xf32>
    %c0_464 = arith.constant 0 : index
    %c0_465 = arith.constant 0 : index
    %565 = vector.load %arg3[%c0_464, %c0_465] : memref<9x512xf32, #tpu.memory_space<vmem>>, vector<1x512xf32>
    %566 = vector.broadcast %565 : vector<1x512xf32> to vector<16x512xf32>
    %567 = arith.mulf %564, %566 : vector<16x512xf32>
    %568 = arith.truncf %567 : vector<16x512xf32> to vector<16x512xbf16>
    %c0_466 = arith.constant 0 : index
    %c0_467 = arith.constant 0 : index
    %569 = vector.load %arg7[%c0_466, %c0_467] : memref<256x512xbf16, #tpu.memory_space<vmem>>, vector<16x512xbf16>
    tpu.vector_store %arg7[%c0_466, %c0_467], %568 {strides = array<i32>} : memref<256x512xbf16, #tpu.memory_space<vmem>>, vector<16x512xbf16>,
    %c16_i32_468 = arith.constant 16 : i32
    %570 = tpu.dynamic_rotate %563 by %c16_i32_468 dim 1 : vector<16x512xf32>, i32 -> vector<16x512xf32>
    %c1_469 = arith.constant 1 : index
    %c0_470 = arith.constant 0 : index
    %571 = vector.load %arg3[%c1_469, %c0_470] : memref<9x512xf32, #tpu.memory_space<vmem>>, vector<1x512xf32>
    %572 = vector.broadcast %571 : vector<1x512xf32> to vector<16x512xf32>
    %573 = arith.mulf %570, %572 : vector<16x512xf32>
    %574 = arith.truncf %573 : vector<16x512xf32> to vector<16x512xbf16>
    %c16_471 = arith.constant 16 : index
    %c0_472 = arith.constant 0 : index
    %575 = vector.load %arg7[%c16_471, %c0_472] : memref<256x512xbf16, #tpu.memory_space<vmem>>, vector<16x512xbf16>
    tpu.vector_store %arg7[%c16_471, %c0_472], %574 {strides = array<i32>} : memref<256x512xbf16, #tpu.memory_space<vmem>>, vector<16x512xbf16>,
    %c15_i32_473 = arith.constant 15 : i32
    %576 = tpu.dynamic_rotate %563 by %c15_i32_473 dim 1 : vector<16x512xf32>, i32 -> vector<16x512xf32>
    %c2_474 = arith.constant 2 : index
    %c0_475 = arith.constant 0 : index
    %577 = vector.load %arg3[%c2_474, %c0_475] : memref<9x512xf32, #tpu.memory_space<vmem>>, vector<1x512xf32>
    %578 = vector.broadcast %577 : vector<1x512xf32> to vector<16x512xf32>
    %579 = arith.mulf %576, %578 : vector<16x512xf32>
    %580 = arith.truncf %579 : vector<16x512xf32> to vector<16x512xbf16>
    %c32_476 = arith.constant 32 : index
    %c0_477 = arith.constant 0 : index
    %581 = vector.load %arg7[%c32_476, %c0_477] : memref<256x512xbf16, #tpu.memory_space<vmem>>, vector<16x512xbf16>
    tpu.vector_store %arg7[%c32_476, %c0_477], %580 {strides = array<i32>} : memref<256x512xbf16, #tpu.memory_space<vmem>>, vector<16x512xbf16>,
    %c1_i32_478 = arith.constant 1 : i32
    %582 = tpu.dynamic_rotate %563 by %c1_i32_478 dim 1 : vector<16x512xf32>, i32 -> vector<16x512xf32>
    %c3_479 = arith.constant 3 : index
    %c0_480 = arith.constant 0 : index
    %583 = vector.load %arg3[%c3_479, %c0_480] : memref<9x512xf32, #tpu.memory_space<vmem>>, vector<1x512xf32>
    %584 = vector.broadcast %583 : vector<1x512xf32> to vector<16x512xf32>
    %585 = arith.mulf %582, %584 : vector<16x512xf32>
    %586 = arith.truncf %585 : vector<16x512xf32> to vector<16x512xbf16>
    %c48_481 = arith.constant 48 : index
    %c0_482 = arith.constant 0 : index
    %587 = vector.load %arg7[%c48_481, %c0_482] : memref<256x512xbf16, #tpu.memory_space<vmem>>, vector<16x512xbf16>
    tpu.vector_store %arg7[%c48_481, %c0_482], %586 {strides = array<i32>} : memref<256x512xbf16, #tpu.memory_space<vmem>>, vector<16x512xbf16>,
    %588 = arith.truncf %563 : vector<16x512xf32> to vector<16x512xbf16>
    %c64_483 = arith.constant 64 : index
    %c0_484 = arith.constant 0 : index
    %589 = vector.load %arg7[%c64_483, %c0_484] : memref<256x512xbf16, #tpu.memory_space<vmem>>, vector<16x512xbf16>
    tpu.vector_store %arg7[%c64_483, %c0_484], %588 {strides = array<i32>} : memref<256x512xbf16, #tpu.memory_space<vmem>>, vector<16x512xbf16>,
    %c511_i32_485 = arith.constant 511 : i32
    %590 = tpu.dynamic_rotate %563 by %c511_i32_485 dim 1 : vector<16x512xf32>, i32 -> vector<16x512xf32>
    %c5_486 = arith.constant 5 : index
    %c0_487 = arith.constant 0 : index
    %591 = vector.load %arg3[%c5_486, %c0_487] : memref<9x512xf32, #tpu.memory_space<vmem>>, vector<1x512xf32>
    %592 = vector.broadcast %591 : vector<1x512xf32> to vector<16x512xf32>
    %593 = arith.mulf %590, %592 : vector<16x512xf32>
    %594 = arith.truncf %593 : vector<16x512xf32> to vector<16x512xbf16>
    %c80_488 = arith.constant 80 : index
    %c0_489 = arith.constant 0 : index
    %595 = vector.load %arg7[%c80_488, %c0_489] : memref<256x512xbf16, #tpu.memory_space<vmem>>, vector<16x512xbf16>
    tpu.vector_store %arg7[%c80_488, %c0_489], %594 {strides = array<i32>} : memref<256x512xbf16, #tpu.memory_space<vmem>>, vector<16x512xbf16>,
    %c497_i32_490 = arith.constant 497 : i32
    %596 = tpu.dynamic_rotate %563 by %c497_i32_490 dim 1 : vector<16x512xf32>, i32 -> vector<16x512xf32>
    %c6_491 = arith.constant 6 : index
    %c0_492 = arith.constant 0 : index
    %597 = vector.load %arg3[%c6_491, %c0_492] : memref<9x512xf32, #tpu.memory_space<vmem>>, vector<1x512xf32>
    %598 = vector.broadcast %597 : vector<1x512xf32> to vector<16x512xf32>
    %599 = arith.mulf %596, %598 : vector<16x512xf32>
    %600 = arith.truncf %599 : vector<16x512xf32> to vector<16x512xbf16>
    %c96_493 = arith.constant 96 : index
    %c0_494 = arith.constant 0 : index
    %601 = vector.load %arg7[%c96_493, %c0_494] : memref<256x512xbf16, #tpu.memory_space<vmem>>, vector<16x512xbf16>
    tpu.vector_store %arg7[%c96_493, %c0_494], %600 {strides = array<i32>} : memref<256x512xbf16, #tpu.memory_space<vmem>>, vector<16x512xbf16>,
    %c496_i32_495 = arith.constant 496 : i32
    %602 = tpu.dynamic_rotate %563 by %c496_i32_495 dim 1 : vector<16x512xf32>, i32 -> vector<16x512xf32>
    %c7_496 = arith.constant 7 : index
    %c0_497 = arith.constant 0 : index
    %603 = vector.load %arg3[%c7_496, %c0_497] : memref<9x512xf32, #tpu.memory_space<vmem>>, vector<1x512xf32>
    %604 = vector.broadcast %603 : vector<1x512xf32> to vector<16x512xf32>
    %605 = arith.mulf %602, %604 : vector<16x512xf32>
    %606 = arith.truncf %605 : vector<16x512xf32> to vector<16x512xbf16>
    %c112_498 = arith.constant 112 : index
    %c0_499 = arith.constant 0 : index
    %607 = vector.load %arg7[%c112_498, %c0_499] : memref<256x512xbf16, #tpu.memory_space<vmem>>, vector<16x512xbf16>
    tpu.vector_store %arg7[%c112_498, %c0_499], %606 {strides = array<i32>} : memref<256x512xbf16, #tpu.memory_space<vmem>>, vector<16x512xbf16>,
    %c495_i32_500 = arith.constant 495 : i32
    %608 = tpu.dynamic_rotate %563 by %c495_i32_500 dim 1 : vector<16x512xf32>, i32 -> vector<16x512xf32>
    %c8_501 = arith.constant 8 : index
    %c0_502 = arith.constant 0 : index
    %609 = vector.load %arg3[%c8_501, %c0_502] : memref<9x512xf32, #tpu.memory_space<vmem>>, vector<1x512xf32>
    %610 = vector.broadcast %609 : vector<1x512xf32> to vector<16x512xf32>
    %611 = arith.mulf %608, %610 : vector<16x512xf32>
    %612 = arith.truncf %611 : vector<16x512xf32> to vector<16x512xbf16>
    %c128_503 = arith.constant 128 : index
    %c0_504 = arith.constant 0 : index
    %613 = vector.load %arg7[%c128_503, %c0_504] : memref<256x512xbf16, #tpu.memory_space<vmem>>, vector<16x512xbf16>
    tpu.vector_store %arg7[%c128_503, %c0_504], %612 {strides = array<i32>} : memref<256x512xbf16, #tpu.memory_space<vmem>>, vector<16x512xbf16>,
    %c10 = arith.constant 10 : index
    %c0_505 = arith.constant 0 : index
    %c0_506 = arith.constant 0 : index
    %614 = vector.load %arg2[%c10, %c0_505, %c0_506] : memref<12x16x256xbf16, #tpu.memory_space<vmem>>, vector<1x16x256xbf16>
    %615 = vector.shape_cast %614 : vector<1x16x256xbf16> to vector<16x256xbf16>
    %c0_507 = arith.constant 0 : index
    %c0_508 = arith.constant 0 : index
    %616 = vector.load %arg7[%c0_507, %c0_508] : memref<256x512xbf16, #tpu.memory_space<vmem>>, vector<256x512xbf16>
    %cst_509 = arith.constant dense<0.000000e+00> : vector<16x512xf32>
    %617 = tpu.matmul %615, %616, %cst_509 {dimension_numbers = #tpu.dot_dimension_numbers<[1], [0], [0], [1], [0, 0, 1, 1], [], []>} : vector<16x256xbf16>, vector<256x512xbf16>, vector<16x512xf32> -> vector<16x512xf32>
    %cst_510 = arith.constant 0.000000e+00 : f32
    %618 = vector.broadcast %cst_510 : f32 to vector<16x512xf32>
    %619 = arith.maximumf %617, %618 : vector<16x512xf32>
    %c17_i32_511 = arith.constant 17 : i32
    %620 = tpu.dynamic_rotate %619 by %c17_i32_511 dim 1 : vector<16x512xf32>, i32 -> vector<16x512xf32>
    %c0_512 = arith.constant 0 : index
    %c0_513 = arith.constant 0 : index
    %621 = vector.load %arg3[%c0_512, %c0_513] : memref<9x512xf32, #tpu.memory_space<vmem>>, vector<1x512xf32>
    %622 = vector.broadcast %621 : vector<1x512xf32> to vector<16x512xf32>
    %623 = arith.mulf %620, %622 : vector<16x512xf32>
    %624 = arith.truncf %623 : vector<16x512xf32> to vector<16x512xbf16>
    %c0_514 = arith.constant 0 : index
    %c0_515 = arith.constant 0 : index
    %625 = vector.load %arg7[%c0_514, %c0_515] : memref<256x512xbf16, #tpu.memory_space<vmem>>, vector<16x512xbf16>
    tpu.vector_store %arg7[%c0_514, %c0_515], %624 {strides = array<i32>} : memref<256x512xbf16, #tpu.memory_space<vmem>>, vector<16x512xbf16>,
    %c16_i32_516 = arith.constant 16 : i32
    %626 = tpu.dynamic_rotate %619 by %c16_i32_516 dim 1 : vector<16x512xf32>, i32 -> vector<16x512xf32>
    %c1_517 = arith.constant 1 : index
    %c0_518 = arith.constant 0 : index
    %627 = vector.load %arg3[%c1_517, %c0_518] : memref<9x512xf32, #tpu.memory_space<vmem>>, vector<1x512xf32>
    %628 = vector.broadcast %627 : vector<1x512xf32> to vector<16x512xf32>
    %629 = arith.mulf %626, %628 : vector<16x512xf32>
    %630 = arith.truncf %629 : vector<16x512xf32> to vector<16x512xbf16>
    %c16_519 = arith.constant 16 : index
    %c0_520 = arith.constant 0 : index
    %631 = vector.load %arg7[%c16_519, %c0_520] : memref<256x512xbf16, #tpu.memory_space<vmem>>, vector<16x512xbf16>
    tpu.vector_store %arg7[%c16_519, %c0_520], %630 {strides = array<i32>} : memref<256x512xbf16, #tpu.memory_space<vmem>>, vector<16x512xbf16>,
    %c15_i32_521 = arith.constant 15 : i32
    %632 = tpu.dynamic_rotate %619 by %c15_i32_521 dim 1 : vector<16x512xf32>, i32 -> vector<16x512xf32>
    %c2_522 = arith.constant 2 : index
    %c0_523 = arith.constant 0 : index
    %633 = vector.load %arg3[%c2_522, %c0_523] : memref<9x512xf32, #tpu.memory_space<vmem>>, vector<1x512xf32>
    %634 = vector.broadcast %633 : vector<1x512xf32> to vector<16x512xf32>
    %635 = arith.mulf %632, %634 : vector<16x512xf32>
    %636 = arith.truncf %635 : vector<16x512xf32> to vector<16x512xbf16>
    %c32_524 = arith.constant 32 : index
    %c0_525 = arith.constant 0 : index
    %637 = vector.load %arg7[%c32_524, %c0_525] : memref<256x512xbf16, #tpu.memory_space<vmem>>, vector<16x512xbf16>
    tpu.vector_store %arg7[%c32_524, %c0_525], %636 {strides = array<i32>} : memref<256x512xbf16, #tpu.memory_space<vmem>>, vector<16x512xbf16>,
    %c1_i32_526 = arith.constant 1 : i32
    %638 = tpu.dynamic_rotate %619 by %c1_i32_526 dim 1 : vector<16x512xf32>, i32 -> vector<16x512xf32>
    %c3_527 = arith.constant 3 : index
    %c0_528 = arith.constant 0 : index
    %639 = vector.load %arg3[%c3_527, %c0_528] : memref<9x512xf32, #tpu.memory_space<vmem>>, vector<1x512xf32>
    %640 = vector.broadcast %639 : vector<1x512xf32> to vector<16x512xf32>
    %641 = arith.mulf %638, %640 : vector<16x512xf32>
    %642 = arith.truncf %641 : vector<16x512xf32> to vector<16x512xbf16>
    %c48_529 = arith.constant 48 : index
    %c0_530 = arith.constant 0 : index
    %643 = vector.load %arg7[%c48_529, %c0_530] : memref<256x512xbf16, #tpu.memory_space<vmem>>, vector<16x512xbf16>
    tpu.vector_store %arg7[%c48_529, %c0_530], %642 {strides = array<i32>} : memref<256x512xbf16, #tpu.memory_space<vmem>>, vector<16x512xbf16>,
    %644 = arith.truncf %619 : vector<16x512xf32> to vector<16x512xbf16>
    %c64_531 = arith.constant 64 : index
    %c0_532 = arith.constant 0 : index
    %645 = vector.load %arg7[%c64_531, %c0_532] : memref<256x512xbf16, #tpu.memory_space<vmem>>, vector<16x512xbf16>
    tpu.vector_store %arg7[%c64_531, %c0_532], %644 {strides = array<i32>} : memref<256x512xbf16, #tpu.memory_space<vmem>>, vector<16x512xbf16>,
    %c511_i32_533 = arith.constant 511 : i32
    %646 = tpu.dynamic_rotate %619 by %c511_i32_533 dim 1 : vector<16x512xf32>, i32 -> vector<16x512xf32>
    %c5_534 = arith.constant 5 : index
    %c0_535 = arith.constant 0 : index
    %647 = vector.load %arg3[%c5_534, %c0_535] : memref<9x512xf32, #tpu.memory_space<vmem>>, vector<1x512xf32>
    %648 = vector.broadcast %647 : vector<1x512xf32> to vector<16x512xf32>
    %649 = arith.mulf %646, %648 : vector<16x512xf32>
    %650 = arith.truncf %649 : vector<16x512xf32> to vector<16x512xbf16>
    %c80_536 = arith.constant 80 : index
    %c0_537 = arith.constant 0 : index
    %651 = vector.load %arg7[%c80_536, %c0_537] : memref<256x512xbf16, #tpu.memory_space<vmem>>, vector<16x512xbf16>
    tpu.vector_store %arg7[%c80_536, %c0_537], %650 {strides = array<i32>} : memref<256x512xbf16, #tpu.memory_space<vmem>>, vector<16x512xbf16>,
    %c497_i32_538 = arith.constant 497 : i32
    %652 = tpu.dynamic_rotate %619 by %c497_i32_538 dim 1 : vector<16x512xf32>, i32 -> vector<16x512xf32>
    %c6_539 = arith.constant 6 : index
    %c0_540 = arith.constant 0 : index
    %653 = vector.load %arg3[%c6_539, %c0_540] : memref<9x512xf32, #tpu.memory_space<vmem>>, vector<1x512xf32>
    %654 = vector.broadcast %653 : vector<1x512xf32> to vector<16x512xf32>
    %655 = arith.mulf %652, %654 : vector<16x512xf32>
    %656 = arith.truncf %655 : vector<16x512xf32> to vector<16x512xbf16>
    %c96_541 = arith.constant 96 : index
    %c0_542 = arith.constant 0 : index
    %657 = vector.load %arg7[%c96_541, %c0_542] : memref<256x512xbf16, #tpu.memory_space<vmem>>, vector<16x512xbf16>
    tpu.vector_store %arg7[%c96_541, %c0_542], %656 {strides = array<i32>} : memref<256x512xbf16, #tpu.memory_space<vmem>>, vector<16x512xbf16>,
    %c496_i32_543 = arith.constant 496 : i32
    %658 = tpu.dynamic_rotate %619 by %c496_i32_543 dim 1 : vector<16x512xf32>, i32 -> vector<16x512xf32>
    %c7_544 = arith.constant 7 : index
    %c0_545 = arith.constant 0 : index
    %659 = vector.load %arg3[%c7_544, %c0_545] : memref<9x512xf32, #tpu.memory_space<vmem>>, vector<1x512xf32>
    %660 = vector.broadcast %659 : vector<1x512xf32> to vector<16x512xf32>
    %661 = arith.mulf %658, %660 : vector<16x512xf32>
    %662 = arith.truncf %661 : vector<16x512xf32> to vector<16x512xbf16>
    %c112_546 = arith.constant 112 : index
    %c0_547 = arith.constant 0 : index
    %663 = vector.load %arg7[%c112_546, %c0_547] : memref<256x512xbf16, #tpu.memory_space<vmem>>, vector<16x512xbf16>
    tpu.vector_store %arg7[%c112_546, %c0_547], %662 {strides = array<i32>} : memref<256x512xbf16, #tpu.memory_space<vmem>>, vector<16x512xbf16>,
    %c495_i32_548 = arith.constant 495 : i32
    %664 = tpu.dynamic_rotate %619 by %c495_i32_548 dim 1 : vector<16x512xf32>, i32 -> vector<16x512xf32>
    %c8_549 = arith.constant 8 : index
    %c0_550 = arith.constant 0 : index
    %665 = vector.load %arg3[%c8_549, %c0_550] : memref<9x512xf32, #tpu.memory_space<vmem>>, vector<1x512xf32>
    %666 = vector.broadcast %665 : vector<1x512xf32> to vector<16x512xf32>
    %667 = arith.mulf %664, %666 : vector<16x512xf32>
    %668 = arith.truncf %667 : vector<16x512xf32> to vector<16x512xbf16>
    %c128_551 = arith.constant 128 : index
    %c0_552 = arith.constant 0 : index
    %669 = vector.load %arg7[%c128_551, %c0_552] : memref<256x512xbf16, #tpu.memory_space<vmem>>, vector<16x512xbf16>
    tpu.vector_store %arg7[%c128_551, %c0_552], %668 {strides = array<i32>} : memref<256x512xbf16, #tpu.memory_space<vmem>>, vector<16x512xbf16>,
    %c11 = arith.constant 11 : index
    %c0_553 = arith.constant 0 : index
    %c0_554 = arith.constant 0 : index
    %670 = vector.load %arg2[%c11, %c0_553, %c0_554] : memref<12x16x256xbf16, #tpu.memory_space<vmem>>, vector<1x16x256xbf16>
    %671 = vector.shape_cast %670 : vector<1x16x256xbf16> to vector<16x256xbf16>
    %c0_555 = arith.constant 0 : index
    %c0_556 = arith.constant 0 : index
    %672 = vector.load %arg7[%c0_555, %c0_556] : memref<256x512xbf16, #tpu.memory_space<vmem>>, vector<256x512xbf16>
    %cst_557 = arith.constant dense<0.000000e+00> : vector<16x512xf32>
    %673 = tpu.matmul %671, %672, %cst_557 {dimension_numbers = #tpu.dot_dimension_numbers<[1], [0], [0], [1], [0, 0, 1, 1], [], []>} : vector<16x256xbf16>, vector<256x512xbf16>, vector<16x512xf32> -> vector<16x512xf32>
    %674 = arith.addf %673, %563 : vector<16x512xf32>
    %c0_558 = arith.constant 0 : index
    %c0_559 = arith.constant 0 : index
    %675 = vector.load %arg4[%c0_558, %c0_559] : memref<16x16xbf16, #tpu.memory_space<vmem>>, vector<16x16xbf16>
    %676 = arith.truncf %674 : vector<16x512xf32> to vector<16x512xbf16>
    %cst_560 = arith.constant dense<0.000000e+00> : vector<16x512xf32>
    %677 = tpu.matmul %675, %676, %cst_560 {dimension_numbers = #tpu.dot_dimension_numbers<[1], [0], [0], [1], [0, 0, 1, 1], [], []>} : vector<16x16xbf16>, vector<16x512xbf16>, vector<16x512xf32> -> vector<16x512xf32>
    %c0_561 = arith.constant 0 : index
    %c0_562 = arith.constant 0 : index
    %678 = vector.load %arg5[%c0_561, %c0_562] : memref<16x1xf32, #tpu.memory_space<vmem>>, vector<16x1xf32>
    %679 = vector.broadcast %678 : vector<16x1xf32> to vector<16x512xf32>
    %680 = arith.addf %677, %679 : vector<16x512xf32>
    %681 = arith.negf %680 : vector<16x512xf32>
    %682 = math.exp %681 : vector<16x512xf32>
    %cst_563 = arith.constant 1.000000e+00 : f32
    %683 = vector.broadcast %cst_563 : f32 to vector<16x512xf32>
    %684 = arith.addf %683, %682 : vector<16x512xf32>
    %685 = arith.divf %683, %684 : vector<16x512xf32>
    %686 = arith.mulf %341, %685 : vector<16x512xf32>
    %687 = arith.addf %8, %686 : vector<16x512xf32>
    %c0_564 = arith.constant 0 : index
    %c0_565 = arith.constant 0 : index
    %688 = vector.load %arg6[%c0_564, %c0_565] : memref<16x512xf32, #tpu.memory_space<vmem>>, vector<16x512xf32>
    tpu.vector_store %arg6[%c0_564, %c0_565], %687 {strides = array<i32>} : memref<16x512xf32, #tpu.memory_space<vmem>>, vector<16x512xf32>,
    return
  }
  func.func @transform_0(%arg0: i32) -> (i32, i32) {
    %c0_i32 = arith.constant 0 : i32
    %c0_i32_0 = arith.constant 0 : i32
    %c0_i32_1 = arith.constant 0 : i32
    return %c0_i32, %c0_i32_0 : i32, i32
  }
  func.func @transform_1(%arg0: i32) -> (i32, i32, i32) {
    %c0_i32 = arith.constant 0 : i32
    %c0_i32_0 = arith.constant 0 : i32
    %c0_i32_1 = arith.constant 0 : i32
    %c0_i32_2 = arith.constant 0 : i32
    return %c0_i32, %c0_i32_0, %c0_i32_1 : i32, i32, i32
  }
  func.func @transform_2(%arg0: i32) -> (i32, i32) {
    %c0_i32 = arith.constant 0 : i32
    %c0_i32_0 = arith.constant 0 : i32
    %c0_i32_1 = arith.constant 0 : i32
    return %c0_i32, %c0_i32_0 : i32, i32
  }
  func.func @transform_3(%arg0: i32) -> (i32, i32) {
    %c0_i32 = arith.constant 0 : i32
    %c0_i32_0 = arith.constant 0 : i32
    %c0_i32_1 = arith.constant 0 : i32
    return %c0_i32, %c0_i32_0 : i32, i32
  }
  func.func @transform_4(%arg0: i32) -> (i32, i32) {
    %c0_i32 = arith.constant 0 : i32
    %c0_i32_0 = arith.constant 0 : i32
    %c0_i32_1 = arith.constant 0 : i32
    return %c0_i32, %c0_i32_0 : i32, i32
  }
  func.func @transform_5(%arg0: i32) -> (i32, i32) {
    %c0_i32 = arith.constant 0 : i32
    %c0_i32_0 = arith.constant 0 : i32
    %c0_i32_1 = arith.constant 0 : i32
    return %c0_i32, %c0_i32_0 : i32, i32
  }
}

</mosaic_0001>

<bundles_post_ra>
// kernel: tpu_custom_call.1
= control target key start
LH: loop header
LB: loop body
LE: loop exit
PB: predicated region body
PF: predicated region fallthrough
CT: control target
= control target key end

     0   :  { %10 = vsyncpa [#allocation4], 0  ;;  %s13889_s0 = inlined_call_operand.hbm [shape: f32[16,512], index: 0, kind: input, shape index: {}]   ;;  %s13890_s1 = inlined_call_operand.hbm [shape: bf16[12,16,256], index: 1, kind: input, shape index: {}]   ;;  %s13891_s2 = inlined_call_operand.hbm [shape: f32[9,512], index: 2, kind: input, shape index: {}]   ;;  %s13892_s3 = inlined_call_operand.vmem [shape: bf16[16,16], index: 3, kind: input, shape index: {}]   ;;  %s13893_s4 = inlined_call_operand.vmem [shape: f32[16,1], index: 4, kind: input, shape index: {}]   ;;  %s13894_s5 = inlined_call_operand.hbm [shape: f32[16,512], index: 5, kind: output, shape index: {}]  }
   0x1   :  { %11 = vsyncpa [#allocation7], 0 }
   0x2   :  { %12 = vsyncpa [#allocation5], 0  ;;  %s8612_s18 = smov [#allocation6]   ;;  %s8518_s22 = scalar_lea.hbm %s13890_s1, 3072 }
   0x3   :  { %s30_s19 = sshll.u32 %s8612_s18, 4  ;;  %p8519_p0 = scmp.ne.s32.totalorder %s13890_s1, %s8518_s22  ;;  %s31_s19 = int_to_ptr.vmem [resolvable:$true] %s30_s19 }
   0x4   :  { %p8522_p1 = scmp.lt.u32.totalorder %s8518_s22, %s13890_s1 }
   0x6   :  { %p8524_p2 = pnand %p8522_p1, %p8519_p0 }
   0x8   :  { %8527 = shalt.err (!%p8524_p2)
}
   0x9   :  { %s8528_s27 = scalar_lea.vmem %s31_s19, 3072  ;;  %p8533_p4 = scmp.lt.s32.totalorder %s31_s19, %s31_s19 }
   0xa   :  { %p8529_p3 = scmp.ne.s32.totalorder %s31_s19, %s8528_s27  ;;  %p8534_p5 = scmp.lt.s32.totalorder %s8528_s27, %s8528_s27 }
   0xc   :  { %p8535_p6 = por %p8534_p5, %p8533_p4 }
   0xe   :  { %p8536_p7 = pnand %p8535_p6, %p8529_p3 }
  0x10   :  { %8539 = shalt.err (!%p8536_p7)
}
  0x11   :  { %s8613_s28 = smov 128   ;;  %s8614_s29 = smov 8  }
  0x12   :  { %36 = dma.hbm_to_vmem [thread:$0]  %s13890_s1, 3072, %s31_s19, [#allocation7], %s8613_s28, %s8613_s28, %s8614_s29  }
  0x13   :  { %s8615_s7 = smov [#allocation3]   ;;  %s8540_s11 = scalar_lea.hbm %s13889_s0, 1024 }
  0x14   :  { %s18_s8 = sshll.u32 %s8615_s7, 4  ;;  %p8541_p8 = scmp.ne.s32.totalorder %s13889_s0, %s8540_s11  ;;  %s19_s8 = int_to_ptr.vmem [resolvable:$true] %s18_s8 }
  0x15   :  { %p8544_p9 = scmp.lt.u32.totalorder %s8540_s11, %s13889_s0 }
  0x17   :  { %p8546_p10 = pnand %p8544_p9, %p8541_p8 }
  0x19   :  { %8549 = shalt.err (!%p8546_p10)
}
  0x1a   :  { %s8550_s16 = scalar_lea.vmem %s19_s8, 1024  ;;  %p8555_p12 = scmp.lt.s32.totalorder %s19_s8, %s19_s8 }
  0x1b   :  { %p8551_p11 = scmp.ne.s32.totalorder %s19_s8, %s8550_s16  ;;  %p8556_p13 = scmp.lt.s32.totalorder %s8550_s16, %s8550_s16 }
  0x1d   :  { %p8557_p0 = por %p8556_p13, %p8555_p12 }
  0x1f   :  { %p8558_p1 = pnand %p8557_p0, %p8551_p11 }
  0x21   :  { %8561 = shalt.err (!%p8558_p1)
}
  0x22   :  { %s8616_s1 = smov 512   ;;  %s8617_s17 = smov 32  }
  0x23   :  { %24 = dma.hbm_to_vmem [thread:$0]  %s13889_s0, 1024, %s19_s8, [#allocation4], %s8616_s1, %s8616_s1, %s8617_s17  }
  0x24   :  { %s8618_s20 = smov [#allocation8]   ;;  %s8562_s24 = scalar_lea.hbm %s13891_s2, 1024 }
  0x25   :  { %s42_s21 = sshll.u32 %s8618_s20, 4  ;;  %p8563_p2 = scmp.ne.s32.totalorder %s13891_s2, %s8562_s24  ;;  %s43_s21 = int_to_ptr.vmem [resolvable:$true] %s42_s21 }
  0x26   :  { %p8566_p3 = scmp.lt.u32.totalorder %s8562_s24, %s13891_s2 }
  0x28   :  { %p8568_p4 = pnand %p8566_p3, %p8563_p2 }
  0x2a   :  { %8571 = shalt.err (!%p8568_p4)
}
  0x2b   :  { %s8572_s29 = scalar_lea.vmem %s43_s21, 1024  ;;  %p8577_p6 = scmp.lt.s32.totalorder %s43_s21, %s43_s21 }
  0x2c   :  { %p8573_p5 = scmp.ne.s32.totalorder %s43_s21, %s8572_s29  ;;  %p8578_p7 = scmp.lt.s32.totalorder %s8572_s29, %s8572_s29 }
  0x2e   :  { %p8579_p8 = por %p8578_p7, %p8577_p6 }
  0x30   :  { %p8580_p9 = pnand %p8579_p8, %p8573_p5 }
  0x32   :  { %8583 = shalt.err (!%p8580_p9)
}
  0x33   :  { %48 = dma.hbm_to_vmem [thread:$0]  %s13891_s2, 1024, %s43_s21, [#allocation7], %s8616_s1, %s8616_s1, %s8617_s17  }
  0x34   :  { %8606 = dma.done.wait [#allocation4], 1024  }
  0x35   :  { %8607 = vsyncadd [#allocation4], 4294966272 }
  0x36   :  { %8608 = dma.done.wait [#allocation7], 4096  }
  0x37   :  { %8609 = vsyncadd [#allocation7], 4294963200  ;;  %v8704_v0 = vld [vmem:[#allocation3 + $0x8] sm:$0xff]  ;;  %v8706_v1 = vld [vmem:[#allocation3] sm:$0xff]  ;;  %s8619_s6 = smov 17   ;;  %s8620_s2 = smov 16   ;;  %v63_v8 = vlaneseq }
  0x38   :  { %153 = vrot.lane.b32.xlu1 %v8704_v0, %s8619_s6  ;;  %149 = vrot.lane.b32.xlu0 %v8706_v1, %s8619_s6  ;;  %v8712_v2 = vld [vmem:[#allocation3 + $0x28] sm:$0xff]  ;;  %v8714_v3 = vld [vmem:[#allocation3 + $0x20] sm:$0xff]  ;;  %v8716_v4 = vld [vmem:[#allocation3 + $0x30] sm:$0xff]  ;;  %s8621_s7 = smov 15   ;;  %s8622_s8 = smov 1   ;;  %vm8629_vm9 = vmmov 1  }
  0x39   :  { %v8718_v5 = vld [vmem:[#allocation3 + $0x10] sm:$0xff]  ;;  %v8724_v6 = vld [vmem:[#allocation3 + $0x38] sm:$0xff]  ;;  %s8623_s9 = smov 127   ;;  %s8624_s10 = smov 113   ;;  %v8828_v9 = vshrl.u32 %v63_v8, 7  ;;  %v8834_v10 = vand.u32 127, %v63_v8 }
  0x3a   :  { %v8726_v7 = vld [vmem:[#allocation3 + $0x18] sm:$0xff]  ;;  %s8625_s11 = smov 112   ;;  %s8626_s12 = smov 111   ;;  %v8427_v22 = vld [vmem:[#allocation6 + $0x4] ss:$8 sps:$4 sm:$0xff]   ;;  %vm8044_vm11 = vcmask 130048  }
  0x3b   :  { %v8837_v11 = vsub.s32 1, %v8828_v9  ;;  %v176_v12 = vld [vmem:[#allocation8] ss:$8 sm:$0xf]  ;;  %vm167_vm0 = vcmp.lt.s32.totalorder %v8834_v10, 17  ;;  %v8845_v16 = vsub.s32 2, %v8828_v9  ;;  %778 = vmatprep.mubr.bf16.mxu0 %v8427_v22  ;;  %821 = vmatprep.mubr.bf16.mxu1 %v8427_v22 }
  0x3c   :  { %155 = vrot.lane.b32.xlu1 %v8712_v2, %s8619_s6  ;;  %151 = vrot.lane.b32.xlu0 %v8714_v3, %s8619_s6  ;;  %v4191_v13 = vld [vmem:[#allocation8] ss:$8 sm:$0xf]  ;;  %v8859_v25 = vsub.s32 0, %v8828_v9  ;;  %v8870_v30 = vsub.s32 3, %v8828_v9  ;;  %vm230_vm1 = vcmp.lt.s32.totalorder %v8834_v10, 16 }
  0x3d   :  { %v185_v17 = vrot.slane %v176_v12, %v8837_v11  ;;  %v4200_v19 = vrot.slane %v4191_v13, %v8837_v11  ;;  %v4204_v23 = vrot.slane %v4191_v13, %v8845_v16  ;;  %v189_v34 = vrot.slane %v176_v12, %v8845_v16  ;;  %v240_v61 = vld [vmem:[#allocation8 + $0x1] ss:$8 sm:$0xf] }
  0x3e   :  { %v4196_v38 = vrot.slane %v4191_v13, %v8859_v25  ;;  %v181_v41 = vrot.slane %v176_v12, %v8859_v25  ;;  %v193_v42 = vrot.slane %v176_v12, %v8870_v30  ;;  %v4208_v43 = vrot.slane %v4191_v13, %v8870_v30  ;;  %v4229_v62 = vld [vmem:[#allocation8 + $0x1] ss:$8 sm:$0xf] }
  0x3f   :  { %vm294_vm2 = vcmp.lt.s32.totalorder %v8834_v10, 15  ;;  %vm358_vm3 = vcmp.lt.s32.totalorder %v8834_v10, 1  ;;  %vm430_vm4 = vcmp.lt.s32.totalorder %v8834_v10, 127  ;;  %vm494_vm5 = vcmp.lt.s32.totalorder %v8834_v10, 113 }
  0x40   :  { %159 = vrot.lane.b32.xlu1 %v8716_v4, %s8619_s6  ;;  %157 = vrot.lane.b32.xlu0 %v8718_v5, %s8619_s6  ;;  %vm558_vm6 = vcmp.lt.s32.totalorder %v8834_v10, 112  ;;  %vm622_vm7 = vcmp.lt.s32.totalorder %v8834_v10, 111  ;;  %vm78_vm8 = vcmp.eq.s32.totalorder %v8828_v9, 0  ;;  %v8630_v10 = vmov 0  }
  0x41   :  { %vm9269_vm10 = vmpackc.low %vm8629_vm9, %vm78_vm8  ;;  %8423 = vset.pattern.permute.xlu0 %v8630_v10  ;;  %8424 = vset.pattern.permute.xlu1 %v8630_v10 }
  0x44   :  { %163 = vrot.lane.b32.xlu1 %v8724_v6, %s8619_s6  ;;  %161 = vrot.lane.b32.xlu0 %v8726_v7, %s8619_s6 }
  0x48   :  { %216 = vrot.lane.b32.xlu1 %v8714_v3, %s8620_s2  ;;  %214 = vrot.lane.b32.xlu0 %v8706_v1, %s8620_s2 }
  0x4c   :  { %220 = vrot.lane.b32.xlu1 %v8712_v2, %s8620_s2  ;;  %218 = vrot.lane.b32.xlu0 %v8704_v0, %s8620_s2 }
  0x50   :  { %224 = vrot.lane.b32.xlu1 %v8716_v4, %s8620_s2  ;;  %222 = vrot.lane.b32.xlu0 %v8718_v5, %s8620_s2 }
  0x54   :  { %228 = vrot.lane.b32.xlu1 %v8724_v6, %s8620_s2  ;;  %226 = vrot.lane.b32.xlu0 %v8726_v7, %s8620_s2 }
  0x58   :  { %280 = vrot.lane.b32.xlu1 %v8714_v3, %s8621_s7  ;;  %278 = vrot.lane.b32.xlu0 %v8706_v1, %s8621_s7 }
  0x5c   :  { %284 = vrot.lane.b32.xlu1 %v8712_v2, %s8621_s7  ;;  %282 = vrot.lane.b32.xlu0 %v8704_v0, %s8621_s7 }
  0x60   :  { %288 = vrot.lane.b32.xlu1 %v8716_v4, %s8621_s7  ;;  %286 = vrot.lane.b32.xlu0 %v8718_v5, %s8621_s7 }
  0x64   :  { %292 = vrot.lane.b32.xlu1 %v8724_v6, %s8621_s7  ;;  %290 = vrot.lane.b32.xlu0 %v8726_v7, %s8621_s7 }
  0x68   :  { %344 = vrot.lane.b32.xlu1 %v8714_v3, %s8622_s8  ;;  %342 = vrot.lane.b32.xlu0 %v8706_v1, %s8622_s8 }
  0x6c   :  { %348 = vrot.lane.b32.xlu1 %v8712_v2, %s8622_s8  ;;  %346 = vrot.lane.b32.xlu0 %v8704_v0, %s8622_s8 }
  0x70   :  { %352 = vrot.lane.b32.xlu1 %v8716_v4, %s8622_s8  ;;  %350 = vrot.lane.b32.xlu0 %v8718_v5, %s8622_s8 }
  0x74   :  { %356 = vrot.lane.b32.xlu1 %v8724_v6, %s8622_s8  ;;  %354 = vrot.lane.b32.xlu0 %v8726_v7, %s8622_s8 }
  0x78   :  { %416 = vrot.lane.b32.xlu1 %v8714_v3, %s8623_s9  ;;  %414 = vrot.lane.b32.xlu0 %v8706_v1, %s8623_s9 }
  0x7c   :  { %420 = vrot.lane.b32.xlu1 %v8712_v2, %s8623_s9  ;;  %418 = vrot.lane.b32.xlu0 %v8704_v0, %s8623_s9 }
  0x80   :  { %424 = vrot.lane.b32.xlu1 %v8716_v4, %s8623_s9  ;;  %422 = vrot.lane.b32.xlu0 %v8718_v5, %s8623_s9 }
  0x84   :  { %428 = vrot.lane.b32.xlu1 %v8724_v6, %s8623_s9  ;;  %426 = vrot.lane.b32.xlu0 %v8726_v7, %s8623_s9 }
  0x88   :  { %480 = vrot.lane.b32.xlu1 %v8714_v3, %s8624_s10  ;;  %478 = vrot.lane.b32.xlu0 %v8706_v1, %s8624_s10 }
  0x8c   :  { %484 = vrot.lane.b32.xlu1 %v8712_v2, %s8624_s10  ;;  %482 = vrot.lane.b32.xlu0 %v8704_v0, %s8624_s10 }
  0x90   :  { %488 = vrot.lane.b32.xlu1 %v8716_v4, %s8624_s10  ;;  %486 = vrot.lane.b32.xlu0 %v8718_v5, %s8624_s10 }
  0x94   :  { %492 = vrot.lane.b32.xlu1 %v8724_v6, %s8624_s10  ;;  %490 = vrot.lane.b32.xlu0 %v8726_v7, %s8624_s10 }
  0x98   :  { %544 = vrot.lane.b32.xlu1 %v8714_v3, %s8625_s11  ;;  %542 = vrot.lane.b32.xlu0 %v8706_v1, %s8625_s11 }
  0x9c   :  { %548 = vrot.lane.b32.xlu1 %v8712_v2, %s8625_s11  ;;  %546 = vrot.lane.b32.xlu0 %v8704_v0, %s8625_s11 }
  0xa0   :  { %552 = vrot.lane.b32.xlu1 %v8716_v4, %s8625_s11  ;;  %550 = vrot.lane.b32.xlu0 %v8718_v5, %s8625_s11 }
  0xa4   :  { %556 = vrot.lane.b32.xlu1 %v8724_v6, %s8625_s11  ;;  %554 = vrot.lane.b32.xlu0 %v8726_v7, %s8625_s11 }
  0xa8   :  { %608 = vrot.lane.b32.xlu1 %v8714_v3, %s8626_s12  ;;  %606 = vrot.lane.b32.xlu0 %v8706_v1, %s8626_s12 }
  0xaa   :  { %v154_v14 = vpop.permute.xlu1 %153  ;;  %v150_v15 = vpop.permute.xlu0 %149 }
  0xab   :  { %v172_v18 = vsel %vm167_vm0, %v150_v15, %v154_v14 }
  0xac   :  { %612 = vrot.lane.b32.xlu1 %v8712_v2, %s8626_s12  ;;  %610 = vrot.lane.b32.xlu0 %v8704_v0, %s8626_s12  ;;  %v199_v26 = vmul.f32 %v185_v17, %v172_v18  ;;  %v8865_v28 = vmul.f32 %v4200_v19, %v172_v18  ;;  %v249_v18 = vrot.slane %v240_v61, %v8837_v11 }
  0xae   :  { %v156_v20 = vpop.permute.xlu1 %155  ;;  %v152_v21 = vpop.permute.xlu0 %151  ;;  %14051 = vst [vmem:[#allocation13_spill] sm:$0xff] %v8865_v28 }
  0xaf   :  { %v173_v24 = vsel %vm167_vm0, %v152_v21, %v156_v20 }
  0xb0   :  { %616 = vrot.lane.b32.xlu1 %v8716_v4, %s8626_s12  ;;  %614 = vrot.lane.b32.xlu0 %v8718_v5, %s8626_s12  ;;  %v203_v27 = vmul.f32 %v185_v17, %v173_v24  ;;  %v8867_v29 = vmul.f32 %v4200_v19, %v173_v24  ;;  %v4238_v19 = vrot.slane %v4229_v62, %v8837_v11 }
  0xb1   :  { %v4242_v24 = vrot.slane %v4229_v62, %v8845_v16 }
  0xb2   :  { %14052 = vst [vmem:[#allocation14_spill] sm:$0xff] %v8867_v29  ;;  %v160_v31 = vpop.permute.xlu1 %159  ;;  %v158_v32 = vpop.permute.xlu0 %157  ;;  %v207_v33 = vpack.c.bf16 %v203_v27, %v199_v26 }
  0xb3   :  { %v171_v36 = vsel %vm167_vm0, %v156_v20, %v160_v31  ;;  %v170_v37 = vsel %vm167_vm0, %v154_v14, %v158_v32 }
  0xb4   :  { %v8880_v39 = vmul.f32 %v4204_v23, %v171_v36  ;;  %v8882_v40 = vmul.f32 %v4204_v23, %v170_v37  ;;  %620 = vrot.lane.b32.xlu1 %v8724_v6, %s8626_s12  ;;  %618 = vrot.lane.b32.xlu0 %v8726_v7, %s8626_s12  ;;  %v200_v47 = vmul.f32 %v189_v34, %v170_v37 }
  0xb5   :  { %746 = vmatprep.subr.bf16.mxu0 %v207_v33  ;;  %v204_v48 = vmul.f32 %v189_v34, %v171_v36  ;;  %v253_v33 = vrot.slane %v240_v61, %v8845_v16 }
  0xb6   :  { %14053 = vst [vmem:[#allocation15_spill] sm:$0xff] %v8880_v39  ;;  %14054 = vst [vmem:[#allocation16_spill] sm:$0xff] %v8882_v40  ;;  %v164_v45 = vpop.permute.xlu1 %163  ;;  %v162_v46 = vpop.permute.xlu0 %161 }
  0xb7   :  { %v175_v49 = vsel %vm167_vm0, %v164_v45, %v152_v21  ;;  %v174_v50 = vsel %vm167_vm0, %v162_v46, %v150_v15  ;;  %v168_v51 = vsel %vm167_vm0, %v158_v32, %v162_v46  ;;  %v169_v52 = vsel %vm167_vm0, %v160_v31, %v164_v45 }
  0xb8   :  { %v8901_v53 = vmul.f32 %v4196_v38, %v175_v49  ;;  %v8903_v54 = vmul.f32 %v4196_v38, %v174_v50  ;;  %v198_v55 = vmul.f32 %v181_v41, %v174_v50  ;;  %v202_v56 = vmul.f32 %v181_v41, %v175_v49 }
  0xb9   :  { %v201_v57 = vmul.f32 %v193_v42, %v168_v51  ;;  %v205_v58 = vmul.f32 %v193_v42, %v169_v52  ;;  %v8905_v59 = vmul.f32 %v4208_v43, %v168_v51  ;;  %v8907_v60 = vmul.f32 %v4208_v43, %v169_v52 }
  0xba   :  { %14055 = vst [vmem:[#allocation17_spill] sm:$0xff] %v8901_v53  ;;  %14056 = vst [vmem:[#allocation18_spill] sm:$0xff] %v8903_v54  ;;  %v217_v8 = vpop.permute.xlu1 %216  ;;  %v215_v12 = vpop.permute.xlu0 %214  ;;  %v206_v13 = vpack.c.bf16 %v202_v56, %v198_v55  ;;  %v208_v17 = vpack.c.bf16 %v204_v48, %v200_v47  ;;  %v245_v43 = vrot.slane %v240_v61, %v8859_v25 }
  0xbb   :  { %14057 = vst [vmem:[#allocation19_spill] sm:$0xff] %v8905_v59  ;;  %14058 = vst [vmem:[#allocation20_spill] sm:$0xff] %v8907_v60  ;;  %v209_v14 = vpack.c.bf16 %v205_v58, %v201_v57  ;;  %v257_v45 = vrot.slane %v240_v61, %v8870_v30  ;;  %v4234_v48 = vrot.slane %v4229_v62, %v8859_v25 }
  0xbc   :  { %747 = vmatpush1.bf16.msra.mxu0 %v206_v13  ;;  %v4246_v49 = vrot.slane %v4229_v62, %v8870_v30 }
  0xbd   :  { %789 = vmatprep.subr.bf16.mxu1 %v209_v14 }
  0xbe   :  { %790 = vmatpush1.bf16.msra.mxu1 %v208_v17  ;;  %v221_v20 = vpop.permute.xlu1 %220  ;;  %v219_v21 = vpop.permute.xlu0 %218 }
  0xbf   :  { %v236_v22 = vsel %vm230_vm1, %v217_v8, %v221_v20  ;;  %v235_v23 = vsel %vm230_vm1, %v215_v12, %v219_v21 }
  0xc0   :  { %v267_v26 = vmul.f32 %v249_v18, %v236_v22  ;;  %v8921_v27 = vmul.f32 %v4238_v19, %v236_v22  ;;  %v263_v31 = vmul.f32 %v249_v18, %v235_v23  ;;  %v8923_v32 = vmul.f32 %v4238_v19, %v235_v23  ;;  %v304_v23 = vld [vmem:[#allocation8 + $0x2] ss:$8 sm:$0xf] }
  0xc2   :  { %14059 = vst [vmem:[#allocation21_spill] sm:$0xff] %v8921_v27  ;;  %14060 = vst [vmem:[#allocation22_spill] sm:$0xff] %v8923_v32  ;;  %v225_v34 = vpop.permute.xlu1 %224  ;;  %v223_v36 = vpop.permute.xlu0 %222  ;;  %v271_v37 = vpack.c.bf16 %v267_v26, %v263_v31  ;;  %v926_v27 = vld [vmem:[#allocation8 + $0x1] ss:$8 sm:$0xf] }
  0xc3   :  { %v234_v41 = vsel %vm230_vm1, %v221_v20, %v225_v34  ;;  %v233_v42 = vsel %vm230_vm1, %v219_v21, %v223_v36 }
  0xc4   :  { %v8934_v46 = vmul.f32 %v4242_v24, %v234_v41  ;;  %v8936_v47 = vmul.f32 %v4242_v24, %v233_v42  ;;  %748 = vmatprep.subr.bf16.mxu0 %v271_v37  ;;  %v268_v50 = vmul.f32 %v253_v33, %v234_v41  ;;  %v264_v51 = vmul.f32 %v253_v33, %v233_v42 }
  0xc5   :  { %v313_v37 = vrot.slane %v304_v23, %v8837_v11 }
  0xc6   :  { %14061 = vst [vmem:[#allocation23_spill] sm:$0xff] %v8934_v46  ;;  %14062 = vst [vmem:[#allocation24_spill] sm:$0xff] %v8936_v47  ;;  %v229_v55 = vpop.permute.xlu1 %228  ;;  %v227_v56 = vpop.permute.xlu0 %226 }
  0xc7   :  { %v232_v57 = vsel %vm230_vm1, %v225_v34, %v229_v55  ;;  %v238_v58 = vsel %vm230_vm1, %v229_v55, %v217_v8  ;;  %v231_v61 = vsel %vm230_vm1, %v223_v36, %v227_v56  ;;  %v237_v13 = vsel %vm230_vm1, %v227_v56, %v215_v12  ;;  %v4267_v8 = vld [vmem:[#allocation8 + $0x2] ss:$8 sm:$0xf] }
  0xc8   :  { %v266_v62 = vmul.f32 %v245_v43, %v238_v58  ;;  %v269_v14 = vmul.f32 %v257_v45, %v232_v57  ;;  %v8950_v17 = vmul.f32 %v4234_v48, %v238_v58  ;;  %v8952_v18 = vmul.f32 %v4246_v49, %v232_v57 }
  0xc9   :  { %v262_v19 = vmul.f32 %v245_v43, %v237_v13  ;;  %v265_v20 = vmul.f32 %v257_v45, %v231_v61  ;;  %v8954_v21 = vmul.f32 %v4234_v48, %v237_v13  ;;  %v8956_v22 = vmul.f32 %v4246_v49, %v231_v61 }
  0xca   :  { %14063 = vst [vmem:[#allocation25_spill] sm:$0xff] %v8950_v17  ;;  %14064 = vst [vmem:[#allocation26_spill] sm:$0xff] %v8952_v18  ;;  %v281_v24 = vpop.permute.xlu1 %280  ;;  %v279_v26 = vpop.permute.xlu0 %278  ;;  %v272_v36 = vpack.c.bf16 %v268_v50, %v264_v51  ;;  %v4276_v41 = vrot.slane %v4267_v8, %v8837_v11  ;;  %v4280_v49 = vrot.slane %v4267_v8, %v8845_v16 }
  0xcb   :  { %14065 = vst [vmem:[#allocation27_spill] sm:$0xff] %v8954_v21  ;;  %14066 = vst [vmem:[#allocation28_spill] sm:$0xff] %v8956_v22  ;;  %v270_v12 = vpack.c.bf16 %v266_v62, %v262_v19  ;;  %v273_v33 = vpack.c.bf16 %v269_v14, %v265_v20  ;;  %v317_v57 = vrot.slane %v304_v23, %v8845_v16  ;;  %v368_v62 = vld [vmem:[#allocation8 + $0x3] ss:$8 sm:$0xf] }
  0xcc   :  { %v309_v20 = vrot.slane %v304_v23, %v8859_v25 }
  0xcd   :  { %749 = vmatpush1.bf16.msra.mxu0 %v270_v12  ;;  %791 = vmatprep.subr.bf16.mxu1 %v273_v33  ;;  %v321_v12 = vrot.slane %v304_v23, %v8870_v30 }
  0xce   :  { %792 = vmatpush1.bf16.msra.mxu1 %v272_v36  ;;  %v285_v42 = vpop.permute.xlu1 %284  ;;  %v283_v43 = vpop.permute.xlu0 %282 }
  0xcf   :  { %v300_v45 = vsel %vm294_vm2, %v281_v24, %v285_v42  ;;  %v299_v48 = vsel %vm294_vm2, %v279_v26, %v283_v43 }
  0xd0   :  { %v331_v50 = vmul.f32 %v313_v37, %v300_v45  ;;  %v8970_v51 = vmul.f32 %v4276_v41, %v300_v45  ;;  %v327_v55 = vmul.f32 %v313_v37, %v299_v48  ;;  %v8972_v56 = vmul.f32 %v4276_v41, %v299_v48 }
  0xd1   :  { %v4272_v37 = vrot.slane %v4267_v8, %v8859_v25  ;;  %v4284_v41 = vrot.slane %v4267_v8, %v8870_v30 }
  0xd2   :  { %14067 = vst [vmem:[#allocation29_spill] sm:$0xff] %v8970_v51  ;;  %14068 = vst [vmem:[#allocation30_spill] sm:$0xff] %v8972_v56  ;;  %v289_v58 = vpop.permute.xlu1 %288  ;;  %v287_v61 = vpop.permute.xlu0 %286  ;;  %v335_v13 = vpack.c.bf16 %v331_v50, %v327_v55 }
  0xd3   :  { %v298_v14 = vsel %vm294_vm2, %v285_v42, %v289_v58  ;;  %v297_v19 = vsel %vm294_vm2, %v283_v43, %v287_v61 }
  0xd4   :  { %v8983_v33 = vmul.f32 %v4280_v49, %v298_v14  ;;  %v8985_v36 = vmul.f32 %v4280_v49, %v297_v19  ;;  %750 = vmatprep.subr.bf16.mxu0 %v335_v13  ;;  %v332_v45 = vmul.f32 %v317_v57, %v298_v14  ;;  %v328_v48 = vmul.f32 %v317_v57, %v297_v19 }
  0xd6   :  { %14069 = vst [vmem:[#allocation31_spill] sm:$0xff] %v8983_v33  ;;  %14070 = vst [vmem:[#allocation32_spill] sm:$0xff] %v8985_v36  ;;  %v293_v50 = vpop.permute.xlu1 %292  ;;  %v291_v43 = vpop.permute.xlu0 %290 }
  0xd7   :  { %v296_v55 = vsel %vm294_vm2, %v289_v58, %v293_v50  ;;  %v302_v23 = vsel %vm294_vm2, %v293_v50, %v281_v24  ;;  %v295_v49 = vsel %vm294_vm2, %v287_v61, %v291_v43  ;;  %v301_v13 = vsel %vm294_vm2, %v291_v43, %v279_v26  ;;  %v4305_v24 = vld [vmem:[#allocation8 + $0x3] ss:$8 sm:$0xf] }
  0xd8   :  { %v330_v8 = vmul.f32 %v309_v20, %v302_v23  ;;  %v333_v14 = vmul.f32 %v321_v12, %v296_v55  ;;  %v8999_v57 = vmul.f32 %v4272_v37, %v302_v23  ;;  %v9001_v19 = vmul.f32 %v4284_v41, %v296_v55 }
  0xd9   :  { %v326_v42 = vmul.f32 %v309_v20, %v301_v13  ;;  %v329_v52 = vmul.f32 %v321_v12, %v295_v49  ;;  %v9003_v34 = vmul.f32 %v4272_v37, %v301_v13  ;;  %v9005_v58 = vmul.f32 %v4284_v41, %v295_v49 }
  0xda   :  { %14071 = vst [vmem:[#allocation33_spill] sm:$0xff] %v8999_v57  ;;  %14072 = vst [vmem:[#allocation34_spill] sm:$0xff] %v9001_v19  ;;  %v345_v50 = vpop.permute.xlu1 %344  ;;  %v343_v44 = vpop.permute.xlu0 %342  ;;  %v336_v55 = vpack.c.bf16 %v332_v45, %v328_v48  ;;  %v377_v20 = vrot.slane %v368_v62, %v8837_v11  ;;  %v4314_v12 = vrot.slane %v4305_v24, %v8837_v11 }
  0xdb   :  { %14073 = vst [vmem:[#allocation35_spill] sm:$0xff] %v9003_v34  ;;  %14074 = vst [vmem:[#allocation36_spill] sm:$0xff] %v9005_v58  ;;  %v334_v26 = vpack.c.bf16 %v330_v8, %v326_v42  ;;  %v337_v43 = vpack.c.bf16 %v333_v14, %v329_v52  ;;  %v4318_v42 = vrot.slane %v4305_v24, %v8845_v16  ;;  %v864_v34 = vld [vmem:[#allocation8] ss:$8 sm:$0xf] }
  0xdc   :  { %v381_v14 = vrot.slane %v368_v62, %v8845_v16  ;;  %v873_v22 = vrot.slane %v864_v34, %v8837_v11  ;;  %v869_v39 = vrot.slane %v864_v34, %v8859_v25  ;;  %v881_v60 = vrot.slane %v864_v34, %v8870_v30 }
  0xdd   :  { %751 = vmatpush1.bf16.msra.mxu0 %v334_v26  ;;  %793 = vmatprep.subr.bf16.mxu1 %v337_v43  ;;  %v877_v54 = vrot.slane %v864_v34, %v8845_v16  ;;  %v935_v34 = vrot.slane %v926_v27, %v8837_v11 }
  0xde   :  { %794 = vmatpush1.bf16.msra.mxu1 %v336_v55  ;;  %v349_v37 = vpop.permute.xlu1 %348  ;;  %v347_v41 = vpop.permute.xlu0 %346 }
  0xdf   :  { %v364_v49 = vsel %vm358_vm3, %v345_v50, %v349_v37  ;;  %v363_v52 = vsel %vm358_vm3, %v343_v44, %v347_v41 }
  0xe0   :  { %v395_v45 = vmul.f32 %v377_v20, %v364_v49  ;;  %v9019_v48 = vmul.f32 %v4314_v12, %v364_v49  ;;  %v391_v13 = vmul.f32 %v377_v20, %v363_v52  ;;  %v9021_v8 = vmul.f32 %v4314_v12, %v363_v52 }
  0xe1   :  { %v373_v49 = vrot.slane %v368_v62, %v8859_v25  ;;  %v385_v20 = vrot.slane %v368_v62, %v8870_v30 }
  0xe2   :  { %14075 = vst [vmem:[#allocation37_spill] sm:$0xff] %v9019_v48  ;;  %14076 = vst [vmem:[#allocation38_spill] sm:$0xff] %v9021_v8  ;;  %v353_v26 = vpop.permute.xlu1 %352  ;;  %v351_v43 = vpop.permute.xlu0 %350  ;;  %v399_v55 = vpack.c.bf16 %v395_v45, %v391_v13  ;;  %v4310_v45 = vrot.slane %v4305_v24, %v8859_v25  ;;  %v4322_v13 = vrot.slane %v4305_v24, %v8870_v30 }
  0xe3   :  { %v362_v61 = vsel %vm358_vm3, %v349_v37, %v353_v26  ;;  %v361_v31 = vsel %vm358_vm3, %v347_v41, %v351_v43 }
  0xe4   :  { %v9032_v12 = vmul.f32 %v4318_v42, %v362_v61  ;;  %v9034_v52 = vmul.f32 %v4318_v42, %v361_v31  ;;  %752 = vmatprep.subr.bf16.mxu0 %v399_v55  ;;  %v396_v23 = vmul.f32 %v381_v14, %v362_v61  ;;  %v392_v15 = vmul.f32 %v381_v14, %v361_v31 }
  0xe6   :  { %14077 = vst [vmem:[#allocation39_spill] sm:$0xff] %v9032_v12  ;;  %14078 = vst [vmem:[#allocation40_spill] sm:$0xff] %v9034_v52  ;;  %v357_v38 = vpop.permute.xlu1 %356  ;;  %v355_v41 = vpop.permute.xlu0 %354  ;;  %v4347_v12 = vld [vmem:[#allocation8 + $0x5] ss:$8 sm:$0xf] }
  0xe7   :  { %v360_v63 = vsel %vm358_vm3, %v353_v26, %v357_v38  ;;  %v366_v62 = vsel %vm358_vm3, %v357_v38, %v345_v50  ;;  %v359_v42 = vsel %vm358_vm3, %v351_v43, %v355_v41  ;;  %v365_v55 = vsel %vm358_vm3, %v355_v41, %v343_v44 }
  0xe8   :  { %v394_v24 = vmul.f32 %v373_v49, %v366_v62  ;;  %v397_v61 = vmul.f32 %v385_v20, %v360_v63  ;;  %v9048_v31 = vmul.f32 %v4310_v45, %v366_v62  ;;  %v9050_v14 = vmul.f32 %v4322_v13, %v360_v63 }
  0xe9   :  { %v390_v37 = vmul.f32 %v373_v49, %v365_v55  ;;  %v393_v35 = vmul.f32 %v385_v20, %v359_v42  ;;  %v9052_v52 = vmul.f32 %v4310_v45, %v365_v55  ;;  %v9054_v26 = vmul.f32 %v4322_v13, %v359_v42  ;;  %v440_v45 = vld [vmem:[#allocation8 + $0x5] ss:$8 sm:$0xf] }
  0xea   :  { %14079 = vst [vmem:[#allocation41_spill] sm:$0xff] %v9048_v31  ;;  %14080 = vst [vmem:[#allocation42_spill] sm:$0xff] %v9050_v14  ;;  %v417_v38 = vpop.permute.xlu1 %416  ;;  %v415_v50 = vpop.permute.xlu0 %414  ;;  %v9058_v43 = vpack.c.bf16 %v8712_v2, %v8704_v0  ;;  %v9062_v44 = vpack.c.bf16 %v8724_v6, %v8726_v7  ;;  %v400_v41 = vpack.c.bf16 %v396_v23, %v392_v15 }
  0xeb   :  { %14081 = vst [vmem:[#allocation43_spill] sm:$0xff] %v9052_v52  ;;  %14082 = vst [vmem:[#allocation44_spill] sm:$0xff] %v9054_v26  ;;  %v398_v49 = vpack.c.bf16 %v394_v24, %v390_v37  ;;  %v401_v20 = vpack.c.bf16 %v397_v61, %v393_v35  ;;  %v4352_v62 = vrot.slane %v4347_v12, %v8859_v25 }
  0xec   :  { %14083 = vst [vmem:[#allocation45_spill] sm:$0xff] %v9058_v43  ;;  %14084 = vst [vmem:[#allocation46_spill] sm:$0xff] %v9062_v44  ;;  %v9072_v0 = vpack.c.bf16 %v8714_v3, %v8706_v1  ;;  %v445_v2 = vrot.slane %v440_v45, %v8859_v25  ;;  %v9078_v35 = vpack.c.bf16 %v8716_v4, %v8718_v5 }
  0xed   :  { %753 = vmatpush1.bf16.msra.mxu0 %v398_v49  ;;  %795 = vmatprep.subr.bf16.mxu1 %v401_v20  ;;  %v449_v37 = vrot.slane %v440_v45, %v8837_v11  ;;  %v4356_v42 = vrot.slane %v4347_v12, %v8837_v11  ;;  %v453_v4 = vrot.slane %v440_v45, %v8845_v16 }
  0xee   :  { %14085 = vst [vmem:[#allocation47_spill] sm:$0xff] %v9072_v0  ;;  %796 = vmatpush1.bf16.msra.mxu1 %v400_v41  ;;  %v421_v6 = vpop.permute.xlu1 %420  ;;  %v419_v7 = vpop.permute.xlu0 %418  ;;  %754 = vmatprep.subr.bf16.mxu0 %v9058_v43  ;;  %14086 = vst [vmem:[#allocation48_spill] sm:$0xff] %v9078_v35  ;;  %v457_v20 = vrot.slane %v440_v45, %v8870_v30  ;;  %v4360_v13 = vrot.slane %v4347_v12, %v8845_v16  ;;  %v8627_v43 = vmov 0.0  }
  0xef   :  { %v436_v15 = vsel %vm430_vm4, %v417_v38, %v421_v6  ;;  %v435_v23 = vsel %vm430_vm4, %v415_v50, %v419_v7  ;;  %797 = vmatprep.subr.bf16.mxu1 %v9062_v44 }
  0xf0   :  { %v9085_v1 = vmul.f32 %v4352_v62, %v436_v15  ;;  %v9087_v3 = vmul.f32 %v4352_v62, %v435_v23  ;;  %v466_v5 = vmul.f32 %v445_v2, %v436_v15  ;;  %v462_v55 = vmul.f32 %v445_v2, %v435_v23 }
  0xf1   :  { %755 = vmatpush1.bf16.msra.mxu0 %v9072_v0  ;;  %v4364_v15 = vrot.slane %v4347_v12, %v8870_v30 }
  0xf2   :  { %14087 = vst [vmem:[#allocation49_spill] sm:$0xff] %v9085_v1  ;;  %14088 = vst [vmem:[#allocation50_spill] sm:$0xff] %v9087_v3  ;;  %v425_v61 = vpop.permute.xlu1 %424  ;;  %v423_v49 = vpop.permute.xlu0 %422  ;;  %798 = vmatpush1.bf16.msra.mxu1 %v9078_v35  ;;  %v470_v35 = vpack.c.bf16 %v466_v5, %v462_v55 }
  0xf3   :  { %v434_v41 = vsel %vm430_vm4, %v421_v6, %v425_v61  ;;  %v433_v62 = vsel %vm430_vm4, %v419_v7, %v423_v49 }
  0xf4   :  { %v467_v2 = vmul.f32 %v449_v37, %v434_v41  ;;  %v9103_v23 = vmul.f32 %v4356_v42, %v434_v41  ;;  %v463_v24 = vmul.f32 %v449_v37, %v433_v62  ;;  %v9105_v63 = vmul.f32 %v4356_v42, %v433_v62 }
  0xf6   :  { %14089 = vst [vmem:[#allocation51_spill] sm:$0xff] %v9103_v23  ;;  %14090 = vst [vmem:[#allocation52_spill] sm:$0xff] %v9105_v63  ;;  %v429_v3 = vpop.permute.xlu1 %428  ;;  %v427_v45 = vpop.permute.xlu0 %426  ;;  %v471_v1 = vpack.c.bf16 %v467_v2, %v463_v24 }
  0xf7   :  { %v432_v7 = vsel %vm430_vm4, %v425_v61, %v429_v3  ;;  %v438_v44 = vsel %vm430_vm4, %v429_v3, %v417_v38  ;;  %v431_v12 = vsel %vm430_vm4, %v423_v49, %v427_v45  ;;  %v437_v37 = vsel %vm430_vm4, %v427_v45, %v415_v50  ;;  %v4385_v38 = vld [vmem:[#allocation8 + $0x6] ss:$8 sm:$0xf] }
  0xf8   :  { %v468_v42 = vmul.f32 %v453_v4, %v432_v7  ;;  %v469_v41 = vmul.f32 %v457_v20, %v438_v44  ;;  %v9117_v62 = vmul.f32 %v4360_v13, %v432_v7  ;;  %v9119_v5 = vmul.f32 %v4364_v15, %v438_v44  ;;  %756 = vmatprep.subr.bf16.mxu0 %v471_v1  ;;  %v504_v7 = vld [vmem:[#allocation8 + $0x6] ss:$8 sm:$0xf] }
  0xf9   :  { %v464_v55 = vmul.f32 %v453_v4, %v431_v12  ;;  %v465_v24 = vmul.f32 %v457_v20, %v437_v37  ;;  %v9121_v2 = vmul.f32 %v4360_v13, %v431_v12  ;;  %v9123_v61 = vmul.f32 %v4364_v15, %v437_v37  ;;  %757 = vmatpush1.bf16.msra.mxu0 %v470_v35 }
  0xfa   :  { %14091 = vst [vmem:[#allocation53_spill] sm:$0xff] %v9117_v62  ;;  %14092 = vst [vmem:[#allocation54_spill] sm:$0xff] %v9119_v5  ;;  %v481_v3 = vpop.permute.xlu1 %480  ;;  %v479_v49 = vpop.permute.xlu0 %478  ;;  %v4390_v13 = vrot.slane %v4385_v38, %v8859_v25  ;;  %v509_v35 = vrot.slane %v504_v7, %v8859_v25  ;;  %v4402_v5 = vrot.slane %v4385_v38, %v8870_v30 }
  0xfb   :  { %14093 = vst [vmem:[#allocation55_spill] sm:$0xff] %v9121_v2  ;;  %14094 = vst [vmem:[#allocation56_spill] sm:$0xff] %v9123_v61  ;;  %v473_v45 = vpack.c.bf16 %v469_v41, %v465_v24  ;;  %v472_v6 = vpack.c.bf16 %v468_v42, %v464_v55  ;;  %v513_v42 = vrot.slane %v504_v7, %v8837_v11 }
  0xfc   :  { %v4394_v41 = vrot.slane %v4385_v38, %v8837_v11  ;;  %v521_v2 = vrot.slane %v504_v7, %v8870_v30  ;;  %v4398_v61 = vrot.slane %v4385_v38, %v8845_v16 }
  0xfd   :  { %799 = vmatprep.subr.bf16.mxu1 %v473_v45 }
  0xfe   :  { %800 = vmatpush1.bf16.msra.mxu1 %v472_v6  ;;  %v485_v1 = vpop.permute.xlu1 %484  ;;  %v483_v4 = vpop.permute.xlu0 %482  ;;  %v517_v6 = vrot.slane %v504_v7, %v8845_v16 }
  0xff   :  { %v500_v20 = vsel %vm494_vm5, %v481_v3, %v485_v1  ;;  %v499_v15 = vsel %vm494_vm5, %v479_v49, %v483_v4 }
 0x100   :  { %v9136_v12 = vmul.f32 %v4390_v13, %v500_v20  ;;  %v9138_v37 = vmul.f32 %v4390_v13, %v499_v15  ;;  %v530_v55 = vmul.f32 %v509_v35, %v500_v20  ;;  %v526_v24 = vmul.f32 %v509_v35, %v499_v15 }
 0x102   :  { %14095 = vst [vmem:[#allocation57_spill] sm:$0xff] %v9136_v12  ;;  %14096 = vst [vmem:[#allocation58_spill] sm:$0xff] %v9138_v37  ;;  %v489_v50 = vpop.permute.xlu1 %488  ;;  %v487_v44 = vpop.permute.xlu0 %486  ;;  %v534_v7 = vpack.c.bf16 %v530_v55, %v526_v24 }
 0x103   :  { %v498_v62 = vsel %vm494_vm5, %v485_v1, %v489_v50  ;;  %v497_v13 = vsel %vm494_vm5, %v483_v4, %v487_v44 }
 0x104   :  { %v531_v63 = vmul.f32 %v513_v42, %v498_v62  ;;  %v9152_v20 = vmul.f32 %v4394_v41, %v498_v62  ;;  %v527_v35 = vmul.f32 %v513_v42, %v497_v13  ;;  %v9154_v15 = vmul.f32 %v4394_v41, %v497_v13 }
 0x106   :  { %14097 = vst [vmem:[#allocation59_spill] sm:$0xff] %v9152_v20  ;;  %14098 = vst [vmem:[#allocation60_spill] sm:$0xff] %v9154_v15  ;;  %v493_v45 = vpop.permute.xlu1 %492  ;;  %v491_v37 = vpop.permute.xlu0 %490  ;;  %v535_v12 = vpack.c.bf16 %v531_v63, %v527_v35 }
 0x107   :  { %v496_v4 = vsel %vm494_vm5, %v489_v50, %v493_v45  ;;  %v502_v23 = vsel %vm494_vm5, %v493_v45, %v481_v3  ;;  %v495_v62 = vsel %vm494_vm5, %v487_v44, %v491_v37  ;;  %v501_v38 = vsel %vm494_vm5, %v491_v37, %v479_v49  ;;  %v4423_v3 = vld [vmem:[#allocation8 + $0x7] ss:$8 sm:$0xf] }
 0x108   :  { %v532_v42 = vmul.f32 %v517_v6, %v496_v4  ;;  %v533_v41 = vmul.f32 %v521_v2, %v502_v23  ;;  %v9166_v13 = vmul.f32 %v4398_v61, %v496_v4  ;;  %v9168_v63 = vmul.f32 %v4402_v5, %v502_v23  ;;  %758 = vmatprep.subr.bf16.mxu0 %v535_v12  ;;  %v568_v4 = vld [vmem:[#allocation8 + $0x7] ss:$8 sm:$0xf] }
 0x109   :  { %v528_v55 = vmul.f32 %v517_v6, %v495_v62  ;;  %v529_v24 = vmul.f32 %v521_v2, %v501_v38  ;;  %v9170_v35 = vmul.f32 %v4398_v61, %v495_v62  ;;  %v9172_v50 = vmul.f32 %v4402_v5, %v501_v38  ;;  %759 = vmatpush1.bf16.msra.mxu0 %v534_v7 }
 0x10a   :  { %14099 = vst [vmem:[#allocation61_spill] sm:$0xff] %v9166_v13  ;;  %14100 = vst [vmem:[#allocation62_spill] sm:$0xff] %v9168_v63  ;;  %v545_v45 = vpop.permute.xlu1 %544  ;;  %v543_v44 = vpop.permute.xlu0 %542  ;;  %v4428_v2 = vrot.slane %v4423_v3, %v8859_v25  ;;  %v573_v5 = vrot.slane %v568_v4, %v8859_v25  ;;  %v4440_v63 = vrot.slane %v4423_v3, %v8870_v30 }
 0x10b   :  { %14101 = vst [vmem:[#allocation63_spill] sm:$0xff] %v9170_v35  ;;  %14102 = vst [vmem:[#allocation64_spill] sm:$0xff] %v9172_v50  ;;  %v537_v37 = vpack.c.bf16 %v533_v41, %v529_v24  ;;  %v536_v1 = vpack.c.bf16 %v532_v42, %v528_v55  ;;  %v577_v42 = vrot.slane %v568_v4, %v8837_v11 }
 0x10c   :  { %v4432_v41 = vrot.slane %v4423_v3, %v8837_v11  ;;  %v585_v35 = vrot.slane %v568_v4, %v8870_v30  ;;  %v4436_v50 = vrot.slane %v4423_v3, %v8845_v16 }
 0x10d   :  { %801 = vmatprep.subr.bf16.mxu1 %v537_v37 }
 0x10e   :  { %802 = vmatpush1.bf16.msra.mxu1 %v536_v1  ;;  %v549_v61 = vpop.permute.xlu1 %548  ;;  %v547_v12 = vpop.permute.xlu0 %546  ;;  %v581_v1 = vrot.slane %v568_v4, %v8845_v16 }
 0x10f   :  { %v564_v6 = vsel %vm558_vm6, %v545_v45, %v549_v61  ;;  %v563_v7 = vsel %vm558_vm6, %v543_v44, %v547_v12 }
 0x110   :  { %v9185_v62 = vmul.f32 %v4428_v2, %v564_v6  ;;  %v9187_v38 = vmul.f32 %v4428_v2, %v563_v7  ;;  %v594_v55 = vmul.f32 %v573_v5, %v564_v6  ;;  %v590_v24 = vmul.f32 %v573_v5, %v563_v7 }
 0x112   :  { %14103 = vst [vmem:[#allocation65_spill] sm:$0xff] %v9185_v62  ;;  %14104 = vst [vmem:[#allocation66_spill] sm:$0xff] %v9187_v38  ;;  %v553_v49 = vpop.permute.xlu1 %552  ;;  %v551_v23 = vpop.permute.xlu0 %550  ;;  %v598_v4 = vpack.c.bf16 %v594_v55, %v590_v24 }
 0x113   :  { %v562_v13 = vsel %vm558_vm6, %v549_v61, %v553_v49  ;;  %v561_v2 = vsel %vm558_vm6, %v547_v12, %v551_v23 }
 0x114   :  { %v595_v15 = vmul.f32 %v577_v42, %v562_v13  ;;  %v9201_v6 = vmul.f32 %v4432_v41, %v562_v13  ;;  %v591_v5 = vmul.f32 %v577_v42, %v561_v2  ;;  %v9203_v7 = vmul.f32 %v4432_v41, %v561_v2 }
 0x116   :  { %14105 = vst [vmem:[#allocation67_spill] sm:$0xff] %v9201_v6  ;;  %14106 = vst [vmem:[#allocation68_spill] sm:$0xff] %v9203_v7  ;;  %v557_v37 = vpop.permute.xlu1 %556  ;;  %v555_v38 = vpop.permute.xlu0 %554  ;;  %v599_v62 = vpack.c.bf16 %v595_v15, %v591_v5 }
 0x117   :  { %v560_v12 = vsel %vm558_vm6, %v553_v49, %v557_v37  ;;  %v566_v20 = vsel %vm558_vm6, %v557_v37, %v545_v45  ;;  %v559_v13 = vsel %vm558_vm6, %v551_v23, %v555_v38  ;;  %v565_v3 = vsel %vm558_vm6, %v555_v38, %v543_v44  ;;  %v4461_v45 = vld [vmem:[#allocation8 + $0x20] ss:$8 sm:$0xf] }
 0x118   :  { %v596_v42 = vmul.f32 %v581_v1, %v560_v12  ;;  %v597_v41 = vmul.f32 %v585_v35, %v566_v20  ;;  %v9215_v2 = vmul.f32 %v4436_v50, %v560_v12  ;;  %v9217_v15 = vmul.f32 %v4440_v63, %v566_v20  ;;  %760 = vmatprep.subr.bf16.mxu0 %v599_v62  ;;  %v632_v12 = vld [vmem:[#allocation8 + $0x20] ss:$8 sm:$0xf] }
 0x119   :  { %v592_v55 = vmul.f32 %v581_v1, %v559_v13  ;;  %v593_v24 = vmul.f32 %v585_v35, %v565_v3  ;;  %v9219_v5 = vmul.f32 %v4436_v50, %v559_v13  ;;  %v9221_v49 = vmul.f32 %v4440_v63, %v565_v3  ;;  %761 = vmatpush1.bf16.msra.mxu0 %v598_v4 }
 0x11a   :  { %14107 = vst [vmem:[#allocation69_spill] sm:$0xff] %v9215_v2  ;;  %14108 = vst [vmem:[#allocation70_spill] sm:$0xff] %v9217_v15  ;;  %v609_v37 = vpop.permute.xlu1 %608  ;;  %v607_v23 = vpop.permute.xlu0 %606  ;;  %v4466_v35 = vrot.slane %v4461_v45, %v8859_v25  ;;  %v637_v63 = vrot.slane %v632_v12, %v8859_v25  ;;  %v641_v13 = vrot.slane %v632_v12, %v8837_v11 }
 0x11b   :  { %14109 = vst [vmem:[#allocation71_spill] sm:$0xff] %v9219_v5  ;;  %14110 = vst [vmem:[#allocation72_spill] sm:$0xff] %v9221_v49  ;;  %v601_v38 = vpack.c.bf16 %v597_v41, %v593_v24  ;;  %v600_v61 = vpack.c.bf16 %v596_v42, %v592_v55  ;;  %v4470_v41 = vrot.slane %v4461_v45, %v8837_v11  ;;  %v8628_v5 = vmov 1.0  }
 0x11c   :  { %v649_v55 = vrot.slane %v632_v12, %v8870_v30  ;;  %v4474_v24 = vrot.slane %v4461_v45, %v8845_v16 }
 0x11d   :  { %803 = vmatprep.subr.bf16.mxu1 %v601_v38  ;;  %v4478_v38 = vrot.slane %v4461_v45, %v8870_v30 }
 0x11e   :  { %804 = vmatpush1.bf16.msra.mxu1 %v600_v61  ;;  %v613_v50 = vpop.permute.xlu1 %612  ;;  %v611_v62 = vpop.permute.xlu0 %610  ;;  %v645_v61 = vrot.slane %v632_v12, %v8845_v16 }
 0x11f   :  { %v628_v1 = vsel %vm622_vm7, %v609_v37, %v613_v50  ;;  %v627_v4 = vsel %vm622_vm7, %v607_v23, %v611_v62 }
 0x120   :  { %v9235_v3 = vmul.f32 %v4466_v35, %v628_v1  ;;  %v9237_v42 = vmul.f32 %v4466_v35, %v627_v4  ;;  %v658_v44 = vmul.f32 %v637_v63, %v628_v1  ;;  %v654_v20 = vmul.f32 %v637_v63, %v627_v4 }
 0x122   :  { %14111 = vst [vmem:[#allocation73_spill] sm:$0xff] %v9235_v3  ;;  %14112 = vst [vmem:[#allocation74_spill] sm:$0xff] %v9237_v42  ;;  %v617_v2 = vpop.permute.xlu1 %616  ;;  %v615_v35 = vpop.permute.xlu0 %614  ;;  %v662_v4 = vpack.c.bf16 %v658_v44, %v654_v20  ;;  %v9255_v42 = vpack.c.bf16 %v8627_v43, %v8628_v5  ;;  %v14116_v43 = vmov 0 }
 0x123   :  { %v626_v49 = vsel %vm622_vm7, %v613_v50, %v617_v2  ;;  %v625_v15 = vsel %vm622_vm7, %v611_v62, %v615_v35  ;;  %v14117_v43 = vsel %vm9269_vm10, 4294967295, %v14116_v43 }
 0x124   :  { %v659_v12 = vmul.f32 %v641_v13, %v626_v49  ;;  %v9251_v7 = vmul.f32 %v4470_v41, %v626_v49  ;;  %v655_v6 = vmul.f32 %v641_v13, %v625_v15  ;;  %v9253_v45 = vmul.f32 %v4470_v41, %v625_v15  ;;  %14115 = vst [vmem:[#allocation77_spill] sm:$0xff] %v9255_v42 }
 0x125   :  { %14118 = vst [vmem:[#allocation78_spill] sm:$0xff] %v14117_v43 }
 0x126   :  { %14113 = vst [vmem:[#allocation75_spill] sm:$0xff] %v9251_v7  ;;  %14114 = vst [vmem:[#allocation76_spill] sm:$0xff] %v9253_v45  ;;  %v621_v0 = vpop.permute.xlu1 %620  ;;  %v619_v1 = vpop.permute.xlu0 %618  ;;  %v663_v63 = vpack.c.bf16 %v659_v12, %v655_v6 }
 0x127   :  { %v624_v62 = vsel %vm622_vm7, %v617_v2, %v621_v0  ;;  %v630_v49 = vsel %vm622_vm7, %v621_v0, %v609_v37  ;;  %v623_v15 = vsel %vm622_vm7, %v615_v35, %v619_v1  ;;  %v629_v6 = vsel %vm622_vm7, %v619_v1, %v607_v23  ;;  %v8425_v1 = vld [vmem:[#allocation6] ss:$8 sps:$4 sm:$0xff]  }
 0x128   :  { %v660_v5 = vmul.f32 %v645_v61, %v624_v62  ;;  %v661_v44 = vmul.f32 %v649_v55, %v630_v49  ;;  %v9273_v20 = vmul.f32 %v4474_v24, %v624_v62  ;;  %v9275_v2 = vmul.f32 %v4478_v38, %v630_v49  ;;  %762 = vmatprep.subr.bf16.mxu0 %v663_v63 }
 0x129   :  { %v656_v0 = vmul.f32 %v645_v61, %v623_v15  ;;  %v657_v37 = vmul.f32 %v649_v55, %v629_v6  ;;  %v9277_v13 = vmul.f32 %v4474_v24, %v623_v15  ;;  %v9279_v41 = vmul.f32 %v4478_v38, %v629_v6  ;;  %763 = vmatpush1.bf16.msra.mxu0 %v662_v4 }
 0x12a   :  { %14119 = vst [vmem:[#allocation79_spill] sm:$0xff] %v9273_v20  ;;  %14120 = vst [vmem:[#allocation80_spill] sm:$0xff] %v9275_v2  ;;  %8261 = vmatprep.subr.msk.bf16.mxu0 %vm9269_vm10, %v9255_v42 }
 0x12b   :  { %14121 = vst [vmem:[#allocation81_spill] sm:$0xff] %v9277_v13  ;;  %14122 = vst [vmem:[#allocation82_spill] sm:$0xff] %v9279_v41  ;;  %v665_v23 = vpack.c.bf16 %v661_v44, %v657_v37  ;;  %v664_v35 = vpack.c.bf16 %v660_v5, %v656_v0 }
 0x12d   :  { %805 = vmatprep.subr.bf16.mxu1 %v665_v23  ;;  %8264 = vmatpush1.bf16.msk.msra.mxu0 %vm9269_vm10, %v9255_v42 }
 0x12e   :  { %806 = vmatpush1.bf16.msra.mxu1 %v664_v35 }
 0x12f   :  { %8267 = vmatprep.subr.msk.bf16.mxu1 %vm9269_vm10, %v9255_v42 }
 0x130   :  { %779 = vmatmul.mubr.bf16.vlgmr.msra.gmra.mrb[0].mxu0 %v8425_v1 }
 0x132   :  { %8270 = vmatpush1.bf16.msk.msra.mxu1 %vm9269_vm10, %v9255_v42 }
 0x135   :  { %822 = vmatmul.mubr.bf16.vlgmr.msra.gmra.mrb[0].mxu1 %v8425_v1 }
 0x203   :  { %v780_v61 = vpop.f32.mrb[0].mxu0 }
 0x204   :  { %v9297_v55 = vmax.f32 %v780_v61, 0.0  ;;  %v782_v24 = vpop.f32.mrb[1].mxu0 }
 0x205   :  { %v784_v38 = vpop.f32.mrb[2].mxu0  ;;  %v9371_v23 = vmax.f32 %v782_v24, 0.0 }
 0x206   :  { %v9299_v63 = vmax.f32 %v784_v38, 0.0  ;;  %840 = vrot.lane.b32.xlu0 %v9297_v55, %s8619_s6  ;;  %v786_v4 = vpop.f32.mrb[3].mxu0 }
 0x207   :  { %v9375_v35 = vmax.f32 %v786_v4, 0.0 }
 0x208   :  { %v823_v62 = vpop.f32.mrb[0].mxu1  ;;  %842 = vrot.lane.b32.xlu1 %v9299_v63, %s8619_s6 }
 0x209   :  { %v9307_v15 = vmax.f32 %v823_v62, 0.0  ;;  %v825_v6 = vpop.f32.mrb[1].mxu1  ;;  %v8430_v62 = vld [vmem:[#allocation6 + $0x14] ss:$8 sps:$4 sm:$0xff]  }
 0x20a   :  { %v827_v5 = vpop.f32.mrb[2].mxu1  ;;  %v9379_v1 = vmax.f32 %v825_v6, 0.0  ;;  %1453 = vmatprep.mubr.bf16.mxu0 %v8430_v62  ;;  %1496 = vmatprep.mubr.bf16.mxu1 %v8430_v62 }
 0x20b   :  { %v9309_v44 = vmax.f32 %v827_v5, 0.0  ;;  %v829_v0 = vpop.f32.mrb[3].mxu1  ;;  %848 = vrot.lane.b32.xlu0 %v9307_v15, %s8619_s6 }
 0x20c   :  { %v9383_v61 = vmax.f32 %v829_v0, 0.0 }
 0x20d   :  { %850 = vrot.lane.b32.xlu1 %v9309_v44, %s8619_s6 }
 0x20f   :  { %902 = vrot.lane.b32.xlu0 %v9297_v55, %s8620_s2 }
 0x211   :  { %904 = vrot.lane.b32.xlu1 %v9299_v63, %s8620_s2 }
 0x213   :  { %910 = vrot.lane.b32.xlu0 %v9307_v15, %s8620_s2 }
 0x215   :  { %912 = vrot.lane.b32.xlu1 %v9309_v44, %s8620_s2 }
 0x217   :  { %964 = vrot.lane.b32.xlu0 %v9297_v55, %s8621_s7 }
 0x219   :  { %966 = vrot.lane.b32.xlu1 %v9299_v63, %s8621_s7 }
 0x21b   :  { %972 = vrot.lane.b32.xlu0 %v9307_v15, %s8621_s7 }
 0x21d   :  { %974 = vrot.lane.b32.xlu1 %v9309_v44, %s8621_s7 }
 0x21f   :  { %1026 = vrot.lane.b32.xlu0 %v9297_v55, %s8622_s8 }
 0x221   :  { %1028 = vrot.lane.b32.xlu1 %v9299_v63, %s8622_s8 }
 0x223   :  { %1034 = vrot.lane.b32.xlu0 %v9307_v15, %s8622_s8 }
 0x225   :  { %1036 = vrot.lane.b32.xlu1 %v9309_v44, %s8622_s8 }
 0x227   :  { %1096 = vrot.lane.b32.xlu0 %v9297_v55, %s8623_s9 }
 0x229   :  { %1098 = vrot.lane.b32.xlu1 %v9299_v63, %s8623_s9 }
 0x22b   :  { %1104 = vrot.lane.b32.xlu0 %v9307_v15, %s8623_s9 }
 0x22d   :  { %1106 = vrot.lane.b32.xlu1 %v9309_v44, %s8623_s9 }
 0x22f   :  { %1158 = vrot.lane.b32.xlu0 %v9297_v55, %s8624_s10 }
 0x231   :  { %1160 = vrot.lane.b32.xlu1 %v9299_v63, %s8624_s10 }
 0x233   :  { %1166 = vrot.lane.b32.xlu0 %v9307_v15, %s8624_s10 }
 0x235   :  { %1168 = vrot.lane.b32.xlu1 %v9309_v44, %s8624_s10 }
 0x237   :  { %1220 = vrot.lane.b32.xlu0 %v9297_v55, %s8625_s11 }
 0x239   :  { %1222 = vrot.lane.b32.xlu1 %v9299_v63, %s8625_s11 }
 0x23b   :  { %1228 = vrot.lane.b32.xlu0 %v9307_v15, %s8625_s11 }
 0x23d   :  { %1230 = vrot.lane.b32.xlu1 %v9309_v44, %s8625_s11 }
 0x23f   :  { %1282 = vrot.lane.b32.xlu0 %v9297_v55, %s8626_s12 }
 0x241   :  { %1284 = vrot.lane.b32.xlu1 %v9299_v63, %s8626_s12 }
 0x243   :  { %1290 = vrot.lane.b32.xlu0 %v9307_v15, %s8626_s12 }
 0x245   :  { %1292 = vrot.lane.b32.xlu1 %v9309_v44, %s8626_s12 }
 0x247   :  { %844 = vrot.lane.b32.xlu0 %v9371_v23, %s8619_s6 }
 0x249   :  { %846 = vrot.lane.b32.xlu1 %v9375_v35, %s8619_s6 }
 0x24b   :  { %852 = vrot.lane.b32.xlu0 %v9379_v1, %s8619_s6 }
 0x24d   :  { %854 = vrot.lane.b32.xlu1 %v9383_v61, %s8619_s6 }
 0x24f   :  { %906 = vrot.lane.b32.xlu0 %v9371_v23, %s8620_s2 }
 0x251   :  { %908 = vrot.lane.b32.xlu1 %v9375_v35, %s8620_s2 }
 0x253   :  { %914 = vrot.lane.b32.xlu0 %v9379_v1, %s8620_s2 }
 0x255   :  { %916 = vrot.lane.b32.xlu1 %v9383_v61, %s8620_s2 }
 0x257   :  { %968 = vrot.lane.b32.xlu0 %v9371_v23, %s8621_s7 }
 0x259   :  { %970 = vrot.lane.b32.xlu1 %v9375_v35, %s8621_s7 }
 0x25b   :  { %976 = vrot.lane.b32.xlu0 %v9379_v1, %s8621_s7 }
 0x25d   :  { %978 = vrot.lane.b32.xlu1 %v9383_v61, %s8621_s7 }
 0x25f   :  { %1030 = vrot.lane.b32.xlu0 %v9371_v23, %s8622_s8 }
 0x261   :  { %1032 = vrot.lane.b32.xlu1 %v9375_v35, %s8622_s8 }
 0x263   :  { %1038 = vrot.lane.b32.xlu0 %v9379_v1, %s8622_s8 }
 0x265   :  { %1040 = vrot.lane.b32.xlu1 %v9383_v61, %s8622_s8 }
 0x267   :  { %1100 = vrot.lane.b32.xlu0 %v9371_v23, %s8623_s9 }
 0x269   :  { %1102 = vrot.lane.b32.xlu1 %v9375_v35, %s8623_s9 }
 0x26b   :  { %1108 = vrot.lane.b32.xlu0 %v9379_v1, %s8623_s9 }
 0x26d   :  { %1110 = vrot.lane.b32.xlu1 %v9383_v61, %s8623_s9 }
 0x26f   :  { %1162 = vrot.lane.b32.xlu0 %v9371_v23, %s8624_s10 }
 0x271   :  { %1164 = vrot.lane.b32.xlu1 %v9375_v35, %s8624_s10 }
 0x273   :  { %1170 = vrot.lane.b32.xlu0 %v9379_v1, %s8624_s10 }
 0x275   :  { %1172 = vrot.lane.b32.xlu1 %v9383_v61, %s8624_s10 }
 0x277   :  { %1224 = vrot.lane.b32.xlu0 %v9371_v23, %s8625_s11 }
 0x278   :  { %v841_v24 = vpop.permute.xlu0 %840 }
 0x279   :  { %1226 = vrot.lane.b32.xlu1 %v9375_v35, %s8625_s11 }
 0x27a   :  { %v843_v38 = vpop.permute.xlu1 %842 }
 0x27b   :  { %1232 = vrot.lane.b32.xlu0 %v9379_v1, %s8625_s11 }
 0x27d   :  { %v849_v4 = vpop.permute.xlu0 %848  ;;  %1234 = vrot.lane.b32.xlu1 %v9383_v61, %s8625_s11 }
 0x27f   :  { %1286 = vrot.lane.b32.xlu0 %v9371_v23, %s8626_s12  ;;  %v851_v6 = vpop.permute.xlu1 %850 }
 0x281   :  { %v9439_v5 = vpop.permute.xlu0 %902  ;;  %1288 = vrot.lane.b32.xlu1 %v9375_v35, %s8626_s12 }
 0x283   :  { %1294 = vrot.lane.b32.xlu0 %v9379_v1, %s8626_s12  ;;  %v9445_v0 = vpop.permute.xlu1 %904 }
 0x285   :  { %v9447_v9 = vpop.permute.xlu0 %910  ;;  %1296 = vrot.lane.b32.xlu1 %v9383_v61, %s8626_s12 }
 0x287   :  { %v9451_v12 = vpop.permute.xlu1 %912 }
 0x289   :  { %v9453_v50 = vpop.permute.xlu0 %964 }
 0x28b   :  { %v9455_v62 = vpop.permute.xlu1 %966 }
 0x28d   :  { %v9457_v37 = vpop.permute.xlu0 %972 }
 0x28f   :  { %v9459_v49 = vpop.permute.xlu1 %974 }
 0x291   :  { %v9461_v13 = vpop.permute.xlu0 %1026 }
 0x293   :  { %v9463_v20 = vpop.permute.xlu1 %1028 }
 0x295   :  { %v9465_v41 = vpop.permute.xlu0 %1034 }
 0x297   :  { %v9467_v2 = vpop.permute.xlu1 %1036 }
 0x299   :  { %v9469_v3 = vpop.permute.xlu0 %1096 }
 0x29b   :  { %v9471_v45 = vpop.permute.xlu1 %1098 }
 0x29d   :  { %v9473_v7 = vpop.permute.xlu0 %1104 }
 0x29f   :  { %v9475_v26 = vpop.permute.xlu1 %1106 }
 0x2a1   :  { %v9477_v14 = vpop.permute.xlu0 %1158 }
 0x2a3   :  { %v9479_v36 = vpop.permute.xlu1 %1160 }
 0x2a5   :  { %v9481_v33 = vpop.permute.xlu0 %1166 }
 0x2a7   :  { %v9483_v52 = vpop.permute.xlu1 %1168 }
 0x2a9   :  { %v9485_v31 = vpop.permute.xlu0 %1220 }
 0x2ab   :  { %v9487_v58 = vpop.permute.xlu1 %1222 }
 0x2ad   :  { %v9489_v19 = vpop.permute.xlu0 %1228 }
 0x2af   :  { %v9491_v8 = vpop.permute.xlu1 %1230 }
 0x2b1   :  { %v9493_v48 = vpop.permute.xlu0 %1282 }
 0x2b2   :  { %14123 = vst [vmem:[#allocation83_spill] sm:$0xff] %v9493_v48 }
 0x2b3   :  { %v9495_v47 = vpop.permute.xlu1 %1284 }
 0x2b4   :  { %14124 = vst [vmem:[#allocation84_spill] sm:$0xff] %v9495_v47 }
 0x2b5   :  { %v9497_v46 = vpop.permute.xlu0 %1290 }
 0x2b6   :  { %14125 = vst [vmem:[#allocation85_spill] sm:$0xff] %v9497_v46 }
 0x2b7   :  { %v9499_v57 = vpop.permute.xlu1 %1292 }
 0x2b8   :  { %14126 = vst [vmem:[#allocation86_spill] sm:$0xff] %v9499_v57 }
 0x2b9   :  { %v845_v18 = vpop.permute.xlu0 %844 }
 0x2ba   :  { %v860_v56 = vsel %vm167_vm0, %v841_v24, %v845_v18  ;;  %v858_v29 = vsel %vm167_vm0, %v845_v18, %v849_v4 }
 0x2bb   :  { %v847_v51 = vpop.permute.xlu1 %846  ;;  %v887_v21 = vmul.f32 %v873_v22, %v860_v56 }
 0x2bc   :  { %v861_v40 = vsel %vm167_vm0, %v843_v38, %v847_v51  ;;  %v859_v17 = vsel %vm167_vm0, %v847_v51, %v851_v6 }
 0x2bd   :  { %v891_v59 = vmul.f32 %v873_v22, %v861_v40  ;;  %v853_v32 = vpop.permute.xlu0 %852  ;;  %v892_v42 = vmul.f32 %v877_v54, %v859_v17 }
 0x2be   :  { %v856_v53 = vsel %vm167_vm0, %v849_v4, %v853_v32  ;;  %v862_v28 = vsel %vm167_vm0, %v853_v32, %v841_v24  ;;  %v888_v32 = vmul.f32 %v877_v54, %v858_v29 }
 0x2bf   :  { %v855_v56 = vpop.permute.xlu1 %854  ;;  %v895_v43 = vpack.c.bf16 %v891_v59, %v887_v21  ;;  %v886_v51 = vmul.f32 %v869_v39, %v862_v28  ;;  %v889_v47 = vmul.f32 %v881_v60, %v856_v53  ;;  %v931_v28 = vrot.slane %v926_v27, %v8859_v25 }
 0x2c0   :  { %v857_v40 = vsel %vm167_vm0, %v851_v6, %v855_v56  ;;  %v863_v22 = vsel %vm167_vm0, %v855_v56, %v843_v38  ;;  %v896_v24 = vpack.c.bf16 %v892_v42, %v888_v32 }
 0x2c1   :  { %v890_v57 = vmul.f32 %v869_v39, %v863_v22  ;;  %v893_v48 = vmul.f32 %v881_v60, %v857_v40  ;;  %v907_v46 = vpop.permute.xlu0 %906  ;;  %1421 = vmatprep.subr.bf16.mxu0 %v895_v43  ;;  %v943_v39 = vrot.slane %v926_v27, %v8870_v30 }
 0x2c2   :  { %v922_v59 = vsel %vm230_vm1, %v9439_v5, %v907_v46  ;;  %v920_v43 = vsel %vm230_vm1, %v907_v46, %v9447_v9 }
 0x2c3   :  { %v894_v17 = vpack.c.bf16 %v890_v57, %v886_v51  ;;  %v909_v18 = vpop.permute.xlu1 %908  ;;  %v897_v21 = vpack.c.bf16 %v893_v48, %v889_v47  ;;  %v949_v53 = vmul.f32 %v935_v34, %v922_v59  ;;  %v988_v57 = vld [vmem:[#allocation8 + $0x2] ss:$8 sm:$0xf]  ;;  %v939_v47 = vrot.slane %v926_v27, %v8845_v16 }
 0x2c4   :  { %v923_v38 = vsel %vm230_vm1, %v9445_v0, %v909_v18  ;;  %v921_v29 = vsel %vm230_vm1, %v909_v18, %v9451_v12  ;;  %v997_v22 = vrot.slane %v988_v57, %v8837_v11 }
 0x2c5   :  { %v953_v54 = vmul.f32 %v935_v34, %v923_v38  ;;  %v915_v60 = vpop.permute.xlu0 %914  ;;  %1422 = vmatpush1.bf16.msra.mxu0 %v894_v17  ;;  %1464 = vmatprep.subr.bf16.mxu1 %v897_v21  ;;  %v954_v56 = vmul.f32 %v939_v47, %v921_v29  ;;  %v950_v46 = vmul.f32 %v939_v47, %v920_v43 }
 0x2c6   :  { %v918_v48 = vsel %vm230_vm1, %v9447_v9, %v915_v60  ;;  %v924_v42 = vsel %vm230_vm1, %v915_v60, %v9439_v5  ;;  %1465 = vmatpush1.bf16.msra.mxu1 %v896_v24  ;;  %v993_v24 = vrot.slane %v988_v57, %v8859_v25  ;;  %v1005_v38 = vrot.slane %v988_v57, %v8870_v30 }
 0x2c7   :  { %v917_v4 = vpop.permute.xlu1 %916  ;;  %v957_v6 = vpack.c.bf16 %v953_v54, %v949_v53  ;;  %v948_v34 = vmul.f32 %v931_v28, %v924_v42  ;;  %v951_v5 = vmul.f32 %v943_v39, %v918_v48  ;;  %v958_v21 = vpack.c.bf16 %v954_v56, %v950_v46  ;;  %v1050_v54 = vld [vmem:[#allocation8 + $0x3] ss:$8 sm:$0xf] }
 0x2c8   :  { %v919_v27 = vsel %vm230_vm1, %v9451_v12, %v917_v4  ;;  %v925_v40 = vsel %vm230_vm1, %v917_v4, %v9445_v0  ;;  %v1001_v60 = vrot.slane %v988_v57, %v8845_v16 }
 0x2c9   :  { %v952_v51 = vmul.f32 %v931_v28, %v925_v40  ;;  %v955_v32 = vmul.f32 %v943_v39, %v919_v27  ;;  %v969_v59 = vpop.permute.xlu0 %968  ;;  %1423 = vmatprep.subr.bf16.mxu0 %v957_v6  ;;  %v1059_v27 = vrot.slane %v1050_v54, %v8837_v11 }
 0x2ca   :  { %v984_v9 = vsel %vm294_vm2, %v9453_v50, %v969_v59  ;;  %v982_v42 = vsel %vm294_vm2, %v969_v59, %v9457_v37 }
 0x2cb   :  { %v956_v17 = vpack.c.bf16 %v952_v51, %v948_v34  ;;  %v971_v18 = vpop.permute.xlu1 %970  ;;  %v959_v12 = vpack.c.bf16 %v955_v32, %v951_v5  ;;  %v1011_v28 = vmul.f32 %v997_v22, %v984_v9  ;;  %v1055_v9 = vrot.slane %v1050_v54, %v8859_v25 }
 0x2cc   :  { %v985_v0 = vsel %vm294_vm2, %v9455_v62, %v971_v18  ;;  %v983_v39 = vsel %vm294_vm2, %v971_v18, %v9459_v49 }
 0x2cd   :  { %v1015_v53 = vmul.f32 %v997_v22, %v985_v0  ;;  %v977_v29 = vpop.permute.xlu0 %976  ;;  %1424 = vmatpush1.bf16.msra.mxu0 %v956_v17  ;;  %1466 = vmatprep.subr.bf16.mxu1 %v959_v12  ;;  %v1016_v6 = vmul.f32 %v1001_v60, %v983_v39  ;;  %v1067_v17 = vrot.slane %v1050_v54, %v8870_v30 }
 0x2ce   :  { %v980_v47 = vsel %vm294_vm2, %v9457_v37, %v977_v29  ;;  %v986_v48 = vsel %vm294_vm2, %v977_v29, %v9453_v50  ;;  %1467 = vmatpush1.bf16.msra.mxu1 %v958_v21  ;;  %v1012_v37 = vmul.f32 %v1001_v60, %v982_v42 }
 0x2cf   :  { %v979_v43 = vpop.permute.xlu1 %978  ;;  %v1019_v4 = vpack.c.bf16 %v1015_v53, %v1011_v28  ;;  %v1010_v40 = vmul.f32 %v993_v24, %v986_v48  ;;  %v1013_v50 = vmul.f32 %v1005_v38, %v980_v47 }
 0x2d0   :  { %v981_v57 = vsel %vm294_vm2, %v9459_v49, %v979_v43  ;;  %v987_v56 = vsel %vm294_vm2, %v979_v43, %v9455_v62  ;;  %v1020_v46 = vpack.c.bf16 %v1016_v6, %v1012_v37 }
 0x2d1   :  { %v1014_v22 = vmul.f32 %v993_v24, %v987_v56  ;;  %v1017_v34 = vmul.f32 %v1005_v38, %v981_v57  ;;  %v1031_v5 = vpop.permute.xlu0 %1030  ;;  %1425 = vmatprep.subr.bf16.mxu0 %v1019_v4  ;;  %v1120_v24 = vld [vmem:[#allocation8 + $0x5] ss:$8 sm:$0xf]  ;;  %v1063_v38 = vrot.slane %v1050_v54, %v8845_v16 }
 0x2d2   :  { %v1046_v51 = vsel %vm358_vm3, %v9461_v13, %v1031_v5  ;;  %v1044_v53 = vsel %vm358_vm3, %v1031_v5, %v9465_v41  ;;  %v1129_v42 = vrot.slane %v1120_v24, %v8837_v11 }
 0x2d3   :  { %v1018_v32 = vpack.c.bf16 %v1014_v22, %v1010_v40  ;;  %v1033_v59 = vpop.permute.xlu1 %1032  ;;  %v1021_v49 = vpack.c.bf16 %v1017_v34, %v1013_v50  ;;  %v1073_v18 = vmul.f32 %v1059_v27, %v1046_v51  ;;  %v1125_v40 = vrot.slane %v1120_v24, %v8859_v25 }
 0x2d4   :  { %v1047_v62 = vsel %vm358_vm3, %v9463_v20, %v1033_v59  ;;  %v1045_v12 = vsel %vm358_vm3, %v1033_v59, %v9467_v2  ;;  %v1133_v22 = vrot.slane %v1120_v24, %v8845_v16 }
 0x2d5   :  { %v1077_v21 = vmul.f32 %v1059_v27, %v1047_v62  ;;  %v1039_v0 = vpop.permute.xlu0 %1038  ;;  %1426 = vmatpush1.bf16.msra.mxu0 %v1018_v32  ;;  %1468 = vmatprep.subr.bf16.mxu1 %v1021_v49  ;;  %v1078_v47 = vmul.f32 %v1063_v38, %v1045_v12  ;;  %v1091_v27 = vpack.c.bf16 %v9383_v61, %v9379_v1 }
 0x2d6   :  { %v1042_v28 = vsel %vm358_vm3, %v9465_v41, %v1039_v0  ;;  %v1048_v39 = vsel %vm358_vm3, %v1039_v0, %v9461_v13  ;;  %1469 = vmatpush1.bf16.msra.mxu1 %v1020_v46  ;;  %v1074_v41 = vmul.f32 %v1063_v38, %v1044_v53  ;;  %v14127_v53 = vpack.c.bf16 %v9299_v63, %v9297_v55 }
 0x2d7   :  { %v1041_v29 = vpop.permute.xlu1 %1040  ;;  %v1081_v60 = vpack.c.bf16 %v1077_v21, %v1073_v18  ;;  %v1072_v43 = vmul.f32 %v1055_v9, %v1048_v39  ;;  %v1075_v13 = vmul.f32 %v1067_v17, %v1042_v28 }
 0x2d8   :  { %v1043_v54 = vsel %vm358_vm3, %v9467_v2, %v1041_v29  ;;  %v1049_v48 = vsel %vm358_vm3, %v1041_v29, %v9463_v20  ;;  %v1089_v2 = vpack.c.bf16 %v9375_v35, %v9371_v23  ;;  %v1082_v5 = vpack.c.bf16 %v1078_v47, %v1074_v41  ;;  %v1182_v35 = vld [vmem:[#allocation8 + $0x6] ss:$8 sm:$0xf] }
 0x2d9   :  { %v1076_v4 = vmul.f32 %v1055_v9, %v1049_v48  ;;  %v1079_v6 = vmul.f32 %v1067_v17, %v1043_v54  ;;  %v1101_v57 = vpop.permute.xlu0 %1100  ;;  %1427 = vmatprep.subr.bf16.mxu0 %v1081_v60  ;;  %v1137_v23 = vrot.slane %v1120_v24, %v8870_v30  ;;  %v1187_v17 = vrot.slane %v1182_v35, %v8859_v25 }
 0x2da   :  { %v1114_v56 = vsel %vm430_vm4, %v1101_v57, %v9473_v7  ;;  %v1116_v1 = vsel %vm430_vm4, %v9469_v3, %v1101_v57  ;;  %v1191_v0 = vrot.slane %v1182_v35, %v8837_v11  ;;  %v1195_v48 = vrot.slane %v1182_v35, %v8845_v16  ;;  %v1244_v57 = vld [vmem:[#allocation8 + $0x7] ss:$8 sm:$0xf] }
 0x2db   :  { %v1080_v20 = vpack.c.bf16 %v1076_v4, %v1072_v43  ;;  %v1103_v50 = vpop.permute.xlu1 %1102  ;;  %v1083_v34 = vpack.c.bf16 %v1079_v6, %v1075_v13  ;;  %v1143_v61 = vmul.f32 %v1129_v42, %v1114_v56  ;;  %v1142_v12 = vmul.f32 %v1125_v40, %v1116_v1 }
 0x2dc   :  { %v1115_v37 = vsel %vm430_vm4, %v1103_v50, %v9475_v26  ;;  %v1117_v51 = vsel %vm430_vm4, %v9471_v45, %v1103_v50  ;;  %v1199_v13 = vrot.slane %v1182_v35, %v8870_v30 }
 0x2dd   :  { %v1147_v32 = vmul.f32 %v1129_v42, %v1115_v37  ;;  %v1109_v59 = vpop.permute.xlu0 %1108  ;;  %1428 = vmatpush1.bf16.msra.mxu0 %v1080_v20  ;;  %1470 = vmatprep.subr.bf16.mxu1 %v1083_v34  ;;  %v1146_v62 = vmul.f32 %v1125_v40, %v1117_v51 }
 0x2de   :  { %v1112_v49 = vsel %vm430_vm4, %v9473_v7, %v1109_v59  ;;  %v1118_v46 = vsel %vm430_vm4, %v1109_v59, %v9469_v3  ;;  %1429 = vmatprep.subr.bf16.mxu0 %v1089_v2  ;;  %1471 = vmatpush1.bf16.msra.mxu1 %v1082_v5  ;;  %v1257_v59 = vrot.slane %v1244_v57, %v8845_v16 }
 0x2df   :  { %1472 = vmatprep.subr.bf16.mxu1 %v1091_v27  ;;  %v1111_v9 = vpop.permute.xlu1 %1110  ;;  %v1151_v18 = vpack.c.bf16 %v1147_v32, %v1143_v61  ;;  %v1144_v3 = vmul.f32 %v1133_v22, %v1112_v49  ;;  %v1145_v24 = vmul.f32 %v1137_v23, %v1118_v46  ;;  %v1150_v60 = vpack.c.bf16 %v1146_v62, %v1142_v12  ;;  %v1306_v12 = vld [vmem:[#allocation8 + $0x20] ss:$8 sm:$0xf] }
 0x2e0   :  { %v1113_v21 = vsel %vm430_vm4, %v9475_v26, %v1111_v9  ;;  %v1119_v7 = vsel %vm430_vm4, %v1111_v9, %v9471_v45  ;;  %v14128_v45 = vpack.c.bf16 %v9309_v44, %v9307_v15  ;;  %v1261_v49 = vrot.slane %v1244_v57, %v8870_v30 }
 0x2e1   :  { %v1148_v38 = vmul.f32 %v1133_v22, %v1113_v21  ;;  %v1149_v28 = vmul.f32 %v1137_v23, %v1119_v7  ;;  %v1163_v39 = vpop.permute.xlu0 %1162  ;;  %1430 = vmatpush1.bf16.msra.mxu0 %v14127_v53  ;;  %v1249_v22 = vrot.slane %v1244_v57, %v8859_v25 }
 0x2e2   :  { %v1176_v29 = vsel %vm494_vm5, %v1163_v39, %v9481_v33  ;;  %v1178_v26 = vsel %vm494_vm5, %v9477_v14, %v1163_v39  ;;  %1431 = vmatprep.subr.bf16.mxu0 %v1151_v18  ;;  %1473 = vmatpush1.bf16.msra.mxu1 %v14128_v45  ;;  %v1311_v39 = vrot.slane %v1306_v12, %v8859_v25 }
 0x2e3   :  { %v1152_v47 = vpack.c.bf16 %v1148_v38, %v1144_v3  ;;  %v1165_v54 = vpop.permute.xlu1 %1164  ;;  %v1153_v55 = vpack.c.bf16 %v1149_v28, %v1145_v24  ;;  %v1204_v63 = vmul.f32 %v1187_v17, %v1178_v26  ;;  %v1205_v4 = vmul.f32 %v1191_v0, %v1176_v29 }
 0x2e4   :  { %v1177_v42 = vsel %vm494_vm5, %v1165_v54, %v9483_v52  ;;  %v1179_v43 = vsel %vm494_vm5, %v9479_v36, %v1165_v54  ;;  %v14130_v54 = vld [vmem:[#allocation83_spill] sm:$0xff] }
 0x2e5   :  { %v1208_v15 = vmul.f32 %v1187_v17, %v1179_v43  ;;  %v1209_v44 = vmul.f32 %v1191_v0, %v1177_v42  ;;  %v1171_v6 = vpop.permute.xlu0 %1170  ;;  %1432 = vmatpush1.bf16.msra.mxu0 %v1150_v60  ;;  %1474 = vmatprep.subr.bf16.mxu1 %v1153_v55  ;;  %v14129_v60 = vld [vmem:[#allocation85_spill] sm:$0xff]  ;;  %v14132_v43 = vld [vmem:[#allocation84_spill] sm:$0xff] }
 0x2e6   :  { %v1174_v41 = vsel %vm494_vm5, %v9481_v33, %v1171_v6  ;;  %v1180_v56 = vsel %vm494_vm5, %v1171_v6, %v9477_v14  ;;  %1475 = vmatpush1.bf16.msra.mxu1 %v1152_v47  ;;  %v1253_v33 = vrot.slane %v1244_v57, %v8837_v11 }
 0x2e7   :  { %v1212_v2 = vpack.c.bf16 %v1208_v15, %v1204_v63  ;;  %v1173_v27 = vpop.permute.xlu1 %1172  ;;  %v1213_v20 = vpack.c.bf16 %v1209_v44, %v1205_v4  ;;  %v1206_v34 = vmul.f32 %v1195_v48, %v1174_v41  ;;  %v1207_v5 = vmul.f32 %v1199_v13, %v1180_v56  ;;  %v14131_v63 = vld [vmem:[#allocation86_spill] sm:$0xff] }
 0x2e8   :  { %v1175_v40 = vsel %vm494_vm5, %v9483_v52, %v1173_v27  ;;  %v1181_v50 = vsel %vm494_vm5, %v1173_v27, %v9479_v36  ;;  %v1319_v4 = vrot.slane %v1306_v12, %v8845_v16  ;;  %v1323_v15 = vrot.slane %v1306_v12, %v8870_v30 }
 0x2e9   :  { %v1210_v37 = vmul.f32 %v1195_v48, %v1175_v40  ;;  %v1211_v14 = vmul.f32 %v1199_v13, %v1181_v50  ;;  %v1225_v51 = vpop.permute.xlu0 %1224  ;;  %1433 = vmatprep.subr.bf16.mxu0 %v1213_v20 }
 0x2ea   :  { %v1238_v23 = vsel %vm558_vm6, %v1225_v51, %v9489_v19  ;;  %v1240_v52 = vsel %vm558_vm6, %v9485_v31, %v1225_v51  ;;  %1434 = vmatpush1.bf16.msra.mxu0 %v1212_v2 }
 0x2eb   :  { %v1214_v36 = vpack.c.bf16 %v1210_v37, %v1206_v34  ;;  %v1227_v35 = vpop.permute.xlu1 %1226  ;;  %v1215_v1 = vpack.c.bf16 %v1211_v14, %v1207_v5  ;;  %v1266_v46 = vmul.f32 %v1249_v22, %v1240_v52  ;;  %v1267_v62 = vmul.f32 %v1253_v33, %v1238_v23  ;;  %v14133_v23 = vld [vmem:[#allocation77_spill] sm:$0xff] }
 0x2ec   :  { %v1239_v61 = vsel %vm558_vm6, %v1227_v35, %v9491_v8  ;;  %v1241_v32 = vsel %vm558_vm6, %v9487_v58, %v1227_v35  ;;  %v8428_v35 = vld [vmem:[#allocation6 + $0x10] ss:$8 sps:$4 sm:$0xff]  }
 0x2ed   :  { %v1270_v9 = vmul.f32 %v1249_v22, %v1241_v32  ;;  %v1271_v17 = vmul.f32 %v1253_v33, %v1239_v61  ;;  %v1233_v18 = vpop.permute.xlu0 %1232  ;;  %1476 = vmatprep.subr.bf16.mxu1 %v1215_v1  ;;  %v8494_v61 = vld [vmem:[#allocation3] sm:$0xff] }
 0x2ee   :  { %v1236_v21 = vsel %vm558_vm6, %v9489_v19, %v1233_v18  ;;  %v1242_v7 = vsel %vm558_vm6, %v1233_v18, %v9485_v31  ;;  %1477 = vmatpush1.bf16.msra.mxu1 %v1214_v36  ;;  %v1315_v19 = vrot.slane %v1306_v12, %v8837_v11  ;;  %v8496_v18 = vld [vmem:[#allocation3 + $0x10] sm:$0xff] }
 0x2ef   :  { %v1274_v0 = vpack.c.bf16 %v1270_v9, %v1266_v46  ;;  %v1235_v3 = vpop.permute.xlu1 %1234  ;;  %v1275_v24 = vpack.c.bf16 %v1271_v17, %v1267_v62  ;;  %v1268_v53 = vmul.f32 %v1257_v59, %v1236_v21  ;;  %v1269_v29 = vmul.f32 %v1261_v49, %v1242_v7  ;;  %v8495_v46 = vld [vmem:[#allocation3 + $0x20] sm:$0xff] }
 0x2f0   :  { %v1237_v38 = vsel %vm558_vm6, %v9491_v8, %v1235_v3  ;;  %v1243_v28 = vsel %vm558_vm6, %v1235_v3, %v9487_v58 }
 0x2f1   :  { %v1272_v26 = vmul.f32 %v1257_v59, %v1237_v38  ;;  %v1273_v31 = vmul.f32 %v1261_v49, %v1243_v28  ;;  %v1287_v45 = vpop.permute.xlu0 %1286  ;;  %1435 = vmatprep.subr.bf16.mxu0 %v1275_v24  ;;  %v8498_v38 = vld [vmem:[#allocation3 + $0x8] sm:$0xff] }
 0x2f2   :  { %v1300_v47 = vsel %vm622_vm7, %v1287_v45, %v14129_v60  ;;  %v1302_v8 = vsel %vm622_vm7, %v14130_v54, %v1287_v45  ;;  %1436 = vmatpush1.bf16.msra.mxu0 %v1274_v0  ;;  %v8497_v0 = vld [vmem:[#allocation3 + $0x30] sm:$0xff] }
 0x2f3   :  { %v1276_v58 = vpack.c.bf16 %v1272_v26, %v1268_v53  ;;  %v1289_v48 = vpop.permute.xlu1 %1288  ;;  %v1277_v55 = vpack.c.bf16 %v1273_v31, %v1269_v29  ;;  %v1328_v44 = vmul.f32 %v1311_v39, %v1302_v8  ;;  %v1329_v6 = vmul.f32 %v1315_v19, %v1300_v47  ;;  %v8500_v53 = vld [vmem:[#allocation3 + $0x18] sm:$0xff] }
 0x2f4   :  { %v1301_v42 = vsel %vm622_vm7, %v1289_v48, %v14131_v63  ;;  %v1303_v13 = vsel %vm622_vm7, %v14132_v43, %v1289_v48  ;;  %v8501_v26 = vld [vmem:[#allocation3 + $0x38] sm:$0xff] }
 0x2f5   :  { %v1332_v57 = vmul.f32 %v1311_v39, %v1303_v13  ;;  %v1333_v41 = vmul.f32 %v1315_v19, %v1301_v42  ;;  %v1295_v56 = vpop.permute.xlu0 %1294  ;;  %1478 = vmatprep.subr.bf16.mxu1 %v1277_v55  ;;  %v8499_v39 = vld [vmem:[#allocation3 + $0x28] sm:$0xff] }
 0x2f6   :  { %v1298_v2 = vsel %vm622_vm7, %v14129_v60, %v1295_v56  ;;  %v1304_v27 = vsel %vm622_vm7, %v1295_v56, %v14130_v54  ;;  %1479 = vmatpush1.bf16.msra.mxu1 %v1276_v58  ;;  %v8433_v54 = vld [vmem:[#allocation6 + $0x24] ss:$8 sps:$4 sm:$0xff]  }
 0x2f7   :  { %v1336_v20 = vpack.c.bf16 %v1332_v57, %v1328_v44  ;;  %v1297_v40 = vpop.permute.xlu1 %1296  ;;  %v1337_v50 = vpack.c.bf16 %v1333_v41, %v1329_v6  ;;  %v1330_v34 = vmul.f32 %v1319_v4, %v1298_v2  ;;  %v1331_v5 = vmul.f32 %v1323_v15, %v1304_v27 }
 0x2f8   :  { %v1299_v22 = vsel %vm622_vm7, %v14131_v63, %v1297_v40  ;;  %v1305_v33 = vsel %vm622_vm7, %v1297_v40, %v14132_v43 }
 0x2f9   :  { %v1334_v37 = vmul.f32 %v1319_v4, %v1299_v22  ;;  %v1335_v14 = vmul.f32 %v1323_v15, %v1305_v33  ;;  %1437 = vmatprep.subr.bf16.mxu0 %v1337_v50 }
 0x2fa   :  { %1438 = vmatpush1.bf16.msra.mxu0 %v1336_v20 }
 0x2fb   :  { %v1338_v51 = vpack.c.bf16 %v1334_v37, %v1330_v34  ;;  %8273 = vmatprep.subr.msk.bf16.mxu0 %vm9269_vm10, %v14133_v23  ;;  %v1339_v36 = vpack.c.bf16 %v1335_v14, %v1331_v5 }
 0x2fd   :  { %1480 = vmatprep.subr.bf16.mxu1 %v1339_v36 }
 0x2fe   :  { %8276 = vmatpush1.bf16.msk.msra.mxu0 %vm9269_vm10, %v14133_v23  ;;  %1481 = vmatpush1.bf16.msra.mxu1 %v1338_v51 }
 0x2ff   :  { %8279 = vmatprep.subr.msk.bf16.mxu1 %vm9269_vm10, %v14133_v23 }
 0x301   :  { %1454 = vmatmul.mubr.bf16.vlgmr.msra.gmra.mrb[4].mxu0 %v8428_v35 }
 0x302   :  { %8282 = vmatpush1.bf16.msk.msra.mxu1 %vm9269_vm10, %v14133_v23  ;;  %2120 = vmatprep.mubr.bf16.mxu0 %v8433_v54 }
 0x305   :  { %1497 = vmatmul.mubr.bf16.vlgmr.msra.gmra.mrb[4].mxu1 %v8428_v35  ;;  %v1531_v35 = vld [vmem:[#allocation8] ss:$8 sm:$0xf] }
 0x306   :  { %2163 = vmatprep.mubr.bf16.mxu1 %v8433_v54 }
 0x3d4   :  { %v1455_v1 = vpop.f32.mrb[4].mxu0 }
 0x3d5   :  { %v9739_v32 = vadd.f32 %v8494_v61, %v1455_v1  ;;  %v1457_v59 = vpop.f32.mrb[5].mxu0  ;;  %v1540_v61 = vrot.slane %v1531_v35, %v8837_v11 }
 0x3d6   :  { %v1459_v49 = vpop.f32.mrb[6].mxu0  ;;  %v9809_v28 = vadd.f32 %v8498_v38, %v1457_v59  ;;  %v1593_v38 = vld [vmem:[#allocation8 + $0x1] ss:$8 sm:$0xf] }
 0x3d7   :  { %14135 = vst [vmem:[#allocation85_spill] sm:$0xff] %v9739_v32  ;;  %v9741_v62 = vadd.f32 %v8495_v46, %v1459_v49  ;;  %v1461_v9 = vpop.f32.mrb[7].mxu0  ;;  %1507 = vrot.lane.b32.xlu0 %v9739_v32, %s8619_s6 }
 0x3d8   :  { %v1498_v17 = vpop.f32.mrb[4].mxu1  ;;  %14139 = vst [vmem:[#allocation87_spill] sm:$0xff] %v9809_v28  ;;  %v9813_v19 = vadd.f32 %v8499_v39, %v1461_v9  ;;  %v1544_v39 = vrot.slane %v1531_v35, %v8845_v16 }
 0x3d9   :  { %14136 = vst [vmem:[#allocation83_spill] sm:$0xff] %v9741_v62  ;;  %v9745_v12 = vadd.f32 %v8496_v18, %v1498_v17  ;;  %v1500_v21 = vpop.f32.mrb[5].mxu1  ;;  %1509 = vrot.lane.b32.xlu1 %v9741_v62, %s8619_s6  ;;  %v1536_v17 = vrot.slane %v1531_v35, %v8859_v25 }
 0x3da   :  { %v1502_v7 = vpop.f32.mrb[6].mxu1  ;;  %14140 = vst [vmem:[#allocation88_spill] sm:$0xff] %v9813_v19  ;;  %v9817_v29 = vadd.f32 %v8500_v53, %v1500_v21 }
 0x3db   :  { %14137 = vst [vmem:[#allocation86_spill] sm:$0xff] %v9745_v12  ;;  %v9749_v3 = vadd.f32 %v8497_v0, %v1502_v7  ;;  %v1504_v24 = vpop.f32.mrb[7].mxu1  ;;  %1515 = vrot.lane.b32.xlu0 %v9745_v12, %s8619_s6  ;;  %v1548_v0 = vrot.slane %v1531_v35, %v8870_v30  ;;  %v1602_v35 = vrot.slane %v1593_v38, %v8837_v11 }
 0x3dc   :  { %14141 = vst [vmem:[#allocation89_spill] sm:$0xff] %v9817_v29  ;;  %v9821_v31 = vadd.f32 %v8501_v26, %v1504_v24 }
 0x3dd   :  { %14138 = vst [vmem:[#allocation84_spill] sm:$0xff] %v9749_v3  ;;  %1517 = vrot.lane.b32.xlu1 %v9749_v3, %s8619_s6 }
 0x3de   :  { %14142 = vst [vmem:[#allocation90_spill] sm:$0xff] %v9821_v31 }
 0x3df   :  { %1569 = vrot.lane.b32.xlu0 %v9739_v32, %s8620_s2 }
 0x3e1   :  { %1571 = vrot.lane.b32.xlu1 %v9741_v62, %s8620_s2 }
 0x3e3   :  { %1577 = vrot.lane.b32.xlu0 %v9745_v12, %s8620_s2 }
 0x3e5   :  { %1579 = vrot.lane.b32.xlu1 %v9749_v3, %s8620_s2 }
 0x3e7   :  { %1631 = vrot.lane.b32.xlu0 %v9739_v32, %s8621_s7 }
 0x3e9   :  { %1633 = vrot.lane.b32.xlu1 %v9741_v62, %s8621_s7 }
 0x3eb   :  { %1639 = vrot.lane.b32.xlu0 %v9745_v12, %s8621_s7 }
 0x3ed   :  { %1641 = vrot.lane.b32.xlu1 %v9749_v3, %s8621_s7 }
 0x3ef   :  { %1693 = vrot.lane.b32.xlu0 %v9739_v32, %s8622_s8 }
 0x3f1   :  { %1695 = vrot.lane.b32.xlu1 %v9741_v62, %s8622_s8 }
 0x3f3   :  { %1701 = vrot.lane.b32.xlu0 %v9745_v12, %s8622_s8 }
 0x3f5   :  { %1703 = vrot.lane.b32.xlu1 %v9749_v3, %s8622_s8 }
 0x3f7   :  { %1763 = vrot.lane.b32.xlu0 %v9739_v32, %s8623_s9 }
 0x3f9   :  { %1765 = vrot.lane.b32.xlu1 %v9741_v62, %s8623_s9 }
 0x3fb   :  { %1771 = vrot.lane.b32.xlu0 %v9745_v12, %s8623_s9 }
 0x3fd   :  { %1773 = vrot.lane.b32.xlu1 %v9749_v3, %s8623_s9 }
 0x3ff   :  { %1825 = vrot.lane.b32.xlu0 %v9739_v32, %s8624_s10 }
 0x401   :  { %1827 = vrot.lane.b32.xlu1 %v9741_v62, %s8624_s10 }
 0x403   :  { %1833 = vrot.lane.b32.xlu0 %v9745_v12, %s8624_s10 }
 0x405   :  { %1835 = vrot.lane.b32.xlu1 %v9749_v3, %s8624_s10 }
 0x407   :  { %1887 = vrot.lane.b32.xlu0 %v9739_v32, %s8625_s11 }
 0x409   :  { %1889 = vrot.lane.b32.xlu1 %v9741_v62, %s8625_s11 }
 0x40b   :  { %1895 = vrot.lane.b32.xlu0 %v9745_v12, %s8625_s11 }
 0x40d   :  { %1897 = vrot.lane.b32.xlu1 %v9749_v3, %s8625_s11 }
 0x40f   :  { %1949 = vrot.lane.b32.xlu0 %v9739_v32, %s8626_s12 }
 0x411   :  { %1951 = vrot.lane.b32.xlu1 %v9741_v62, %s8626_s12 }
 0x413   :  { %1957 = vrot.lane.b32.xlu0 %v9745_v12, %s8626_s12 }
 0x415   :  { %1959 = vrot.lane.b32.xlu1 %v9749_v3, %s8626_s12 }
 0x417   :  { %1511 = vrot.lane.b32.xlu0 %v9809_v28, %s8619_s6 }
 0x419   :  { %1513 = vrot.lane.b32.xlu1 %v9813_v19, %s8619_s6 }
 0x41b   :  { %1519 = vrot.lane.b32.xlu0 %v9817_v29, %s8619_s6 }
 0x41d   :  { %1521 = vrot.lane.b32.xlu1 %v9821_v31, %s8619_s6 }
 0x41f   :  { %1573 = vrot.lane.b32.xlu0 %v9809_v28, %s8620_s2 }
 0x421   :  { %1575 = vrot.lane.b32.xlu1 %v9813_v19, %s8620_s2 }
 0x423   :  { %1581 = vrot.lane.b32.xlu0 %v9817_v29, %s8620_s2 }
 0x425   :  { %1583 = vrot.lane.b32.xlu1 %v9821_v31, %s8620_s2 }
 0x427   :  { %1635 = vrot.lane.b32.xlu0 %v9809_v28, %s8621_s7 }
 0x429   :  { %1637 = vrot.lane.b32.xlu1 %v9813_v19, %s8621_s7 }
 0x42b   :  { %1643 = vrot.lane.b32.xlu0 %v9817_v29, %s8621_s7 }
 0x42d   :  { %1645 = vrot.lane.b32.xlu1 %v9821_v31, %s8621_s7 }
 0x42f   :  { %1697 = vrot.lane.b32.xlu0 %v9809_v28, %s8622_s8 }
 0x431   :  { %1699 = vrot.lane.b32.xlu1 %v9813_v19, %s8622_s8 }
 0x433   :  { %1705 = vrot.lane.b32.xlu0 %v9817_v29, %s8622_s8 }
 0x435   :  { %1707 = vrot.lane.b32.xlu1 %v9821_v31, %s8622_s8 }
 0x437   :  { %1767 = vrot.lane.b32.xlu0 %v9809_v28, %s8623_s9 }
 0x439   :  { %1769 = vrot.lane.b32.xlu1 %v9813_v19, %s8623_s9 }
 0x43b   :  { %1775 = vrot.lane.b32.xlu0 %v9817_v29, %s8623_s9 }
 0x43d   :  { %1777 = vrot.lane.b32.xlu1 %v9821_v31, %s8623_s9 }
 0x43f   :  { %1829 = vrot.lane.b32.xlu0 %v9809_v28, %s8624_s10 }
 0x441   :  { %1831 = vrot.lane.b32.xlu1 %v9813_v19, %s8624_s10 }
 0x443   :  { %1837 = vrot.lane.b32.xlu0 %v9817_v29, %s8624_s10 }
 0x445   :  { %1839 = vrot.lane.b32.xlu1 %v9821_v31, %s8624_s10 }
 0x447   :  { %1891 = vrot.lane.b32.xlu0 %v9809_v28, %s8625_s11 }
 0x449   :  { %1893 = vrot.lane.b32.xlu1 %v9813_v19, %s8625_s11  ;;  %v1508_v45 = vpop.permute.xlu0 %1507 }
 0x44b   :  { %v1510_v60 = vpop.permute.xlu1 %1509  ;;  %1899 = vrot.lane.b32.xlu0 %v9817_v29, %s8625_s11 }
 0x44d   :  { %1901 = vrot.lane.b32.xlu1 %v9821_v31, %s8625_s11  ;;  %v1516_v47 = vpop.permute.xlu0 %1515 }
 0x44f   :  { %v1518_v8 = vpop.permute.xlu1 %1517  ;;  %1953 = vrot.lane.b32.xlu0 %v9809_v28, %s8626_s12 }
 0x451   :  { %1955 = vrot.lane.b32.xlu1 %v9813_v19, %s8626_s12  ;;  %v9879_v58 = vpop.permute.xlu0 %1569 }
 0x453   :  { %v9881_v48 = vpop.permute.xlu1 %1571  ;;  %1961 = vrot.lane.b32.xlu0 %v9817_v29, %s8626_s12 }
 0x455   :  { %1963 = vrot.lane.b32.xlu1 %v9821_v31, %s8626_s12  ;;  %v9887_v55 = vpop.permute.xlu0 %1577 }
 0x457   :  { %v9889_v63 = vpop.permute.xlu1 %1579 }
 0x459   :  { %v9891_v42 = vpop.permute.xlu0 %1631 }
 0x45b   :  { %v9893_v43 = vpop.permute.xlu1 %1633 }
 0x45d   :  { %v9895_v13 = vpop.permute.xlu0 %1639 }
 0x45f   :  { %v9897_v4 = vpop.permute.xlu1 %1641 }
 0x461   :  { %v9899_v15 = vpop.permute.xlu0 %1693 }
 0x463   :  { %v9901_v44 = vpop.permute.xlu1 %1695 }
 0x465   :  { %v9903_v6 = vpop.permute.xlu0 %1701 }
 0x467   :  { %v9905_v57 = vpop.permute.xlu1 %1703 }
 0x469   :  { %v9907_v41 = vpop.permute.xlu0 %1763 }
 0x46b   :  { %v9909_v56 = vpop.permute.xlu1 %1765 }
 0x46d   :  { %v9911_v2 = vpop.permute.xlu0 %1771 }
 0x46f   :  { %v9913_v27 = vpop.permute.xlu1 %1773 }
 0x471   :  { %v9915_v20 = vpop.permute.xlu0 %1825 }
 0x473   :  { %v9917_v40 = vpop.permute.xlu1 %1827 }
 0x475   :  { %v9919_v50 = vpop.permute.xlu0 %1833 }
 0x477   :  { %v9921_v22 = vpop.permute.xlu1 %1835 }
 0x479   :  { %v9923_v33 = vpop.permute.xlu0 %1887 }
 0x47b   :  { %v9925_v34 = vpop.permute.xlu1 %1889 }
 0x47d   :  { %v9927_v5 = vpop.permute.xlu0 %1895 }
 0x47f   :  { %v9929_v37 = vpop.permute.xlu1 %1897 }
 0x481   :  { %v9931_v14 = vpop.permute.xlu0 %1949 }
 0x482   :  { %14143 = vst [vmem:[#allocation91_spill] sm:$0xff] %v9931_v14 }
 0x483   :  { %v9933_v51 = vpop.permute.xlu1 %1951 }
 0x484   :  { %14144 = vst [vmem:[#allocation92_spill] sm:$0xff] %v9933_v51 }
 0x485   :  { %v9935_v36 = vpop.permute.xlu0 %1957 }
 0x487   :  { %v9937_v1 = vpop.permute.xlu1 %1959 }
 0x488   :  { %14145 = vst [vmem:[#allocation93_spill] sm:$0xff] %v9937_v1 }
 0x489   :  { %v1512_v59 = vpop.permute.xlu0 %1511 }
 0x48a   :  { %v1527_v49 = vsel %vm167_vm0, %v1508_v45, %v1512_v59  ;;  %v1525_v54 = vsel %vm167_vm0, %v1512_v59, %v1516_v47 }
 0x48b   :  { %v1514_v46 = vpop.permute.xlu1 %1513  ;;  %v1554_v18 = vmul.f32 %v1540_v61, %v1527_v49 }
 0x48c   :  { %v1528_v9 = vsel %vm167_vm0, %v1510_v60, %v1514_v46  ;;  %v1526_v21 = vsel %vm167_vm0, %v1514_v46, %v1518_v8 }
 0x48d   :  { %v1558_v7 = vmul.f32 %v1540_v61, %v1528_v9  ;;  %v1520_v24 = vpop.permute.xlu0 %1519  ;;  %v1559_v23 = vmul.f32 %v1544_v39, %v1526_v21 }
 0x48e   :  { %v1523_v53 = vsel %vm167_vm0, %v1516_v47, %v1520_v24  ;;  %v1529_v26 = vsel %vm167_vm0, %v1520_v24, %v1508_v45  ;;  %v1555_v24 = vmul.f32 %v1544_v39, %v1525_v54 }
 0x48f   :  { %v1522_v49 = vpop.permute.xlu1 %1521  ;;  %v1562_v52 = vpack.c.bf16 %v1558_v7, %v1554_v18  ;;  %v1553_v9 = vmul.f32 %v1536_v17, %v1529_v26  ;;  %v1556_v51 = vmul.f32 %v1548_v0, %v1523_v53  ;;  %v1598_v7 = vrot.slane %v1593_v38, %v8859_v25  ;;  %v1655_v53 = vld [vmem:[#allocation8 + $0x2] ss:$8 sm:$0xf] }
 0x490   :  { %v1524_v61 = vsel %vm167_vm0, %v1518_v8, %v1522_v49  ;;  %v1530_v46 = vsel %vm167_vm0, %v1522_v49, %v1510_v60  ;;  %v1563_v8 = vpack.c.bf16 %v1559_v23, %v1555_v24  ;;  %v1606_v23 = vrot.slane %v1593_v38, %v8845_v16 }
 0x491   :  { %v1557_v1 = vmul.f32 %v1536_v17, %v1530_v46  ;;  %v1560_v14 = vmul.f32 %v1548_v0, %v1524_v61  ;;  %2088 = vmatprep.subr.bf16.mxu0 %v1562_v52  ;;  %v1574_v45 = vpop.permute.xlu0 %1573  ;;  %v1610_v17 = vrot.slane %v1593_v38, %v8870_v30 }
 0x492   :  { %v1589_v47 = vsel %vm230_vm1, %v9879_v58, %v1574_v45  ;;  %v1587_v26 = vsel %vm230_vm1, %v1574_v45, %v9887_v55 }
 0x493   :  { %v1561_v59 = vpack.c.bf16 %v1557_v1, %v1553_v9  ;;  %v1576_v18 = vpop.permute.xlu1 %1575  ;;  %v1564_v21 = vpack.c.bf16 %v1560_v14, %v1556_v51  ;;  %v1616_v0 = vmul.f32 %v1602_v35, %v1589_v47 }
 0x494   :  { %v1590_v60 = vsel %vm230_vm1, %v9881_v48, %v1576_v18  ;;  %v1588_v52 = vsel %vm230_vm1, %v1576_v18, %v9889_v63 }
 0x495   :  { %v1620_v39 = vmul.f32 %v1602_v35, %v1590_v60  ;;  %2089 = vmatpush1.bf16.msra.mxu0 %v1561_v59  ;;  %2131 = vmatprep.subr.bf16.mxu1 %v1564_v21  ;;  %v1582_v1 = vpop.permute.xlu0 %1581  ;;  %v1621_v61 = vmul.f32 %v1606_v23, %v1588_v52  ;;  %v1664_v35 = vrot.slane %v1655_v53, %v8837_v11 }
 0x496   :  { %v1585_v14 = vsel %vm230_vm1, %v9887_v55, %v1582_v1  ;;  %v1591_v51 = vsel %vm230_vm1, %v1582_v1, %v9879_v58  ;;  %2132 = vmatpush1.bf16.msra.mxu1 %v1563_v8  ;;  %v1617_v55 = vmul.f32 %v1606_v23, %v1587_v26  ;;  %v1660_v60 = vrot.slane %v1655_v53, %v8859_v25  ;;  %v1717_v1 = vld [vmem:[#allocation8 + $0x3] ss:$8 sm:$0xf] }
 0x497   :  { %v1584_v54 = vpop.permute.xlu1 %1583  ;;  %v1624_v49 = vpack.c.bf16 %v1620_v39, %v1616_v0  ;;  %v1615_v9 = vmul.f32 %v1598_v7, %v1591_v51  ;;  %v1618_v58 = vmul.f32 %v1610_v17, %v1585_v14  ;;  %v1668_v23 = vrot.slane %v1655_v53, %v8845_v16 }
 0x498   :  { %v1586_v38 = vsel %vm230_vm1, %v9889_v63, %v1584_v54  ;;  %v1592_v46 = vsel %vm230_vm1, %v1584_v54, %v9881_v48  ;;  %v1625_v8 = vpack.c.bf16 %v1621_v61, %v1617_v55 }
 0x499   :  { %v1619_v24 = vmul.f32 %v1598_v7, %v1592_v46  ;;  %v1622_v47 = vmul.f32 %v1610_v17, %v1586_v38  ;;  %2090 = vmatprep.subr.bf16.mxu0 %v1624_v49  ;;  %v1636_v59 = vpop.permute.xlu0 %1635  ;;  %v1672_v7 = vrot.slane %v1655_v53, %v8870_v30  ;;  %v1726_v46 = vrot.slane %v1717_v1, %v8837_v11 }
 0x49a   :  { %v1651_v45 = vsel %vm294_vm2, %v9891_v42, %v1636_v59  ;;  %v1649_v26 = vsel %vm294_vm2, %v1636_v59, %v9895_v13 }
 0x49b   :  { %v1623_v18 = vpack.c.bf16 %v1619_v24, %v1615_v9  ;;  %v1638_v21 = vpop.permute.xlu1 %1637  ;;  %v1626_v63 = vpack.c.bf16 %v1622_v47, %v1618_v58  ;;  %v1678_v17 = vmul.f32 %v1664_v35, %v1651_v45 }
 0x49c   :  { %v1652_v48 = vsel %vm294_vm2, %v9893_v43, %v1638_v21  ;;  %v1650_v0 = vsel %vm294_vm2, %v1638_v21, %v9897_v4  ;;  %v1734_v21 = vrot.slane %v1717_v1, %v8870_v30 }
 0x49d   :  { %v1682_v52 = vmul.f32 %v1664_v35, %v1652_v48  ;;  %2091 = vmatpush1.bf16.msra.mxu0 %v1623_v18  ;;  %2133 = vmatprep.subr.bf16.mxu1 %v1626_v63  ;;  %v1644_v39 = vpop.permute.xlu0 %1643  ;;  %v1683_v61 = vmul.f32 %v1668_v23, %v1650_v0  ;;  %v1722_v18 = vrot.slane %v1717_v1, %v8859_v25 }
 0x49e   :  { %v1647_v14 = vsel %vm294_vm2, %v9895_v13, %v1644_v39  ;;  %v1653_v51 = vsel %vm294_vm2, %v1644_v39, %v9891_v42  ;;  %2134 = vmatpush1.bf16.msra.mxu1 %v1625_v8  ;;  %v1679_v13 = vmul.f32 %v1668_v23, %v1649_v26 }
 0x49f   :  { %v1646_v54 = vpop.permute.xlu1 %1645  ;;  %v1686_v49 = vpack.c.bf16 %v1682_v52, %v1678_v17  ;;  %v1677_v35 = vmul.f32 %v1660_v60, %v1653_v51  ;;  %v1680_v42 = vmul.f32 %v1672_v7, %v1647_v14  ;;  %v1730_v17 = vrot.slane %v1717_v1, %v8845_v16 }
 0x4a0   :  { %v1648_v53 = vsel %vm294_vm2, %v9897_v4, %v1646_v54  ;;  %v1654_v38 = vsel %vm294_vm2, %v1646_v54, %v9893_v43  ;;  %v1687_v45 = vpack.c.bf16 %v1683_v61, %v1679_v13 }
 0x4a1   :  { %v1681_v9 = vmul.f32 %v1660_v60, %v1654_v38  ;;  %v1684_v58 = vmul.f32 %v1672_v7, %v1648_v53  ;;  %2092 = vmatprep.subr.bf16.mxu0 %v1686_v49  ;;  %v1698_v24 = vpop.permute.xlu0 %1697  ;;  %v1787_v7 = vld [vmem:[#allocation8 + $0x5] ss:$8 sm:$0xf] }
 0x4a2   :  { %v1713_v47 = vsel %vm358_vm3, %v9899_v15, %v1698_v24  ;;  %v1711_v39 = vsel %vm358_vm3, %v1698_v24, %v9903_v6  ;;  %v1796_v54 = vrot.slane %v1787_v7, %v8837_v11  ;;  %v1800_v24 = vrot.slane %v1787_v7, %v8845_v16 }
 0x4a3   :  { %v1685_v59 = vpack.c.bf16 %v1681_v9, %v1677_v35  ;;  %v1700_v55 = vpop.permute.xlu1 %1699  ;;  %v1688_v4 = vpack.c.bf16 %v1684_v58, %v1680_v42  ;;  %v1740_v63 = vmul.f32 %v1726_v46, %v1713_v47  ;;  %v1758_v35 = vpack.c.bf16 %v9821_v31, %v9817_v29 }
 0x4a4   :  { %v1714_v43 = vsel %vm358_vm3, %v9901_v44, %v1700_v55  ;;  %v1712_v8 = vsel %vm358_vm3, %v1700_v55, %v9905_v57  ;;  %v1792_v42 = vrot.slane %v1787_v7, %v8859_v25  ;;  %v1804_v55 = vrot.slane %v1787_v7, %v8870_v30 }
 0x4a5   :  { %v1744_v48 = vmul.f32 %v1726_v46, %v1714_v43  ;;  %2093 = vmatpush1.bf16.msra.mxu0 %v1685_v59  ;;  %2135 = vmatprep.subr.bf16.mxu1 %v1688_v4  ;;  %v1706_v60 = vpop.permute.xlu0 %1705  ;;  %v1745_v51 = vmul.f32 %v1730_v17, %v1712_v8  ;;  %v1849_v4 = vld [vmem:[#allocation8 + $0x6] ss:$8 sm:$0xf] }
 0x4a6   :  { %v1709_v0 = vsel %vm358_vm3, %v9903_v6, %v1706_v60  ;;  %v1715_v52 = vsel %vm358_vm3, %v1706_v60, %v9899_v15  ;;  %2136 = vmatpush1.bf16.msra.mxu1 %v1687_v45  ;;  %v1741_v6 = vmul.f32 %v1730_v17, %v1711_v39  ;;  %v1854_v17 = vrot.slane %v1849_v4, %v8859_v25 }
 0x4a7   :  { %v1708_v23 = vpop.permute.xlu1 %1707  ;;  %v1748_v14 = vpack.c.bf16 %v1744_v48, %v1740_v63  ;;  %v1739_v49 = vmul.f32 %v1722_v18, %v1715_v52  ;;  %v1742_v15 = vmul.f32 %v1734_v21, %v1709_v0  ;;  %v1755_v48 = vpack.c.bf16 %v9741_v62, %v9739_v32 }
 0x4a8   :  { %v1710_v1 = vsel %vm358_vm3, %v9905_v57, %v1708_v23  ;;  %v1716_v26 = vsel %vm358_vm3, %v1708_v23, %v9901_v44  ;;  %v1756_v57 = vpack.c.bf16 %v9813_v19, %v9809_v28  ;;  %v1749_v13 = vpack.c.bf16 %v1745_v51, %v1741_v6  ;;  %v2268_v28 = vld [vmem:[#allocation8 + $0x1] ss:$8 sm:$0xf] }
 0x4a9   :  { %v1743_v61 = vmul.f32 %v1722_v18, %v1716_v26  ;;  %v1746_v53 = vmul.f32 %v1734_v21, %v1710_v1  ;;  %2094 = vmatprep.subr.bf16.mxu0 %v1748_v14  ;;  %v1768_v38 = vpop.permute.xlu0 %1767  ;;  %v1757_v52 = vpack.c.bf16 %v9749_v3, %v9745_v12  ;;  %v1858_v23 = vrot.slane %v1849_v4, %v8837_v11 }
 0x4aa   :  { %v1781_v46 = vsel %vm430_vm4, %v1768_v38, %v9911_v2  ;;  %v1783_v45 = vsel %vm430_vm4, %v9907_v41, %v1768_v38  ;;  %v1862_v38 = vrot.slane %v1849_v4, %v8845_v16 }
 0x4ab   :  { %v1747_v44 = vpack.c.bf16 %v1743_v61, %v1739_v49  ;;  %v1770_v9 = vpop.permute.xlu1 %1769  ;;  %v1750_v58 = vpack.c.bf16 %v1746_v53, %v1742_v15  ;;  %v1810_v43 = vmul.f32 %v1796_v54, %v1781_v46  ;;  %v1809_v39 = vmul.f32 %v1792_v42, %v1783_v45 }
 0x4ac   :  { %v1782_v47 = vsel %vm430_vm4, %v1770_v9, %v9913_v27  ;;  %v1784_v59 = vsel %vm430_vm4, %v9909_v56, %v1770_v9 }
 0x4ad   :  { %v1814_v18 = vmul.f32 %v1796_v54, %v1782_v47  ;;  %2095 = vmatpush1.bf16.msra.mxu0 %v1747_v44  ;;  %2137 = vmatprep.subr.bf16.mxu1 %v1750_v58  ;;  %v1776_v21 = vpop.permute.xlu0 %1775  ;;  %v1813_v60 = vmul.f32 %v1792_v42, %v1784_v59 }
 0x4ae   :  { %v1779_v63 = vsel %vm430_vm4, %v9911_v2, %v1776_v21  ;;  %v1785_v8 = vsel %vm430_vm4, %v1776_v21, %v9907_v41  ;;  %2096 = vmatprep.subr.bf16.mxu0 %v1756_v57  ;;  %2138 = vmatpush1.bf16.msra.mxu1 %v1749_v13 }
 0x4af   :  { %v1778_v7 = vpop.permute.xlu1 %1777  ;;  %2139 = vmatprep.subr.bf16.mxu1 %v1758_v35  ;;  %v1818_v0 = vpack.c.bf16 %v1814_v18, %v1810_v43  ;;  %v1811_v14 = vmul.f32 %v1800_v24, %v1779_v63  ;;  %v1812_v51 = vmul.f32 %v1804_v55, %v1785_v8  ;;  %v1817_v15 = vpack.c.bf16 %v1813_v60, %v1809_v39 }
 0x4b0   :  { %v1780_v2 = vsel %vm430_vm4, %v9913_v27, %v1778_v7  ;;  %v1786_v41 = vsel %vm430_vm4, %v1778_v7, %v9909_v56  ;;  %v1866_v35 = vrot.slane %v1849_v4, %v8870_v30 }
 0x4b1   :  { %v1815_v1 = vmul.f32 %v1800_v24, %v1780_v2  ;;  %v1816_v26 = vmul.f32 %v1804_v55, %v1786_v41  ;;  %v1830_v54 = vpop.permute.xlu0 %1829  ;;  %2097 = vmatpush1.bf16.msra.mxu0 %v1755_v48  ;;  %v1911_v24 = vld [vmem:[#allocation8 + $0x7] ss:$8 sm:$0xf] }
 0x4b2   :  { %v1843_v49 = vsel %vm494_vm5, %v1830_v54, %v9919_v50  ;;  %v1845_v27 = vsel %vm494_vm5, %v9915_v20, %v1830_v54  ;;  %2098 = vmatprep.subr.bf16.mxu0 %v1818_v0  ;;  %2140 = vmatpush1.bf16.msra.mxu1 %v1757_v52  ;;  %v1916_v18 = vrot.slane %v1911_v24, %v8859_v25 }
 0x4b3   :  { %v1819_v56 = vpack.c.bf16 %v1815_v1, %v1811_v14  ;;  %v1832_v61 = vpop.permute.xlu1 %1831  ;;  %v1820_v53 = vpack.c.bf16 %v1816_v26, %v1812_v51  ;;  %v1871_v6 = vmul.f32 %v1854_v17, %v1845_v27  ;;  %v1872_v44 = vmul.f32 %v1858_v23, %v1843_v49  ;;  %v1973_v26 = vld [vmem:[#allocation8 + $0x20] ss:$8 sm:$0xf] }
 0x4b4   :  { %v1844_v46 = vsel %vm494_vm5, %v1832_v61, %v9921_v22  ;;  %v1846_v57 = vsel %vm494_vm5, %v9917_v40, %v1832_v61  ;;  %v1924_v39 = vrot.slane %v1911_v24, %v8845_v16  ;;  %v1928_v2 = vrot.slane %v1911_v24, %v8870_v30 }
 0x4b5   :  { %v1875_v42 = vmul.f32 %v1854_v17, %v1846_v57  ;;  %v1876_v9 = vmul.f32 %v1858_v23, %v1844_v46  ;;  %2141 = vmatprep.subr.bf16.mxu1 %v1820_v53  ;;  %v1838_v58 = vpop.permute.xlu0 %1837  ;;  %2099 = vmatpush1.bf16.msra.mxu0 %v1817_v15 }
 0x4b6   :  { %v1841_v13 = vsel %vm494_vm5, %v9919_v50, %v1838_v58  ;;  %v1847_v47 = vsel %vm494_vm5, %v1838_v58, %v9915_v20  ;;  %2142 = vmatpush1.bf16.msra.mxu1 %v1819_v56  ;;  %v1920_v50 = vrot.slane %v1911_v24, %v8837_v11  ;;  %v14147_v24 = vld [vmem:[#allocation93_spill] sm:$0xff] }
 0x4b7   :  { %v1879_v59 = vpack.c.bf16 %v1875_v42, %v1871_v6  ;;  %v1840_v55 = vpop.permute.xlu1 %1839  ;;  %v1880_v45 = vpack.c.bf16 %v1876_v9, %v1872_v44  ;;  %v1873_v21 = vmul.f32 %v1862_v38, %v1841_v13  ;;  %v1874_v63 = vmul.f32 %v1866_v35, %v1847_v47  ;;  %v14146_v42 = vld [vmem:[#allocation91_spill] sm:$0xff]  ;;  %v14148_v47 = vld [vmem:[#allocation92_spill] sm:$0xff] }
 0x4b8   :  { %v1842_v4 = vsel %vm494_vm5, %v9921_v22, %v1840_v55  ;;  %v1848_v43 = vsel %vm494_vm5, %v1840_v55, %v9917_v40  ;;  %v1986_v55 = vrot.slane %v1973_v26, %v8845_v16 }
 0x4b9   :  { %v1877_v8 = vmul.f32 %v1862_v38, %v1842_v4  ;;  %v1878_v20 = vmul.f32 %v1866_v35, %v1848_v43  ;;  %v1892_v48 = vpop.permute.xlu0 %1891  ;;  %2100 = vmatprep.subr.bf16.mxu0 %v1880_v45  ;;  %v1978_v38 = vrot.slane %v1973_v26, %v8859_v25  ;;  %v1990_v45 = vrot.slane %v1973_v26, %v8870_v30 }
 0x4ba   :  { %v1905_v60 = vsel %vm558_vm6, %v1892_v48, %v9927_v5  ;;  %v1907_v22 = vsel %vm558_vm6, %v9923_v33, %v1892_v48  ;;  %2101 = vmatpush1.bf16.msra.mxu0 %v1879_v59 }
 0x4bb   :  { %v1881_v40 = vpack.c.bf16 %v1877_v8, %v1873_v21  ;;  %v1894_v7 = vpop.permute.xlu1 %1893  ;;  %v1882_v17 = vpack.c.bf16 %v1878_v20, %v1874_v63  ;;  %v1933_v41 = vmul.f32 %v1916_v18, %v1907_v22  ;;  %v1934_v23 = vmul.f32 %v1920_v50, %v1905_v60 }
 0x4bc   :  { %v1906_v0 = vsel %vm558_vm6, %v1894_v7, %v9929_v37  ;;  %v1908_v52 = vsel %vm558_vm6, %v9925_v34, %v1894_v7 }
 0x4bd   :  { %v1937_v14 = vmul.f32 %v1916_v18, %v1908_v52  ;;  %v1938_v51 = vmul.f32 %v1920_v50, %v1906_v0  ;;  %2143 = vmatprep.subr.bf16.mxu1 %v1882_v17  ;;  %v1900_v1 = vpop.permute.xlu0 %1899 }
 0x4be   :  { %v1903_v54 = vsel %vm558_vm6, %v9927_v5, %v1900_v1  ;;  %v1909_v49 = vsel %vm558_vm6, %v1900_v1, %v9923_v33  ;;  %2144 = vmatpush1.bf16.msra.mxu1 %v1881_v40  ;;  %v1982_v5 = vrot.slane %v1973_v26, %v8837_v11 }
 0x4bf   :  { %v1941_v27 = vpack.c.bf16 %v1937_v14, %v1933_v41  ;;  %v1902_v15 = vpop.permute.xlu1 %1901  ;;  %v1942_v56 = vpack.c.bf16 %v1938_v51, %v1934_v23  ;;  %v1935_v6 = vmul.f32 %v1924_v39, %v1903_v54  ;;  %v1936_v46 = vmul.f32 %v1928_v2, %v1909_v49  ;;  %v8431_v23 = vld [vmem:[#allocation6 + $0x20] ss:$8 sps:$4 sm:$0xff]  }
 0x4c0   :  { %v1904_v61 = vsel %vm558_vm6, %v9929_v37, %v1902_v15  ;;  %v1910_v53 = vsel %vm558_vm6, %v1902_v15, %v9925_v34 }
 0x4c1   :  { %v1939_v57 = vmul.f32 %v1924_v39, %v1904_v61  ;;  %v1940_v33 = vmul.f32 %v1928_v2, %v1910_v53  ;;  %v1954_v35 = vpop.permute.xlu0 %1953  ;;  %2102 = vmatprep.subr.bf16.mxu0 %v1942_v56  ;;  %v14149_v39 = vld [vmem:[#allocation77_spill] sm:$0xff] }
 0x4c2   :  { %v1967_v44 = vsel %vm622_vm7, %v1954_v35, %v9935_v36  ;;  %v1969_v37 = vsel %vm622_vm7, %v14146_v42, %v1954_v35  ;;  %2103 = vmatpush1.bf16.msra.mxu0 %v1941_v27 }
 0x4c3   :  { %v1943_v34 = vpack.c.bf16 %v1939_v57, %v1935_v6  ;;  %v1956_v9 = vpop.permute.xlu1 %1955  ;;  %v1944_v58 = vpack.c.bf16 %v1940_v33, %v1936_v46  ;;  %v1995_v4 = vmul.f32 %v1978_v38, %v1969_v37  ;;  %v1996_v43 = vmul.f32 %v1982_v5, %v1967_v44 }
 0x4c4   :  { %v1968_v13 = vsel %vm622_vm7, %v1956_v9, %v14147_v24  ;;  %v1970_v59 = vsel %vm622_vm7, %v14148_v47, %v1956_v9 }
 0x4c5   :  { %v1999_v18 = vmul.f32 %v1978_v38, %v1970_v59  ;;  %v2000_v50 = vmul.f32 %v1982_v5, %v1968_v13  ;;  %2145 = vmatprep.subr.bf16.mxu1 %v1944_v58  ;;  %v1962_v21 = vpop.permute.xlu0 %1961 }
 0x4c6   :  { %v1965_v63 = vsel %vm622_vm7, %v9935_v36, %v1962_v21  ;;  %v1971_v8 = vsel %vm622_vm7, %v1962_v21, %v14146_v42  ;;  %2146 = vmatpush1.bf16.msra.mxu1 %v1943_v34  ;;  %v8436_v34 = vld [vmem:[#allocation6 + $0x34] ss:$8 sps:$4 sm:$0xff]  }
 0x4c7   :  { %v2003_v20 = vpack.c.bf16 %v1999_v18, %v1995_v4  ;;  %v1964_v48 = vpop.permute.xlu1 %1963  ;;  %v2004_v60 = vpack.c.bf16 %v2000_v50, %v1996_v43  ;;  %v1997_v7 = vmul.f32 %v1986_v55, %v1965_v63  ;;  %v1998_v17 = vmul.f32 %v1990_v45, %v1971_v8 }
 0x4c8   :  { %v1966_v22 = vsel %vm622_vm7, %v14147_v24, %v1964_v48  ;;  %v1972_v40 = vsel %vm622_vm7, %v1964_v48, %v14148_v47 }
 0x4c9   :  { %v2001_v0 = vmul.f32 %v1986_v55, %v1966_v22  ;;  %v2002_v36 = vmul.f32 %v1990_v45, %v1972_v40  ;;  %2104 = vmatprep.subr.bf16.mxu0 %v2004_v60 }
 0x4ca   :  { %2105 = vmatpush1.bf16.msra.mxu0 %v2003_v20 }
 0x4cb   :  { %v2005_v52 = vpack.c.bf16 %v2001_v0, %v1997_v7  ;;  %8285 = vmatprep.subr.msk.bf16.mxu0 %vm9269_vm10, %v14149_v39  ;;  %v2006_v41 = vpack.c.bf16 %v2002_v36, %v1998_v17 }
 0x4cd   :  { %2147 = vmatprep.subr.bf16.mxu1 %v2006_v41 }
 0x4ce   :  { %8288 = vmatpush1.bf16.msk.msra.mxu0 %vm9269_vm10, %v14149_v39  ;;  %2148 = vmatpush1.bf16.msra.mxu1 %v2005_v52 }
 0x4cf   :  { %8291 = vmatprep.subr.msk.bf16.mxu1 %vm9269_vm10, %v14149_v39 }
 0x4d1   :  { %2121 = vmatmul.mubr.bf16.vlgmr.msra.gmra.mrb[8].mxu0 %v8431_v23 }
 0x4d2   :  { %8294 = vmatpush1.bf16.msk.msra.mxu1 %vm9269_vm10, %v14149_v39  ;;  %2795 = vmatprep.mubr.bf16.mxu0 %v8436_v34 }
 0x4d5   :  { %2164 = vmatmul.mubr.bf16.vlgmr.msra.gmra.mrb[8].mxu1 %v8431_v23 }
 0x4d6   :  { %2838 = vmatprep.mubr.bf16.mxu1 %v8436_v34 }
 0x5a4   :  { %v2122_v14 = vpop.f32.mrb[8].mxu0 }
 0x5a5   :  { %v10175_v51 = vmax.f32 %v2122_v14, 0.0  ;;  %v2124_v1 = vpop.f32.mrb[9].mxu0 }
 0x5a6   :  { %v2126_v26 = vpop.f32.mrb[10].mxu0  ;;  %v10249_v46 = vmax.f32 %v2124_v1, 0.0  ;;  %v2206_v1 = vld [vmem:[#allocation8] ss:$8 sm:$0xf] }
 0x5a7   :  { %v10177_v54 = vmax.f32 %v2126_v26, 0.0  ;;  %2182 = vrot.lane.b32.xlu0 %v10175_v51, %s8619_s6  ;;  %v2128_v49 = vpop.f32.mrb[11].mxu0  ;;  %v2211_v34 = vrot.slane %v2206_v1, %v8859_v25  ;;  %v2223_v29 = vrot.slane %v2206_v1, %v8870_v30  ;;  %v2219_v3 = vrot.slane %v2206_v1, %v8845_v16 }
 0x5a8   :  { %v2165_v27 = vpop.f32.mrb[8].mxu1  ;;  %v10253_v57 = vmax.f32 %v2128_v49, 0.0  ;;  %v2215_v49 = vrot.slane %v2206_v1, %v8837_v11  ;;  %v2277_v1 = vrot.slane %v2268_v28, %v8837_v11 }
 0x5a9   :  { %v10181_v15 = vmax.f32 %v2165_v27, 0.0  ;;  %v2167_v56 = vpop.f32.mrb[9].mxu1  ;;  %2184 = vrot.lane.b32.xlu1 %v10177_v54, %s8619_s6 }
 0x5aa   :  { %v2169_v53 = vpop.f32.mrb[10].mxu1  ;;  %v10257_v33 = vmax.f32 %v2167_v56, 0.0 }
 0x5ab   :  { %v10187_v38 = vmax.f32 %v2169_v53, 0.0  ;;  %v2171_v5 = vpop.f32.mrb[11].mxu1  ;;  %2190 = vrot.lane.b32.xlu0 %v10181_v15, %s8619_s6 }
 0x5ac   :  { %v10261_v35 = vmax.f32 %v2171_v5, 0.0 }
 0x5ad   :  { %2192 = vrot.lane.b32.xlu1 %v10187_v38, %s8619_s6 }
 0x5af   :  { %2244 = vrot.lane.b32.xlu0 %v10175_v51, %s8620_s2 }
 0x5b1   :  { %2246 = vrot.lane.b32.xlu1 %v10177_v54, %s8620_s2 }
 0x5b3   :  { %2252 = vrot.lane.b32.xlu0 %v10181_v15, %s8620_s2 }
 0x5b5   :  { %2254 = vrot.lane.b32.xlu1 %v10187_v38, %s8620_s2 }
 0x5b7   :  { %2306 = vrot.lane.b32.xlu0 %v10175_v51, %s8621_s7 }
 0x5b9   :  { %2308 = vrot.lane.b32.xlu1 %v10177_v54, %s8621_s7 }
 0x5bb   :  { %2314 = vrot.lane.b32.xlu0 %v10181_v15, %s8621_s7 }
 0x5bd   :  { %2316 = vrot.lane.b32.xlu1 %v10187_v38, %s8621_s7 }
 0x5bf   :  { %2368 = vrot.lane.b32.xlu0 %v10175_v51, %s8622_s8 }
 0x5c1   :  { %2370 = vrot.lane.b32.xlu1 %v10177_v54, %s8622_s8 }
 0x5c3   :  { %2376 = vrot.lane.b32.xlu0 %v10181_v15, %s8622_s8 }
 0x5c5   :  { %2378 = vrot.lane.b32.xlu1 %v10187_v38, %s8622_s8 }
 0x5c7   :  { %2438 = vrot.lane.b32.xlu0 %v10175_v51, %s8623_s9 }
 0x5c9   :  { %2440 = vrot.lane.b32.xlu1 %v10177_v54, %s8623_s9 }
 0x5cb   :  { %2446 = vrot.lane.b32.xlu0 %v10181_v15, %s8623_s9 }
 0x5cd   :  { %2448 = vrot.lane.b32.xlu1 %v10187_v38, %s8623_s9 }
 0x5cf   :  { %2500 = vrot.lane.b32.xlu0 %v10175_v51, %s8624_s10 }
 0x5d1   :  { %2502 = vrot.lane.b32.xlu1 %v10177_v54, %s8624_s10 }
 0x5d3   :  { %2508 = vrot.lane.b32.xlu0 %v10181_v15, %s8624_s10 }
 0x5d5   :  { %2510 = vrot.lane.b32.xlu1 %v10187_v38, %s8624_s10 }
 0x5d7   :  { %2562 = vrot.lane.b32.xlu0 %v10175_v51, %s8625_s11 }
 0x5d9   :  { %2564 = vrot.lane.b32.xlu1 %v10177_v54, %s8625_s11 }
 0x5db   :  { %2570 = vrot.lane.b32.xlu0 %v10181_v15, %s8625_s11 }
 0x5dd   :  { %2572 = vrot.lane.b32.xlu1 %v10187_v38, %s8625_s11 }
 0x5df   :  { %2624 = vrot.lane.b32.xlu0 %v10175_v51, %s8626_s12 }
 0x5e1   :  { %2626 = vrot.lane.b32.xlu1 %v10177_v54, %s8626_s12 }
 0x5e3   :  { %2632 = vrot.lane.b32.xlu0 %v10181_v15, %s8626_s12 }
 0x5e5   :  { %2634 = vrot.lane.b32.xlu1 %v10187_v38, %s8626_s12 }
 0x5e7   :  { %2186 = vrot.lane.b32.xlu0 %v10249_v46, %s8619_s6 }
 0x5e9   :  { %2188 = vrot.lane.b32.xlu1 %v10253_v57, %s8619_s6 }
 0x5eb   :  { %2194 = vrot.lane.b32.xlu0 %v10257_v33, %s8619_s6 }
 0x5ed   :  { %2196 = vrot.lane.b32.xlu1 %v10261_v35, %s8619_s6 }
 0x5ef   :  { %2248 = vrot.lane.b32.xlu0 %v10249_v46, %s8620_s2 }
 0x5f1   :  { %2250 = vrot.lane.b32.xlu1 %v10253_v57, %s8620_s2 }
 0x5f3   :  { %2256 = vrot.lane.b32.xlu0 %v10257_v33, %s8620_s2 }
 0x5f5   :  { %2258 = vrot.lane.b32.xlu1 %v10261_v35, %s8620_s2 }
 0x5f7   :  { %2310 = vrot.lane.b32.xlu0 %v10249_v46, %s8621_s7 }
 0x5f9   :  { %2312 = vrot.lane.b32.xlu1 %v10253_v57, %s8621_s7 }
 0x5fb   :  { %2318 = vrot.lane.b32.xlu0 %v10257_v33, %s8621_s7 }
 0x5fd   :  { %2320 = vrot.lane.b32.xlu1 %v10261_v35, %s8621_s7 }
 0x5ff   :  { %2372 = vrot.lane.b32.xlu0 %v10249_v46, %s8622_s8 }
 0x601   :  { %2374 = vrot.lane.b32.xlu1 %v10253_v57, %s8622_s8 }
 0x603   :  { %2380 = vrot.lane.b32.xlu0 %v10257_v33, %s8622_s8 }
 0x605   :  { %2382 = vrot.lane.b32.xlu1 %v10261_v35, %s8622_s8 }
 0x607   :  { %2442 = vrot.lane.b32.xlu0 %v10249_v46, %s8623_s9 }
 0x609   :  { %2444 = vrot.lane.b32.xlu1 %v10253_v57, %s8623_s9 }
 0x60b   :  { %2450 = vrot.lane.b32.xlu0 %v10257_v33, %s8623_s9 }
 0x60d   :  { %2452 = vrot.lane.b32.xlu1 %v10261_v35, %s8623_s9 }
 0x60f   :  { %2504 = vrot.lane.b32.xlu0 %v10249_v46, %s8624_s10 }
 0x611   :  { %2506 = vrot.lane.b32.xlu1 %v10253_v57, %s8624_s10 }
 0x613   :  { %2512 = vrot.lane.b32.xlu0 %v10257_v33, %s8624_s10 }
 0x615   :  { %2514 = vrot.lane.b32.xlu1 %v10261_v35, %s8624_s10 }
 0x617   :  { %2566 = vrot.lane.b32.xlu0 %v10249_v46, %s8625_s11 }
 0x619   :  { %v2183_v44 = vpop.permute.xlu0 %2182  ;;  %2568 = vrot.lane.b32.xlu1 %v10253_v57, %s8625_s11 }
 0x61b   :  { %2574 = vrot.lane.b32.xlu0 %v10257_v33, %s8625_s11  ;;  %v2185_v42 = vpop.permute.xlu1 %2184 }
 0x61d   :  { %v2191_v37 = vpop.permute.xlu0 %2190  ;;  %2576 = vrot.lane.b32.xlu1 %v10261_v35, %s8625_s11 }
 0x61f   :  { %2628 = vrot.lane.b32.xlu0 %v10249_v46, %s8626_s12  ;;  %v2193_v9 = vpop.permute.xlu1 %2192 }
 0x621   :  { %v10317_v58 = vpop.permute.xlu0 %2244  ;;  %2630 = vrot.lane.b32.xlu1 %v10253_v57, %s8626_s12 }
 0x623   :  { %2636 = vrot.lane.b32.xlu0 %v10257_v33, %s8626_s12  ;;  %v10323_v24 = vpop.permute.xlu1 %2246 }
 0x625   :  { %v10325_v13 = vpop.permute.xlu0 %2252  ;;  %2638 = vrot.lane.b32.xlu1 %v10261_v35, %s8626_s12 }
 0x627   :  { %v10329_v47 = vpop.permute.xlu1 %2254 }
 0x629   :  { %v10331_v59 = vpop.permute.xlu0 %2306 }
 0x62b   :  { %v10333_v55 = vpop.permute.xlu1 %2308 }
 0x62d   :  { %v10335_v45 = vpop.permute.xlu0 %2314 }
 0x62f   :  { %v10337_v4 = vpop.permute.xlu1 %2316 }
 0x631   :  { %v10339_v43 = vpop.permute.xlu0 %2368 }
 0x633   :  { %v10341_v18 = vpop.permute.xlu1 %2370 }
 0x635   :  { %v10343_v50 = vpop.permute.xlu0 %2376 }
 0x637   :  { %v10345_v21 = vpop.permute.xlu1 %2378 }
 0x639   :  { %v10347_v63 = vpop.permute.xlu0 %2438 }
 0x63b   :  { %v10349_v8 = vpop.permute.xlu1 %2440 }
 0x63d   :  { %v10351_v20 = vpop.permute.xlu0 %2446 }
 0x63f   :  { %v10353_v48 = vpop.permute.xlu1 %2448 }
 0x641   :  { %v10355_v60 = vpop.permute.xlu0 %2500 }
 0x643   :  { %v10357_v22 = vpop.permute.xlu1 %2502 }
 0x645   :  { %v10359_v40 = vpop.permute.xlu0 %2508 }
 0x647   :  { %v10361_v7 = vpop.permute.xlu1 %2510 }
 0x649   :  { %v10363_v17 = vpop.permute.xlu0 %2562 }
 0x64b   :  { %v10365_v0 = vpop.permute.xlu1 %2564 }
 0x64d   :  { %v10367_v36 = vpop.permute.xlu0 %2570 }
 0x64f   :  { %v10369_v52 = vpop.permute.xlu1 %2572 }
 0x651   :  { %v10371_v41 = vpop.permute.xlu0 %2624 }
 0x652   :  { %14151 = vst [vmem:[#allocation91_spill] sm:$0xff] %v10371_v41 }
 0x653   :  { %v10373_v23 = vpop.permute.xlu1 %2626 }
 0x654   :  { %14152 = vst [vmem:[#allocation93_spill] sm:$0xff] %v10373_v23 }
 0x655   :  { %v10375_v14 = vpop.permute.xlu0 %2632 }
 0x656   :  { %14153 = vst [vmem:[#allocation92_spill] sm:$0xff] %v10375_v14 }
 0x657   :  { %v10377_v26 = vpop.permute.xlu1 %2634 }
 0x658   :  { %14154 = vst [vmem:[#allocation94_spill] sm:$0xff] %v10377_v26 }
 0x659   :  { %v2187_v27 = vpop.permute.xlu0 %2186 }
 0x65a   :  { %v2202_v56 = vsel %vm167_vm0, %v2183_v44, %v2187_v27  ;;  %v2200_v32 = vsel %vm167_vm0, %v2187_v27, %v2191_v37 }
 0x65b   :  { %v2189_v53 = vpop.permute.xlu1 %2188  ;;  %v2229_v6 = vmul.f32 %v2215_v49, %v2202_v56 }
 0x65c   :  { %v2203_v5 = vsel %vm167_vm0, %v2185_v42, %v2189_v53  ;;  %v2201_v61 = vsel %vm167_vm0, %v2189_v53, %v2193_v9 }
 0x65d   :  { %v2233_v31 = vmul.f32 %v2215_v49, %v2203_v5  ;;  %v2195_v19 = vpop.permute.xlu0 %2194  ;;  %v2234_v39 = vmul.f32 %v2219_v3, %v2201_v61 }
 0x65e   :  { %v2198_v12 = vsel %vm167_vm0, %v2191_v37, %v2195_v19  ;;  %v2204_v62 = vsel %vm167_vm0, %v2195_v19, %v2183_v44  ;;  %v2230_v19 = vmul.f32 %v2219_v3, %v2200_v32 }
 0x65f   :  { %v2197_v56 = vpop.permute.xlu1 %2196  ;;  %v2237_v2 = vpack.c.bf16 %v2233_v31, %v2229_v6  ;;  %v2228_v5 = vmul.f32 %v2211_v34, %v2204_v62  ;;  %v2231_v23 = vmul.f32 %v2223_v29, %v2198_v12  ;;  %v2273_v62 = vrot.slane %v2268_v28, %v8859_v25 }
 0x660   :  { %v2199_v49 = vsel %vm167_vm0, %v2193_v9, %v2197_v56  ;;  %v2205_v53 = vsel %vm167_vm0, %v2197_v56, %v2185_v42  ;;  %v2238_v37 = vpack.c.bf16 %v2234_v39, %v2230_v19  ;;  %v2285_v12 = vrot.slane %v2268_v28, %v8870_v30  ;;  %v2330_v9 = vld [vmem:[#allocation8 + $0x2] ss:$8 sm:$0xf] }
 0x661   :  { %v2232_v26 = vmul.f32 %v2211_v34, %v2205_v53  ;;  %v2235_v41 = vmul.f32 %v2223_v29, %v2199_v49  ;;  %v2249_v14 = vpop.permute.xlu0 %2248  ;;  %2763 = vmatprep.subr.bf16.mxu0 %v2237_v2  ;;  %v2281_v39 = vrot.slane %v2268_v28, %v8845_v16  ;;  %v2339_v53 = vrot.slane %v2330_v9, %v8837_v11 }
 0x662   :  { %v2264_v31 = vsel %vm230_vm1, %v10317_v58, %v2249_v14 }
 0x663   :  { %v2236_v61 = vpack.c.bf16 %v2232_v26, %v2228_v5  ;;  %v2251_v6 = vpop.permute.xlu1 %2250  ;;  %v2239_v44 = vpack.c.bf16 %v2235_v41, %v2231_v23  ;;  %v2291_v29 = vmul.f32 %v2277_v1, %v2264_v31  ;;  %v2262_v26 = vsel %vm230_vm1, %v2249_v14, %v10325_v13 }
 0x664   :  { %v2265_v42 = vsel %vm230_vm1, %v10323_v24, %v2251_v6  ;;  %v2263_v32 = vsel %vm230_vm1, %v2251_v6, %v10329_v47 }
 0x665   :  { %v2295_v3 = vmul.f32 %v2277_v1, %v2265_v42  ;;  %v2257_v2 = vpop.permute.xlu0 %2256  ;;  %2764 = vmatpush1.bf16.msra.mxu0 %v2236_v61  ;;  %2806 = vmatprep.subr.bf16.mxu1 %v2239_v44  ;;  %v2296_v56 = vmul.f32 %v2281_v39, %v2263_v32  ;;  %v2347_v42 = vrot.slane %v2330_v9, %v8870_v30 }
 0x666   :  { %v2260_v41 = vsel %vm230_vm1, %v10325_v13, %v2257_v2  ;;  %v2266_v23 = vsel %vm230_vm1, %v2257_v2, %v10317_v58  ;;  %2807 = vmatpush1.bf16.msra.mxu1 %v2238_v37  ;;  %v2292_v13 = vmul.f32 %v2281_v39, %v2262_v26  ;;  %v2335_v37 = vrot.slane %v2330_v9, %v8859_v25 }
 0x667   :  { %v2259_v27 = vpop.permute.xlu1 %2258  ;;  %v2299_v34 = vpack.c.bf16 %v2295_v3, %v2291_v29  ;;  %v2290_v1 = vmul.f32 %v2273_v62, %v2266_v23  ;;  %v2293_v58 = vmul.f32 %v2285_v12, %v2260_v41  ;;  %v2392_v3 = vld [vmem:[#allocation8 + $0x3] ss:$8 sm:$0xf]  ;;  %v2343_v2 = vrot.slane %v2330_v9, %v8845_v16 }
 0x668   :  { %v2261_v28 = vsel %vm230_vm1, %v10329_v47, %v2259_v27  ;;  %v2267_v49 = vsel %vm230_vm1, %v2259_v27, %v10323_v24  ;;  %v2300_v44 = vpack.c.bf16 %v2296_v56, %v2292_v13 }
 0x669   :  { %v2294_v5 = vmul.f32 %v2273_v62, %v2267_v49  ;;  %v2297_v19 = vmul.f32 %v2285_v12, %v2261_v28  ;;  %v2311_v31 = vpop.permute.xlu0 %2310  ;;  %2765 = vmatprep.subr.bf16.mxu0 %v2299_v34  ;;  %v2401_v28 = vrot.slane %v2392_v3, %v8837_v11 }
 0x66a   :  { %v2326_v14 = vsel %vm294_vm2, %v10331_v59, %v2311_v31  ;;  %v2324_v23 = vsel %vm294_vm2, %v2311_v31, %v10335_v45 }
 0x66b   :  { %v2298_v61 = vpack.c.bf16 %v2294_v5, %v2290_v1  ;;  %v2313_v6 = vpop.permute.xlu1 %2312  ;;  %v2301_v47 = vpack.c.bf16 %v2297_v19, %v2293_v58  ;;  %v2353_v62 = vmul.f32 %v2339_v53, %v2326_v14  ;;  %v2397_v14 = vrot.slane %v2392_v3, %v8859_v25 }
 0x66c   :  { %v2327_v24 = vsel %vm294_vm2, %v10333_v55, %v2313_v6  ;;  %v2325_v12 = vsel %vm294_vm2, %v2313_v6, %v10337_v4 }
 0x66d   :  { %v2357_v29 = vmul.f32 %v2339_v53, %v2327_v24  ;;  %v2319_v32 = vpop.permute.xlu0 %2318  ;;  %2766 = vmatpush1.bf16.msra.mxu0 %v2298_v61  ;;  %2808 = vmatprep.subr.bf16.mxu1 %v2301_v47  ;;  %v2358_v34 = vmul.f32 %v2343_v2, %v2325_v12  ;;  %v2409_v61 = vrot.slane %v2392_v3, %v8870_v30 }
 0x66e   :  { %v2322_v39 = vsel %vm294_vm2, %v10335_v45, %v2319_v32  ;;  %v2328_v41 = vsel %vm294_vm2, %v2319_v32, %v10331_v59  ;;  %2809 = vmatpush1.bf16.msra.mxu1 %v2300_v44  ;;  %v2354_v45 = vmul.f32 %v2343_v2, %v2324_v23 }
 0x66f   :  { %v2321_v26 = vpop.permute.xlu1 %2320  ;;  %v2361_v27 = vpack.c.bf16 %v2357_v29, %v2353_v62  ;;  %v2352_v49 = vmul.f32 %v2335_v37, %v2328_v41  ;;  %v2355_v59 = vmul.f32 %v2347_v42, %v2322_v39 }
 0x670   :  { %v2323_v9 = vsel %vm294_vm2, %v10337_v4, %v2321_v26  ;;  %v2329_v56 = vsel %vm294_vm2, %v2321_v26, %v10333_v55  ;;  %v2362_v13 = vpack.c.bf16 %v2358_v34, %v2354_v45 }
 0x671   :  { %v2356_v53 = vmul.f32 %v2335_v37, %v2329_v56  ;;  %v2359_v1 = vmul.f32 %v2347_v42, %v2323_v9  ;;  %v2373_v58 = vpop.permute.xlu0 %2372  ;;  %2767 = vmatprep.subr.bf16.mxu0 %v2361_v27  ;;  %v2462_v37 = vld [vmem:[#allocation8 + $0x5] ss:$8 sm:$0xf]  ;;  %v2405_v42 = vrot.slane %v2392_v3, %v8845_v16 }
 0x672   :  { %v2388_v5 = vsel %vm358_vm3, %v10339_v43, %v2373_v58  ;;  %v2386_v29 = vsel %vm358_vm3, %v2373_v58, %v10343_v50  ;;  %v2471_v23 = vrot.slane %v2462_v37, %v8837_v11 }
 0x673   :  { %v2360_v19 = vpack.c.bf16 %v2356_v53, %v2352_v49  ;;  %v2375_v31 = vpop.permute.xlu1 %2374  ;;  %v2363_v4 = vpack.c.bf16 %v2359_v1, %v2355_v59  ;;  %v2415_v6 = vmul.f32 %v2401_v28, %v2388_v5  ;;  %v2467_v49 = vrot.slane %v2462_v37, %v8859_v25 }
 0x674   :  { %v2389_v55 = vsel %vm358_vm3, %v10341_v18, %v2375_v31  ;;  %v2387_v47 = vsel %vm358_vm3, %v2375_v31, %v10345_v21  ;;  %v2475_v53 = vrot.slane %v2462_v37, %v8845_v16 }
 0x675   :  { %v2419_v44 = vmul.f32 %v2401_v28, %v2389_v55  ;;  %v2381_v24 = vpop.permute.xlu0 %2380  ;;  %2768 = vmatpush1.bf16.msra.mxu0 %v2360_v19  ;;  %2810 = vmatprep.subr.bf16.mxu1 %v2363_v4  ;;  %v2420_v39 = vmul.f32 %v2405_v42, %v2387_v47  ;;  %v2433_v28 = vpack.c.bf16 %v10261_v35, %v10257_v33 }
 0x676   :  { %v2384_v62 = vsel %vm358_vm3, %v10343_v50, %v2381_v24  ;;  %v2390_v12 = vsel %vm358_vm3, %v2381_v24, %v10339_v43  ;;  %2811 = vmatpush1.bf16.msra.mxu1 %v2362_v13  ;;  %v2416_v50 = vmul.f32 %v2405_v42, %v2386_v29  ;;  %v14155_v29 = vpack.c.bf16 %v10177_v54, %v10175_v51 }
 0x677   :  { %v2383_v32 = vpop.permute.xlu1 %2382  ;;  %v2423_v2 = vpack.c.bf16 %v2419_v44, %v2415_v6  ;;  %v2414_v26 = vmul.f32 %v2397_v14, %v2390_v12  ;;  %v2417_v43 = vmul.f32 %v2409_v61, %v2384_v62 }
 0x678   :  { %v2385_v3 = vsel %vm358_vm3, %v10345_v21, %v2383_v32  ;;  %v2391_v41 = vsel %vm358_vm3, %v2383_v32, %v10341_v18  ;;  %v2431_v21 = vpack.c.bf16 %v10253_v57, %v10249_v46  ;;  %v2424_v58 = vpack.c.bf16 %v2420_v39, %v2416_v50  ;;  %v2524_v57 = vld [vmem:[#allocation8 + $0x6] ss:$8 sm:$0xf] }
 0x679   :  { %v2418_v27 = vmul.f32 %v2397_v14, %v2391_v41  ;;  %v2421_v34 = vmul.f32 %v2409_v61, %v2385_v3  ;;  %v2443_v9 = vpop.permute.xlu0 %2442  ;;  %2769 = vmatprep.subr.bf16.mxu0 %v2423_v2  ;;  %v2479_v46 = vrot.slane %v2462_v37, %v8870_v30  ;;  %v2529_v61 = vrot.slane %v2524_v57, %v8859_v25 }
 0x67a   :  { %v2456_v56 = vsel %vm430_vm4, %v2443_v9, %v10351_v20  ;;  %v2458_v33 = vsel %vm430_vm4, %v10347_v63, %v2443_v9  ;;  %v2533_v24 = vrot.slane %v2524_v57, %v8837_v11  ;;  %v2537_v41 = vrot.slane %v2524_v57, %v8845_v16  ;;  %v2586_v9 = vld [vmem:[#allocation8 + $0x7] ss:$8 sm:$0xf] }
 0x67b   :  { %v2422_v18 = vpack.c.bf16 %v2418_v27, %v2414_v26  ;;  %v2445_v59 = vpop.permute.xlu1 %2444  ;;  %v2425_v1 = vpack.c.bf16 %v2421_v34, %v2417_v43  ;;  %v2485_v35 = vmul.f32 %v2471_v23, %v2456_v56  ;;  %v2484_v47 = vmul.f32 %v2467_v49, %v2458_v33 }
 0x67c   :  { %v2457_v45 = vsel %vm430_vm4, %v2445_v59, %v10353_v48  ;;  %v2459_v5 = vsel %vm430_vm4, %v10349_v8, %v2445_v59  ;;  %v2541_v43 = vrot.slane %v2524_v57, %v8870_v30 }
 0x67d   :  { %v2489_v19 = vmul.f32 %v2471_v23, %v2457_v45  ;;  %v2451_v31 = vpop.permute.xlu0 %2450  ;;  %2770 = vmatpush1.bf16.msra.mxu0 %v2422_v18  ;;  %2812 = vmatprep.subr.bf16.mxu1 %v2425_v1  ;;  %v2488_v55 = vmul.f32 %v2467_v49, %v2459_v5 }
 0x67e   :  { %v2454_v4 = vsel %vm430_vm4, %v10351_v20, %v2451_v31  ;;  %v2460_v13 = vsel %vm430_vm4, %v2451_v31, %v10347_v63  ;;  %2771 = vmatprep.subr.bf16.mxu0 %v2431_v21  ;;  %2813 = vmatpush1.bf16.msra.mxu1 %v2424_v58  ;;  %v2599_v31 = vrot.slane %v2586_v9, %v8845_v16 }
 0x67f   :  { %2814 = vmatprep.subr.bf16.mxu1 %v2433_v28  ;;  %v2453_v14 = vpop.permute.xlu1 %2452  ;;  %v2493_v6 = vpack.c.bf16 %v2489_v19, %v2485_v35  ;;  %v2486_v63 = vmul.f32 %v2475_v53, %v2454_v4  ;;  %v2487_v37 = vmul.f32 %v2479_v46, %v2460_v13  ;;  %v2492_v2 = vpack.c.bf16 %v2488_v55, %v2484_v47  ;;  %v2648_v47 = vld [vmem:[#allocation8 + $0x20] ss:$8 sm:$0xf] }
 0x680   :  { %v2455_v44 = vsel %vm430_vm4, %v10353_v48, %v2453_v14  ;;  %v2461_v20 = vsel %vm430_vm4, %v2453_v14, %v10349_v8  ;;  %v14156_v8 = vpack.c.bf16 %v10187_v38, %v10181_v15  ;;  %v2603_v4 = vrot.slane %v2586_v9, %v8870_v30 }
 0x681   :  { %v2490_v42 = vmul.f32 %v2475_v53, %v2455_v44  ;;  %v2491_v62 = vmul.f32 %v2479_v46, %v2461_v20  ;;  %v2505_v12 = vpop.permute.xlu0 %2504  ;;  %2772 = vmatpush1.bf16.msra.mxu0 %v14155_v29  ;;  %v2591_v53 = vrot.slane %v2586_v9, %v8859_v25 }
 0x682   :  { %v2518_v32 = vsel %vm494_vm5, %v2505_v12, %v10359_v40  ;;  %v2520_v48 = vsel %vm494_vm5, %v10355_v60, %v2505_v12  ;;  %2773 = vmatprep.subr.bf16.mxu0 %v2493_v6  ;;  %2815 = vmatpush1.bf16.msra.mxu1 %v14156_v8  ;;  %v2653_v12 = vrot.slane %v2648_v47, %v8859_v25 }
 0x683   :  { %v2494_v39 = vpack.c.bf16 %v2490_v42, %v2486_v63  ;;  %v2507_v3 = vpop.permute.xlu1 %2506  ;;  %v2495_v51 = vpack.c.bf16 %v2491_v62, %v2487_v37  ;;  %v2546_v54 = vmul.f32 %v2529_v61, %v2520_v48  ;;  %v2547_v27 = vmul.f32 %v2533_v24, %v2518_v32 }
 0x684   :  { %v2519_v23 = vsel %vm494_vm5, %v2507_v3, %v10361_v7  ;;  %v2521_v26 = vsel %vm494_vm5, %v10357_v22, %v2507_v3  ;;  %v14158_v3 = vld [vmem:[#allocation91_spill] sm:$0xff] }
 0x685   :  { %v2550_v15 = vmul.f32 %v2529_v61, %v2521_v26  ;;  %v2551_v38 = vmul.f32 %v2533_v24, %v2519_v23  ;;  %v2513_v34 = vpop.permute.xlu0 %2512  ;;  %2774 = vmatpush1.bf16.msra.mxu0 %v2492_v2  ;;  %2816 = vmatprep.subr.bf16.mxu1 %v2495_v51  ;;  %v14157_v2 = vld [vmem:[#allocation92_spill] sm:$0xff]  ;;  %v14160_v26 = vld [vmem:[#allocation93_spill] sm:$0xff] }
 0x686   :  { %v2516_v50 = vsel %vm494_vm5, %v10359_v40, %v2513_v34  ;;  %v2522_v56 = vsel %vm494_vm5, %v2513_v34, %v10355_v60  ;;  %2817 = vmatpush1.bf16.msra.mxu1 %v2494_v39  ;;  %v2595_v40 = vrot.slane %v2586_v9, %v8837_v11 }
 0x687   :  { %v2554_v21 = vpack.c.bf16 %v2550_v15, %v2546_v54  ;;  %v2515_v28 = vpop.permute.xlu1 %2514  ;;  %v2555_v18 = vpack.c.bf16 %v2551_v38, %v2547_v27  ;;  %v2548_v1 = vmul.f32 %v2537_v41, %v2516_v50  ;;  %v2549_v58 = vmul.f32 %v2541_v43, %v2522_v56  ;;  %v14159_v54 = vld [vmem:[#allocation94_spill] sm:$0xff] }
 0x688   :  { %v2517_v49 = vsel %vm494_vm5, %v10361_v7, %v2515_v28  ;;  %v2523_v59 = vsel %vm494_vm5, %v2515_v28, %v10357_v22  ;;  %v2661_v27 = vrot.slane %v2648_v47, %v8845_v16  ;;  %v2665_v15 = vrot.slane %v2648_v47, %v8870_v30 }
 0x689   :  { %v2552_v45 = vmul.f32 %v2537_v41, %v2517_v49  ;;  %v2553_v60 = vmul.f32 %v2541_v43, %v2523_v59  ;;  %v2567_v5 = vpop.permute.xlu0 %2566  ;;  %2775 = vmatprep.subr.bf16.mxu0 %v2555_v18 }
 0x68a   :  { %v2580_v46 = vsel %vm558_vm6, %v2567_v5, %v10367_v36  ;;  %v2582_v7 = vsel %vm558_vm6, %v10363_v17, %v2567_v5  ;;  %2776 = vmatpush1.bf16.msra.mxu0 %v2554_v21 }
 0x68b   :  { %v2556_v22 = vpack.c.bf16 %v2552_v45, %v2548_v1  ;;  %v2569_v57 = vpop.permute.xlu1 %2568  ;;  %v2557_v33 = vpack.c.bf16 %v2553_v60, %v2549_v58  ;;  %v2608_v13 = vmul.f32 %v2591_v53, %v2582_v7  ;;  %v2609_v55 = vmul.f32 %v2595_v40, %v2580_v46  ;;  %v14161_v46 = vld [vmem:[#allocation77_spill] sm:$0xff] }
 0x68c   :  { %v2581_v35 = vsel %vm558_vm6, %v2569_v57, %v10369_v52  ;;  %v2583_v19 = vsel %vm558_vm6, %v10365_v0, %v2569_v57  ;;  %v8434_v57 = vld [vmem:[#allocation6 + $0x30] ss:$8 sps:$4 sm:$0xff]  }
 0x68d   :  { %v2612_v14 = vmul.f32 %v2591_v53, %v2583_v19  ;;  %v2613_v61 = vmul.f32 %v2595_v40, %v2581_v35  ;;  %v2575_v6 = vpop.permute.xlu0 %2574  ;;  %2818 = vmatprep.subr.bf16.mxu1 %v2557_v33  ;;  %v14163_v35 = vld [vmem:[#allocation85_spill] sm:$0xff] }
 0x68e   :  { %v2578_v44 = vsel %vm558_vm6, %v10367_v36, %v2575_v6  ;;  %v2584_v20 = vsel %vm558_vm6, %v2575_v6, %v10363_v17  ;;  %2819 = vmatpush1.bf16.msra.mxu1 %v2556_v22  ;;  %v2657_v36 = vrot.slane %v2648_v47, %v8837_v11  ;;  %v14167_v6 = vld [vmem:[#allocation86_spill] sm:$0xff] }
 0x68f   :  { %v2616_v24 = vpack.c.bf16 %v2612_v14, %v2608_v13  ;;  %v2577_v63 = vpop.permute.xlu1 %2576  ;;  %v2617_v37 = vpack.c.bf16 %v2613_v61, %v2609_v55  ;;  %v2610_v29 = vmul.f32 %v2599_v31, %v2578_v44  ;;  %v2611_v32 = vmul.f32 %v2603_v4, %v2584_v20  ;;  %v14165_v13 = vld [vmem:[#allocation83_spill] sm:$0xff] }
 0x690   :  { %v2579_v42 = vsel %vm558_vm6, %v10369_v52, %v2577_v63  ;;  %v2585_v62 = vsel %vm558_vm6, %v2577_v63, %v10365_v0 }
 0x691   :  { %v2614_v48 = vmul.f32 %v2599_v31, %v2579_v42  ;;  %v2615_v17 = vmul.f32 %v2603_v4, %v2585_v62  ;;  %v2629_v8 = vpop.permute.xlu0 %2628  ;;  %2777 = vmatprep.subr.bf16.mxu0 %v2617_v37  ;;  %v14171_v42 = vld [vmem:[#allocation87_spill] sm:$0xff] }
 0x692   :  { %v2642_v39 = vsel %vm622_vm7, %v2629_v8, %v14157_v2  ;;  %v2644_v52 = vsel %vm622_vm7, %v14158_v3, %v2629_v8  ;;  %2778 = vmatpush1.bf16.msra.mxu0 %v2616_v24  ;;  %v14169_v24 = vld [vmem:[#allocation84_spill] sm:$0xff] }
 0x693   :  { %v2618_v0 = vpack.c.bf16 %v2614_v48, %v2610_v29  ;;  %v2631_v41 = vpop.permute.xlu1 %2630  ;;  %v2619_v51 = vpack.c.bf16 %v2615_v17, %v2611_v32  ;;  %v2670_v38 = vmul.f32 %v2653_v12, %v2644_v52  ;;  %v2671_v34 = vmul.f32 %v2657_v36, %v2642_v39  ;;  %v14175_v29 = vld [vmem:[#allocation89_spill] sm:$0xff]  ;;  %v14177_v48 = vld [vmem:[#allocation90_spill] sm:$0xff] }
 0x694   :  { %v2643_v23 = vsel %vm622_vm7, %v2631_v41, %v14159_v54  ;;  %v2645_v43 = vsel %vm622_vm7, %v14160_v26, %v2631_v41 }
 0x695   :  { %v2674_v9 = vmul.f32 %v2653_v12, %v2645_v43  ;;  %v2675_v50 = vmul.f32 %v2657_v36, %v2643_v23  ;;  %v2637_v56 = vpop.permute.xlu0 %2636  ;;  %2820 = vmatprep.subr.bf16.mxu1 %v2619_v51  ;;  %v14173_v12 = vld [vmem:[#allocation88_spill] sm:$0xff] }
 0x696   :  { %v2640_v21 = vsel %vm622_vm7, %v14157_v2, %v2637_v56  ;;  %v2646_v28 = vsel %vm622_vm7, %v2637_v56, %v14158_v3  ;;  %2821 = vmatpush1.bf16.msra.mxu1 %v2618_v0  ;;  %v8439_v3 = vld [vmem:[#allocation6 + $0x44] ss:$8 sps:$4 sm:$0xff]  }
 0x697   :  { %v2678_v18 = vpack.c.bf16 %v2674_v9, %v2670_v38  ;;  %v2639_v49 = vpop.permute.xlu1 %2638  ;;  %v2679_v59 = vpack.c.bf16 %v2675_v50, %v2671_v34  ;;  %v2672_v1 = vmul.f32 %v2661_v27, %v2640_v21  ;;  %v2673_v58 = vmul.f32 %v2665_v15, %v2646_v28 }
 0x698   :  { %v2641_v53 = vsel %vm622_vm7, %v14159_v54, %v2639_v49  ;;  %v2647_v40 = vsel %vm622_vm7, %v2639_v49, %v14160_v26 }
 0x699   :  { %v2676_v45 = vmul.f32 %v2661_v27, %v2641_v53  ;;  %v2677_v60 = vmul.f32 %v2665_v15, %v2647_v40  ;;  %2779 = vmatprep.subr.bf16.mxu0 %v2679_v59 }
 0x69a   :  { %2780 = vmatpush1.bf16.msra.mxu0 %v2678_v18 }
 0x69b   :  { %v2680_v5 = vpack.c.bf16 %v2676_v45, %v2672_v1  ;;  %8297 = vmatprep.subr.msk.bf16.mxu0 %vm9269_vm10, %v14161_v46  ;;  %v2681_v22 = vpack.c.bf16 %v2677_v60, %v2673_v58 }
 0x69d   :  { %2822 = vmatprep.subr.bf16.mxu1 %v2681_v22 }
 0x69e   :  { %8300 = vmatpush1.bf16.msk.msra.mxu0 %vm9269_vm10, %v14161_v46  ;;  %2823 = vmatpush1.bf16.msra.mxu1 %v2680_v5 }
 0x69f   :  { %8303 = vmatprep.subr.msk.bf16.mxu1 %vm9269_vm10, %v14161_v46 }
 0x6a1   :  { %2796 = vmatmul.mubr.bf16.vlgmr.msra.gmra.mrb[12].mxu0 %v8434_v57 }
 0x6a2   :  { %8306 = vmatpush1.bf16.msk.msra.mxu1 %vm9269_vm10, %v14161_v46  ;;  %3462 = vmatprep.mubr.bf16.mxu0 %v8439_v3 }
 0x6a5   :  { %2839 = vmatmul.mubr.bf16.vlgmr.msra.gmra.mrb[12].mxu1 %v8434_v57  ;;  %v2873_v57 = vld [vmem:[#allocation8] ss:$8 sm:$0xf] }
 0x6a6   :  { %3505 = vmatprep.mubr.bf16.mxu1 %v8439_v3 }
 0x774   :  { %v2797_v33 = vpop.f32.mrb[12].mxu0 }
 0x775   :  { %v10618_v19 = vadd.f32 %v2797_v33, %v14163_v35  ;;  %v2799_v31 = vpop.f32.mrb[13].mxu0  ;;  %v2882_v35 = vrot.slane %v2873_v57, %v8837_v11 }
 0x776   :  { %v2801_v4 = vpop.f32.mrb[14].mxu0  ;;  %v10692_v62 = vadd.f32 %v2799_v31, %v14171_v42  ;;  %v2935_v42 = vld [vmem:[#allocation8 + $0x1] ss:$8 sm:$0xf] }
 0x777   :  { %14164 = vst [vmem:[#allocation92_spill] sm:$0xff] %v10618_v19  ;;  %v10621_v55 = vadd.f32 %v2801_v4, %v14165_v13  ;;  %v2803_v14 = vpop.f32.mrb[15].mxu0  ;;  %2849 = vrot.lane.b32.xlu0 %v10618_v19, %s8619_s6 }
 0x778   :  { %v2840_v61 = vpop.f32.mrb[12].mxu1  ;;  %14172 = vst [vmem:[#allocation85_spill] sm:$0xff] %v10692_v62  ;;  %v10697_v36 = vadd.f32 %v2803_v14, %v14173_v12  ;;  %v2886_v12 = vrot.slane %v2873_v57, %v8845_v16 }
 0x779   :  { %14166 = vst [vmem:[#allocation91_spill] sm:$0xff] %v10621_v55  ;;  %v10626_v47 = vadd.f32 %v2840_v61, %v14167_v6  ;;  %v2842_v44 = vpop.f32.mrb[13].mxu1  ;;  %2851 = vrot.lane.b32.xlu1 %v10621_v55, %s8619_s6  ;;  %v2878_v61 = vrot.slane %v2873_v57, %v8859_v25 }
 0x77a   :  { %v2844_v20 = vpop.f32.mrb[14].mxu1  ;;  %14174 = vst [vmem:[#allocation83_spill] sm:$0xff] %v10697_v36  ;;  %v10702_v32 = vadd.f32 %v2842_v44, %v14175_v29 }
 0x77b   :  { %14168 = vst [vmem:[#allocation94_spill] sm:$0xff] %v10626_v47  ;;  %v10631_v63 = vadd.f32 %v2844_v20, %v14169_v24  ;;  %v2846_v37 = vpop.f32.mrb[15].mxu1  ;;  %2857 = vrot.lane.b32.xlu0 %v10626_v47, %s8619_s6  ;;  %v2890_v24 = vrot.slane %v2873_v57, %v8870_v30  ;;  %v2944_v57 = vrot.slane %v2935_v42, %v8837_v11 }
 0x77c   :  { %14176 = vst [vmem:[#allocation86_spill] sm:$0xff] %v10702_v32  ;;  %v10707_v17 = vadd.f32 %v2846_v37, %v14177_v48 }
 0x77d   :  { %14170 = vst [vmem:[#allocation93_spill] sm:$0xff] %v10631_v63  ;;  %2859 = vrot.lane.b32.xlu1 %v10631_v63, %s8619_s6 }
 0x77e   :  { %14178 = vst [vmem:[#allocation84_spill] sm:$0xff] %v10707_v17 }
 0x77f   :  { %2911 = vrot.lane.b32.xlu0 %v10618_v19, %s8620_s2 }
 0x781   :  { %2913 = vrot.lane.b32.xlu1 %v10621_v55, %s8620_s2 }
 0x783   :  { %2919 = vrot.lane.b32.xlu0 %v10626_v47, %s8620_s2 }
 0x785   :  { %2921 = vrot.lane.b32.xlu1 %v10631_v63, %s8620_s2 }
 0x787   :  { %2973 = vrot.lane.b32.xlu0 %v10618_v19, %s8621_s7 }
 0x789   :  { %2975 = vrot.lane.b32.xlu1 %v10621_v55, %s8621_s7 }
 0x78b   :  { %2981 = vrot.lane.b32.xlu0 %v10626_v47, %s8621_s7 }
 0x78d   :  { %2983 = vrot.lane.b32.xlu1 %v10631_v63, %s8621_s7 }
 0x78f   :  { %3035 = vrot.lane.b32.xlu0 %v10618_v19, %s8622_s8 }
 0x791   :  { %3037 = vrot.lane.b32.xlu1 %v10621_v55, %s8622_s8 }
 0x793   :  { %3043 = vrot.lane.b32.xlu0 %v10626_v47, %s8622_s8 }
 0x795   :  { %3045 = vrot.lane.b32.xlu1 %v10631_v63, %s8622_s8 }
 0x797   :  { %3105 = vrot.lane.b32.xlu0 %v10618_v19, %s8623_s9 }
 0x799   :  { %3107 = vrot.lane.b32.xlu1 %v10621_v55, %s8623_s9 }
 0x79b   :  { %3113 = vrot.lane.b32.xlu0 %v10626_v47, %s8623_s9 }
 0x79d   :  { %3115 = vrot.lane.b32.xlu1 %v10631_v63, %s8623_s9 }
 0x79f   :  { %3167 = vrot.lane.b32.xlu0 %v10618_v19, %s8624_s10 }
 0x7a1   :  { %3169 = vrot.lane.b32.xlu1 %v10621_v55, %s8624_s10 }
 0x7a3   :  { %3175 = vrot.lane.b32.xlu0 %v10626_v47, %s8624_s10 }
 0x7a5   :  { %3177 = vrot.lane.b32.xlu1 %v10631_v63, %s8624_s10 }
 0x7a7   :  { %3229 = vrot.lane.b32.xlu0 %v10618_v19, %s8625_s11 }
 0x7a9   :  { %3231 = vrot.lane.b32.xlu1 %v10621_v55, %s8625_s11 }
 0x7ab   :  { %3237 = vrot.lane.b32.xlu0 %v10626_v47, %s8625_s11 }
 0x7ad   :  { %3239 = vrot.lane.b32.xlu1 %v10631_v63, %s8625_s11 }
 0x7af   :  { %3291 = vrot.lane.b32.xlu0 %v10618_v19, %s8626_s12 }
 0x7b1   :  { %3293 = vrot.lane.b32.xlu1 %v10621_v55, %s8626_s12 }
 0x7b3   :  { %3299 = vrot.lane.b32.xlu0 %v10626_v47, %s8626_s12 }
 0x7b5   :  { %3301 = vrot.lane.b32.xlu1 %v10631_v63, %s8626_s12 }
 0x7b7   :  { %2853 = vrot.lane.b32.xlu0 %v10692_v62, %s8619_s6 }
 0x7b9   :  { %2855 = vrot.lane.b32.xlu1 %v10697_v36, %s8619_s6 }
 0x7bb   :  { %2861 = vrot.lane.b32.xlu0 %v10702_v32, %s8619_s6 }
 0x7bd   :  { %2863 = vrot.lane.b32.xlu1 %v10707_v17, %s8619_s6 }
 0x7bf   :  { %2915 = vrot.lane.b32.xlu0 %v10692_v62, %s8620_s2 }
 0x7c1   :  { %2917 = vrot.lane.b32.xlu1 %v10697_v36, %s8620_s2 }
 0x7c3   :  { %2923 = vrot.lane.b32.xlu0 %v10702_v32, %s8620_s2 }
 0x7c5   :  { %2925 = vrot.lane.b32.xlu1 %v10707_v17, %s8620_s2 }
 0x7c7   :  { %2977 = vrot.lane.b32.xlu0 %v10692_v62, %s8621_s7 }
 0x7c9   :  { %2979 = vrot.lane.b32.xlu1 %v10697_v36, %s8621_s7 }
 0x7cb   :  { %2985 = vrot.lane.b32.xlu0 %v10702_v32, %s8621_s7 }
 0x7cd   :  { %2987 = vrot.lane.b32.xlu1 %v10707_v17, %s8621_s7 }
 0x7cf   :  { %3039 = vrot.lane.b32.xlu0 %v10692_v62, %s8622_s8 }
 0x7d1   :  { %3041 = vrot.lane.b32.xlu1 %v10697_v36, %s8622_s8 }
 0x7d3   :  { %3047 = vrot.lane.b32.xlu0 %v10702_v32, %s8622_s8 }
 0x7d5   :  { %3049 = vrot.lane.b32.xlu1 %v10707_v17, %s8622_s8 }
 0x7d7   :  { %3109 = vrot.lane.b32.xlu0 %v10692_v62, %s8623_s9 }
 0x7d9   :  { %3111 = vrot.lane.b32.xlu1 %v10697_v36, %s8623_s9 }
 0x7db   :  { %3117 = vrot.lane.b32.xlu0 %v10702_v32, %s8623_s9 }
 0x7dd   :  { %3119 = vrot.lane.b32.xlu1 %v10707_v17, %s8623_s9 }
 0x7df   :  { %3171 = vrot.lane.b32.xlu0 %v10692_v62, %s8624_s10 }
 0x7e1   :  { %3173 = vrot.lane.b32.xlu1 %v10697_v36, %s8624_s10 }
 0x7e3   :  { %3179 = vrot.lane.b32.xlu0 %v10702_v32, %s8624_s10 }
 0x7e5   :  { %3181 = vrot.lane.b32.xlu1 %v10707_v17, %s8624_s10 }
 0x7e7   :  { %3233 = vrot.lane.b32.xlu0 %v10692_v62, %s8625_s11 }
 0x7e9   :  { %3235 = vrot.lane.b32.xlu1 %v10697_v36, %s8625_s11  ;;  %v2850_v8 = vpop.permute.xlu0 %2849 }
 0x7eb   :  { %v2852_v2 = vpop.permute.xlu1 %2851  ;;  %3241 = vrot.lane.b32.xlu0 %v10702_v32, %s8625_s11 }
 0x7ed   :  { %3243 = vrot.lane.b32.xlu1 %v10707_v17, %s8625_s11  ;;  %v2858_v39 = vpop.permute.xlu0 %2857 }
 0x7ef   :  { %v2860_v52 = vpop.permute.xlu1 %2859  ;;  %3295 = vrot.lane.b32.xlu0 %v10692_v62, %s8626_s12 }
 0x7f1   :  { %3297 = vrot.lane.b32.xlu1 %v10697_v36, %s8626_s12  ;;  %v10765_v0 = vpop.permute.xlu0 %2911 }
 0x7f3   :  { %v10767_v41 = vpop.permute.xlu1 %2913  ;;  %3303 = vrot.lane.b32.xlu0 %v10702_v32, %s8626_s12 }
 0x7f5   :  { %3305 = vrot.lane.b32.xlu1 %v10707_v17, %s8626_s12  ;;  %v10773_v51 = vpop.permute.xlu0 %2919 }
 0x7f7   :  { %v10775_v54 = vpop.permute.xlu1 %2921 }
 0x7f9   :  { %v10777_v23 = vpop.permute.xlu0 %2973 }
 0x7fb   :  { %v10779_v26 = vpop.permute.xlu1 %2975 }
 0x7fd   :  { %v10781_v43 = vpop.permute.xlu0 %2981 }
 0x7ff   :  { %v10783_v27 = vpop.permute.xlu1 %2983 }
 0x801   :  { %v10785_v15 = vpop.permute.xlu0 %3035 }
 0x803   :  { %v10787_v38 = vpop.permute.xlu1 %3037 }
 0x805   :  { %v10789_v34 = vpop.permute.xlu0 %3043 }
 0x807   :  { %v10791_v9 = vpop.permute.xlu1 %3045 }
 0x809   :  { %v10793_v50 = vpop.permute.xlu0 %3105 }
 0x80b   :  { %v10795_v56 = vpop.permute.xlu1 %3107 }
 0x80d   :  { %v10797_v21 = vpop.permute.xlu0 %3113 }
 0x80f   :  { %v10799_v28 = vpop.permute.xlu1 %3115 }
 0x811   :  { %v10801_v18 = vpop.permute.xlu0 %3167 }
 0x813   :  { %v10803_v49 = vpop.permute.xlu1 %3169 }
 0x815   :  { %v10805_v59 = vpop.permute.xlu0 %3175 }
 0x817   :  { %v10807_v53 = vpop.permute.xlu1 %3177 }
 0x819   :  { %v10809_v40 = vpop.permute.xlu0 %3229 }
 0x81b   :  { %v10811_v1 = vpop.permute.xlu1 %3231 }
 0x81d   :  { %v10813_v58 = vpop.permute.xlu0 %3237 }
 0x81f   :  { %v10815_v45 = vpop.permute.xlu1 %3239 }
 0x821   :  { %v10817_v60 = vpop.permute.xlu0 %3291 }
 0x822   :  { %14179 = vst [vmem:[#allocation87_spill] sm:$0xff] %v10817_v60 }
 0x823   :  { %v10819_v5 = vpop.permute.xlu1 %3293 }
 0x824   :  { %14180 = vst [vmem:[#allocation88_spill] sm:$0xff] %v10819_v5 }
 0x825   :  { %v10821_v22 = vpop.permute.xlu0 %3299 }
 0x827   :  { %v10823_v33 = vpop.permute.xlu1 %3301 }
 0x828   :  { %14181 = vst [vmem:[#allocation89_spill] sm:$0xff] %v10823_v33 }
 0x829   :  { %v2854_v31 = vpop.permute.xlu0 %2853 }
 0x82a   :  { %v2869_v4 = vsel %vm167_vm0, %v2850_v8, %v2854_v31  ;;  %v2867_v3 = vsel %vm167_vm0, %v2854_v31, %v2858_v39 }
 0x82b   :  { %v2856_v13 = vpop.permute.xlu1 %2855  ;;  %v2896_v6 = vmul.f32 %v2882_v35, %v2869_v4 }
 0x82c   :  { %v2870_v14 = vsel %vm167_vm0, %v2852_v2, %v2856_v13  ;;  %v2868_v44 = vsel %vm167_vm0, %v2856_v13, %v2860_v52 }
 0x82d   :  { %v2900_v20 = vmul.f32 %v2882_v35, %v2870_v14  ;;  %v2862_v37 = vpop.permute.xlu0 %2861  ;;  %v2901_v46 = vmul.f32 %v2886_v12, %v2868_v44 }
 0x82e   :  { %v2865_v29 = vsel %vm167_vm0, %v2858_v39, %v2862_v37  ;;  %v2871_v48 = vsel %vm167_vm0, %v2862_v37, %v2850_v8  ;;  %v2897_v37 = vmul.f32 %v2886_v12, %v2867_v3 }
 0x82f   :  { %v2864_v4 = vpop.permute.xlu1 %2863  ;;  %v2904_v7 = vpack.c.bf16 %v2900_v20, %v2896_v6  ;;  %v2895_v14 = vmul.f32 %v2878_v61, %v2871_v48  ;;  %v2898_v5 = vmul.f32 %v2890_v24, %v2865_v29  ;;  %v2940_v20 = vrot.slane %v2935_v42, %v8859_v25  ;;  %v2997_v29 = vld [vmem:[#allocation8 + $0x2] ss:$8 sm:$0xf] }
 0x830   :  { %v2866_v35 = vsel %vm167_vm0, %v2860_v52, %v2864_v4  ;;  %v2872_v13 = vsel %vm167_vm0, %v2864_v4, %v2852_v2  ;;  %v2905_v52 = vpack.c.bf16 %v2901_v46, %v2897_v37  ;;  %v2948_v46 = vrot.slane %v2935_v42, %v8845_v16 }
 0x831   :  { %v2899_v33 = vmul.f32 %v2878_v61, %v2872_v13  ;;  %v2902_v60 = vmul.f32 %v2890_v24, %v2866_v35  ;;  %3430 = vmatprep.subr.bf16.mxu0 %v2904_v7  ;;  %v2916_v8 = vpop.permute.xlu0 %2915  ;;  %v2952_v61 = vrot.slane %v2935_v42, %v8870_v30 }
 0x832   :  { %v2931_v39 = vsel %vm230_vm1, %v10765_v0, %v2916_v8  ;;  %v2929_v48 = vsel %vm230_vm1, %v2916_v8, %v10773_v51 }
 0x833   :  { %v2903_v31 = vpack.c.bf16 %v2899_v33, %v2895_v14  ;;  %v2918_v6 = vpop.permute.xlu1 %2917  ;;  %v2906_v44 = vpack.c.bf16 %v2902_v60, %v2898_v5  ;;  %v2958_v24 = vmul.f32 %v2944_v57, %v2931_v39 }
 0x834   :  { %v2932_v2 = vsel %vm230_vm1, %v10767_v41, %v2918_v6  ;;  %v2930_v7 = vsel %vm230_vm1, %v2918_v6, %v10775_v54 }
 0x835   :  { %v2962_v12 = vmul.f32 %v2944_v57, %v2932_v2  ;;  %3431 = vmatpush1.bf16.msra.mxu0 %v2903_v31  ;;  %3473 = vmatprep.subr.bf16.mxu1 %v2906_v44  ;;  %v2924_v33 = vpop.permute.xlu0 %2923  ;;  %v2963_v35 = vmul.f32 %v2948_v46, %v2930_v7  ;;  %v3006_v57 = vrot.slane %v2997_v29, %v8837_v11 }
 0x836   :  { %v2927_v60 = vsel %vm230_vm1, %v10773_v51, %v2924_v33  ;;  %v2933_v5 = vsel %vm230_vm1, %v2924_v33, %v10765_v0  ;;  %3474 = vmatpush1.bf16.msra.mxu1 %v2905_v52  ;;  %v2959_v51 = vmul.f32 %v2948_v46, %v2929_v48  ;;  %v3002_v2 = vrot.slane %v2997_v29, %v8859_v25  ;;  %v3059_v33 = vld [vmem:[#allocation8 + $0x3] ss:$8 sm:$0xf] }
 0x837   :  { %v2926_v3 = vpop.permute.xlu1 %2925  ;;  %v2966_v4 = vpack.c.bf16 %v2962_v12, %v2958_v24  ;;  %v2957_v14 = vmul.f32 %v2940_v20, %v2933_v5  ;;  %v2960_v0 = vmul.f32 %v2952_v61, %v2927_v60  ;;  %v3010_v46 = vrot.slane %v2997_v29, %v8845_v16 }
 0x838   :  { %v2928_v42 = vsel %vm230_vm1, %v10775_v54, %v2926_v3  ;;  %v2934_v13 = vsel %vm230_vm1, %v2926_v3, %v10767_v41  ;;  %v2967_v52 = vpack.c.bf16 %v2963_v35, %v2959_v51 }
 0x839   :  { %v2961_v37 = vmul.f32 %v2940_v20, %v2934_v13  ;;  %v2964_v39 = vmul.f32 %v2952_v61, %v2928_v42  ;;  %3432 = vmatprep.subr.bf16.mxu0 %v2966_v4  ;;  %v2978_v31 = vpop.permute.xlu0 %2977  ;;  %v3014_v20 = vrot.slane %v2997_v29, %v8870_v30  ;;  %v3068_v13 = vrot.slane %v3059_v33, %v8837_v11 }
 0x83a   :  { %v2993_v8 = vsel %vm294_vm2, %v10777_v23, %v2978_v31  ;;  %v2991_v48 = vsel %vm294_vm2, %v2978_v31, %v10781_v43 }
 0x83b   :  { %v2965_v6 = vpack.c.bf16 %v2961_v37, %v2957_v14  ;;  %v2980_v44 = vpop.permute.xlu1 %2979  ;;  %v2968_v54 = vpack.c.bf16 %v2964_v39, %v2960_v0  ;;  %v3020_v61 = vmul.f32 %v3006_v57, %v2993_v8 }
 0x83c   :  { %v2994_v41 = vsel %vm294_vm2, %v10779_v26, %v2980_v44  ;;  %v2992_v24 = vsel %vm294_vm2, %v2980_v44, %v10783_v27  ;;  %v3076_v44 = vrot.slane %v3059_v33, %v8870_v30 }
 0x83d   :  { %v3024_v7 = vmul.f32 %v3006_v57, %v2994_v41  ;;  %3433 = vmatpush1.bf16.msra.mxu0 %v2965_v6  ;;  %3475 = vmatprep.subr.bf16.mxu1 %v2968_v54  ;;  %v2986_v12 = vpop.permute.xlu0 %2985  ;;  %v3025_v35 = vmul.f32 %v3010_v46, %v2992_v24  ;;  %v3064_v6 = vrot.slane %v3059_v33, %v8859_v25 }
 0x83e   :  { %v2989_v60 = vsel %vm294_vm2, %v10781_v43, %v2986_v12  ;;  %v2995_v5 = vsel %vm294_vm2, %v2986_v12, %v10777_v23  ;;  %3476 = vmatpush1.bf16.msra.mxu1 %v2967_v52  ;;  %v3021_v43 = vmul.f32 %v3010_v46, %v2991_v48 }
 0x83f   :  { %v2988_v3 = vpop.permute.xlu1 %2987  ;;  %v3028_v4 = vpack.c.bf16 %v3024_v7, %v3020_v61  ;;  %v3019_v57 = vmul.f32 %v3002_v2, %v2995_v5  ;;  %v3022_v23 = vmul.f32 %v3014_v20, %v2989_v60  ;;  %v3072_v61 = vrot.slane %v3059_v33, %v8845_v16 }
 0x840   :  { %v2990_v29 = vsel %vm294_vm2, %v10783_v27, %v2988_v3  ;;  %v2996_v42 = vsel %vm294_vm2, %v2988_v3, %v10779_v26  ;;  %v3029_v8 = vpack.c.bf16 %v3025_v35, %v3021_v43 }
 0x841   :  { %v3023_v14 = vmul.f32 %v3002_v2, %v2996_v42  ;;  %v3026_v0 = vmul.f32 %v3014_v20, %v2990_v29  ;;  %3434 = vmatprep.subr.bf16.mxu0 %v3028_v4  ;;  %v3040_v37 = vpop.permute.xlu0 %3039  ;;  %v3129_v20 = vld [vmem:[#allocation8 + $0x5] ss:$8 sm:$0xf] }
 0x842   :  { %v3055_v39 = vsel %vm358_vm3, %v10785_v15, %v3040_v37  ;;  %v3053_v12 = vsel %vm358_vm3, %v3040_v37, %v10789_v34  ;;  %v3138_v3 = vrot.slane %v3129_v20, %v8837_v11  ;;  %v3142_v37 = vrot.slane %v3129_v20, %v8845_v16 }
 0x843   :  { %v3027_v31 = vpack.c.bf16 %v3023_v14, %v3019_v57  ;;  %v3042_v51 = vpop.permute.xlu1 %3041  ;;  %v3030_v27 = vpack.c.bf16 %v3026_v0, %v3022_v23  ;;  %v3082_v54 = vmul.f32 %v3068_v13, %v3055_v39  ;;  %v3100_v57 = vpack.c.bf16 %v10707_v17, %v10702_v32 }
 0x844   :  { %v3056_v26 = vsel %vm358_vm3, %v10787_v38, %v3042_v51  ;;  %v3054_v52 = vsel %vm358_vm3, %v3042_v51, %v10791_v9  ;;  %v3134_v23 = vrot.slane %v3129_v20, %v8859_v25  ;;  %v3146_v51 = vrot.slane %v3129_v20, %v8870_v30 }
 0x845   :  { %v3086_v41 = vmul.f32 %v3068_v13, %v3056_v26  ;;  %3435 = vmatpush1.bf16.msra.mxu0 %v3027_v31  ;;  %3477 = vmatprep.subr.bf16.mxu1 %v3030_v27  ;;  %v3048_v2 = vpop.permute.xlu0 %3047  ;;  %v3087_v5 = vmul.f32 %v3072_v61, %v3054_v52  ;;  %v3191_v27 = vld [vmem:[#allocation8 + $0x6] ss:$8 sm:$0xf] }
 0x846   :  { %v3051_v24 = vsel %vm358_vm3, %v10789_v34, %v3048_v2  ;;  %v3057_v7 = vsel %vm358_vm3, %v3048_v2, %v10785_v15  ;;  %3478 = vmatpush1.bf16.msra.mxu1 %v3029_v8  ;;  %v3083_v34 = vmul.f32 %v3072_v61, %v3053_v12  ;;  %v3196_v61 = vrot.slane %v3191_v27, %v8859_v25 }
 0x847   :  { %v3050_v46 = vpop.permute.xlu1 %3049  ;;  %v3090_v60 = vpack.c.bf16 %v3086_v41, %v3082_v54  ;;  %v3081_v4 = vmul.f32 %v3064_v6, %v3057_v7  ;;  %v3084_v15 = vmul.f32 %v3076_v44, %v3051_v24  ;;  %v3097_v41 = vpack.c.bf16 %v10621_v55, %v10618_v19 }
 0x848   :  { %v3052_v33 = vsel %vm358_vm3, %v10791_v9, %v3050_v46  ;;  %v3058_v48 = vsel %vm358_vm3, %v3050_v46, %v10787_v38  ;;  %v3098_v9 = vpack.c.bf16 %v10697_v36, %v10692_v62  ;;  %v3091_v43 = vpack.c.bf16 %v3087_v5, %v3083_v34 }
 0x849   :  { %v3085_v35 = vmul.f32 %v3064_v6, %v3058_v48  ;;  %v3088_v29 = vmul.f32 %v3076_v44, %v3052_v33  ;;  %3436 = vmatprep.subr.bf16.mxu0 %v3090_v60  ;;  %v3110_v42 = vpop.permute.xlu0 %3109  ;;  %v3099_v7 = vpack.c.bf16 %v10631_v63, %v10626_v47  ;;  %v3200_v46 = vrot.slane %v3191_v27, %v8837_v11  ;;  %v3610_v47 = vld [vmem:[#allocation8 + $0x1] ss:$8 sm:$0xf] }
 0x84a   :  { %v3123_v13 = vsel %vm430_vm4, %v3110_v42, %v10797_v21  ;;  %v3125_v8 = vsel %vm430_vm4, %v10793_v50, %v3110_v42  ;;  %v3204_v42 = vrot.slane %v3191_v27, %v8845_v16 }
 0x84b   :  { %v3089_v38 = vpack.c.bf16 %v3085_v35, %v3081_v4  ;;  %v3112_v14 = vpop.permute.xlu1 %3111  ;;  %v3092_v0 = vpack.c.bf16 %v3088_v29, %v3084_v15  ;;  %v3152_v26 = vmul.f32 %v3138_v3, %v3123_v13  ;;  %v3151_v12 = vmul.f32 %v3134_v23, %v3125_v8 }
 0x84c   :  { %v3124_v39 = vsel %vm430_vm4, %v3112_v14, %v10799_v28  ;;  %v3126_v31 = vsel %vm430_vm4, %v10795_v56, %v3112_v14 }
 0x84d   :  { %v3156_v6 = vmul.f32 %v3138_v3, %v3124_v39  ;;  %3437 = vmatpush1.bf16.msra.mxu0 %v3089_v38  ;;  %3479 = vmatprep.subr.bf16.mxu1 %v3092_v0  ;;  %v3118_v44 = vpop.permute.xlu0 %3117  ;;  %v3155_v2 = vmul.f32 %v3134_v23, %v3126_v31 }
 0x84e   :  { %v3121_v54 = vsel %vm430_vm4, %v10797_v21, %v3118_v44  ;;  %v3127_v52 = vsel %vm430_vm4, %v3118_v44, %v10793_v50  ;;  %3438 = vmatprep.subr.bf16.mxu0 %v3098_v9  ;;  %3480 = vmatpush1.bf16.msra.mxu1 %v3091_v43 }
 0x84f   :  { %v3120_v20 = vpop.permute.xlu1 %3119  ;;  %3481 = vmatprep.subr.bf16.mxu1 %v3100_v57  ;;  %v3160_v24 = vpack.c.bf16 %v3156_v6, %v3152_v26  ;;  %v3153_v60 = vmul.f32 %v3142_v37, %v3121_v54  ;;  %v3154_v5 = vmul.f32 %v3146_v51, %v3127_v52  ;;  %v3159_v15 = vpack.c.bf16 %v3155_v2, %v3151_v12 }
 0x850   :  { %v3122_v21 = vsel %vm430_vm4, %v10799_v28, %v3120_v20  ;;  %v3128_v50 = vsel %vm430_vm4, %v3120_v20, %v10795_v56  ;;  %v3208_v57 = vrot.slane %v3191_v27, %v8870_v30 }
 0x851   :  { %v3157_v33 = vmul.f32 %v3142_v37, %v3122_v21  ;;  %v3158_v48 = vmul.f32 %v3146_v51, %v3128_v50  ;;  %v3172_v3 = vpop.permute.xlu0 %3171  ;;  %3439 = vmatpush1.bf16.msra.mxu0 %v3097_v41  ;;  %v3253_v37 = vld [vmem:[#allocation8 + $0x7] ss:$8 sm:$0xf] }
 0x852   :  { %v3185_v4 = vsel %vm494_vm5, %v3172_v3, %v10805_v59  ;;  %v3187_v28 = vsel %vm494_vm5, %v10801_v18, %v3172_v3  ;;  %3440 = vmatprep.subr.bf16.mxu0 %v3160_v24  ;;  %3482 = vmatpush1.bf16.msra.mxu1 %v3099_v7  ;;  %v3258_v6 = vrot.slane %v3253_v37, %v8859_v25 }
 0x853   :  { %v3161_v56 = vpack.c.bf16 %v3157_v33, %v3153_v60  ;;  %v3174_v35 = vpop.permute.xlu1 %3173  ;;  %v3162_v29 = vpack.c.bf16 %v3158_v48, %v3154_v5  ;;  %v3213_v34 = vmul.f32 %v3196_v61, %v3187_v28  ;;  %v3214_v38 = vmul.f32 %v3200_v46, %v3185_v4  ;;  %v3315_v48 = vld [vmem:[#allocation8 + $0x20] ss:$8 sm:$0xf] }
 0x854   :  { %v3186_v13 = vsel %vm494_vm5, %v3174_v35, %v10807_v53  ;;  %v3188_v9 = vsel %vm494_vm5, %v10803_v49, %v3174_v35  ;;  %v3266_v12 = vrot.slane %v3253_v37, %v8845_v16  ;;  %v3270_v21 = vrot.slane %v3253_v37, %v8870_v30 }
 0x855   :  { %v3217_v23 = vmul.f32 %v3196_v61, %v3188_v9  ;;  %v3218_v14 = vmul.f32 %v3200_v46, %v3186_v13  ;;  %3483 = vmatprep.subr.bf16.mxu1 %v3162_v29  ;;  %v3180_v0 = vpop.permute.xlu0 %3179  ;;  %3441 = vmatpush1.bf16.msra.mxu0 %v3159_v15 }
 0x856   :  { %v3183_v43 = vsel %vm494_vm5, %v10805_v59, %v3180_v0  ;;  %v3189_v39 = vsel %vm494_vm5, %v3180_v0, %v10801_v18  ;;  %3484 = vmatpush1.bf16.msra.mxu1 %v3161_v56  ;;  %v3262_v59 = vrot.slane %v3253_v37, %v8837_v11  ;;  %v14183_v37 = vld [vmem:[#allocation89_spill] sm:$0xff] }
 0x857   :  { %v3221_v31 = vpack.c.bf16 %v3217_v23, %v3213_v34  ;;  %v3182_v51 = vpop.permute.xlu1 %3181  ;;  %v3222_v8 = vpack.c.bf16 %v3218_v14, %v3214_v38  ;;  %v3215_v44 = vmul.f32 %v3204_v42, %v3183_v43  ;;  %v3216_v54 = vmul.f32 %v3208_v57, %v3189_v39  ;;  %v14182_v23 = vld [vmem:[#allocation87_spill] sm:$0xff]  ;;  %v14184_v39 = vld [vmem:[#allocation88_spill] sm:$0xff] }
 0x858   :  { %v3184_v27 = vsel %vm494_vm5, %v10807_v53, %v3182_v51  ;;  %v3190_v26 = vsel %vm494_vm5, %v3182_v51, %v10803_v49  ;;  %v3328_v51 = vrot.slane %v3315_v48, %v8845_v16 }
 0x859   :  { %v3219_v52 = vmul.f32 %v3204_v42, %v3184_v27  ;;  %v3220_v18 = vmul.f32 %v3208_v57, %v3190_v26  ;;  %v3234_v41 = vpop.permute.xlu0 %3233  ;;  %3442 = vmatprep.subr.bf16.mxu0 %v3222_v8  ;;  %v3320_v42 = vrot.slane %v3315_v48, %v8859_v25  ;;  %v3332_v8 = vrot.slane %v3315_v48, %v8870_v30 }
 0x85a   :  { %v3247_v2 = vsel %vm558_vm6, %v3234_v41, %v10813_v58  ;;  %v3249_v53 = vsel %vm558_vm6, %v10809_v40, %v3234_v41  ;;  %3443 = vmatpush1.bf16.msra.mxu0 %v3221_v31 }
 0x85b   :  { %v3223_v49 = vpack.c.bf16 %v3219_v52, %v3215_v44  ;;  %v3236_v20 = vpop.permute.xlu1 %3235  ;;  %v3224_v61 = vpack.c.bf16 %v3220_v18, %v3216_v54  ;;  %v3275_v50 = vmul.f32 %v3258_v6, %v3249_v53  ;;  %v3276_v46 = vmul.f32 %v3262_v59, %v3247_v2 }
 0x85c   :  { %v3248_v24 = vsel %vm558_vm6, %v3236_v20, %v10815_v45  ;;  %v3250_v7 = vsel %vm558_vm6, %v10811_v1, %v3236_v20 }
 0x85d   :  { %v3279_v60 = vmul.f32 %v3258_v6, %v3250_v7  ;;  %v3280_v5 = vmul.f32 %v3262_v59, %v3248_v24  ;;  %3485 = vmatprep.subr.bf16.mxu1 %v3224_v61  ;;  %v3242_v33 = vpop.permute.xlu0 %3241 }
 0x85e   :  { %v3245_v3 = vsel %vm558_vm6, %v10813_v58, %v3242_v33  ;;  %v3251_v4 = vsel %vm558_vm6, %v3242_v33, %v10809_v40  ;;  %3486 = vmatpush1.bf16.msra.mxu1 %v3223_v49  ;;  %v3324_v58 = vrot.slane %v3315_v48, %v8837_v11 }
 0x85f   :  { %v3283_v28 = vpack.c.bf16 %v3279_v60, %v3275_v50  ;;  %v3244_v15 = vpop.permute.xlu1 %3243  ;;  %v3284_v56 = vpack.c.bf16 %v3280_v5, %v3276_v46  ;;  %v3277_v34 = vmul.f32 %v3266_v12, %v3245_v3  ;;  %v3278_v13 = vmul.f32 %v3270_v21, %v3251_v4  ;;  %v8437_v46 = vld [vmem:[#allocation6 + $0x40] ss:$8 sps:$4 sm:$0xff]  }
 0x860   :  { %v3246_v35 = vsel %vm558_vm6, %v10815_v45, %v3244_v15  ;;  %v3252_v29 = vsel %vm558_vm6, %v3244_v15, %v10811_v1 }
 0x861   :  { %v3281_v9 = vmul.f32 %v3266_v12, %v3246_v35  ;;  %v3282_v40 = vmul.f32 %v3270_v21, %v3252_v29  ;;  %v3296_v57 = vpop.permute.xlu0 %3295  ;;  %3444 = vmatprep.subr.bf16.mxu0 %v3284_v56  ;;  %v14185_v12 = vld [vmem:[#allocation77_spill] sm:$0xff] }
 0x862   :  { %v3309_v38 = vsel %vm622_vm7, %v3296_v57, %v10821_v22  ;;  %v3311_v45 = vsel %vm622_vm7, %v14182_v23, %v3296_v57  ;;  %3445 = vmatpush1.bf16.msra.mxu0 %v3283_v28 }
 0x863   :  { %v3285_v1 = vpack.c.bf16 %v3281_v9, %v3277_v34  ;;  %v3298_v14 = vpop.permute.xlu1 %3297  ;;  %v3286_v0 = vpack.c.bf16 %v3282_v40, %v3278_v13  ;;  %v3337_v27 = vmul.f32 %v3320_v42, %v3311_v45  ;;  %v3338_v26 = vmul.f32 %v3324_v58, %v3309_v38 }
 0x864   :  { %v3310_v43 = vsel %vm622_vm7, %v3298_v14, %v14183_v37  ;;  %v3312_v31 = vsel %vm622_vm7, %v14184_v39, %v3298_v14  ;;  %v8442_v14 = vld [vmem:[#allocation6 + $0x54] ss:$8 sps:$4 sm:$0xff]  }
 0x865   :  { %v3341_v6 = vmul.f32 %v3320_v42, %v3312_v31  ;;  %v3342_v59 = vmul.f32 %v3324_v58, %v3310_v43  ;;  %3487 = vmatprep.subr.bf16.mxu1 %v3286_v0  ;;  %v3304_v44 = vpop.permute.xlu0 %3303 }
 0x866   :  { %v3307_v54 = vsel %vm622_vm7, %v10821_v22, %v3304_v44  ;;  %v3313_v52 = vsel %vm622_vm7, %v3304_v44, %v14182_v23  ;;  %3488 = vmatpush1.bf16.msra.mxu1 %v3285_v1 }
 0x867   :  { %v3345_v18 = vpack.c.bf16 %v3341_v6, %v3337_v27  ;;  %v3306_v41 = vpop.permute.xlu1 %3305  ;;  %v3346_v2 = vpack.c.bf16 %v3342_v59, %v3338_v26  ;;  %v3339_v20 = vmul.f32 %v3328_v51, %v3307_v54  ;;  %v3340_v61 = vmul.f32 %v3332_v8, %v3313_v52 }
 0x868   :  { %v3308_v53 = vsel %vm622_vm7, %v14183_v37, %v3306_v41  ;;  %v3314_v49 = vsel %vm622_vm7, %v3306_v41, %v14184_v39 }
 0x869   :  { %v3343_v24 = vmul.f32 %v3328_v51, %v3308_v53  ;;  %v3344_v22 = vmul.f32 %v3332_v8, %v3314_v49  ;;  %3446 = vmatprep.subr.bf16.mxu0 %v3346_v2 }
 0x86a   :  { %3447 = vmatpush1.bf16.msra.mxu0 %v3345_v18 }
 0x86b   :  { %v3347_v7 = vpack.c.bf16 %v3343_v24, %v3339_v20  ;;  %8309 = vmatprep.subr.msk.bf16.mxu0 %vm9269_vm10, %v14185_v12  ;;  %v3348_v50 = vpack.c.bf16 %v3344_v22, %v3340_v61 }
 0x86d   :  { %3489 = vmatprep.subr.bf16.mxu1 %v3348_v50 }
 0x86e   :  { %8312 = vmatpush1.bf16.msk.msra.mxu0 %vm9269_vm10, %v14185_v12  ;;  %3490 = vmatpush1.bf16.msra.mxu1 %v3347_v7 }
 0x86f   :  { %8315 = vmatprep.subr.msk.bf16.mxu1 %vm9269_vm10, %v14185_v12 }
 0x871   :  { %3463 = vmatmul.mubr.bf16.vlgmr.msra.gmra.mrb[16].mxu0 %v8437_v46 }
 0x872   :  { %8318 = vmatpush1.bf16.msk.msra.mxu1 %vm9269_vm10, %v14185_v12  ;;  %4137 = vmatprep.mubr.bf16.mxu0 %v8442_v14 }
 0x875   :  { %3506 = vmatmul.mubr.bf16.vlgmr.msra.gmra.mrb[16].mxu1 %v8437_v46 }
 0x876   :  { %4180 = vmatprep.mubr.bf16.mxu1 %v8442_v14 }
 0x944   :  { %v3464_v60 = vpop.f32.mrb[16].mxu0 }
 0x945   :  { %v11061_v5 = vmax.f32 %v3464_v60, 0.0  ;;  %v3466_v33 = vpop.f32.mrb[17].mxu0 }
 0x946   :  { %v3468_v48 = vpop.f32.mrb[18].mxu0  ;;  %v11135_v13 = vmax.f32 %v3466_v33, 0.0  ;;  %v3548_v33 = vld [vmem:[#allocation8] ss:$8 sm:$0xf] }
 0x947   :  { %v11063_v3 = vmax.f32 %v3468_v48, 0.0  ;;  %3524 = vrot.lane.b32.xlu0 %v11061_v5, %s8619_s6  ;;  %v3470_v4 = vpop.f32.mrb[19].mxu0  ;;  %v3553_v14 = vrot.slane %v3548_v33, %v8859_v25  ;;  %v3565_v63 = vrot.slane %v3548_v33, %v8870_v30  ;;  %v3561_v36 = vrot.slane %v3548_v33, %v8845_v16 }
 0x948   :  { %v3507_v28 = vpop.f32.mrb[16].mxu1  ;;  %v11139_v9 = vmax.f32 %v3470_v4, 0.0  ;;  %v3557_v4 = vrot.slane %v3548_v33, %v8837_v11  ;;  %v3619_v33 = vrot.slane %v3610_v47, %v8837_v11 }
 0x949   :  { %v11067_v15 = vmax.f32 %v3507_v28, 0.0  ;;  %v3509_v56 = vpop.f32.mrb[17].mxu1  ;;  %3526 = vrot.lane.b32.xlu1 %v11063_v3, %s8619_s6 }
 0x94a   :  { %v3511_v29 = vpop.f32.mrb[18].mxu1  ;;  %v11143_v40 = vmax.f32 %v3509_v56, 0.0 }
 0x94b   :  { %v11073_v42 = vmax.f32 %v3511_v29, 0.0  ;;  %v3513_v58 = vpop.f32.mrb[19].mxu1  ;;  %3532 = vrot.lane.b32.xlu0 %v11067_v15, %s8619_s6 }
 0x94c   :  { %v11147_v57 = vmax.f32 %v3513_v58, 0.0 }
 0x94d   :  { %3534 = vrot.lane.b32.xlu1 %v11073_v42, %s8619_s6 }
 0x94f   :  { %3586 = vrot.lane.b32.xlu0 %v11061_v5, %s8620_s2 }
 0x951   :  { %3588 = vrot.lane.b32.xlu1 %v11063_v3, %s8620_s2 }
 0x953   :  { %3594 = vrot.lane.b32.xlu0 %v11067_v15, %s8620_s2 }
 0x955   :  { %3596 = vrot.lane.b32.xlu1 %v11073_v42, %s8620_s2 }
 0x957   :  { %3648 = vrot.lane.b32.xlu0 %v11061_v5, %s8621_s7 }
 0x959   :  { %3650 = vrot.lane.b32.xlu1 %v11063_v3, %s8621_s7 }
 0x95b   :  { %3656 = vrot.lane.b32.xlu0 %v11067_v15, %s8621_s7 }
 0x95d   :  { %3658 = vrot.lane.b32.xlu1 %v11073_v42, %s8621_s7 }
 0x95f   :  { %3710 = vrot.lane.b32.xlu0 %v11061_v5, %s8622_s8 }
 0x961   :  { %3712 = vrot.lane.b32.xlu1 %v11063_v3, %s8622_s8 }
 0x963   :  { %3718 = vrot.lane.b32.xlu0 %v11067_v15, %s8622_s8 }
 0x965   :  { %3720 = vrot.lane.b32.xlu1 %v11073_v42, %s8622_s8 }
 0x967   :  { %3780 = vrot.lane.b32.xlu0 %v11061_v5, %s8623_s9 }
 0x969   :  { %3782 = vrot.lane.b32.xlu1 %v11063_v3, %s8623_s9 }
 0x96b   :  { %3788 = vrot.lane.b32.xlu0 %v11067_v15, %s8623_s9 }
 0x96d   :  { %3790 = vrot.lane.b32.xlu1 %v11073_v42, %s8623_s9 }
 0x96f   :  { %3842 = vrot.lane.b32.xlu0 %v11061_v5, %s8624_s10 }
 0x971   :  { %3844 = vrot.lane.b32.xlu1 %v11063_v3, %s8624_s10 }
 0x973   :  { %3850 = vrot.lane.b32.xlu0 %v11067_v15, %s8624_s10 }
 0x975   :  { %3852 = vrot.lane.b32.xlu1 %v11073_v42, %s8624_s10 }
 0x977   :  { %3904 = vrot.lane.b32.xlu0 %v11061_v5, %s8625_s11 }
 0x979   :  { %3906 = vrot.lane.b32.xlu1 %v11063_v3, %s8625_s11 }
 0x97b   :  { %3912 = vrot.lane.b32.xlu0 %v11067_v15, %s8625_s11 }
 0x97d   :  { %3914 = vrot.lane.b32.xlu1 %v11073_v42, %s8625_s11 }
 0x97f   :  { %3966 = vrot.lane.b32.xlu0 %v11061_v5, %s8626_s12 }
 0x981   :  { %3968 = vrot.lane.b32.xlu1 %v11063_v3, %s8626_s12 }
 0x983   :  { %3974 = vrot.lane.b32.xlu0 %v11067_v15, %s8626_s12 }
 0x985   :  { %3976 = vrot.lane.b32.xlu1 %v11073_v42, %s8626_s12 }
 0x987   :  { %3528 = vrot.lane.b32.xlu0 %v11135_v13, %s8619_s6 }
 0x989   :  { %3530 = vrot.lane.b32.xlu1 %v11139_v9, %s8619_s6 }
 0x98b   :  { %3536 = vrot.lane.b32.xlu0 %v11143_v40, %s8619_s6 }
 0x98d   :  { %3538 = vrot.lane.b32.xlu1 %v11147_v57, %s8619_s6 }
 0x98f   :  { %3590 = vrot.lane.b32.xlu0 %v11135_v13, %s8620_s2 }
 0x991   :  { %3592 = vrot.lane.b32.xlu1 %v11139_v9, %s8620_s2 }
 0x993   :  { %3598 = vrot.lane.b32.xlu0 %v11143_v40, %s8620_s2 }
 0x995   :  { %3600 = vrot.lane.b32.xlu1 %v11147_v57, %s8620_s2 }
 0x997   :  { %3652 = vrot.lane.b32.xlu0 %v11135_v13, %s8621_s7 }
 0x999   :  { %3654 = vrot.lane.b32.xlu1 %v11139_v9, %s8621_s7 }
 0x99b   :  { %3660 = vrot.lane.b32.xlu0 %v11143_v40, %s8621_s7 }
 0x99d   :  { %3662 = vrot.lane.b32.xlu1 %v11147_v57, %s8621_s7 }
 0x99f   :  { %3714 = vrot.lane.b32.xlu0 %v11135_v13, %s8622_s8 }
 0x9a1   :  { %3716 = vrot.lane.b32.xlu1 %v11139_v9, %s8622_s8 }
 0x9a3   :  { %3722 = vrot.lane.b32.xlu0 %v11143_v40, %s8622_s8 }
 0x9a5   :  { %3724 = vrot.lane.b32.xlu1 %v11147_v57, %s8622_s8 }
 0x9a7   :  { %3784 = vrot.lane.b32.xlu0 %v11135_v13, %s8623_s9 }
 0x9a9   :  { %3786 = vrot.lane.b32.xlu1 %v11139_v9, %s8623_s9 }
 0x9ab   :  { %3792 = vrot.lane.b32.xlu0 %v11143_v40, %s8623_s9 }
 0x9ad   :  { %3794 = vrot.lane.b32.xlu1 %v11147_v57, %s8623_s9 }
 0x9af   :  { %3846 = vrot.lane.b32.xlu0 %v11135_v13, %s8624_s10 }
 0x9b1   :  { %3848 = vrot.lane.b32.xlu1 %v11139_v9, %s8624_s10 }
 0x9b3   :  { %3854 = vrot.lane.b32.xlu0 %v11143_v40, %s8624_s10 }
 0x9b5   :  { %3856 = vrot.lane.b32.xlu1 %v11147_v57, %s8624_s10 }
 0x9b7   :  { %3908 = vrot.lane.b32.xlu0 %v11135_v13, %s8625_s11 }
 0x9b9   :  { %v3525_v38 = vpop.permute.xlu0 %3524  ;;  %3910 = vrot.lane.b32.xlu1 %v11139_v9, %s8625_s11 }
 0x9bb   :  { %3916 = vrot.lane.b32.xlu0 %v11143_v40, %s8625_s11  ;;  %v3527_v23 = vpop.permute.xlu1 %3526 }
 0x9bd   :  { %v3533_v45 = vpop.permute.xlu0 %3532  ;;  %3918 = vrot.lane.b32.xlu1 %v11147_v57, %s8625_s11 }
 0x9bf   :  { %3970 = vrot.lane.b32.xlu0 %v11135_v13, %s8626_s12  ;;  %v3535_v1 = vpop.permute.xlu1 %3534 }
 0x9c1   :  { %v11203_v0 = vpop.permute.xlu0 %3586  ;;  %3972 = vrot.lane.b32.xlu1 %v11139_v9, %s8626_s12 }
 0x9c3   :  { %3978 = vrot.lane.b32.xlu0 %v11143_v40, %s8626_s12  ;;  %v11209_v37 = vpop.permute.xlu1 %3588 }
 0x9c5   :  { %v11211_v43 = vpop.permute.xlu0 %3594  ;;  %3980 = vrot.lane.b32.xlu1 %v11147_v57, %s8626_s12 }
 0x9c7   :  { %v11215_v39 = vpop.permute.xlu1 %3596 }
 0x9c9   :  { %v11217_v31 = vpop.permute.xlu0 %3648 }
 0x9cb   :  { %v11219_v51 = vpop.permute.xlu1 %3650 }
 0x9cd   :  { %v11221_v8 = vpop.permute.xlu0 %3656 }
 0x9cf   :  { %v11223_v27 = vpop.permute.xlu1 %3658 }
 0x9d1   :  { %v11225_v26 = vpop.permute.xlu0 %3710 }
 0x9d3   :  { %v11227_v6 = vpop.permute.xlu1 %3712 }
 0x9d5   :  { %v11229_v59 = vpop.permute.xlu0 %3718 }
 0x9d7   :  { %v11231_v44 = vpop.permute.xlu1 %3720 }
 0x9d9   :  { %v11233_v54 = vpop.permute.xlu0 %3780 }
 0x9db   :  { %v11235_v52 = vpop.permute.xlu1 %3782 }
 0x9dd   :  { %v11237_v18 = vpop.permute.xlu0 %3788 }
 0x9df   :  { %v11239_v41 = vpop.permute.xlu1 %3790 }
 0x9e1   :  { %v11241_v2 = vpop.permute.xlu0 %3842 }
 0x9e3   :  { %v11243_v53 = vpop.permute.xlu1 %3844 }
 0x9e5   :  { %v11245_v49 = vpop.permute.xlu0 %3850 }
 0x9e7   :  { %v11247_v20 = vpop.permute.xlu1 %3852 }
 0x9e9   :  { %v11249_v61 = vpop.permute.xlu0 %3904 }
 0x9eb   :  { %v11251_v24 = vpop.permute.xlu1 %3906 }
 0x9ed   :  { %v11253_v22 = vpop.permute.xlu0 %3912 }
 0x9ef   :  { %v11255_v7 = vpop.permute.xlu1 %3914 }
 0x9f1   :  { %v11257_v50 = vpop.permute.xlu0 %3966 }
 0x9f2   :  { %14187 = vst [vmem:[#allocation90_spill] sm:$0xff] %v11257_v50 }
 0x9f3   :  { %v11259_v46 = vpop.permute.xlu1 %3968 }
 0x9f4   :  { %14188 = vst [vmem:[#allocation87_spill] sm:$0xff] %v11259_v46 }
 0x9f5   :  { %v11261_v60 = vpop.permute.xlu0 %3974 }
 0x9f6   :  { %14189 = vst [vmem:[#allocation89_spill] sm:$0xff] %v11261_v60 }
 0x9f7   :  { %v11263_v48 = vpop.permute.xlu1 %3976 }
 0x9f8   :  { %14190 = vst [vmem:[#allocation88_spill] sm:$0xff] %v11263_v48 }
 0x9f9   :  { %v3529_v28 = vpop.permute.xlu0 %3528 }
 0x9fa   :  { %v3544_v56 = vsel %vm167_vm0, %v3525_v38, %v3529_v28  ;;  %v3542_v19 = vsel %vm167_vm0, %v3529_v28, %v3533_v45 }
 0x9fb   :  { %v3531_v29 = vpop.permute.xlu1 %3530  ;;  %v3571_v34 = vmul.f32 %v3557_v4, %v3544_v56 }
 0x9fc   :  { %v3545_v58 = vsel %vm167_vm0, %v3527_v23, %v3531_v29  ;;  %v3543_v35 = vsel %vm167_vm0, %v3531_v29, %v3535_v1 }
 0x9fd   :  { %v3575_v17 = vmul.f32 %v3557_v4, %v3545_v58  ;;  %v3537_v32 = vpop.permute.xlu0 %3536  ;;  %v3576_v12 = vmul.f32 %v3561_v36, %v3543_v35 }
 0x9fe   :  { %v3540_v55 = vsel %vm167_vm0, %v3533_v45, %v3537_v32  ;;  %v3546_v62 = vsel %vm167_vm0, %v3537_v32, %v3525_v38  ;;  %v3572_v32 = vmul.f32 %v3561_v36, %v3542_v19 }
 0x9ff   :  { %v3539_v56 = vpop.permute.xlu1 %3538  ;;  %v3579_v21 = vpack.c.bf16 %v3575_v17, %v3571_v34  ;;  %v3570_v58 = vmul.f32 %v3553_v14, %v3546_v62  ;;  %v3573_v46 = vmul.f32 %v3565_v63, %v3540_v55  ;;  %v3615_v62 = vrot.slane %v3610_v47, %v8859_v25 }
 0xa00   :  { %v3541_v4 = vsel %vm167_vm0, %v3535_v1, %v3539_v56  ;;  %v3547_v29 = vsel %vm167_vm0, %v3539_v56, %v3527_v23  ;;  %v3580_v45 = vpack.c.bf16 %v3576_v12, %v3572_v32  ;;  %v3627_v55 = vrot.slane %v3610_v47, %v8870_v30  ;;  %v3672_v1 = vld [vmem:[#allocation8 + $0x2] ss:$8 sm:$0xf] }
 0xa01   :  { %v3574_v48 = vmul.f32 %v3553_v14, %v3547_v29  ;;  %v3577_v50 = vmul.f32 %v3565_v63, %v3541_v4  ;;  %v3591_v60 = vpop.permute.xlu0 %3590  ;;  %4105 = vmatprep.subr.bf16.mxu0 %v3579_v21  ;;  %v3623_v12 = vrot.slane %v3610_v47, %v8845_v16  ;;  %v3681_v29 = vrot.slane %v3672_v1, %v8837_v11 }
 0xa02   :  { %v3606_v17 = vsel %vm230_vm1, %v11203_v0, %v3591_v60 }
 0xa03   :  { %v3578_v35 = vpack.c.bf16 %v3574_v48, %v3570_v58  ;;  %v3593_v34 = vpop.permute.xlu1 %3592  ;;  %v3581_v38 = vpack.c.bf16 %v3577_v50, %v3573_v46  ;;  %v3633_v63 = vmul.f32 %v3619_v33, %v3606_v17  ;;  %v3604_v48 = vsel %vm230_vm1, %v3591_v60, %v11211_v43 }
 0xa04   :  { %v3607_v23 = vsel %vm230_vm1, %v11209_v37, %v3593_v34  ;;  %v3605_v19 = vsel %vm230_vm1, %v3593_v34, %v11215_v39 }
 0xa05   :  { %v3637_v36 = vmul.f32 %v3619_v33, %v3607_v23  ;;  %v3599_v21 = vpop.permute.xlu0 %3598  ;;  %4106 = vmatpush1.bf16.msra.mxu0 %v3578_v35  ;;  %4148 = vmatprep.subr.bf16.mxu1 %v3581_v38  ;;  %v3638_v56 = vmul.f32 %v3623_v12, %v3605_v19  ;;  %v3689_v23 = vrot.slane %v3672_v1, %v8870_v30 }
 0xa06   :  { %v3602_v50 = vsel %vm230_vm1, %v11211_v43, %v3599_v21  ;;  %v3608_v46 = vsel %vm230_vm1, %v3599_v21, %v11203_v0  ;;  %4149 = vmatpush1.bf16.msra.mxu1 %v3580_v45  ;;  %v3634_v43 = vmul.f32 %v3623_v12, %v3604_v48  ;;  %v3677_v45 = vrot.slane %v3672_v1, %v8859_v25 }
 0xa07   :  { %v3601_v28 = vpop.permute.xlu1 %3600  ;;  %v3641_v14 = vpack.c.bf16 %v3637_v36, %v3633_v63  ;;  %v3632_v33 = vmul.f32 %v3615_v62, %v3608_v46  ;;  %v3635_v0 = vmul.f32 %v3627_v55, %v3602_v50  ;;  %v3734_v36 = vld [vmem:[#allocation8 + $0x3] ss:$8 sm:$0xf]  ;;  %v3685_v21 = vrot.slane %v3672_v1, %v8845_v16 }
 0xa08   :  { %v3603_v47 = vsel %vm230_vm1, %v11215_v39, %v3601_v28  ;;  %v3609_v4 = vsel %vm230_vm1, %v3601_v28, %v11209_v37  ;;  %v3642_v38 = vpack.c.bf16 %v3638_v56, %v3634_v43 }
 0xa09   :  { %v3636_v58 = vmul.f32 %v3615_v62, %v3609_v4  ;;  %v3639_v32 = vmul.f32 %v3627_v55, %v3603_v47  ;;  %v3653_v17 = vpop.permute.xlu0 %3652  ;;  %4107 = vmatprep.subr.bf16.mxu0 %v3641_v14  ;;  %v3743_v47 = vrot.slane %v3734_v36, %v8837_v11 }
 0xa0a   :  { %v3668_v60 = vsel %vm294_vm2, %v11217_v31, %v3653_v17  ;;  %v3666_v46 = vsel %vm294_vm2, %v3653_v17, %v11221_v8 }
 0xa0b   :  { %v3640_v35 = vpack.c.bf16 %v3636_v58, %v3632_v33  ;;  %v3655_v34 = vpop.permute.xlu1 %3654  ;;  %v3643_v39 = vpack.c.bf16 %v3639_v32, %v3635_v0  ;;  %v3695_v62 = vmul.f32 %v3681_v29, %v3668_v60  ;;  %v3739_v60 = vrot.slane %v3734_v36, %v8859_v25 }
 0xa0c   :  { %v3669_v37 = vsel %vm294_vm2, %v11219_v51, %v3655_v34  ;;  %v3667_v55 = vsel %vm294_vm2, %v3655_v34, %v11223_v27 }
 0xa0d   :  { %v3699_v63 = vmul.f32 %v3681_v29, %v3669_v37  ;;  %v3661_v19 = vpop.permute.xlu0 %3660  ;;  %4108 = vmatpush1.bf16.msra.mxu0 %v3640_v35  ;;  %4150 = vmatprep.subr.bf16.mxu1 %v3643_v39  ;;  %v3700_v14 = vmul.f32 %v3685_v21, %v3667_v55  ;;  %v3751_v35 = vrot.slane %v3734_v36, %v8870_v30 }
 0xa0e   :  { %v3664_v12 = vsel %vm294_vm2, %v11221_v8, %v3661_v19  ;;  %v3670_v50 = vsel %vm294_vm2, %v3661_v19, %v11217_v31  ;;  %4151 = vmatpush1.bf16.msra.mxu1 %v3642_v38  ;;  %v3696_v8 = vmul.f32 %v3685_v21, %v3666_v46 }
 0xa0f   :  { %v3663_v48 = vpop.permute.xlu1 %3662  ;;  %v3703_v28 = vpack.c.bf16 %v3699_v63, %v3695_v62  ;;  %v3694_v4 = vmul.f32 %v3677_v45, %v3670_v50  ;;  %v3697_v31 = vmul.f32 %v3689_v23, %v3664_v12 }
 0xa10   :  { %v3665_v1 = vsel %vm294_vm2, %v11223_v27, %v3663_v48  ;;  %v3671_v56 = vsel %vm294_vm2, %v3663_v48, %v11219_v51  ;;  %v3704_v43 = vpack.c.bf16 %v3700_v14, %v3696_v8 }
 0xa11   :  { %v3698_v29 = vmul.f32 %v3677_v45, %v3671_v56  ;;  %v3701_v33 = vmul.f32 %v3689_v23, %v3665_v1  ;;  %v3715_v0 = vpop.permute.xlu0 %3714  ;;  %4109 = vmatprep.subr.bf16.mxu0 %v3703_v28  ;;  %v3804_v45 = vld [vmem:[#allocation8 + $0x5] ss:$8 sm:$0xf]  ;;  %v3747_v23 = vrot.slane %v3734_v36, %v8845_v16 }
 0xa12   :  { %v3730_v58 = vsel %vm358_vm3, %v11225_v26, %v3715_v0  ;;  %v3728_v63 = vsel %vm358_vm3, %v3715_v0, %v11229_v59  ;;  %v3813_v46 = vrot.slane %v3804_v45, %v8837_v11 }
 0xa13   :  { %v3702_v32 = vpack.c.bf16 %v3698_v29, %v3694_v4  ;;  %v3717_v17 = vpop.permute.xlu1 %3716  ;;  %v3705_v27 = vpack.c.bf16 %v3701_v33, %v3697_v31  ;;  %v3757_v34 = vmul.f32 %v3743_v47, %v3730_v58  ;;  %v3809_v4 = vrot.slane %v3804_v45, %v8859_v25 }
 0xa14   :  { %v3731_v51 = vsel %vm358_vm3, %v11227_v6, %v3717_v17  ;;  %v3729_v39 = vsel %vm358_vm3, %v3717_v17, %v11231_v44  ;;  %v3817_v29 = vrot.slane %v3804_v45, %v8845_v16 }
 0xa15   :  { %v3761_v38 = vmul.f32 %v3743_v47, %v3731_v51  ;;  %v3723_v37 = vpop.permute.xlu0 %3722  ;;  %4110 = vmatpush1.bf16.msra.mxu0 %v3702_v32  ;;  %4152 = vmatprep.subr.bf16.mxu1 %v3705_v27  ;;  %v3762_v12 = vmul.f32 %v3747_v23, %v3729_v39  ;;  %v3775_v47 = vpack.c.bf16 %v11147_v57, %v11143_v40 }
 0xa16   :  { %v3726_v62 = vsel %vm358_vm3, %v11229_v59, %v3723_v37  ;;  %v3732_v55 = vsel %vm358_vm3, %v3723_v37, %v11225_v26  ;;  %4153 = vmatpush1.bf16.msra.mxu1 %v3704_v43  ;;  %v3758_v59 = vmul.f32 %v3747_v23, %v3728_v63  ;;  %v14191_v63 = vpack.c.bf16 %v11063_v3, %v11061_v5 }
 0xa17   :  { %v3725_v19 = vpop.permute.xlu1 %3724  ;;  %v3765_v21 = vpack.c.bf16 %v3761_v38, %v3757_v34  ;;  %v3756_v48 = vmul.f32 %v3739_v60, %v3732_v55  ;;  %v3759_v26 = vmul.f32 %v3751_v35, %v3726_v62 }
 0xa18   :  { %v3727_v36 = vsel %vm358_vm3, %v11231_v44, %v3725_v19  ;;  %v3733_v50 = vsel %vm358_vm3, %v3725_v19, %v11227_v6  ;;  %v3773_v44 = vpack.c.bf16 %v11139_v9, %v11135_v13  ;;  %v3766_v0 = vpack.c.bf16 %v3762_v12, %v3758_v59  ;;  %v3866_v9 = vld [vmem:[#allocation8 + $0x6] ss:$8 sm:$0xf] }
 0xa19   :  { %v3760_v28 = vmul.f32 %v3739_v60, %v3733_v50  ;;  %v3763_v14 = vmul.f32 %v3751_v35, %v3727_v36  ;;  %v3785_v1 = vpop.permute.xlu0 %3784  ;;  %4111 = vmatprep.subr.bf16.mxu0 %v3765_v21  ;;  %v3821_v13 = vrot.slane %v3804_v45, %v8870_v30  ;;  %v3871_v35 = vrot.slane %v3866_v9, %v8859_v25 }
 0xa1a   :  { %v3798_v56 = vsel %vm430_vm4, %v3785_v1, %v11237_v18  ;;  %v3800_v40 = vsel %vm430_vm4, %v11233_v54, %v3785_v1  ;;  %v3875_v37 = vrot.slane %v3866_v9, %v8837_v11  ;;  %v3879_v50 = vrot.slane %v3866_v9, %v8845_v16  ;;  %v3928_v1 = vld [vmem:[#allocation8 + $0x7] ss:$8 sm:$0xf] }
 0xa1b   :  { %v3764_v6 = vpack.c.bf16 %v3760_v28, %v3756_v48  ;;  %v3787_v31 = vpop.permute.xlu1 %3786  ;;  %v3767_v33 = vpack.c.bf16 %v3763_v14, %v3759_v26  ;;  %v3827_v57 = vmul.f32 %v3813_v46, %v3798_v56  ;;  %v3826_v39 = vmul.f32 %v3809_v4, %v3800_v40 }
 0xa1c   :  { %v3799_v8 = vsel %vm430_vm4, %v3787_v31, %v11239_v41  ;;  %v3801_v58 = vsel %vm430_vm4, %v11235_v52, %v3787_v31  ;;  %v3883_v26 = vrot.slane %v3866_v9, %v8870_v30 }
 0xa1d   :  { %v3831_v32 = vmul.f32 %v3813_v46, %v3799_v8  ;;  %v3793_v17 = vpop.permute.xlu0 %3792  ;;  %4112 = vmatpush1.bf16.msra.mxu0 %v3764_v6  ;;  %4154 = vmatprep.subr.bf16.mxu1 %v3767_v33  ;;  %v3830_v51 = vmul.f32 %v3809_v4, %v3801_v58 }
 0xa1e   :  { %v3796_v27 = vsel %vm430_vm4, %v11237_v18, %v3793_v17  ;;  %v3802_v43 = vsel %vm430_vm4, %v3793_v17, %v11233_v54  ;;  %4113 = vmatprep.subr.bf16.mxu0 %v3773_v44  ;;  %4155 = vmatpush1.bf16.msra.mxu1 %v3766_v0  ;;  %v3941_v17 = vrot.slane %v3928_v1, %v8845_v16 }
 0xa1f   :  { %4156 = vmatprep.subr.bf16.mxu1 %v3775_v47  ;;  %v3795_v60 = vpop.permute.xlu1 %3794  ;;  %v3835_v34 = vpack.c.bf16 %v3831_v32, %v3827_v57  ;;  %v3828_v54 = vmul.f32 %v3817_v29, %v3796_v27  ;;  %v3829_v45 = vmul.f32 %v3821_v13, %v3802_v43  ;;  %v3834_v21 = vpack.c.bf16 %v3830_v51, %v3826_v39  ;;  %v3990_v39 = vld [vmem:[#allocation8 + $0x20] ss:$8 sm:$0xf] }
 0xa20   :  { %v3797_v38 = vsel %vm430_vm4, %v11239_v41, %v3795_v60  ;;  %v3803_v18 = vsel %vm430_vm4, %v3795_v60, %v11235_v52  ;;  %v14192_v52 = vpack.c.bf16 %v11073_v42, %v11067_v15  ;;  %v3945_v27 = vrot.slane %v3928_v1, %v8870_v30 }
 0xa21   :  { %v3832_v23 = vmul.f32 %v3817_v29, %v3797_v38  ;;  %v3833_v62 = vmul.f32 %v3821_v13, %v3803_v18  ;;  %v3847_v55 = vpop.permute.xlu0 %3846  ;;  %4114 = vmatpush1.bf16.msra.mxu0 %v14191_v63  ;;  %v3933_v29 = vrot.slane %v3928_v1, %v8859_v25 }
 0xa22   :  { %v3860_v19 = vsel %vm494_vm5, %v3847_v55, %v11245_v49  ;;  %v3862_v41 = vsel %vm494_vm5, %v11241_v2, %v3847_v55  ;;  %4115 = vmatprep.subr.bf16.mxu0 %v3835_v34  ;;  %4157 = vmatpush1.bf16.msra.mxu1 %v14192_v52  ;;  %v3995_v55 = vrot.slane %v3990_v39, %v8859_v25 }
 0xa23   :  { %v3836_v12 = vpack.c.bf16 %v3832_v23, %v3828_v54  ;;  %v3849_v36 = vpop.permute.xlu1 %3848  ;;  %v3837_v5 = vpack.c.bf16 %v3833_v62, %v3829_v45  ;;  %v3888_v3 = vmul.f32 %v3871_v35, %v3862_v41  ;;  %v3889_v28 = vmul.f32 %v3875_v37, %v3860_v19 }
 0xa24   :  { %v3861_v46 = vsel %vm494_vm5, %v3849_v36, %v11247_v20  ;;  %v3863_v48 = vsel %vm494_vm5, %v11243_v53, %v3849_v36  ;;  %v14194_v36 = vld [vmem:[#allocation90_spill] sm:$0xff] }
 0xa25   :  { %v3892_v15 = vmul.f32 %v3871_v35, %v3863_v48  ;;  %v3893_v42 = vmul.f32 %v3875_v37, %v3861_v46  ;;  %v3855_v14 = vpop.permute.xlu0 %3854  ;;  %4116 = vmatpush1.bf16.msra.mxu0 %v3834_v21  ;;  %4158 = vmatprep.subr.bf16.mxu1 %v3837_v5  ;;  %v14193_v21 = vld [vmem:[#allocation89_spill] sm:$0xff]  ;;  %v14196_v48 = vld [vmem:[#allocation87_spill] sm:$0xff] }
 0xa26   :  { %v3858_v59 = vsel %vm494_vm5, %v11245_v49, %v3855_v14  ;;  %v3864_v56 = vsel %vm494_vm5, %v3855_v14, %v11241_v2  ;;  %4159 = vmatpush1.bf16.msra.mxu1 %v3836_v12  ;;  %v3937_v49 = vrot.slane %v3928_v1, %v8837_v11 }
 0xa27   :  { %v3896_v44 = vpack.c.bf16 %v3892_v15, %v3888_v3  ;;  %v3857_v47 = vpop.permute.xlu1 %3856  ;;  %v3897_v6 = vpack.c.bf16 %v3893_v42, %v3889_v28  ;;  %v3890_v33 = vmul.f32 %v3879_v50, %v3858_v59  ;;  %v3891_v0 = vmul.f32 %v3883_v26, %v3864_v56  ;;  %v14195_v3 = vld [vmem:[#allocation88_spill] sm:$0xff] }
 0xa28   :  { %v3859_v4 = vsel %vm494_vm5, %v11247_v20, %v3857_v47  ;;  %v3865_v31 = vsel %vm494_vm5, %v3857_v47, %v11243_v53  ;;  %v4003_v28 = vrot.slane %v3990_v39, %v8845_v16  ;;  %v4007_v15 = vrot.slane %v3990_v39, %v8870_v30 }
 0xa29   :  { %v3894_v8 = vmul.f32 %v3879_v50, %v3859_v4  ;;  %v3895_v2 = vmul.f32 %v3883_v26, %v3865_v31  ;;  %v3909_v58 = vpop.permute.xlu0 %3908  ;;  %4117 = vmatprep.subr.bf16.mxu0 %v3897_v6 }
 0xa2a   :  { %v3922_v13 = vsel %vm558_vm6, %v3909_v58, %v11253_v22  ;;  %v3924_v20 = vsel %vm558_vm6, %v11249_v61, %v3909_v58  ;;  %4118 = vmatpush1.bf16.msra.mxu0 %v3896_v44 }
 0xa2b   :  { %v3898_v53 = vpack.c.bf16 %v3894_v8, %v3890_v33  ;;  %v3911_v9 = vpop.permute.xlu1 %3910  ;;  %v3899_v40 = vpack.c.bf16 %v3895_v2, %v3891_v0  ;;  %v3950_v43 = vmul.f32 %v3933_v29, %v3924_v20  ;;  %v3951_v51 = vmul.f32 %v3937_v49, %v3922_v13  ;;  %v14197_v13 = vld [vmem:[#allocation77_spill] sm:$0xff] }
 0xa2c   :  { %v3923_v57 = vsel %vm558_vm6, %v3911_v9, %v11255_v7  ;;  %v3925_v32 = vsel %vm558_vm6, %v11251_v24, %v3911_v9  ;;  %v8440_v9 = vld [vmem:[#allocation6 + $0x50] ss:$8 sps:$4 sm:$0xff]  }
 0xa2d   :  { %v3954_v60 = vmul.f32 %v3933_v29, %v3925_v32  ;;  %v3955_v35 = vmul.f32 %v3937_v49, %v3923_v57  ;;  %v3917_v34 = vpop.permute.xlu0 %3916  ;;  %4160 = vmatprep.subr.bf16.mxu1 %v3899_v40  ;;  %v14199_v40 = vld [vmem:[#allocation14_spill] sm:$0xff]  ;;  %v14200_v57 = vld [vmem:[#allocation13_spill] sm:$0xff] }
 0xa2e   :  { %v3920_v38 = vsel %vm558_vm6, %v11253_v22, %v3917_v34  ;;  %v3926_v18 = vsel %vm558_vm6, %v3917_v34, %v11249_v61  ;;  %4161 = vmatpush1.bf16.msra.mxu1 %v3898_v53  ;;  %v3999_v22 = vrot.slane %v3990_v39, %v8837_v11  ;;  %v14201_v32 = vpack.c.bf16 %v14199_v40, %v14200_v57  ;;  %v14208_v39 = vld [vmem:[#allocation20_spill] sm:$0xff] }
 0xa2f   :  { %v3958_v37 = vpack.c.bf16 %v3954_v60, %v3950_v43  ;;  %v3919_v54 = vpop.permute.xlu1 %3918  ;;  %v3959_v45 = vpack.c.bf16 %v3955_v35, %v3951_v51  ;;  %v3952_v63 = vmul.f32 %v3941_v17, %v3920_v38  ;;  %v3953_v19 = vmul.f32 %v3945_v27, %v3926_v18  ;;  %v14203_v43 = vld [vmem:[#allocation18_spill] sm:$0xff]  ;;  %v14205_v60 = vld [vmem:[#allocation21_spill] sm:$0xff]  ;;  %v14209_v38 = vld [vmem:[#allocation19_spill] sm:$0xff] }
 0xa30   :  { %v3921_v23 = vsel %vm558_vm6, %v11255_v7, %v3919_v54  ;;  %v3927_v62 = vsel %vm558_vm6, %v3919_v54, %v11251_v24  ;;  %v14206_v35 = vld [vmem:[#allocation22_spill] sm:$0xff]  ;;  %v14210_v18 = vpack.c.bf16 %v14208_v39, %v14209_v38  ;;  %v14212_v54 = vld [vmem:[#allocation27_spill] sm:$0xff]  ;;  %v14256_v57 = vld [vmem:[#allocation48_spill] sm:$0xff] }
 0xa31   :  { %v3956_v41 = vmul.f32 %v3941_v17, %v3921_v23  ;;  %v3957_v61 = vmul.f32 %v3945_v27, %v3927_v62  ;;  %v3971_v52 = vpop.permute.xlu0 %3970  ;;  %4119 = vmatprep.subr.bf16.mxu0 %v3959_v45  ;;  %v8445_v17 = vld [vmem:[#allocation6 + $0x64] ss:$8 sps:$4 sm:$0xff]   ;;  %v14207_v34 = vpack.c.bf16 %v14205_v60, %v14206_v35  ;;  %v14214_v23 = vld [vmem:[#allocation15_spill] sm:$0xff]  ;;  %v14215_v62 = vld [vmem:[#allocation16_spill] sm:$0xff] }
 0xa32   :  { %v3984_v12 = vsel %vm622_vm7, %v3971_v52, %v14193_v21  ;;  %v3986_v7 = vsel %vm622_vm7, %v14194_v36, %v3971_v52  ;;  %4120 = vmatpush1.bf16.msra.mxu0 %v3958_v37  ;;  %v14202_v27 = vld [vmem:[#allocation17_spill] sm:$0xff] }
 0xa33   :  { %v3960_v24 = vpack.c.bf16 %v3956_v41, %v3952_v63  ;;  %v3973_v50 = vpop.permute.xlu1 %3972  ;;  %v3961_v5 = vpack.c.bf16 %v3957_v61, %v3953_v19  ;;  %v4012_v42 = vmul.f32 %v3995_v55, %v3986_v7  ;;  %v4013_v14 = vmul.f32 %v3999_v22, %v3984_v12  ;;  %v14211_v37 = vld [vmem:[#allocation25_spill] sm:$0xff]  ;;  %v14218_v63 = vld [vmem:[#allocation30_spill] sm:$0xff]  ;;  %v14221_v61 = vld [vmem:[#allocation28_spill] sm:$0xff] }
 0xa34   :  { %v3985_v46 = vsel %vm622_vm7, %v3973_v50, %v14195_v3  ;;  %v3987_v26 = vsel %vm622_vm7, %v14196_v48, %v3973_v50  ;;  %v14204_v51 = vpack.c.bf16 %v14202_v27, %v14203_v43  ;;  %v14213_v45 = vpack.c.bf16 %v14211_v37, %v14212_v54  ;;  %v14220_v41 = vld [vmem:[#allocation26_spill] sm:$0xff]  ;;  %v14224_v12 = vld [vmem:[#allocation35_spill] sm:$0xff]  ;;  %v14263_v35 = vld [vmem:[#allocation57_spill] sm:$0xff] }
 0xa35   :  { %v4016_v1 = vmul.f32 %v3995_v55, %v3987_v26  ;;  %v4017_v59 = vmul.f32 %v3999_v22, %v3985_v46  ;;  %v3979_v56 = vpop.permute.xlu0 %3978  ;;  %4162 = vmatprep.subr.bf16.mxu1 %v3961_v5  ;;  %v14216_v55 = vpack.c.bf16 %v14214_v23, %v14215_v62  ;;  %v14217_v22 = vld [vmem:[#allocation29_spill] sm:$0xff]  ;;  %v14222_v52 = vpack.c.bf16 %v14220_v41, %v14221_v61  ;;  %v14226_v7 = vld [vmem:[#allocation23_spill] sm:$0xff]  ;;  %v14233_v26 = vld [vmem:[#allocation36_spill] sm:$0xff] }
 0xa36   :  { %v3982_v44 = vsel %vm622_vm7, %v14193_v21, %v3979_v56  ;;  %v3988_v47 = vsel %vm622_vm7, %v3979_v56, %v14194_v36  ;;  %4163 = vmatpush1.bf16.msra.mxu1 %v3960_v24  ;;  %v14219_v19 = vpack.c.bf16 %v14217_v22, %v14218_v63  ;;  %v14223_v21 = vld [vmem:[#allocation33_spill] sm:$0xff]  ;;  %v14227_v24 = vld [vmem:[#allocation24_spill] sm:$0xff]  ;;  %v14260_v43 = vld [vmem:[#allocation54_spill] sm:$0xff] }
 0xa37   :  { %v4020_v6 = vpack.c.bf16 %v4016_v1, %v4012_v42  ;;  %v3981_v4 = vpop.permute.xlu1 %3980  ;;  %v4021_v31 = vpack.c.bf16 %v4017_v59, %v4013_v14  ;;  %v4014_v33 = vmul.f32 %v4003_v28, %v3982_v44  ;;  %v4015_v0 = vmul.f32 %v4007_v15, %v3988_v47  ;;  %v14229_v5 = vld [vmem:[#allocation37_spill] sm:$0xff]  ;;  %v14236_v42 = vld [vmem:[#allocation43_spill] sm:$0xff]  ;;  %v14239_v59 = vld [vmem:[#allocation32_spill] sm:$0xff] }
 0xa38   :  { %v3983_v29 = vsel %vm622_vm7, %v14195_v3, %v3981_v4  ;;  %v3989_v49 = vsel %vm622_vm7, %v3981_v4, %v14196_v48  ;;  %v14225_v36 = vpack.c.bf16 %v14223_v21, %v14224_v12  ;;  %v14228_v50 = vpack.c.bf16 %v14226_v7, %v14227_v24  ;;  %v14230_v3 = vld [vmem:[#allocation38_spill] sm:$0xff]  ;;  %v14238_v1 = vld [vmem:[#allocation31_spill] sm:$0xff]  ;;  %v14242_v47 = vld [vmem:[#allocation44_spill] sm:$0xff] }
 0xa39   :  { %v4018_v8 = vmul.f32 %v4003_v28, %v3983_v29  ;;  %v4019_v2 = vmul.f32 %v4007_v15, %v3989_v49  ;;  %4121 = vmatprep.subr.bf16.mxu0 %v4021_v31  ;;  %v14231_v46 = vpack.c.bf16 %v14229_v5, %v14230_v3  ;;  %v14232_v48 = vld [vmem:[#allocation34_spill] sm:$0xff]  ;;  %v14235_v15 = vld [vmem:[#allocation41_spill] sm:$0xff]  ;;  %v14240_v56 = vpack.c.bf16 %v14238_v1, %v14239_v59  ;;  %v14245_v31 = vld [vmem:[#allocation47_spill] sm:$0xff] }
 0xa3a   :  { %4122 = vmatpush1.bf16.msra.mxu0 %v4020_v6  ;;  %v14234_v28 = vpack.c.bf16 %v14232_v48, %v14233_v26  ;;  %v14237_v14 = vpack.c.bf16 %v14235_v15, %v14236_v42  ;;  %v14241_v44 = vld [vmem:[#allocation42_spill] sm:$0xff]  ;;  %v14244_v4 = vld [vmem:[#allocation45_spill] sm:$0xff]  ;;  %v14246_v29 = vld [vmem:[#allocation39_spill] sm:$0xff] }
 0xa3b   :  { %v4022_v58 = vpack.c.bf16 %v4018_v8, %v4014_v33  ;;  %8321 = vmatprep.subr.msk.bf16.mxu0 %vm9269_vm10, %v14197_v13  ;;  %v4023_v53 = vpack.c.bf16 %v4019_v2, %v4015_v0  ;;  %v14243_v6 = vpack.c.bf16 %v14241_v44, %v14242_v47  ;;  %v14247_v49 = vld [vmem:[#allocation40_spill] sm:$0xff]  ;;  %v14249_v0 = vld [vmem:[#allocation51_spill] sm:$0xff]  ;;  %v14266_v38 = vld [vmem:[#allocation53_spill] sm:$0xff] }
 0xa3c   :  { %v14248_v33 = vpack.c.bf16 %v14246_v29, %v14247_v49  ;;  %v14250_v8 = vld [vmem:[#allocation52_spill] sm:$0xff]  ;;  %v14269_v54 = vld [vmem:[#allocation67_spill] sm:$0xff]  ;;  %v14272_v62 = vld [vmem:[#allocation62_spill] sm:$0xff] }
 0xa3d   :  { %4164 = vmatprep.subr.bf16.mxu1 %v4023_v53  ;;  %v14251_v2 = vpack.c.bf16 %v14249_v0, %v14250_v8  ;;  %v14253_v53 = vld [vmem:[#allocation49_spill] sm:$0xff]  ;;  %v14281_v12 = vld [vmem:[#allocation75_spill] sm:$0xff]  ;;  %v14284_v24 = vld [vmem:[#allocation70_spill] sm:$0xff] }
 0xa3e   :  { %8324 = vmatpush1.bf16.msk.msra.mxu0 %vm9269_vm10, %v14197_v13  ;;  %4165 = vmatpush1.bf16.msra.mxu1 %v4022_v58  ;;  %v14252_v58 = vld [vmem:[#allocation46_spill] sm:$0xff]  ;;  %v14275_v63 = vld [vmem:[#allocation65_spill] sm:$0xff]  ;;  %v14293_v42 = vld [vmem:[#allocation80_spill] sm:$0xff] }
 0xa3f   :  { %4576 = vmatprep.subr.bf16.mxu0 %v14201_v32  ;;  %8327 = vmatprep.subr.msk.bf16.mxu1 %vm9269_vm10, %v14197_v13  ;;  %v14257_v32 = vld [vmem:[#allocation59_spill] sm:$0xff]  ;;  %v14278_v61 = vld [vmem:[#allocation61_spill] sm:$0xff] }
 0xa40   :  { %v14287_v3 = vld [vmem:[#allocation73_spill] sm:$0xff] }
 0xa41   :  { %4138 = vmatmul.mubr.bf16.vlgmr.msra.gmra.mrb[20].mxu0 %v8440_v9  ;;  %v14290_v26 = vld [vmem:[#allocation69_spill] sm:$0xff] }
 0xa42   :  { %8330 = vmatpush1.bf16.msk.msra.mxu1 %vm9269_vm10, %v14197_v13  ;;  %4577 = vmatpush1.bf16.msra.mxu0 %v14204_v51  ;;  %v14261_v51 = vld [vmem:[#allocation56_spill] sm:$0xff]  ;;  %v8443_v59 = vld [vmem:[#allocation6 + $0x60] ss:$8 sps:$4 sm:$0xff]  }
 0xa43   :  { %4578 = vmatprep.subr.bf16.mxu0 %v14207_v34  ;;  %4619 = vmatprep.subr.bf16.mxu1 %v14210_v18  ;;  %v14262_v60 = vpack.c.bf16 %v14260_v43, %v14261_v51  ;;  %v14264_v34 = vld [vmem:[#allocation58_spill] sm:$0xff]  ;;  %v14267_v18 = vld [vmem:[#allocation55_spill] sm:$0xff]  ;;  %v14297_v44 = vld [vmem:[#allocation81_spill] sm:$0xff] }
 0xa44   :  { %4608 = vmatprep.mubr.bf16.mxu0 %v8445_v17  ;;  %v14265_v39 = vpack.c.bf16 %v14263_v35, %v14264_v34  ;;  %v14268_v37 = vpack.c.bf16 %v14266_v38, %v14267_v18 }
 0xa45   :  { %4181 = vmatmul.mubr.bf16.vlgmr.msra.gmra.mrb[20].mxu1 %v8440_v9  ;;  %v14254_v9 = vld [vmem:[#allocation50_spill] sm:$0xff] }
 0xa46   :  { %4579 = vmatpush1.bf16.msra.mxu0 %v14213_v45  ;;  %4620 = vmatpush1.bf16.msra.mxu1 %v14216_v55  ;;  %v14255_v40 = vpack.c.bf16 %v14253_v53, %v14254_v9  ;;  %v14270_v45 = vld [vmem:[#allocation68_spill] sm:$0xff] }
 0xa47   :  { %4580 = vmatprep.subr.bf16.mxu0 %v14219_v19  ;;  %4621 = vmatprep.subr.bf16.mxu1 %v14222_v52  ;;  %v14271_v23 = vpack.c.bf16 %v14269_v54, %v14270_v45  ;;  %v14273_v55 = vld [vmem:[#allocation64_spill] sm:$0xff]  ;;  %v14276_v19 = vld [vmem:[#allocation66_spill] sm:$0xff]  ;;  %v14279_v52 = vld [vmem:[#allocation63_spill] sm:$0xff] }
 0xa48   :  { %4651 = vmatprep.mubr.bf16.mxu1 %v8445_v17  ;;  %v14258_v17 = vld [vmem:[#allocation60_spill] sm:$0xff]  ;;  %v14274_v22 = vpack.c.bf16 %v14272_v62, %v14273_v55  ;;  %v14277_v41 = vpack.c.bf16 %v14275_v63, %v14276_v19  ;;  %v14280_v21 = vpack.c.bf16 %v14278_v61, %v14279_v52 }
 0xa49   :  { %v14259_v27 = vpack.c.bf16 %v14257_v32, %v14258_v17  ;;  %v8448_v62 = vld [vmem:[#allocation6 + $0x74] ss:$8 sps:$4 sm:$0xff]  }
 0xa4a   :  { %4581 = vmatpush1.bf16.msra.mxu0 %v14225_v36  ;;  %4622 = vmatpush1.bf16.msra.mxu1 %v14228_v50  ;;  %v14282_v36 = vld [vmem:[#allocation76_spill] sm:$0xff] }
 0xa4b   :  { %4582 = vmatprep.subr.bf16.mxu0 %v14231_v46  ;;  %4623 = vmatprep.subr.bf16.mxu1 %v14234_v28  ;;  %v14283_v7 = vpack.c.bf16 %v14281_v12, %v14282_v36  ;;  %v14285_v50 = vld [vmem:[#allocation72_spill] sm:$0xff]  ;;  %v14288_v46 = vld [vmem:[#allocation74_spill] sm:$0xff]  ;;  %v14291_v28 = vld [vmem:[#allocation71_spill] sm:$0xff] }
 0xa4c   :  { %v14286_v5 = vpack.c.bf16 %v14284_v24, %v14285_v50  ;;  %v14289_v48 = vpack.c.bf16 %v14287_v3, %v14288_v46  ;;  %v14292_v15 = vpack.c.bf16 %v14290_v26, %v14291_v28 }
 0xa4e   :  { %4583 = vmatpush1.bf16.msra.mxu0 %v14237_v14  ;;  %4624 = vmatpush1.bf16.msra.mxu1 %v14240_v56  ;;  %v14294_v14 = vld [vmem:[#allocation82_spill] sm:$0xff]  ;;  %v14296_v56 = vld [vmem:[#allocation79_spill] sm:$0xff] }
 0xa4f   :  { %4625 = vmatprep.subr.bf16.mxu1 %v14243_v6  ;;  %4584 = vmatprep.subr.bf16.mxu0 %v14244_v4  ;;  %v14295_v1 = vpack.c.bf16 %v14293_v42, %v14294_v14  ;;  %v14298_v47 = vpack.c.bf16 %v14296_v56, %v14297_v44 }
 0xa52   :  { %4585 = vmatpush1.bf16.msra.mxu0 %v14245_v31  ;;  %4626 = vmatpush1.bf16.msra.mxu1 %v14248_v33 }
 0xa53   :  { %4586 = vmatprep.subr.bf16.mxu0 %v14251_v2  ;;  %4627 = vmatprep.subr.bf16.mxu1 %v14252_v58 }
 0xa56   :  { %4587 = vmatpush1.bf16.msra.mxu0 %v14255_v40  ;;  %4628 = vmatpush1.bf16.msra.mxu1 %v14256_v57 }
 0xa57   :  { %4588 = vmatprep.subr.bf16.mxu0 %v14259_v27  ;;  %4629 = vmatprep.subr.bf16.mxu1 %v14262_v60 }
 0xa5a   :  { %4589 = vmatpush1.bf16.msra.mxu0 %v14265_v39  ;;  %4630 = vmatpush1.bf16.msra.mxu1 %v14268_v37 }
 0xa5b   :  { %4590 = vmatprep.subr.bf16.mxu0 %v14271_v23  ;;  %4631 = vmatprep.subr.bf16.mxu1 %v14274_v22 }
 0xa5e   :  { %4591 = vmatpush1.bf16.msra.mxu0 %v14277_v41  ;;  %4632 = vmatpush1.bf16.msra.mxu1 %v14280_v21 }
 0xa5f   :  { %4592 = vmatprep.subr.bf16.mxu0 %v14283_v7  ;;  %4633 = vmatprep.subr.bf16.mxu1 %v14286_v5 }
 0xa62   :  { %4593 = vmatpush1.bf16.msra.mxu0 %v14289_v48  ;;  %4634 = vmatpush1.bf16.msra.mxu1 %v14292_v15 }
 0xa63   :  { %4635 = vmatprep.subr.bf16.mxu1 %v14295_v1  ;;  %8333 = vmatprep.subr.msk.bf16.mxu0 %vm9269_vm10, %v14197_v13 }
 0xa66   :  { %8336 = vmatpush1.bf16.msk.msra.mxu0 %vm9269_vm10, %v14197_v13  ;;  %4636 = vmatpush1.bf16.msra.mxu1 %v14298_v47 }
 0xa67   :  { %8339 = vmatprep.subr.msk.bf16.mxu1 %vm9269_vm10, %v14197_v13 }
 0xa69   :  { %4609 = vmatmul.mubr.bf16.vlgmr.msra.gmra.mrb[24].mxu0 %v8443_v59 }
 0xa6a   :  { %8342 = vmatpush1.bf16.msk.msra.mxu1 %vm9269_vm10, %v14197_v13  ;;  %5283 = vmatprep.mubr.bf16.mxu0 %v8448_v62 }
 0xa6d   :  { %4652 = vmatmul.mubr.bf16.vlgmr.msra.gmra.mrb[24].mxu1 %v8443_v59 }
 0xa6e   :  { %5326 = vmatprep.mubr.bf16.mxu1 %v8448_v62 }
 0xb14   :  { %v11615_v6 = vpop.f32.mrb[20].mxu0 }
 0xb15   :  { %14299 = vst [vmem:[#allocation89_spill] sm:$0xff] %v11615_v6  ;;  %v11617_v4 = vpop.f32.mrb[21].mxu0 }
 0xb16   :  { %14300 = vst [vmem:[#allocation90_spill] sm:$0xff] %v11617_v4  ;;  %v11619_v31 = vpop.f32.mrb[22].mxu0 }
 0xb17   :  { %14301 = vst [vmem:[#allocation88_spill] sm:$0xff] %v11619_v31  ;;  %v11621_v29 = vpop.f32.mrb[23].mxu0 }
 0xb18   :  { %14302 = vst [vmem:[#allocation87_spill] sm:$0xff] %v11621_v29  ;;  %v11623_v49 = vpop.f32.mrb[20].mxu1 }
 0xb19   :  { %14303 = vst [vmem:[#allocation14_spill] sm:$0xff] %v11623_v49  ;;  %v11625_v33 = vpop.f32.mrb[21].mxu1  ;;  %v4756_v49 = vld [vmem:[#allocation8 + $0x1] ss:$8 sm:$0xf] }
 0xb1a   :  { %14304 = vst [vmem:[#allocation13_spill] sm:$0xff] %v11625_v33  ;;  %v11627_v0 = vpop.f32.mrb[22].mxu1 }
 0xb1b   :  { %14305 = vst [vmem:[#allocation17_spill] sm:$0xff] %v11627_v0  ;;  %v11629_v8 = vpop.f32.mrb[23].mxu1 }
 0xb1c   :  { %14306 = vst [vmem:[#allocation18_spill] sm:$0xff] %v11629_v8 }
 0xb3c   :  { %v4610_v2 = vpop.f32.mrb[24].mxu0 }
 0xb3d   :  { %v11631_v58 = vmax.f32 %v4610_v2, 0.0  ;;  %v4612_v53 = vpop.f32.mrb[25].mxu0 }
 0xb3e   :  { %v4614_v9 = vpop.f32.mrb[26].mxu0  ;;  %v11705_v39 = vmax.f32 %v4612_v53, 0.0  ;;  %v4694_v53 = vld [vmem:[#allocation8] ss:$8 sm:$0xf] }
 0xb3f   :  { %v11633_v40 = vmax.f32 %v4614_v9, 0.0  ;;  %4670 = vrot.lane.b32.xlu0 %v11631_v58, %s8619_s6  ;;  %v4616_v57 = vpop.f32.mrb[27].mxu0  ;;  %v4699_v62 = vrot.slane %v4694_v53, %v8859_v25  ;;  %v4711_v0 = vrot.slane %v4694_v53, %v8870_v30  ;;  %v4707_v29 = vrot.slane %v4694_v53, %v8845_v16 }
 0xb40   :  { %v4653_v32 = vpop.f32.mrb[24].mxu1  ;;  %v11709_v38 = vmax.f32 %v4616_v57, 0.0  ;;  %v4703_v57 = vrot.slane %v4694_v53, %v8837_v11  ;;  %v4765_v53 = vrot.slane %v4756_v49, %v8837_v11 }
 0xb41   :  { %v11637_v17 = vmax.f32 %v4653_v32, 0.0  ;;  %v4655_v27 = vpop.f32.mrb[25].mxu1  ;;  %4672 = vrot.lane.b32.xlu1 %v11633_v40, %s8619_s6 }
 0xb42   :  { %v4657_v51 = vpop.f32.mrb[26].mxu1  ;;  %v11713_v18 = vmax.f32 %v4655_v27, 0.0 }
 0xb43   :  { %v11643_v60 = vmax.f32 %v4657_v51, 0.0  ;;  %v4659_v35 = vpop.f32.mrb[27].mxu1  ;;  %4678 = vrot.lane.b32.xlu0 %v11637_v17, %s8619_s6 }
 0xb44   :  { %v11717_v37 = vmax.f32 %v4659_v35, 0.0 }
 0xb45   :  { %4680 = vrot.lane.b32.xlu1 %v11643_v60, %s8619_s6 }
 0xb47   :  { %4732 = vrot.lane.b32.xlu0 %v11631_v58, %s8620_s2 }
 0xb49   :  { %4734 = vrot.lane.b32.xlu1 %v11633_v40, %s8620_s2 }
 0xb4b   :  { %4740 = vrot.lane.b32.xlu0 %v11637_v17, %s8620_s2 }
 0xb4d   :  { %4742 = vrot.lane.b32.xlu1 %v11643_v60, %s8620_s2 }
 0xb4f   :  { %4794 = vrot.lane.b32.xlu0 %v11631_v58, %s8621_s7 }
 0xb51   :  { %4796 = vrot.lane.b32.xlu1 %v11633_v40, %s8621_s7 }
 0xb53   :  { %4802 = vrot.lane.b32.xlu0 %v11637_v17, %s8621_s7 }
 0xb55   :  { %4804 = vrot.lane.b32.xlu1 %v11643_v60, %s8621_s7 }
 0xb57   :  { %4856 = vrot.lane.b32.xlu0 %v11631_v58, %s8622_s8 }
 0xb59   :  { %4858 = vrot.lane.b32.xlu1 %v11633_v40, %s8622_s8 }
 0xb5b   :  { %4864 = vrot.lane.b32.xlu0 %v11637_v17, %s8622_s8 }
 0xb5d   :  { %4866 = vrot.lane.b32.xlu1 %v11643_v60, %s8622_s8 }
 0xb5f   :  { %4926 = vrot.lane.b32.xlu0 %v11631_v58, %s8623_s9 }
 0xb61   :  { %4928 = vrot.lane.b32.xlu1 %v11633_v40, %s8623_s9 }
 0xb63   :  { %4934 = vrot.lane.b32.xlu0 %v11637_v17, %s8623_s9 }
 0xb65   :  { %4936 = vrot.lane.b32.xlu1 %v11643_v60, %s8623_s9 }
 0xb67   :  { %4988 = vrot.lane.b32.xlu0 %v11631_v58, %s8624_s10 }
 0xb69   :  { %4990 = vrot.lane.b32.xlu1 %v11633_v40, %s8624_s10 }
 0xb6b   :  { %4996 = vrot.lane.b32.xlu0 %v11637_v17, %s8624_s10 }
 0xb6d   :  { %4998 = vrot.lane.b32.xlu1 %v11643_v60, %s8624_s10 }
 0xb6f   :  { %5050 = vrot.lane.b32.xlu0 %v11631_v58, %s8625_s11 }
 0xb71   :  { %5052 = vrot.lane.b32.xlu1 %v11633_v40, %s8625_s11 }
 0xb73   :  { %5058 = vrot.lane.b32.xlu0 %v11637_v17, %s8625_s11 }
 0xb75   :  { %5060 = vrot.lane.b32.xlu1 %v11643_v60, %s8625_s11 }
 0xb77   :  { %5112 = vrot.lane.b32.xlu0 %v11631_v58, %s8626_s12 }
 0xb79   :  { %5114 = vrot.lane.b32.xlu1 %v11633_v40, %s8626_s12 }
 0xb7b   :  { %5120 = vrot.lane.b32.xlu0 %v11637_v17, %s8626_s12 }
 0xb7d   :  { %5122 = vrot.lane.b32.xlu1 %v11643_v60, %s8626_s12 }
 0xb7f   :  { %4674 = vrot.lane.b32.xlu0 %v11705_v39, %s8619_s6 }
 0xb81   :  { %4676 = vrot.lane.b32.xlu1 %v11709_v38, %s8619_s6 }
 0xb83   :  { %4682 = vrot.lane.b32.xlu0 %v11713_v18, %s8619_s6 }
 0xb85   :  { %4684 = vrot.lane.b32.xlu1 %v11717_v37, %s8619_s6 }
 0xb87   :  { %4736 = vrot.lane.b32.xlu0 %v11705_v39, %s8620_s2 }
 0xb89   :  { %4738 = vrot.lane.b32.xlu1 %v11709_v38, %s8620_s2 }
 0xb8b   :  { %4744 = vrot.lane.b32.xlu0 %v11713_v18, %s8620_s2 }
 0xb8d   :  { %4746 = vrot.lane.b32.xlu1 %v11717_v37, %s8620_s2 }
 0xb8f   :  { %4798 = vrot.lane.b32.xlu0 %v11705_v39, %s8621_s7 }
 0xb91   :  { %4800 = vrot.lane.b32.xlu1 %v11709_v38, %s8621_s7 }
 0xb93   :  { %4806 = vrot.lane.b32.xlu0 %v11713_v18, %s8621_s7 }
 0xb95   :  { %4808 = vrot.lane.b32.xlu1 %v11717_v37, %s8621_s7 }
 0xb97   :  { %4860 = vrot.lane.b32.xlu0 %v11705_v39, %s8622_s8 }
 0xb99   :  { %4862 = vrot.lane.b32.xlu1 %v11709_v38, %s8622_s8 }
 0xb9b   :  { %4868 = vrot.lane.b32.xlu0 %v11713_v18, %s8622_s8 }
 0xb9d   :  { %4870 = vrot.lane.b32.xlu1 %v11717_v37, %s8622_s8 }
 0xb9f   :  { %4930 = vrot.lane.b32.xlu0 %v11705_v39, %s8623_s9 }
 0xba1   :  { %4932 = vrot.lane.b32.xlu1 %v11709_v38, %s8623_s9 }
 0xba3   :  { %4938 = vrot.lane.b32.xlu0 %v11713_v18, %s8623_s9 }
 0xba5   :  { %4940 = vrot.lane.b32.xlu1 %v11717_v37, %s8623_s9 }
 0xba7   :  { %4992 = vrot.lane.b32.xlu0 %v11705_v39, %s8624_s10 }
 0xba9   :  { %4994 = vrot.lane.b32.xlu1 %v11709_v38, %s8624_s10 }
 0xbab   :  { %5000 = vrot.lane.b32.xlu0 %v11713_v18, %s8624_s10 }
 0xbad   :  { %5002 = vrot.lane.b32.xlu1 %v11717_v37, %s8624_s10 }
 0xbaf   :  { %5054 = vrot.lane.b32.xlu0 %v11705_v39, %s8625_s11 }
 0xbb1   :  { %v4671_v54 = vpop.permute.xlu0 %4670  ;;  %5056 = vrot.lane.b32.xlu1 %v11709_v38, %s8625_s11 }
 0xbb3   :  { %5062 = vrot.lane.b32.xlu0 %v11713_v18, %s8625_s11  ;;  %v4673_v45 = vpop.permute.xlu1 %4672 }
 0xbb5   :  { %v4679_v23 = vpop.permute.xlu0 %4678  ;;  %5064 = vrot.lane.b32.xlu1 %v11717_v37, %s8625_s11 }
 0xbb7   :  { %5116 = vrot.lane.b32.xlu0 %v11705_v39, %s8626_s12  ;;  %v4681_v55 = vpop.permute.xlu1 %4680 }
 0xbb9   :  { %v11773_v22 = vpop.permute.xlu0 %4732  ;;  %5118 = vrot.lane.b32.xlu1 %v11709_v38, %s8626_s12 }
 0xbbb   :  { %5124 = vrot.lane.b32.xlu0 %v11713_v18, %s8626_s12  ;;  %v11779_v63 = vpop.permute.xlu1 %4734 }
 0xbbd   :  { %v11781_v19 = vpop.permute.xlu0 %4740  ;;  %5126 = vrot.lane.b32.xlu1 %v11717_v37, %s8626_s12 }
 0xbbf   :  { %v11785_v41 = vpop.permute.xlu1 %4742 }
 0xbc1   :  { %v11787_v61 = vpop.permute.xlu0 %4794 }
 0xbc3   :  { %v11789_v52 = vpop.permute.xlu1 %4796 }
 0xbc5   :  { %v11791_v21 = vpop.permute.xlu0 %4802 }
 0xbc7   :  { %v11793_v12 = vpop.permute.xlu1 %4804 }
 0xbc9   :  { %v11795_v36 = vpop.permute.xlu0 %4856 }
 0xbcb   :  { %v11797_v7 = vpop.permute.xlu1 %4858 }
 0xbcd   :  { %v11799_v24 = vpop.permute.xlu0 %4864 }
 0xbcf   :  { %v11801_v50 = vpop.permute.xlu1 %4866 }
 0xbd1   :  { %v11803_v5 = vpop.permute.xlu0 %4926 }
 0xbd3   :  { %v11805_v3 = vpop.permute.xlu1 %4928 }
 0xbd5   :  { %v11807_v46 = vpop.permute.xlu0 %4934 }
 0xbd7   :  { %v11809_v48 = vpop.permute.xlu1 %4936 }
 0xbd9   :  { %v11811_v26 = vpop.permute.xlu0 %4988 }
 0xbdb   :  { %v11813_v28 = vpop.permute.xlu1 %4990 }
 0xbdd   :  { %v11815_v15 = vpop.permute.xlu0 %4996 }
 0xbdf   :  { %v11817_v42 = vpop.permute.xlu1 %4998 }
 0xbe1   :  { %v11819_v14 = vpop.permute.xlu0 %5050 }
 0xbe3   :  { %v11821_v1 = vpop.permute.xlu1 %5052 }
 0xbe5   :  { %v11823_v59 = vpop.permute.xlu0 %5058 }
 0xbe7   :  { %v11825_v56 = vpop.permute.xlu1 %5060 }
 0xbe9   :  { %v11827_v44 = vpop.permute.xlu0 %5112 }
 0xbea   :  { %14307 = vst [vmem:[#allocation21_spill] sm:$0xff] %v11827_v44 }
 0xbeb   :  { %v11829_v47 = vpop.permute.xlu1 %5114 }
 0xbec   :  { %14308 = vst [vmem:[#allocation22_spill] sm:$0xff] %v11829_v47 }
 0xbed   :  { %v11831_v2 = vpop.permute.xlu0 %5120 }
 0xbee   :  { %14309 = vst [vmem:[#allocation20_spill] sm:$0xff] %v11831_v2 }
 0xbef   :  { %v11833_v9 = vpop.permute.xlu1 %5122 }
 0xbf0   :  { %14310 = vst [vmem:[#allocation19_spill] sm:$0xff] %v11833_v9 }
 0xbf1   :  { %v4675_v32 = vpop.permute.xlu0 %4674 }
 0xbf2   :  { %v4690_v27 = vsel %vm167_vm0, %v4671_v54, %v4675_v32  ;;  %v4688_v6 = vsel %vm167_vm0, %v4675_v32, %v4679_v23 }
 0xbf3   :  { %v4677_v51 = vpop.permute.xlu1 %4676  ;;  %v4717_v34 = vmul.f32 %v4703_v57, %v4690_v27 }
 0xbf4   :  { %v4691_v35 = vsel %vm167_vm0, %v4673_v45, %v4677_v51  ;;  %v4689_v43 = vsel %vm167_vm0, %v4677_v51, %v4681_v55 }
 0xbf5   :  { %v4721_v8 = vmul.f32 %v4703_v57, %v4691_v35  ;;  %v4683_v33 = vpop.permute.xlu0 %4682  ;;  %v4722_v13 = vmul.f32 %v4707_v29, %v4689_v43 }
 0xbf6   :  { %v4686_v31 = vsel %vm167_vm0, %v4679_v23, %v4683_v33  ;;  %v4692_v4 = vsel %vm167_vm0, %v4683_v33, %v4671_v54  ;;  %v4718_v33 = vmul.f32 %v4707_v29, %v4688_v6 }
 0xbf7   :  { %v4685_v27 = vpop.permute.xlu1 %4684  ;;  %v4725_v20 = vpack.c.bf16 %v4721_v8, %v4717_v34  ;;  %v4716_v35 = vmul.f32 %v4699_v62, %v4692_v4  ;;  %v4719_v47 = vmul.f32 %v4711_v0, %v4686_v31  ;;  %v4761_v4 = vrot.slane %v4756_v49, %v8859_v25 }
 0xbf8   :  { %v4687_v57 = vsel %vm167_vm0, %v4681_v55, %v4685_v27  ;;  %v4693_v51 = vsel %vm167_vm0, %v4685_v27, %v4673_v45  ;;  %v4726_v23 = vpack.c.bf16 %v4722_v13, %v4718_v33  ;;  %v4773_v31 = vrot.slane %v4756_v49, %v8870_v30  ;;  %v4818_v55 = vld [vmem:[#allocation8 + $0x2] ss:$8 sm:$0xf] }
 0xbf9   :  { %v4720_v9 = vmul.f32 %v4699_v62, %v4693_v51  ;;  %v4723_v44 = vmul.f32 %v4711_v0, %v4687_v57  ;;  %v4737_v2 = vpop.permute.xlu0 %4736  ;;  %5251 = vmatprep.subr.bf16.mxu0 %v4725_v20  ;;  %v4769_v13 = vrot.slane %v4756_v49, %v8845_v16  ;;  %v4827_v51 = vrot.slane %v4818_v55, %v8837_v11 }
 0xbfa   :  { %v4752_v8 = vsel %vm230_vm1, %v11773_v22, %v4737_v2 }
 0xbfb   :  { %v4724_v43 = vpack.c.bf16 %v4720_v9, %v4716_v35  ;;  %v4739_v34 = vpop.permute.xlu1 %4738  ;;  %v4727_v54 = vpack.c.bf16 %v4723_v44, %v4719_v47  ;;  %v4779_v0 = vmul.f32 %v4765_v53, %v4752_v8  ;;  %v4750_v9 = vsel %vm230_vm1, %v4737_v2, %v11781_v19 }
 0xbfc   :  { %v4753_v45 = vsel %vm230_vm1, %v11779_v63, %v4739_v34  ;;  %v4751_v20 = vsel %vm230_vm1, %v4739_v34, %v11785_v41 }
 0xbfd   :  { %v4783_v6 = vmul.f32 %v4765_v53, %v4753_v45  ;;  %v4745_v29 = vpop.permute.xlu0 %4744  ;;  %5252 = vmatpush1.bf16.msra.mxu0 %v4724_v43  ;;  %5294 = vmatprep.subr.bf16.mxu1 %v4727_v54  ;;  %v4784_v27 = vmul.f32 %v4769_v13, %v4751_v20  ;;  %v4835_v45 = vrot.slane %v4818_v55, %v8870_v30 }
 0xbfe   :  { %v4748_v44 = vsel %vm230_vm1, %v11781_v19, %v4745_v29  ;;  %v4754_v47 = vsel %vm230_vm1, %v4745_v29, %v11773_v22  ;;  %5295 = vmatpush1.bf16.msra.mxu1 %v4726_v23  ;;  %v4780_v19 = vmul.f32 %v4769_v13, %v4750_v9  ;;  %v4823_v23 = vrot.slane %v4818_v55, %v8859_v25 }
 0xbff   :  { %v4747_v32 = vpop.permute.xlu1 %4746  ;;  %v4787_v62 = vpack.c.bf16 %v4783_v6, %v4779_v0  ;;  %v4778_v53 = vmul.f32 %v4761_v4, %v4754_v47  ;;  %v4781_v22 = vmul.f32 %v4773_v31, %v4748_v44  ;;  %v4880_v6 = vld [vmem:[#allocation8 + $0x3] ss:$8 sm:$0xf]  ;;  %v4831_v29 = vrot.slane %v4818_v55, %v8845_v16 }
 0xc00   :  { %v4749_v49 = vsel %vm230_vm1, %v11785_v41, %v4747_v32  ;;  %v4755_v57 = vsel %vm230_vm1, %v4747_v32, %v11779_v63  ;;  %v4788_v54 = vpack.c.bf16 %v4784_v27, %v4780_v19 }
 0xc01   :  { %v4782_v35 = vmul.f32 %v4761_v4, %v4755_v57  ;;  %v4785_v33 = vmul.f32 %v4773_v31, %v4749_v49  ;;  %v4799_v8 = vpop.permute.xlu0 %4798  ;;  %5253 = vmatprep.subr.bf16.mxu0 %v4787_v62  ;;  %v4889_v49 = vrot.slane %v4880_v6, %v8837_v11 }
 0xc02   :  { %v4814_v2 = vsel %vm294_vm2, %v11787_v61, %v4799_v8  ;;  %v4812_v47 = vsel %vm294_vm2, %v4799_v8, %v11791_v21 }
 0xc03   :  { %v4786_v43 = vpack.c.bf16 %v4782_v35, %v4778_v53  ;;  %v4801_v34 = vpop.permute.xlu1 %4800  ;;  %v4789_v41 = vpack.c.bf16 %v4785_v33, %v4781_v22  ;;  %v4841_v4 = vmul.f32 %v4827_v51, %v4814_v2  ;;  %v4885_v2 = vrot.slane %v4880_v6, %v8859_v25 }
 0xc04   :  { %v4815_v63 = vsel %vm294_vm2, %v11789_v52, %v4801_v34  ;;  %v4813_v31 = vsel %vm294_vm2, %v4801_v34, %v11793_v12 }
 0xc05   :  { %v4845_v0 = vmul.f32 %v4827_v51, %v4815_v63  ;;  %v4807_v20 = vpop.permute.xlu0 %4806  ;;  %5254 = vmatpush1.bf16.msra.mxu0 %v4786_v43  ;;  %5296 = vmatprep.subr.bf16.mxu1 %v4789_v41  ;;  %v4846_v62 = vmul.f32 %v4831_v29, %v4813_v31  ;;  %v4897_v43 = vrot.slane %v4880_v6, %v8870_v30 }
 0xc06   :  { %v4810_v13 = vsel %vm294_vm2, %v11791_v21, %v4807_v20  ;;  %v4816_v44 = vsel %vm294_vm2, %v4807_v20, %v11787_v61  ;;  %5297 = vmatpush1.bf16.msra.mxu1 %v4788_v54  ;;  %v4842_v21 = vmul.f32 %v4831_v29, %v4812_v47 }
 0xc07   :  { %v4809_v9 = vpop.permute.xlu1 %4808  ;;  %v4849_v32 = vpack.c.bf16 %v4845_v0, %v4841_v4  ;;  %v4840_v57 = vmul.f32 %v4823_v23, %v4816_v44  ;;  %v4843_v61 = vmul.f32 %v4835_v45, %v4810_v13 }
 0xc08   :  { %v4811_v55 = vsel %vm294_vm2, %v11793_v12, %v4809_v9  ;;  %v4817_v27 = vsel %vm294_vm2, %v4809_v9, %v11789_v52  ;;  %v4850_v19 = vpack.c.bf16 %v4846_v62, %v4842_v21 }
 0xc09   :  { %v4844_v51 = vmul.f32 %v4823_v23, %v4817_v27  ;;  %v4847_v53 = vmul.f32 %v4835_v45, %v4811_v55  ;;  %v4861_v22 = vpop.permute.xlu0 %4860  ;;  %5255 = vmatprep.subr.bf16.mxu0 %v4849_v32  ;;  %v4950_v23 = vld [vmem:[#allocation8 + $0x5] ss:$8 sm:$0xf]  ;;  %v4893_v45 = vrot.slane %v4880_v6, %v8845_v16 }
 0xc0a   :  { %v4876_v35 = vsel %vm358_vm3, %v11795_v36, %v4861_v22  ;;  %v4874_v0 = vsel %vm358_vm3, %v4861_v22, %v11799_v24  ;;  %v4959_v47 = vrot.slane %v4950_v23, %v8837_v11 }
 0xc0b   :  { %v4848_v33 = vpack.c.bf16 %v4844_v51, %v4840_v57  ;;  %v4863_v8 = vpop.permute.xlu1 %4862  ;;  %v4851_v12 = vpack.c.bf16 %v4847_v53, %v4843_v61  ;;  %v4903_v34 = vmul.f32 %v4889_v49, %v4876_v35  ;;  %v4955_v57 = vrot.slane %v4950_v23, %v8859_v25 }
 0xc0c   :  { %v4877_v52 = vsel %vm358_vm3, %v11797_v7, %v4863_v8  ;;  %v4875_v41 = vsel %vm358_vm3, %v4863_v8, %v11801_v50  ;;  %v4963_v51 = vrot.slane %v4950_v23, %v8845_v16 }
 0xc0d   :  { %v4907_v54 = vmul.f32 %v4889_v49, %v4877_v52  ;;  %v4869_v63 = vpop.permute.xlu0 %4868  ;;  %5256 = vmatpush1.bf16.msra.mxu0 %v4848_v33  ;;  %5298 = vmatprep.subr.bf16.mxu1 %v4851_v12  ;;  %v4908_v13 = vmul.f32 %v4893_v45, %v4875_v41  ;;  %v4921_v49 = vpack.c.bf16 %v11717_v37, %v11713_v18 }
 0xc0e   :  { %v4872_v4 = vsel %vm358_vm3, %v11799_v24, %v4869_v63  ;;  %v4878_v31 = vsel %vm358_vm3, %v4869_v63, %v11795_v36  ;;  %5299 = vmatpush1.bf16.msra.mxu1 %v4850_v19  ;;  %v4904_v24 = vmul.f32 %v4893_v45, %v4874_v0  ;;  %v14311_v0 = vpack.c.bf16 %v11633_v40, %v11631_v58 }
 0xc0f   :  { %v4871_v20 = vpop.permute.xlu1 %4870  ;;  %v4911_v29 = vpack.c.bf16 %v4907_v54, %v4903_v34  ;;  %v4902_v9 = vmul.f32 %v4885_v2, %v4878_v31  ;;  %v4905_v36 = vmul.f32 %v4897_v43, %v4872_v4 }
 0xc10   :  { %v4873_v6 = vsel %vm358_vm3, %v11801_v50, %v4871_v20  ;;  %v4879_v44 = vsel %vm358_vm3, %v4871_v20, %v11797_v7  ;;  %v4919_v50 = vpack.c.bf16 %v11709_v38, %v11705_v39  ;;  %v4912_v22 = vpack.c.bf16 %v4908_v13, %v4904_v24  ;;  %v5012_v38 = vld [vmem:[#allocation8 + $0x6] ss:$8 sm:$0xf] }
 0xc11   :  { %v4906_v32 = vmul.f32 %v4885_v2, %v4879_v44  ;;  %v4909_v62 = vmul.f32 %v4897_v43, %v4873_v6  ;;  %v4931_v55 = vpop.permute.xlu0 %4930  ;;  %5257 = vmatprep.subr.bf16.mxu0 %v4911_v29  ;;  %v4967_v39 = vrot.slane %v4950_v23, %v8870_v30  ;;  %v5017_v43 = vrot.slane %v5012_v38, %v8859_v25 }
 0xc12   :  { %v4944_v27 = vsel %vm430_vm4, %v4931_v55, %v11807_v46  ;;  %v4946_v18 = vsel %vm430_vm4, %v11803_v5, %v4931_v55  ;;  %v5021_v63 = vrot.slane %v5012_v38, %v8837_v11  ;;  %v5025_v44 = vrot.slane %v5012_v38, %v8845_v16  ;;  %v5074_v55 = vld [vmem:[#allocation8 + $0x7] ss:$8 sm:$0xf] }
 0xc13   :  { %v4910_v7 = vpack.c.bf16 %v4906_v32, %v4902_v9  ;;  %v4933_v61 = vpop.permute.xlu1 %4932  ;;  %v4913_v53 = vpack.c.bf16 %v4909_v62, %v4905_v36  ;;  %v4973_v37 = vmul.f32 %v4959_v47, %v4944_v27  ;;  %v4972_v41 = vmul.f32 %v4955_v57, %v4946_v18 }
 0xc14   :  { %v4945_v21 = vsel %vm430_vm4, %v4933_v61, %v11809_v48  ;;  %v4947_v35 = vsel %vm430_vm4, %v11805_v3, %v4933_v61  ;;  %v5029_v36 = vrot.slane %v5012_v38, %v8870_v30 }
 0xc15   :  { %v4977_v33 = vmul.f32 %v4959_v47, %v4945_v21  ;;  %v4939_v8 = vpop.permute.xlu0 %4938  ;;  %5258 = vmatpush1.bf16.msra.mxu0 %v4910_v7  ;;  %5300 = vmatprep.subr.bf16.mxu1 %v4913_v53  ;;  %v4976_v52 = vmul.f32 %v4955_v57, %v4947_v35 }
 0xc16   :  { %v4942_v12 = vsel %vm430_vm4, %v11807_v46, %v4939_v8  ;;  %v4948_v19 = vsel %vm430_vm4, %v4939_v8, %v11803_v5  ;;  %5259 = vmatprep.subr.bf16.mxu0 %v4919_v50  ;;  %5301 = vmatpush1.bf16.msra.mxu1 %v4912_v22  ;;  %v5087_v8 = vrot.slane %v5074_v55, %v8845_v16 }
 0xc17   :  { %5302 = vmatprep.subr.bf16.mxu1 %v4921_v49  ;;  %v4941_v2 = vpop.permute.xlu1 %4940  ;;  %v4981_v34 = vpack.c.bf16 %v4977_v33, %v4973_v37  ;;  %v4974_v5 = vmul.f32 %v4963_v51, %v4942_v12  ;;  %v4975_v23 = vmul.f32 %v4967_v39, %v4948_v19  ;;  %v4980_v29 = vpack.c.bf16 %v4976_v52, %v4972_v41  ;;  %v5136_v41 = vld [vmem:[#allocation8 + $0x20] ss:$8 sm:$0xf] }
 0xc18   :  { %v4943_v54 = vsel %vm430_vm4, %v11809_v48, %v4941_v2  ;;  %v4949_v46 = vsel %vm430_vm4, %v4941_v2, %v11805_v3  ;;  %v14312_v3 = vpack.c.bf16 %v11643_v60, %v11637_v17  ;;  %v5091_v12 = vrot.slane %v5074_v55, %v8870_v30 }
 0xc19   :  { %v4978_v45 = vmul.f32 %v4963_v51, %v4943_v54  ;;  %v4979_v4 = vmul.f32 %v4967_v39, %v4949_v46  ;;  %v4993_v31 = vpop.permute.xlu0 %4992  ;;  %5260 = vmatpush1.bf16.msra.mxu0 %v14311_v0  ;;  %v5079_v51 = vrot.slane %v5074_v55, %v8859_v25 }
 0xc1a   :  { %v5006_v20 = vsel %vm494_vm5, %v4993_v31, %v11815_v15  ;;  %v5008_v48 = vsel %vm494_vm5, %v11811_v26, %v4993_v31  ;;  %5261 = vmatprep.subr.bf16.mxu0 %v4981_v34  ;;  %5303 = vmatpush1.bf16.msra.mxu1 %v14312_v3  ;;  %v5141_v31 = vrot.slane %v5136_v41, %v8859_v25 }
 0xc1b   :  { %v4982_v13 = vpack.c.bf16 %v4978_v45, %v4974_v5  ;;  %v4995_v6 = vpop.permute.xlu1 %4994  ;;  %v4983_v58 = vpack.c.bf16 %v4979_v4, %v4975_v23  ;;  %v5034_v40 = vmul.f32 %v5017_v43, %v5008_v48  ;;  %v5035_v32 = vmul.f32 %v5021_v63, %v5006_v20 }
 0xc1c   :  { %v5007_v47 = vsel %vm494_vm5, %v4995_v6, %v11817_v42  ;;  %v5009_v9 = vsel %vm494_vm5, %v11813_v28, %v4995_v6  ;;  %v14314_v6 = vld [vmem:[#allocation21_spill] sm:$0xff] }
 0xc1d   :  { %v5038_v17 = vmul.f32 %v5017_v43, %v5009_v9  ;;  %v5039_v60 = vmul.f32 %v5021_v63, %v5007_v47  ;;  %v5001_v62 = vpop.permute.xlu0 %5000  ;;  %5262 = vmatpush1.bf16.msra.mxu0 %v4980_v29  ;;  %5304 = vmatprep.subr.bf16.mxu1 %v4983_v58  ;;  %v14313_v29 = vld [vmem:[#allocation20_spill] sm:$0xff]  ;;  %v14316_v9 = vld [vmem:[#allocation22_spill] sm:$0xff] }
 0xc1e   :  { %v5004_v24 = vsel %vm494_vm5, %v11815_v15, %v5001_v62  ;;  %v5010_v27 = vsel %vm494_vm5, %v5001_v62, %v11811_v26  ;;  %5305 = vmatpush1.bf16.msra.mxu1 %v4982_v13  ;;  %v5083_v15 = vrot.slane %v5074_v55, %v8837_v11 }
 0xc1f   :  { %v5042_v50 = vpack.c.bf16 %v5038_v17, %v5034_v40  ;;  %v5003_v49 = vpop.permute.xlu1 %5002  ;;  %v5043_v7 = vpack.c.bf16 %v5039_v60, %v5035_v32  ;;  %v5036_v53 = vmul.f32 %v5025_v44, %v5004_v24  ;;  %v5037_v22 = vmul.f32 %v5029_v36, %v5010_v27  ;;  %v14315_v40 = vld [vmem:[#allocation19_spill] sm:$0xff] }
 0xc20   :  { %v5005_v57 = vsel %vm494_vm5, %v11817_v42, %v5003_v49  ;;  %v5011_v61 = vsel %vm494_vm5, %v5003_v49, %v11813_v28  ;;  %v5149_v32 = vrot.slane %v5136_v41, %v8845_v16  ;;  %v5153_v17 = vrot.slane %v5136_v41, %v8870_v30 }
 0xc21   :  { %v5040_v21 = vmul.f32 %v5025_v44, %v5005_v57  ;;  %v5041_v26 = vmul.f32 %v5029_v36, %v5011_v61  ;;  %v5055_v35 = vpop.permute.xlu0 %5054  ;;  %5263 = vmatprep.subr.bf16.mxu0 %v5043_v7 }
 0xc22   :  { %v5068_v39 = vsel %vm558_vm6, %v5055_v35, %v11823_v59  ;;  %v5070_v42 = vsel %vm558_vm6, %v11819_v14, %v5055_v35  ;;  %5264 = vmatpush1.bf16.msra.mxu0 %v5042_v50 }
 0xc23   :  { %v5044_v28 = vpack.c.bf16 %v5040_v21, %v5036_v53  ;;  %v5057_v38 = vpop.permute.xlu1 %5056  ;;  %v5045_v18 = vpack.c.bf16 %v5041_v26, %v5037_v22  ;;  %v5096_v19 = vmul.f32 %v5079_v51, %v5070_v42  ;;  %v5097_v52 = vmul.f32 %v5083_v15, %v5068_v39  ;;  %v14317_v39 = vld [vmem:[#allocation77_spill] sm:$0xff] }
 0xc24   :  { %v5069_v37 = vsel %vm558_vm6, %v5057_v38, %v11825_v56  ;;  %v5071_v33 = vsel %vm558_vm6, %v11821_v1, %v5057_v38  ;;  %v8446_v38 = vld [vmem:[#allocation6 + $0x70] ss:$8 sps:$4 sm:$0xff]  }
 0xc25   :  { %v5100_v2 = vmul.f32 %v5079_v51, %v5071_v33  ;;  %v5101_v43 = vmul.f32 %v5083_v15, %v5069_v37  ;;  %v5063_v34 = vpop.permute.xlu0 %5062  ;;  %5306 = vmatprep.subr.bf16.mxu1 %v5045_v18  ;;  %v8502_v37 = vld [vmem:[#allocation3] sm:$0xff] }
 0xc26   :  { %v5066_v54 = vsel %vm558_vm6, %v11823_v59, %v5063_v34  ;;  %v5072_v46 = vsel %vm558_vm6, %v5063_v34, %v11819_v14  ;;  %5307 = vmatpush1.bf16.msra.mxu1 %v5044_v28  ;;  %v5145_v59 = vrot.slane %v5136_v41, %v8837_v11  ;;  %v8504_v34 = vld [vmem:[#allocation3 + $0x10] sm:$0xff] }
 0xc27   :  { %v5104_v63 = vpack.c.bf16 %v5100_v2, %v5096_v19  ;;  %v5065_v5 = vpop.permute.xlu1 %5064  ;;  %v5105_v23 = vpack.c.bf16 %v5101_v43, %v5097_v52  ;;  %v5098_v0 = vmul.f32 %v5087_v8, %v5066_v54  ;;  %v5099_v20 = vmul.f32 %v5091_v12, %v5072_v46  ;;  %v8503_v19 = vld [vmem:[#allocation3 + $0x20] sm:$0xff] }
 0xc28   :  { %v5067_v45 = vsel %vm558_vm6, %v11825_v56, %v5065_v5  ;;  %v5073_v4 = vsel %vm558_vm6, %v5065_v5, %v11821_v1 }
 0xc29   :  { %v5102_v48 = vmul.f32 %v5087_v8, %v5067_v45  ;;  %v5103_v14 = vmul.f32 %v5091_v12, %v5073_v4  ;;  %v5117_v3 = vpop.permute.xlu0 %5116  ;;  %5265 = vmatprep.subr.bf16.mxu0 %v5105_v23  ;;  %v8506_v45 = vld [vmem:[#allocation3 + $0x8] sm:$0xff] }
 0xc2a   :  { %v5130_v13 = vsel %vm622_vm7, %v5117_v3, %v14313_v29  ;;  %v5132_v56 = vsel %vm622_vm7, %v14314_v6, %v5117_v3  ;;  %5266 = vmatpush1.bf16.msra.mxu0 %v5104_v63  ;;  %v8505_v63 = vld [vmem:[#allocation3 + $0x30] sm:$0xff] }
 0xc2b   :  { %v5106_v1 = vpack.c.bf16 %v5102_v48, %v5098_v0  ;;  %v5119_v44 = vpop.permute.xlu1 %5118  ;;  %v5107_v58 = vpack.c.bf16 %v5103_v14, %v5099_v20  ;;  %v5158_v60 = vmul.f32 %v5141_v31, %v5132_v56  ;;  %v5159_v62 = vmul.f32 %v5145_v59, %v5130_v13  ;;  %v8508_v0 = vld [vmem:[#allocation3 + $0x18] sm:$0xff] }
 0xc2c   :  { %v5131_v47 = vsel %vm622_vm7, %v5119_v44, %v14315_v40  ;;  %v5133_v36 = vsel %vm622_vm7, %v14316_v9, %v5119_v44  ;;  %v8509_v48 = vld [vmem:[#allocation3 + $0x38] sm:$0xff] }
 0xc2d   :  { %v5162_v55 = vmul.f32 %v5141_v31, %v5133_v36  ;;  %v5163_v24 = vmul.f32 %v5145_v59, %v5131_v47  ;;  %v5125_v27 = vpop.permute.xlu0 %5124  ;;  %5308 = vmatprep.subr.bf16.mxu1 %v5107_v58  ;;  %v8507_v31 = vld [vmem:[#allocation3 + $0x28] sm:$0xff] }
 0xc2e   :  { %v5128_v50 = vsel %vm622_vm7, %v14313_v29, %v5125_v27  ;;  %v5134_v49 = vsel %vm622_vm7, %v5125_v27, %v14314_v6  ;;  %5309 = vmatpush1.bf16.msra.mxu1 %v5106_v1  ;;  %v8451_v6 = vld [vmem:[#allocation6 + $0x84] ss:$8 sps:$4 sm:$0xff]  }
 0xc2f   :  { %v5166_v7 = vpack.c.bf16 %v5162_v55, %v5158_v60  ;;  %v5127_v57 = vpop.permute.xlu1 %5126  ;;  %v5167_v61 = vpack.c.bf16 %v5163_v24, %v5159_v62  ;;  %v5160_v53 = vmul.f32 %v5149_v32, %v5128_v50  ;;  %v5161_v22 = vmul.f32 %v5153_v17, %v5134_v49 }
 0xc30   :  { %v5129_v51 = vsel %vm622_vm7, %v14315_v40, %v5127_v57  ;;  %v5135_v15 = vsel %vm622_vm7, %v5127_v57, %v14316_v9 }
 0xc31   :  { %v5164_v21 = vmul.f32 %v5149_v32, %v5129_v51  ;;  %v5165_v26 = vmul.f32 %v5153_v17, %v5135_v15  ;;  %5267 = vmatprep.subr.bf16.mxu0 %v5167_v61 }
 0xc32   :  { %5268 = vmatpush1.bf16.msra.mxu0 %v5166_v7 }
 0xc33   :  { %v5168_v35 = vpack.c.bf16 %v5164_v21, %v5160_v53  ;;  %8345 = vmatprep.subr.msk.bf16.mxu0 %vm9269_vm10, %v14317_v39  ;;  %v5169_v28 = vpack.c.bf16 %v5165_v26, %v5161_v22 }
 0xc35   :  { %5310 = vmatprep.subr.bf16.mxu1 %v5169_v28 }
 0xc36   :  { %8348 = vmatpush1.bf16.msk.msra.mxu0 %vm9269_vm10, %v14317_v39  ;;  %5311 = vmatpush1.bf16.msra.mxu1 %v5168_v35 }
 0xc37   :  { %8351 = vmatprep.subr.msk.bf16.mxu1 %vm9269_vm10, %v14317_v39 }
 0xc39   :  { %5284 = vmatmul.mubr.bf16.vlgmr.msra.gmra.mrb[28].mxu0 %v8446_v38 }
 0xc3a   :  { %8354 = vmatpush1.bf16.msk.msra.mxu1 %vm9269_vm10, %v14317_v39  ;;  %5950 = vmatprep.mubr.bf16.mxu0 %v8451_v6 }
 0xc3d   :  { %5327 = vmatmul.mubr.bf16.vlgmr.msra.gmra.mrb[28].mxu1 %v8446_v38  ;;  %v5361_v38 = vld [vmem:[#allocation8] ss:$8 sm:$0xf] }
 0xc3e   :  { %5993 = vmatprep.mubr.bf16.mxu1 %v8451_v6 }
 0xd0c   :  { %v5285_v18 = vpop.f32.mrb[28].mxu0 }
 0xd0d   :  { %v12073_v33 = vadd.f32 %v8502_v37, %v5285_v18  ;;  %v5287_v8 = vpop.f32.mrb[29].mxu0  ;;  %v5370_v37 = vrot.slane %v5361_v38, %v8837_v11 }
 0xd0e   :  { %v5289_v12 = vpop.f32.mrb[30].mxu0  ;;  %v12143_v4 = vadd.f32 %v8506_v45, %v5287_v8  ;;  %v5423_v45 = vld [vmem:[#allocation8 + $0x1] ss:$8 sm:$0xf] }
 0xd0f   :  { %14319 = vst [vmem:[#allocation25_spill] sm:$0xff] %v12073_v33  ;;  %v12075_v52 = vadd.f32 %v8503_v19, %v5289_v12  ;;  %v5291_v2 = vpop.f32.mrb[31].mxu0  ;;  %5337 = vrot.lane.b32.xlu0 %v12073_v33, %s8619_s6 }
 0xd10   :  { %v5328_v43 = vpop.f32.mrb[28].mxu1  ;;  %14323 = vst [vmem:[#allocation29_spill] sm:$0xff] %v12143_v4  ;;  %v12147_v59 = vadd.f32 %v8507_v31, %v5291_v2  ;;  %v5374_v31 = vrot.slane %v5361_v38, %v8845_v16 }
 0xd11   :  { %14320 = vst [vmem:[#allocation27_spill] sm:$0xff] %v12075_v52  ;;  %v12079_v41 = vadd.f32 %v8504_v34, %v5328_v43  ;;  %v5330_v54 = vpop.f32.mrb[29].mxu1  ;;  %5339 = vrot.lane.b32.xlu1 %v12075_v52, %s8619_s6  ;;  %v5366_v43 = vrot.slane %v5361_v38, %v8859_v25 }
 0xd12   :  { %v5332_v46 = vpop.f32.mrb[30].mxu1  ;;  %14324 = vst [vmem:[#allocation30_spill] sm:$0xff] %v12147_v59  ;;  %v12151_v20 = vadd.f32 %v8508_v0, %v5330_v54 }
 0xd13   :  { %14321 = vst [vmem:[#allocation15_spill] sm:$0xff] %v12079_v41  ;;  %v12083_v5 = vadd.f32 %v8505_v63, %v5332_v46  ;;  %v5334_v23 = vpop.f32.mrb[31].mxu1  ;;  %5345 = vrot.lane.b32.xlu0 %v12079_v41, %s8619_s6  ;;  %v5378_v63 = vrot.slane %v5361_v38, %v8870_v30  ;;  %v5432_v38 = vrot.slane %v5423_v45, %v8837_v11 }
 0xd14   :  { %14325 = vst [vmem:[#allocation26_spill] sm:$0xff] %v12151_v20  ;;  %v12155_v14 = vadd.f32 %v8509_v48, %v5334_v23 }
 0xd15   :  { %14322 = vst [vmem:[#allocation16_spill] sm:$0xff] %v12083_v5  ;;  %5347 = vrot.lane.b32.xlu1 %v12083_v5, %s8619_s6 }
 0xd16   :  { %14326 = vst [vmem:[#allocation28_spill] sm:$0xff] %v12155_v14 }
 0xd17   :  { %5399 = vrot.lane.b32.xlu0 %v12073_v33, %s8620_s2 }
 0xd19   :  { %5401 = vrot.lane.b32.xlu1 %v12075_v52, %s8620_s2 }
 0xd1b   :  { %5407 = vrot.lane.b32.xlu0 %v12079_v41, %s8620_s2 }
 0xd1d   :  { %5409 = vrot.lane.b32.xlu1 %v12083_v5, %s8620_s2 }
 0xd1f   :  { %5461 = vrot.lane.b32.xlu0 %v12073_v33, %s8621_s7 }
 0xd21   :  { %5463 = vrot.lane.b32.xlu1 %v12075_v52, %s8621_s7 }
 0xd23   :  { %5469 = vrot.lane.b32.xlu0 %v12079_v41, %s8621_s7 }
 0xd25   :  { %5471 = vrot.lane.b32.xlu1 %v12083_v5, %s8621_s7 }
 0xd27   :  { %5523 = vrot.lane.b32.xlu0 %v12073_v33, %s8622_s8 }
 0xd29   :  { %5525 = vrot.lane.b32.xlu1 %v12075_v52, %s8622_s8 }
 0xd2b   :  { %5531 = vrot.lane.b32.xlu0 %v12079_v41, %s8622_s8 }
 0xd2d   :  { %5533 = vrot.lane.b32.xlu1 %v12083_v5, %s8622_s8 }
 0xd2f   :  { %5593 = vrot.lane.b32.xlu0 %v12073_v33, %s8623_s9 }
 0xd31   :  { %5595 = vrot.lane.b32.xlu1 %v12075_v52, %s8623_s9 }
 0xd33   :  { %5601 = vrot.lane.b32.xlu0 %v12079_v41, %s8623_s9 }
 0xd35   :  { %5603 = vrot.lane.b32.xlu1 %v12083_v5, %s8623_s9 }
 0xd37   :  { %5655 = vrot.lane.b32.xlu0 %v12073_v33, %s8624_s10 }
 0xd39   :  { %5657 = vrot.lane.b32.xlu1 %v12075_v52, %s8624_s10 }
 0xd3b   :  { %5663 = vrot.lane.b32.xlu0 %v12079_v41, %s8624_s10 }
 0xd3d   :  { %5665 = vrot.lane.b32.xlu1 %v12083_v5, %s8624_s10 }
 0xd3f   :  { %5717 = vrot.lane.b32.xlu0 %v12073_v33, %s8625_s11 }
 0xd41   :  { %5719 = vrot.lane.b32.xlu1 %v12075_v52, %s8625_s11 }
 0xd43   :  { %5725 = vrot.lane.b32.xlu0 %v12079_v41, %s8625_s11 }
 0xd45   :  { %5727 = vrot.lane.b32.xlu1 %v12083_v5, %s8625_s11 }
 0xd47   :  { %5779 = vrot.lane.b32.xlu0 %v12073_v33, %s8626_s12 }
 0xd49   :  { %5781 = vrot.lane.b32.xlu1 %v12075_v52, %s8626_s12 }
 0xd4b   :  { %5787 = vrot.lane.b32.xlu0 %v12079_v41, %s8626_s12 }
 0xd4d   :  { %5789 = vrot.lane.b32.xlu1 %v12083_v5, %s8626_s12 }
 0xd4f   :  { %5341 = vrot.lane.b32.xlu0 %v12143_v4, %s8619_s6 }
 0xd51   :  { %5343 = vrot.lane.b32.xlu1 %v12147_v59, %s8619_s6 }
 0xd53   :  { %5349 = vrot.lane.b32.xlu0 %v12151_v20, %s8619_s6 }
 0xd55   :  { %5351 = vrot.lane.b32.xlu1 %v12155_v14, %s8619_s6 }
 0xd57   :  { %5403 = vrot.lane.b32.xlu0 %v12143_v4, %s8620_s2 }
 0xd59   :  { %5405 = vrot.lane.b32.xlu1 %v12147_v59, %s8620_s2 }
 0xd5b   :  { %5411 = vrot.lane.b32.xlu0 %v12151_v20, %s8620_s2 }
 0xd5d   :  { %5413 = vrot.lane.b32.xlu1 %v12155_v14, %s8620_s2 }
 0xd5f   :  { %5465 = vrot.lane.b32.xlu0 %v12143_v4, %s8621_s7 }
 0xd61   :  { %5467 = vrot.lane.b32.xlu1 %v12147_v59, %s8621_s7 }
 0xd63   :  { %5473 = vrot.lane.b32.xlu0 %v12151_v20, %s8621_s7 }
 0xd65   :  { %5475 = vrot.lane.b32.xlu1 %v12155_v14, %s8621_s7 }
 0xd67   :  { %5527 = vrot.lane.b32.xlu0 %v12143_v4, %s8622_s8 }
 0xd69   :  { %5529 = vrot.lane.b32.xlu1 %v12147_v59, %s8622_s8 }
 0xd6b   :  { %5535 = vrot.lane.b32.xlu0 %v12151_v20, %s8622_s8 }
 0xd6d   :  { %5537 = vrot.lane.b32.xlu1 %v12155_v14, %s8622_s8 }
 0xd6f   :  { %5597 = vrot.lane.b32.xlu0 %v12143_v4, %s8623_s9 }
 0xd71   :  { %5599 = vrot.lane.b32.xlu1 %v12147_v59, %s8623_s9 }
 0xd73   :  { %5605 = vrot.lane.b32.xlu0 %v12151_v20, %s8623_s9 }
 0xd75   :  { %5607 = vrot.lane.b32.xlu1 %v12155_v14, %s8623_s9 }
 0xd77   :  { %5659 = vrot.lane.b32.xlu0 %v12143_v4, %s8624_s10 }
 0xd79   :  { %5661 = vrot.lane.b32.xlu1 %v12147_v59, %s8624_s10 }
 0xd7b   :  { %5667 = vrot.lane.b32.xlu0 %v12151_v20, %s8624_s10 }
 0xd7d   :  { %5669 = vrot.lane.b32.xlu1 %v12155_v14, %s8624_s10 }
 0xd7f   :  { %5721 = vrot.lane.b32.xlu0 %v12143_v4, %s8625_s11 }
 0xd81   :  { %5723 = vrot.lane.b32.xlu1 %v12147_v59, %s8625_s11  ;;  %v5338_v3 = vpop.permute.xlu0 %5337 }
 0xd83   :  { %v5340_v29 = vpop.permute.xlu1 %5339  ;;  %5729 = vrot.lane.b32.xlu0 %v12151_v20, %s8625_s11 }
 0xd85   :  { %5731 = vrot.lane.b32.xlu1 %v12155_v14, %s8625_s11  ;;  %v5346_v13 = vpop.permute.xlu0 %5345 }
 0xd87   :  { %v5348_v56 = vpop.permute.xlu1 %5347  ;;  %5783 = vrot.lane.b32.xlu0 %v12143_v4, %s8626_s12 }
 0xd89   :  { %5785 = vrot.lane.b32.xlu1 %v12147_v59, %s8626_s12  ;;  %v12213_v1 = vpop.permute.xlu0 %5399 }
 0xd8b   :  { %v12215_v44 = vpop.permute.xlu1 %5401  ;;  %5791 = vrot.lane.b32.xlu0 %v12151_v20, %s8626_s12 }
 0xd8d   :  { %5793 = vrot.lane.b32.xlu1 %v12155_v14, %s8626_s12  ;;  %v12221_v58 = vpop.permute.xlu0 %5407 }
 0xd8f   :  { %v12223_v40 = vpop.permute.xlu1 %5409 }
 0xd91   :  { %v12225_v47 = vpop.permute.xlu0 %5461 }
 0xd93   :  { %v12227_v9 = vpop.permute.xlu1 %5463 }
 0xd95   :  { %v12229_v36 = vpop.permute.xlu0 %5469 }
 0xd97   :  { %v12231_v32 = vpop.permute.xlu1 %5471 }
 0xd99   :  { %v12233_v17 = vpop.permute.xlu0 %5523 }
 0xd9b   :  { %v12235_v60 = vpop.permute.xlu1 %5525 }
 0xd9d   :  { %v12237_v62 = vpop.permute.xlu0 %5531 }
 0xd9f   :  { %v12239_v55 = vpop.permute.xlu1 %5533 }
 0xda1   :  { %v12241_v24 = vpop.permute.xlu0 %5593 }
 0xda3   :  { %v12243_v27 = vpop.permute.xlu1 %5595 }
 0xda5   :  { %v12245_v50 = vpop.permute.xlu0 %5601 }
 0xda7   :  { %v12247_v49 = vpop.permute.xlu1 %5603 }
 0xda9   :  { %v12249_v7 = vpop.permute.xlu0 %5655 }
 0xdab   :  { %v12251_v57 = vpop.permute.xlu1 %5657 }
 0xdad   :  { %v12253_v61 = vpop.permute.xlu0 %5663 }
 0xdaf   :  { %v12255_v51 = vpop.permute.xlu1 %5665 }
 0xdb1   :  { %v12257_v15 = vpop.permute.xlu0 %5717 }
 0xdb3   :  { %v12259_v53 = vpop.permute.xlu1 %5719 }
 0xdb5   :  { %v12261_v22 = vpop.permute.xlu0 %5725 }
 0xdb7   :  { %v12263_v21 = vpop.permute.xlu1 %5727 }
 0xdb9   :  { %v12265_v26 = vpop.permute.xlu0 %5779 }
 0xdba   :  { %14327 = vst [vmem:[#allocation33_spill] sm:$0xff] %v12265_v26 }
 0xdbb   :  { %v12267_v35 = vpop.permute.xlu1 %5781 }
 0xdbc   :  { %14328 = vst [vmem:[#allocation35_spill] sm:$0xff] %v12267_v35 }
 0xdbd   :  { %v12269_v28 = vpop.permute.xlu0 %5787 }
 0xdbf   :  { %v12271_v18 = vpop.permute.xlu1 %5789 }
 0xdc0   :  { %14329 = vst [vmem:[#allocation23_spill] sm:$0xff] %v12271_v18 }
 0xdc1   :  { %v5342_v8 = vpop.permute.xlu0 %5341 }
 0xdc2   :  { %v5357_v12 = vsel %vm167_vm0, %v5338_v3, %v5342_v8  ;;  %v5355_v6 = vsel %vm167_vm0, %v5342_v8, %v5346_v13 }
 0xdc3   :  { %v5344_v19 = vpop.permute.xlu1 %5343  ;;  %v5384_v34 = vmul.f32 %v5370_v37, %v5357_v12 }
 0xdc4   :  { %v5358_v2 = vsel %vm167_vm0, %v5340_v29, %v5344_v19  ;;  %v5356_v54 = vsel %vm167_vm0, %v5344_v19, %v5348_v56 }
 0xdc5   :  { %v5388_v46 = vmul.f32 %v5370_v37, %v5358_v2  ;;  %v5350_v23 = vpop.permute.xlu0 %5349  ;;  %v5389_v39 = vmul.f32 %v5374_v31, %v5356_v54 }
 0xdc6   :  { %v5353_v0 = vsel %vm167_vm0, %v5346_v13, %v5350_v23  ;;  %v5359_v48 = vsel %vm167_vm0, %v5350_v23, %v5338_v3  ;;  %v5385_v23 = vmul.f32 %v5374_v31, %v5355_v6 }
 0xdc7   :  { %v5352_v12 = vpop.permute.xlu1 %5351  ;;  %v5392_v42 = vpack.c.bf16 %v5388_v46, %v5384_v34  ;;  %v5383_v2 = vmul.f32 %v5366_v43, %v5359_v48  ;;  %v5386_v35 = vmul.f32 %v5378_v63, %v5353_v0  ;;  %v5428_v46 = vrot.slane %v5423_v45, %v8859_v25  ;;  %v5485_v0 = vld [vmem:[#allocation8 + $0x2] ss:$8 sm:$0xf] }
 0xdc8   :  { %v5354_v37 = vsel %vm167_vm0, %v5348_v56, %v5352_v12  ;;  %v5360_v19 = vsel %vm167_vm0, %v5352_v12, %v5340_v29  ;;  %v5393_v56 = vpack.c.bf16 %v5389_v39, %v5385_v23  ;;  %v5436_v39 = vrot.slane %v5423_v45, %v8845_v16 }
 0xdc9   :  { %v5387_v18 = vmul.f32 %v5366_v43, %v5360_v19  ;;  %v5390_v26 = vmul.f32 %v5378_v63, %v5354_v37  ;;  %5918 = vmatprep.subr.bf16.mxu0 %v5392_v42  ;;  %v5404_v3 = vpop.permute.xlu0 %5403  ;;  %v5440_v43 = vrot.slane %v5423_v45, %v8870_v30 }
 0xdca   :  { %v5419_v13 = vsel %vm230_vm1, %v12213_v1, %v5404_v3  ;;  %v5417_v48 = vsel %vm230_vm1, %v5404_v3, %v12221_v58 }
 0xdcb   :  { %v5391_v8 = vpack.c.bf16 %v5387_v18, %v5383_v2  ;;  %v5406_v34 = vpop.permute.xlu1 %5405  ;;  %v5394_v54 = vpack.c.bf16 %v5390_v26, %v5386_v35  ;;  %v5446_v63 = vmul.f32 %v5432_v38, %v5419_v13 }
 0xdcc   :  { %v5420_v29 = vsel %vm230_vm1, %v12215_v44, %v5406_v34  ;;  %v5418_v42 = vsel %vm230_vm1, %v5406_v34, %v12223_v40 }
 0xdcd   :  { %v5450_v31 = vmul.f32 %v5432_v38, %v5420_v29  ;;  %5919 = vmatpush1.bf16.msra.mxu0 %v5391_v8  ;;  %5961 = vmatprep.subr.bf16.mxu1 %v5394_v54  ;;  %v5412_v18 = vpop.permute.xlu0 %5411  ;;  %v5451_v37 = vmul.f32 %v5436_v39, %v5418_v42  ;;  %v5494_v38 = vrot.slane %v5485_v0, %v8837_v11 }
 0xdce   :  { %v5415_v26 = vsel %vm230_vm1, %v12221_v58, %v5412_v18  ;;  %v5421_v35 = vsel %vm230_vm1, %v5412_v18, %v12213_v1  ;;  %5962 = vmatpush1.bf16.msra.mxu1 %v5393_v56  ;;  %v5447_v58 = vmul.f32 %v5436_v39, %v5417_v48  ;;  %v5490_v29 = vrot.slane %v5485_v0, %v8859_v25  ;;  %v5547_v18 = vld [vmem:[#allocation8 + $0x3] ss:$8 sm:$0xf] }
 0xdcf   :  { %v5414_v6 = vpop.permute.xlu1 %5413  ;;  %v5454_v12 = vpack.c.bf16 %v5450_v31, %v5446_v63  ;;  %v5445_v2 = vmul.f32 %v5428_v46, %v5421_v35  ;;  %v5448_v1 = vmul.f32 %v5440_v43, %v5415_v26  ;;  %v5498_v39 = vrot.slane %v5485_v0, %v8845_v16 }
 0xdd0   :  { %v5416_v45 = vsel %vm230_vm1, %v12223_v40, %v5414_v6  ;;  %v5422_v19 = vsel %vm230_vm1, %v5414_v6, %v12215_v44  ;;  %v5455_v56 = vpack.c.bf16 %v5451_v37, %v5447_v58 }
 0xdd1   :  { %v5449_v23 = vmul.f32 %v5428_v46, %v5422_v19  ;;  %v5452_v13 = vmul.f32 %v5440_v43, %v5416_v45  ;;  %5920 = vmatprep.subr.bf16.mxu0 %v5454_v12  ;;  %v5466_v8 = vpop.permute.xlu0 %5465  ;;  %v5502_v46 = vrot.slane %v5485_v0, %v8870_v30  ;;  %v5556_v19 = vrot.slane %v5547_v18, %v8837_v11 }
 0xdd2   :  { %v5481_v3 = vsel %vm294_vm2, %v12225_v47, %v5466_v8  ;;  %v5479_v48 = vsel %vm294_vm2, %v5466_v8, %v12229_v36 }
 0xdd3   :  { %v5453_v34 = vpack.c.bf16 %v5449_v23, %v5445_v2  ;;  %v5468_v54 = vpop.permute.xlu1 %5467  ;;  %v5456_v40 = vpack.c.bf16 %v5452_v13, %v5448_v1  ;;  %v5508_v43 = vmul.f32 %v5494_v38, %v5481_v3 }
 0xdd4   :  { %v5482_v44 = vsel %vm294_vm2, %v12227_v9, %v5468_v54  ;;  %v5480_v63 = vsel %vm294_vm2, %v5468_v54, %v12231_v32  ;;  %v5564_v54 = vrot.slane %v5547_v18, %v8870_v30 }
 0xdd5   :  { %v5512_v42 = vmul.f32 %v5494_v38, %v5482_v44  ;;  %5921 = vmatpush1.bf16.msra.mxu0 %v5453_v34  ;;  %5963 = vmatprep.subr.bf16.mxu1 %v5456_v40  ;;  %v5474_v31 = vpop.permute.xlu0 %5473  ;;  %v5513_v37 = vmul.f32 %v5498_v39, %v5480_v63  ;;  %v5552_v34 = vrot.slane %v5547_v18, %v8859_v25 }
 0xdd6   :  { %v5477_v26 = vsel %vm294_vm2, %v12229_v36, %v5474_v31  ;;  %v5483_v35 = vsel %vm294_vm2, %v5474_v31, %v12225_v47  ;;  %5964 = vmatpush1.bf16.msra.mxu1 %v5455_v56  ;;  %v5509_v36 = vmul.f32 %v5498_v39, %v5479_v48 }
 0xdd7   :  { %v5476_v6 = vpop.permute.xlu1 %5475  ;;  %v5516_v12 = vpack.c.bf16 %v5512_v42, %v5508_v43  ;;  %v5507_v38 = vmul.f32 %v5490_v29, %v5483_v35  ;;  %v5510_v47 = vmul.f32 %v5502_v46, %v5477_v26  ;;  %v5560_v43 = vrot.slane %v5547_v18, %v8845_v16 }
 0xdd8   :  { %v5478_v0 = vsel %vm294_vm2, %v12231_v32, %v5476_v6  ;;  %v5484_v45 = vsel %vm294_vm2, %v5476_v6, %v12227_v9  ;;  %v5517_v3 = vpack.c.bf16 %v5513_v37, %v5509_v36 }
 0xdd9   :  { %v5511_v2 = vmul.f32 %v5490_v29, %v5484_v45  ;;  %v5514_v1 = vmul.f32 %v5502_v46, %v5478_v0  ;;  %5922 = vmatprep.subr.bf16.mxu0 %v5516_v12  ;;  %v5528_v23 = vpop.permute.xlu0 %5527  ;;  %v5617_v46 = vld [vmem:[#allocation8 + $0x5] ss:$8 sm:$0xf] }
 0xdda   :  { %v5543_v13 = vsel %vm358_vm3, %v12233_v17, %v5528_v23  ;;  %v5541_v31 = vsel %vm358_vm3, %v5528_v23, %v12237_v62  ;;  %v5626_v6 = vrot.slane %v5617_v46, %v8837_v11  ;;  %v5630_v23 = vrot.slane %v5617_v46, %v8845_v16 }
 0xddb   :  { %v5515_v8 = vpack.c.bf16 %v5511_v2, %v5507_v38  ;;  %v5530_v58 = vpop.permute.xlu1 %5529  ;;  %v5518_v32 = vpack.c.bf16 %v5514_v1, %v5510_v47  ;;  %v5570_v40 = vmul.f32 %v5556_v19, %v5543_v13  ;;  %v5588_v38 = vpack.c.bf16 %v12155_v14, %v12151_v20 }
 0xddc   :  { %v5544_v9 = vsel %vm358_vm3, %v12235_v60, %v5530_v58  ;;  %v5542_v56 = vsel %vm358_vm3, %v5530_v58, %v12239_v55  ;;  %v5622_v47 = vrot.slane %v5617_v46, %v8859_v25  ;;  %v5634_v58 = vrot.slane %v5617_v46, %v8870_v30 }
 0xddd   :  { %v5574_v44 = vmul.f32 %v5556_v19, %v5544_v9  ;;  %5923 = vmatpush1.bf16.msra.mxu0 %v5515_v8  ;;  %5965 = vmatprep.subr.bf16.mxu1 %v5518_v32  ;;  %v5536_v29 = vpop.permute.xlu0 %5535  ;;  %v5575_v35 = vmul.f32 %v5560_v43, %v5542_v56  ;;  %v5679_v32 = vld [vmem:[#allocation8 + $0x6] ss:$8 sm:$0xf] }
 0xdde   :  { %v5539_v63 = vsel %vm358_vm3, %v12237_v62, %v5536_v29  ;;  %v5545_v42 = vsel %vm358_vm3, %v5536_v29, %v12233_v17  ;;  %5966 = vmatpush1.bf16.msra.mxu1 %v5517_v3  ;;  %v5571_v62 = vmul.f32 %v5560_v43, %v5541_v31  ;;  %v5684_v43 = vrot.slane %v5679_v32, %v8859_v25 }
 0xddf   :  { %v5538_v39 = vpop.permute.xlu1 %5537  ;;  %v5578_v26 = vpack.c.bf16 %v5574_v44, %v5570_v40  ;;  %v5569_v12 = vmul.f32 %v5552_v34, %v5545_v42  ;;  %v5572_v17 = vmul.f32 %v5564_v54, %v5539_v63  ;;  %v5585_v44 = vpack.c.bf16 %v12075_v52, %v12073_v33 }
 0xde0   :  { %v5540_v18 = vsel %vm358_vm3, %v12239_v55, %v5538_v39  ;;  %v5546_v48 = vsel %vm358_vm3, %v5538_v39, %v12235_v60  ;;  %v5586_v55 = vpack.c.bf16 %v12147_v59, %v12143_v4  ;;  %v5579_v36 = vpack.c.bf16 %v5575_v35, %v5571_v62  ;;  %v6098_v4 = vld [vmem:[#allocation8 + $0x1] ss:$8 sm:$0xf] }
 0xde1   :  { %v5573_v37 = vmul.f32 %v5552_v34, %v5546_v48  ;;  %v5576_v0 = vmul.f32 %v5564_v54, %v5540_v18  ;;  %5924 = vmatprep.subr.bf16.mxu0 %v5578_v26  ;;  %v5598_v45 = vpop.permute.xlu0 %5597  ;;  %v5587_v42 = vpack.c.bf16 %v12083_v5, %v12079_v41  ;;  %v5688_v39 = vrot.slane %v5679_v32, %v8837_v11 }
 0xde2   :  { %v5611_v19 = vsel %vm430_vm4, %v5598_v45, %v12245_v50  ;;  %v5613_v3 = vsel %vm430_vm4, %v12241_v24, %v5598_v45  ;;  %v5692_v45 = vrot.slane %v5679_v32, %v8845_v16 }
 0xde3   :  { %v5577_v60 = vpack.c.bf16 %v5573_v37, %v5569_v12  ;;  %v5600_v2 = vpop.permute.xlu1 %5599  ;;  %v5580_v1 = vpack.c.bf16 %v5576_v0, %v5572_v17  ;;  %v5640_v9 = vmul.f32 %v5626_v6, %v5611_v19  ;;  %v5639_v31 = vmul.f32 %v5622_v47, %v5613_v3 }
 0xde4   :  { %v5612_v13 = vsel %vm430_vm4, %v5600_v2, %v12247_v49  ;;  %v5614_v8 = vsel %vm430_vm4, %v12243_v27, %v5600_v2 }
 0xde5   :  { %v5644_v34 = vmul.f32 %v5626_v6, %v5612_v13  ;;  %5925 = vmatpush1.bf16.msra.mxu0 %v5577_v60  ;;  %5967 = vmatprep.subr.bf16.mxu1 %v5580_v1  ;;  %v5606_v54 = vpop.permute.xlu0 %5605  ;;  %v5643_v29 = vmul.f32 %v5622_v47, %v5614_v8 }
 0xde6   :  { %v5609_v40 = vsel %vm430_vm4, %v12245_v50, %v5606_v54  ;;  %v5615_v56 = vsel %vm430_vm4, %v5606_v54, %v12241_v24  ;;  %5926 = vmatprep.subr.bf16.mxu0 %v5586_v55  ;;  %5968 = vmatpush1.bf16.msra.mxu1 %v5579_v36 }
 0xde7   :  { %v5608_v46 = vpop.permute.xlu1 %5607  ;;  %5969 = vmatprep.subr.bf16.mxu1 %v5588_v38  ;;  %v5648_v63 = vpack.c.bf16 %v5644_v34, %v5640_v9  ;;  %v5641_v26 = vmul.f32 %v5630_v23, %v5609_v40  ;;  %v5642_v35 = vmul.f32 %v5634_v58, %v5615_v56  ;;  %v5647_v17 = vpack.c.bf16 %v5643_v29, %v5639_v31 }
 0xde8   :  { %v5610_v50 = vsel %vm430_vm4, %v12247_v49, %v5608_v46  ;;  %v5616_v24 = vsel %vm430_vm4, %v5608_v46, %v12243_v27  ;;  %v5696_v38 = vrot.slane %v5679_v32, %v8870_v30 }
 0xde9   :  { %v5645_v18 = vmul.f32 %v5630_v23, %v5610_v50  ;;  %v5646_v48 = vmul.f32 %v5634_v58, %v5616_v24  ;;  %v5660_v6 = vpop.permute.xlu0 %5659  ;;  %5927 = vmatpush1.bf16.msra.mxu0 %v5585_v44  ;;  %v5741_v23 = vld [vmem:[#allocation8 + $0x7] ss:$8 sm:$0xf] }
 0xdea   :  { %v5673_v12 = vsel %vm494_vm5, %v5660_v6, %v12253_v61  ;;  %v5675_v49 = vsel %vm494_vm5, %v12249_v7, %v5660_v6  ;;  %5928 = vmatprep.subr.bf16.mxu0 %v5648_v63  ;;  %5970 = vmatpush1.bf16.msra.mxu1 %v5587_v42  ;;  %v5746_v34 = vrot.slane %v5741_v23, %v8859_v25 }
 0xdeb   :  { %v5649_v27 = vpack.c.bf16 %v5645_v18, %v5641_v26  ;;  %v5662_v37 = vpop.permute.xlu1 %5661  ;;  %v5650_v0 = vpack.c.bf16 %v5646_v48, %v5642_v35  ;;  %v5701_v62 = vmul.f32 %v5684_v43, %v5675_v49  ;;  %v5702_v60 = vmul.f32 %v5688_v39, %v5673_v12  ;;  %v5803_v48 = vld [vmem:[#allocation8 + $0x20] ss:$8 sm:$0xf] }
 0xdec   :  { %v5674_v19 = vsel %vm494_vm5, %v5662_v37, %v12255_v51  ;;  %v5676_v55 = vsel %vm494_vm5, %v12251_v57, %v5662_v37  ;;  %v5754_v31 = vrot.slane %v5741_v23, %v8845_v16  ;;  %v5758_v50 = vrot.slane %v5741_v23, %v8870_v30 }
 0xded   :  { %v5705_v47 = vmul.f32 %v5684_v43, %v5676_v55  ;;  %v5706_v2 = vmul.f32 %v5688_v39, %v5674_v19  ;;  %5971 = vmatprep.subr.bf16.mxu1 %v5650_v0  ;;  %v5668_v1 = vpop.permute.xlu0 %5667  ;;  %5929 = vmatpush1.bf16.msra.mxu0 %v5647_v17 }
 0xdee   :  { %v5671_v36 = vsel %vm494_vm5, %v12253_v61, %v5668_v1  ;;  %v5677_v13 = vsel %vm494_vm5, %v5668_v1, %v12249_v7  ;;  %5972 = vmatpush1.bf16.msra.mxu1 %v5649_v27  ;;  %v5750_v61 = vrot.slane %v5741_v23, %v8837_v11  ;;  %v14331_v23 = vld [vmem:[#allocation23_spill] sm:$0xff] }
 0xdef   :  { %v5709_v8 = vpack.c.bf16 %v5705_v47, %v5701_v62  ;;  %v5670_v58 = vpop.permute.xlu1 %5669  ;;  %v5710_v3 = vpack.c.bf16 %v5706_v2, %v5702_v60  ;;  %v5703_v54 = vmul.f32 %v5692_v45, %v5671_v36  ;;  %v5704_v40 = vmul.f32 %v5696_v38, %v5677_v13  ;;  %v14330_v47 = vld [vmem:[#allocation33_spill] sm:$0xff]  ;;  %v14332_v13 = vld [vmem:[#allocation35_spill] sm:$0xff] }
 0xdf0   :  { %v5672_v32 = vsel %vm494_vm5, %v12255_v51, %v5670_v58  ;;  %v5678_v9 = vsel %vm494_vm5, %v5670_v58, %v12251_v57  ;;  %v5816_v58 = vrot.slane %v5803_v48, %v8845_v16 }
 0xdf1   :  { %v5707_v56 = vmul.f32 %v5692_v45, %v5672_v32  ;;  %v5708_v7 = vmul.f32 %v5696_v38, %v5678_v9  ;;  %v5722_v44 = vpop.permute.xlu0 %5721  ;;  %5930 = vmatprep.subr.bf16.mxu0 %v5710_v3  ;;  %v5808_v45 = vrot.slane %v5803_v48, %v8859_v25  ;;  %v5820_v3 = vrot.slane %v5803_v48, %v8870_v30 }
 0xdf2   :  { %v5735_v29 = vsel %vm558_vm6, %v5722_v44, %v12261_v22  ;;  %v5737_v51 = vsel %vm558_vm6, %v12257_v15, %v5722_v44  ;;  %5931 = vmatpush1.bf16.msra.mxu0 %v5709_v8 }
 0xdf3   :  { %v5711_v57 = vpack.c.bf16 %v5707_v56, %v5703_v54  ;;  %v5724_v46 = vpop.permute.xlu1 %5723  ;;  %v5712_v43 = vpack.c.bf16 %v5708_v7, %v5704_v40  ;;  %v5763_v24 = vmul.f32 %v5746_v34, %v5737_v51  ;;  %v5764_v39 = vmul.f32 %v5750_v61, %v5735_v29 }
 0xdf4   :  { %v5736_v63 = vsel %vm558_vm6, %v5724_v46, %v12263_v21  ;;  %v5738_v42 = vsel %vm558_vm6, %v12259_v53, %v5724_v46 }
 0xdf5   :  { %v5767_v26 = vmul.f32 %v5746_v34, %v5738_v42  ;;  %v5768_v35 = vmul.f32 %v5750_v61, %v5736_v63  ;;  %5973 = vmatprep.subr.bf16.mxu1 %v5712_v43  ;;  %v5730_v18 = vpop.permute.xlu0 %5729 }
 0xdf6   :  { %v5733_v6 = vsel %vm558_vm6, %v12261_v22, %v5730_v18  ;;  %v5739_v12 = vsel %vm558_vm6, %v5730_v18, %v12257_v15  ;;  %5974 = vmatpush1.bf16.msra.mxu1 %v5711_v57  ;;  %v5812_v22 = vrot.slane %v5803_v48, %v8837_v11 }
 0xdf7   :  { %v5771_v49 = vpack.c.bf16 %v5767_v26, %v5763_v24  ;;  %v5732_v17 = vpop.permute.xlu1 %5731  ;;  %v5772_v27 = vpack.c.bf16 %v5768_v35, %v5764_v39  ;;  %v5765_v62 = vmul.f32 %v5754_v31, %v5733_v6  ;;  %v5766_v19 = vmul.f32 %v5758_v50, %v5739_v12  ;;  %v8449_v39 = vld [vmem:[#allocation6 + $0x80] ss:$8 sps:$4 sm:$0xff]  }
 0xdf8   :  { %v5734_v37 = vsel %vm558_vm6, %v12263_v21, %v5732_v17  ;;  %v5740_v0 = vsel %vm558_vm6, %v5732_v17, %v12259_v53 }
 0xdf9   :  { %v5769_v55 = vmul.f32 %v5754_v31, %v5734_v37  ;;  %v5770_v15 = vmul.f32 %v5758_v50, %v5740_v0  ;;  %v5784_v38 = vpop.permute.xlu0 %5783  ;;  %5932 = vmatprep.subr.bf16.mxu0 %v5772_v27  ;;  %v14333_v31 = vld [vmem:[#allocation77_spill] sm:$0xff] }
 0xdfa   :  { %v5797_v60 = vsel %vm622_vm7, %v5784_v38, %v12269_v28  ;;  %v5799_v21 = vsel %vm622_vm7, %v14330_v47, %v5784_v38  ;;  %5933 = vmatpush1.bf16.msra.mxu0 %v5771_v49 }
 0xdfb   :  { %v5773_v53 = vpack.c.bf16 %v5769_v55, %v5765_v62  ;;  %v5786_v2 = vpop.permute.xlu1 %5785  ;;  %v5774_v1 = vpack.c.bf16 %v5770_v15, %v5766_v19  ;;  %v5825_v32 = vmul.f32 %v5808_v45, %v5799_v21  ;;  %v5826_v9 = vmul.f32 %v5812_v22, %v5797_v60 }
 0xdfc   :  { %v5798_v36 = vsel %vm622_vm7, %v5786_v2, %v14331_v23  ;;  %v5800_v8 = vsel %vm622_vm7, %v14332_v13, %v5786_v2 }
 0xdfd   :  { %v5829_v34 = vmul.f32 %v5808_v45, %v5800_v8  ;;  %v5830_v61 = vmul.f32 %v5812_v22, %v5798_v36  ;;  %5975 = vmatprep.subr.bf16.mxu1 %v5774_v1  ;;  %v5792_v54 = vpop.permute.xlu0 %5791 }
 0xdfe   :  { %v5795_v40 = vsel %vm622_vm7, %v12269_v28, %v5792_v54  ;;  %v5801_v56 = vsel %vm622_vm7, %v5792_v54, %v14330_v47  ;;  %5976 = vmatpush1.bf16.msra.mxu1 %v5773_v53  ;;  %v8454_v53 = vld [vmem:[#allocation6 + $0x94] ss:$8 sps:$4 sm:$0xff]  }
 0xdff   :  { %v5833_v7 = vpack.c.bf16 %v5829_v34, %v5825_v32  ;;  %v5794_v44 = vpop.permute.xlu1 %5793  ;;  %v5834_v29 = vpack.c.bf16 %v5830_v61, %v5826_v9  ;;  %v5827_v46 = vmul.f32 %v5816_v58, %v5795_v40  ;;  %v5828_v43 = vmul.f32 %v5820_v3, %v5801_v56 }
 0xe00   :  { %v5796_v51 = vsel %vm622_vm7, %v14331_v23, %v5794_v44  ;;  %v5802_v57 = vsel %vm622_vm7, %v5794_v44, %v14332_v13 }
 0xe01   :  { %v5831_v63 = vmul.f32 %v5816_v58, %v5796_v51  ;;  %v5832_v28 = vmul.f32 %v5820_v3, %v5802_v57  ;;  %5934 = vmatprep.subr.bf16.mxu0 %v5834_v29 }
 0xe02   :  { %5935 = vmatpush1.bf16.msra.mxu0 %v5833_v7 }
 0xe03   :  { %v5835_v42 = vpack.c.bf16 %v5831_v63, %v5827_v46  ;;  %8357 = vmatprep.subr.msk.bf16.mxu0 %vm9269_vm10, %v14333_v31  ;;  %v5836_v24 = vpack.c.bf16 %v5832_v28, %v5828_v43 }
 0xe05   :  { %5977 = vmatprep.subr.bf16.mxu1 %v5836_v24 }
 0xe06   :  { %8360 = vmatpush1.bf16.msk.msra.mxu0 %vm9269_vm10, %v14333_v31  ;;  %5978 = vmatpush1.bf16.msra.mxu1 %v5835_v42 }
 0xe07   :  { %8363 = vmatprep.subr.msk.bf16.mxu1 %vm9269_vm10, %v14333_v31 }
 0xe09   :  { %5951 = vmatmul.mubr.bf16.vlgmr.msra.gmra.mrb[32].mxu0 %v8449_v39 }
 0xe0a   :  { %8366 = vmatpush1.bf16.msk.msra.mxu1 %vm9269_vm10, %v14333_v31  ;;  %6625 = vmatprep.mubr.bf16.mxu0 %v8454_v53 }
 0xe0d   :  { %5994 = vmatmul.mubr.bf16.vlgmr.msra.gmra.mrb[32].mxu1 %v8449_v39 }
 0xe0e   :  { %6668 = vmatprep.mubr.bf16.mxu1 %v8454_v53 }
 0xedc   :  { %v5952_v26 = vpop.f32.mrb[32].mxu0 }
 0xedd   :  { %v12509_v35 = vmax.f32 %v5952_v26, 0.0  ;;  %v5954_v18 = vpop.f32.mrb[33].mxu0 }
 0xede   :  { %v5956_v48 = vpop.f32.mrb[34].mxu0  ;;  %v12583_v19 = vmax.f32 %v5954_v18, 0.0  ;;  %v6036_v18 = vld [vmem:[#allocation8] ss:$8 sm:$0xf] }
 0xedf   :  { %v12511_v6 = vmax.f32 %v5956_v48, 0.0  ;;  %6012 = vrot.lane.b32.xlu0 %v12509_v35, %s8619_s6  ;;  %v5958_v12 = vpop.f32.mrb[35].mxu0  ;;  %v6041_v53 = vrot.slane %v6036_v18, %v8859_v25  ;;  %v6053_v20 = vrot.slane %v6036_v18, %v8870_v30  ;;  %v6049_v5 = vrot.slane %v6036_v18, %v8845_v16 }
 0xee0   :  { %v5995_v49 = vpop.f32.mrb[32].mxu1  ;;  %v12587_v55 = vmax.f32 %v5958_v12, 0.0  ;;  %v6045_v12 = vrot.slane %v6036_v18, %v8837_v11  ;;  %v6107_v18 = vrot.slane %v6098_v4, %v8837_v11 }
 0xee1   :  { %v12515_v17 = vmax.f32 %v5995_v49, 0.0  ;;  %v5997_v27 = vpop.f32.mrb[33].mxu1  ;;  %6014 = vrot.lane.b32.xlu1 %v12511_v6, %s8619_s6 }
 0xee2   :  { %v5999_v0 = vpop.f32.mrb[34].mxu1  ;;  %v12591_v15 = vmax.f32 %v5997_v27, 0.0 }
 0xee3   :  { %v12521_v45 = vmax.f32 %v5999_v0, 0.0  ;;  %v6001_v22 = vpop.f32.mrb[35].mxu1  ;;  %6020 = vrot.lane.b32.xlu0 %v12515_v17, %s8619_s6 }
 0xee4   :  { %v12595_v38 = vmax.f32 %v6001_v22, 0.0 }
 0xee5   :  { %6022 = vrot.lane.b32.xlu1 %v12521_v45, %s8619_s6 }
 0xee7   :  { %6074 = vrot.lane.b32.xlu0 %v12509_v35, %s8620_s2 }
 0xee9   :  { %6076 = vrot.lane.b32.xlu1 %v12511_v6, %s8620_s2 }
 0xeeb   :  { %6082 = vrot.lane.b32.xlu0 %v12515_v17, %s8620_s2 }
 0xeed   :  { %6084 = vrot.lane.b32.xlu1 %v12521_v45, %s8620_s2 }
 0xeef   :  { %6136 = vrot.lane.b32.xlu0 %v12509_v35, %s8621_s7 }
 0xef1   :  { %6138 = vrot.lane.b32.xlu1 %v12511_v6, %s8621_s7 }
 0xef3   :  { %6144 = vrot.lane.b32.xlu0 %v12515_v17, %s8621_s7 }
 0xef5   :  { %6146 = vrot.lane.b32.xlu1 %v12521_v45, %s8621_s7 }
 0xef7   :  { %6198 = vrot.lane.b32.xlu0 %v12509_v35, %s8622_s8 }
 0xef9   :  { %6200 = vrot.lane.b32.xlu1 %v12511_v6, %s8622_s8 }
 0xefb   :  { %6206 = vrot.lane.b32.xlu0 %v12515_v17, %s8622_s8 }
 0xefd   :  { %6208 = vrot.lane.b32.xlu1 %v12521_v45, %s8622_s8 }
 0xeff   :  { %6268 = vrot.lane.b32.xlu0 %v12509_v35, %s8623_s9 }
 0xf01   :  { %6270 = vrot.lane.b32.xlu1 %v12511_v6, %s8623_s9 }
 0xf03   :  { %6276 = vrot.lane.b32.xlu0 %v12515_v17, %s8623_s9 }
 0xf05   :  { %6278 = vrot.lane.b32.xlu1 %v12521_v45, %s8623_s9 }
 0xf07   :  { %6330 = vrot.lane.b32.xlu0 %v12509_v35, %s8624_s10 }
 0xf09   :  { %6332 = vrot.lane.b32.xlu1 %v12511_v6, %s8624_s10 }
 0xf0b   :  { %6338 = vrot.lane.b32.xlu0 %v12515_v17, %s8624_s10 }
 0xf0d   :  { %6340 = vrot.lane.b32.xlu1 %v12521_v45, %s8624_s10 }
 0xf0f   :  { %6392 = vrot.lane.b32.xlu0 %v12509_v35, %s8625_s11 }
 0xf11   :  { %6394 = vrot.lane.b32.xlu1 %v12511_v6, %s8625_s11 }
 0xf13   :  { %6400 = vrot.lane.b32.xlu0 %v12515_v17, %s8625_s11 }
 0xf15   :  { %6402 = vrot.lane.b32.xlu1 %v12521_v45, %s8625_s11 }
 0xf17   :  { %6454 = vrot.lane.b32.xlu0 %v12509_v35, %s8626_s12 }
 0xf19   :  { %6456 = vrot.lane.b32.xlu1 %v12511_v6, %s8626_s12 }
 0xf1b   :  { %6462 = vrot.lane.b32.xlu0 %v12515_v17, %s8626_s12 }
 0xf1d   :  { %6464 = vrot.lane.b32.xlu1 %v12521_v45, %s8626_s12 }
 0xf1f   :  { %6016 = vrot.lane.b32.xlu0 %v12583_v19, %s8619_s6 }
 0xf21   :  { %6018 = vrot.lane.b32.xlu1 %v12587_v55, %s8619_s6 }
 0xf23   :  { %6024 = vrot.lane.b32.xlu0 %v12591_v15, %s8619_s6 }
 0xf25   :  { %6026 = vrot.lane.b32.xlu1 %v12595_v38, %s8619_s6 }
 0xf27   :  { %6078 = vrot.lane.b32.xlu0 %v12583_v19, %s8620_s2 }
 0xf29   :  { %6080 = vrot.lane.b32.xlu1 %v12587_v55, %s8620_s2 }
 0xf2b   :  { %6086 = vrot.lane.b32.xlu0 %v12591_v15, %s8620_s2 }
 0xf2d   :  { %6088 = vrot.lane.b32.xlu1 %v12595_v38, %s8620_s2 }
 0xf2f   :  { %6140 = vrot.lane.b32.xlu0 %v12583_v19, %s8621_s7 }
 0xf31   :  { %6142 = vrot.lane.b32.xlu1 %v12587_v55, %s8621_s7 }
 0xf33   :  { %6148 = vrot.lane.b32.xlu0 %v12591_v15, %s8621_s7 }
 0xf35   :  { %6150 = vrot.lane.b32.xlu1 %v12595_v38, %s8621_s7 }
 0xf37   :  { %6202 = vrot.lane.b32.xlu0 %v12583_v19, %s8622_s8 }
 0xf39   :  { %6204 = vrot.lane.b32.xlu1 %v12587_v55, %s8622_s8 }
 0xf3b   :  { %6210 = vrot.lane.b32.xlu0 %v12591_v15, %s8622_s8 }
 0xf3d   :  { %6212 = vrot.lane.b32.xlu1 %v12595_v38, %s8622_s8 }
 0xf3f   :  { %6272 = vrot.lane.b32.xlu0 %v12583_v19, %s8623_s9 }
 0xf41   :  { %6274 = vrot.lane.b32.xlu1 %v12587_v55, %s8623_s9 }
 0xf43   :  { %6280 = vrot.lane.b32.xlu0 %v12591_v15, %s8623_s9 }
 0xf45   :  { %6282 = vrot.lane.b32.xlu1 %v12595_v38, %s8623_s9 }
 0xf47   :  { %6334 = vrot.lane.b32.xlu0 %v12583_v19, %s8624_s10 }
 0xf49   :  { %6336 = vrot.lane.b32.xlu1 %v12587_v55, %s8624_s10 }
 0xf4b   :  { %6342 = vrot.lane.b32.xlu0 %v12591_v15, %s8624_s10 }
 0xf4d   :  { %6344 = vrot.lane.b32.xlu1 %v12595_v38, %s8624_s10 }
 0xf4f   :  { %6396 = vrot.lane.b32.xlu0 %v12583_v19, %s8625_s11 }
 0xf51   :  { %v6013_v60 = vpop.permute.xlu0 %6012  ;;  %6398 = vrot.lane.b32.xlu1 %v12587_v55, %s8625_s11 }
 0xf53   :  { %6404 = vrot.lane.b32.xlu0 %v12591_v15, %s8625_s11  ;;  %v6015_v47 = vpop.permute.xlu1 %6014 }
 0xf55   :  { %v6021_v21 = vpop.permute.xlu0 %6020  ;;  %6406 = vrot.lane.b32.xlu1 %v12595_v38, %s8625_s11 }
 0xf57   :  { %6458 = vrot.lane.b32.xlu0 %v12583_v19, %s8626_s12  ;;  %v6023_v2 = vpop.permute.xlu1 %6022 }
 0xf59   :  { %v12651_v1 = vpop.permute.xlu0 %6074  ;;  %6460 = vrot.lane.b32.xlu1 %v12587_v55, %s8626_s12 }
 0xf5b   :  { %6466 = vrot.lane.b32.xlu0 %v12591_v15, %s8626_s12  ;;  %v12657_v23 = vpop.permute.xlu1 %6076 }
 0xf5d   :  { %v12659_v36 = vpop.permute.xlu0 %6082  ;;  %6468 = vrot.lane.b32.xlu1 %v12595_v38, %s8626_s12 }
 0xf5f   :  { %v12663_v13 = vpop.permute.xlu1 %6084 }
 0xf61   :  { %v12665_v8 = vpop.permute.xlu0 %6136 }
 0xf63   :  { %v12667_v58 = vpop.permute.xlu1 %6138 }
 0xf65   :  { %v12669_v3 = vpop.permute.xlu0 %6144 }
 0xf67   :  { %v12671_v32 = vpop.permute.xlu1 %6146 }
 0xf69   :  { %v12673_v9 = vpop.permute.xlu0 %6198 }
 0xf6b   :  { %v12675_v34 = vpop.permute.xlu1 %6200 }
 0xf6d   :  { %v12677_v61 = vpop.permute.xlu0 %6206 }
 0xf6f   :  { %v12679_v54 = vpop.permute.xlu1 %6208 }
 0xf71   :  { %v12681_v40 = vpop.permute.xlu0 %6268 }
 0xf73   :  { %v12683_v56 = vpop.permute.xlu1 %6270 }
 0xf75   :  { %v12685_v7 = vpop.permute.xlu0 %6276 }
 0xf77   :  { %v12687_v44 = vpop.permute.xlu1 %6278 }
 0xf79   :  { %v12689_v29 = vpop.permute.xlu0 %6330 }
 0xf7b   :  { %v12691_v51 = vpop.permute.xlu1 %6332 }
 0xf7d   :  { %v12693_v57 = vpop.permute.xlu0 %6338 }
 0xf7f   :  { %v12695_v46 = vpop.permute.xlu1 %6340 }
 0xf81   :  { %v12697_v43 = vpop.permute.xlu0 %6392 }
 0xf83   :  { %v12699_v63 = vpop.permute.xlu1 %6394 }
 0xf85   :  { %v12701_v28 = vpop.permute.xlu0 %6400 }
 0xf87   :  { %v12703_v42 = vpop.permute.xlu1 %6402 }
 0xf89   :  { %v12705_v24 = vpop.permute.xlu0 %6454 }
 0xf8a   :  { %14335 = vst [vmem:[#allocation24_spill] sm:$0xff] %v12705_v24 }
 0xf8b   :  { %v12707_v39 = vpop.permute.xlu1 %6456 }
 0xf8c   :  { %14336 = vst [vmem:[#allocation37_spill] sm:$0xff] %v12707_v39 }
 0xf8d   :  { %v12709_v26 = vpop.permute.xlu0 %6462 }
 0xf8e   :  { %14337 = vst [vmem:[#allocation38_spill] sm:$0xff] %v12709_v26 }
 0xf8f   :  { %v12711_v48 = vpop.permute.xlu1 %6464 }
 0xf90   :  { %14338 = vst [vmem:[#allocation34_spill] sm:$0xff] %v12711_v48 }
 0xf91   :  { %v6017_v49 = vpop.permute.xlu0 %6016 }
 0xf92   :  { %v6032_v27 = vsel %vm167_vm0, %v6013_v60, %v6017_v49  ;;  %v6030_v33 = vsel %vm167_vm0, %v6017_v49, %v6021_v21 }
 0xf93   :  { %v6019_v0 = vpop.permute.xlu1 %6018  ;;  %v6059_v62 = vmul.f32 %v6045_v12, %v6032_v27 }
 0xf94   :  { %v6033_v22 = vsel %vm167_vm0, %v6015_v47, %v6019_v0  ;;  %v6031_v37 = vsel %vm167_vm0, %v6019_v0, %v6023_v2 }
 0xf95   :  { %v6063_v14 = vmul.f32 %v6045_v12, %v6033_v22  ;;  %v6025_v59 = vpop.permute.xlu0 %6024  ;;  %v6064_v31 = vmul.f32 %v6049_v5, %v6031_v37 }
 0xf96   :  { %v6028_v41 = vsel %vm167_vm0, %v6021_v21, %v6025_v59  ;;  %v6034_v52 = vsel %vm167_vm0, %v6025_v59, %v6013_v60  ;;  %v6060_v59 = vmul.f32 %v6049_v5, %v6030_v33 }
 0xf97   :  { %v6027_v27 = vpop.permute.xlu1 %6026  ;;  %v6067_v50 = vpack.c.bf16 %v6063_v14, %v6059_v62  ;;  %v6058_v22 = vmul.f32 %v6041_v53, %v6034_v52  ;;  %v6061_v39 = vmul.f32 %v6053_v20, %v6028_v41  ;;  %v6103_v52 = vrot.slane %v6098_v4, %v8859_v25 }
 0xf98   :  { %v6029_v12 = vsel %vm167_vm0, %v6023_v2, %v6027_v27  ;;  %v6035_v0 = vsel %vm167_vm0, %v6027_v27, %v6015_v47  ;;  %v6068_v21 = vpack.c.bf16 %v6064_v31, %v6060_v59  ;;  %v6115_v41 = vrot.slane %v6098_v4, %v8870_v30  ;;  %v6160_v2 = vld [vmem:[#allocation8 + $0x2] ss:$8 sm:$0xf] }
 0xf99   :  { %v6062_v48 = vmul.f32 %v6041_v53, %v6035_v0  ;;  %v6065_v24 = vmul.f32 %v6053_v20, %v6029_v12  ;;  %v6079_v26 = vpop.permute.xlu0 %6078  ;;  %6593 = vmatprep.subr.bf16.mxu0 %v6067_v50  ;;  %v6111_v31 = vrot.slane %v6098_v4, %v8845_v16  ;;  %v6169_v0 = vrot.slane %v6160_v2, %v8837_v11 }
 0xf9a   :  { %v6094_v14 = vsel %vm230_vm1, %v12651_v1, %v6079_v26 }
 0xf9b   :  { %v6066_v37 = vpack.c.bf16 %v6062_v48, %v6058_v22  ;;  %v6081_v62 = vpop.permute.xlu1 %6080  ;;  %v6069_v60 = vpack.c.bf16 %v6065_v24, %v6061_v39  ;;  %v6121_v20 = vmul.f32 %v6107_v18, %v6094_v14  ;;  %v6092_v48 = vsel %vm230_vm1, %v6079_v26, %v12659_v36 }
 0xf9c   :  { %v6095_v47 = vsel %vm230_vm1, %v12657_v23, %v6081_v62  ;;  %v6093_v33 = vsel %vm230_vm1, %v6081_v62, %v12663_v13 }
 0xf9d   :  { %v6125_v5 = vmul.f32 %v6107_v18, %v6095_v47  ;;  %v6087_v50 = vpop.permute.xlu0 %6086  ;;  %6594 = vmatpush1.bf16.msra.mxu0 %v6066_v37  ;;  %6636 = vmatprep.subr.bf16.mxu1 %v6069_v60  ;;  %v6126_v27 = vmul.f32 %v6111_v31, %v6093_v33  ;;  %v6177_v47 = vrot.slane %v6160_v2, %v8870_v30 }
 0xf9e   :  { %v6090_v24 = vsel %vm230_vm1, %v12659_v36, %v6087_v50  ;;  %v6096_v39 = vsel %vm230_vm1, %v6087_v50, %v12651_v1  ;;  %6637 = vmatpush1.bf16.msra.mxu1 %v6068_v21  ;;  %v6122_v36 = vmul.f32 %v6111_v31, %v6092_v48  ;;  %v6165_v21 = vrot.slane %v6160_v2, %v8859_v25 }
 0xf9f   :  { %v6089_v49 = vpop.permute.xlu1 %6088  ;;  %v6129_v53 = vpack.c.bf16 %v6125_v5, %v6121_v20  ;;  %v6120_v18 = vmul.f32 %v6103_v52, %v6096_v39  ;;  %v6123_v1 = vmul.f32 %v6115_v41, %v6090_v24  ;;  %v6222_v5 = vld [vmem:[#allocation8 + $0x3] ss:$8 sm:$0xf]  ;;  %v6173_v50 = vrot.slane %v6160_v2, %v8845_v16 }
 0xfa0   :  { %v6091_v4 = vsel %vm230_vm1, %v12663_v13, %v6089_v49  ;;  %v6097_v12 = vsel %vm230_vm1, %v6089_v49, %v12657_v23  ;;  %v6130_v60 = vpack.c.bf16 %v6126_v27, %v6122_v36 }
 0xfa1   :  { %v6124_v22 = vmul.f32 %v6103_v52, %v6097_v12  ;;  %v6127_v59 = vmul.f32 %v6115_v41, %v6091_v4  ;;  %v6141_v14 = vpop.permute.xlu0 %6140  ;;  %6595 = vmatprep.subr.bf16.mxu0 %v6129_v53  ;;  %v6231_v4 = vrot.slane %v6222_v5, %v8837_v11 }
 0xfa2   :  { %v6156_v26 = vsel %vm294_vm2, %v12665_v8, %v6141_v14  ;;  %v6154_v39 = vsel %vm294_vm2, %v6141_v14, %v12669_v3 }
 0xfa3   :  { %v6128_v37 = vpack.c.bf16 %v6124_v22, %v6120_v18  ;;  %v6143_v62 = vpop.permute.xlu1 %6142  ;;  %v6131_v13 = vpack.c.bf16 %v6127_v59, %v6123_v1  ;;  %v6183_v52 = vmul.f32 %v6169_v0, %v6156_v26  ;;  %v6227_v26 = vrot.slane %v6222_v5, %v8859_v25 }
 0xfa4   :  { %v6157_v23 = vsel %vm294_vm2, %v12667_v58, %v6143_v62  ;;  %v6155_v41 = vsel %vm294_vm2, %v6143_v62, %v12671_v32 }
 0xfa5   :  { %v6187_v20 = vmul.f32 %v6169_v0, %v6157_v23  ;;  %v6149_v33 = vpop.permute.xlu0 %6148  ;;  %6596 = vmatpush1.bf16.msra.mxu0 %v6128_v37  ;;  %6638 = vmatprep.subr.bf16.mxu1 %v6131_v13  ;;  %v6188_v53 = vmul.f32 %v6173_v50, %v6155_v41  ;;  %v6239_v37 = vrot.slane %v6222_v5, %v8870_v30 }
 0xfa6   :  { %v6152_v31 = vsel %vm294_vm2, %v12669_v3, %v6149_v33  ;;  %v6158_v24 = vsel %vm294_vm2, %v6149_v33, %v12665_v8  ;;  %6639 = vmatpush1.bf16.msra.mxu1 %v6130_v60  ;;  %v6184_v3 = vmul.f32 %v6173_v50, %v6154_v39 }
 0xfa7   :  { %v6151_v48 = vpop.permute.xlu1 %6150  ;;  %v6191_v49 = vpack.c.bf16 %v6187_v20, %v6183_v52  ;;  %v6182_v12 = vmul.f32 %v6165_v21, %v6158_v24  ;;  %v6185_v8 = vmul.f32 %v6177_v47, %v6152_v31 }
 0xfa8   :  { %v6153_v2 = vsel %vm294_vm2, %v12671_v32, %v6151_v48  ;;  %v6159_v27 = vsel %vm294_vm2, %v6151_v48, %v12667_v58  ;;  %v6192_v36 = vpack.c.bf16 %v6188_v53, %v6184_v3 }
 0xfa9   :  { %v6186_v0 = vmul.f32 %v6165_v21, %v6159_v27  ;;  %v6189_v18 = vmul.f32 %v6177_v47, %v6153_v2  ;;  %v6203_v1 = vpop.permute.xlu0 %6202  ;;  %6597 = vmatprep.subr.bf16.mxu0 %v6191_v49  ;;  %v6292_v21 = vld [vmem:[#allocation8 + $0x5] ss:$8 sm:$0xf]  ;;  %v6235_v47 = vrot.slane %v6222_v5, %v8845_v16 }
 0xfaa   :  { %v6218_v22 = vsel %vm358_vm3, %v12673_v9, %v6203_v1  ;;  %v6216_v20 = vsel %vm358_vm3, %v6203_v1, %v12677_v61  ;;  %v6301_v39 = vrot.slane %v6292_v21, %v8837_v11 }
 0xfab   :  { %v6190_v59 = vpack.c.bf16 %v6186_v0, %v6182_v12  ;;  %v6205_v14 = vpop.permute.xlu1 %6204  ;;  %v6193_v32 = vpack.c.bf16 %v6189_v18, %v6185_v8  ;;  %v6245_v62 = vmul.f32 %v6231_v4, %v6218_v22  ;;  %v6297_v12 = vrot.slane %v6292_v21, %v8859_v25 }
 0xfac   :  { %v6219_v58 = vsel %vm358_vm3, %v12675_v34, %v6205_v14  ;;  %v6217_v13 = vsel %vm358_vm3, %v6205_v14, %v12679_v54  ;;  %v6305_v0 = vrot.slane %v6292_v21, %v8845_v16 }
 0xfad   :  { %v6249_v60 = vmul.f32 %v6231_v4, %v6219_v58  ;;  %v6211_v23 = vpop.permute.xlu0 %6210  ;;  %6598 = vmatpush1.bf16.msra.mxu0 %v6190_v59  ;;  %6640 = vmatprep.subr.bf16.mxu1 %v6193_v32  ;;  %v6250_v31 = vmul.f32 %v6235_v47, %v6217_v13  ;;  %v6263_v4 = vpack.c.bf16 %v12595_v38, %v12591_v15 }
 0xfae   :  { %v6214_v52 = vsel %vm358_vm3, %v12677_v61, %v6211_v23  ;;  %v6220_v41 = vsel %vm358_vm3, %v6211_v23, %v12673_v9  ;;  %6641 = vmatpush1.bf16.msra.mxu1 %v6192_v36  ;;  %v6246_v61 = vmul.f32 %v6235_v47, %v6216_v20  ;;  %v14339_v20 = vpack.c.bf16 %v12511_v6, %v12509_v35 }
 0xfaf   :  { %v6213_v33 = vpop.permute.xlu1 %6212  ;;  %v6253_v50 = vpack.c.bf16 %v6249_v60, %v6245_v62  ;;  %v6244_v48 = vmul.f32 %v6227_v26, %v6220_v41  ;;  %v6247_v9 = vmul.f32 %v6239_v37, %v6214_v52 }
 0xfb0   :  { %v6215_v5 = vsel %vm358_vm3, %v12679_v54, %v6213_v33  ;;  %v6221_v24 = vsel %vm358_vm3, %v6213_v33, %v12675_v34  ;;  %v6261_v54 = vpack.c.bf16 %v12587_v55, %v12583_v19  ;;  %v6254_v1 = vpack.c.bf16 %v6250_v31, %v6246_v61  ;;  %v6354_v55 = vld [vmem:[#allocation8 + $0x6] ss:$8 sm:$0xf] }
 0xfb1   :  { %v6248_v49 = vmul.f32 %v6227_v26, %v6221_v24  ;;  %v6251_v53 = vmul.f32 %v6239_v37, %v6215_v5  ;;  %v6273_v2 = vpop.permute.xlu0 %6272  ;;  %6599 = vmatprep.subr.bf16.mxu0 %v6253_v50  ;;  %v6309_v19 = vrot.slane %v6292_v21, %v8870_v30  ;;  %v6359_v37 = vrot.slane %v6354_v55, %v8859_v25 }
 0xfb2   :  { %v6286_v27 = vsel %vm430_vm4, %v6273_v2, %v12685_v7  ;;  %v6288_v15 = vsel %vm430_vm4, %v12681_v40, %v6273_v2  ;;  %v6363_v23 = vrot.slane %v6354_v55, %v8837_v11  ;;  %v6367_v24 = vrot.slane %v6354_v55, %v8845_v16  ;;  %v6416_v2 = vld [vmem:[#allocation8 + $0x7] ss:$8 sm:$0xf] }
 0xfb3   :  { %v6252_v34 = vpack.c.bf16 %v6248_v49, %v6244_v48  ;;  %v6275_v8 = vpop.permute.xlu1 %6274  ;;  %v6255_v18 = vpack.c.bf16 %v6251_v53, %v6247_v9  ;;  %v6315_v38 = vmul.f32 %v6301_v39, %v6286_v27  ;;  %v6314_v13 = vmul.f32 %v6297_v12, %v6288_v15 }
 0xfb4   :  { %v6287_v3 = vsel %vm430_vm4, %v6275_v8, %v12687_v44  ;;  %v6289_v22 = vsel %vm430_vm4, %v12683_v56, %v6275_v8  ;;  %v6371_v9 = vrot.slane %v6354_v55, %v8870_v30 }
 0xfb5   :  { %v6319_v59 = vmul.f32 %v6301_v39, %v6287_v3  ;;  %v6281_v14 = vpop.permute.xlu0 %6280  ;;  %6600 = vmatpush1.bf16.msra.mxu0 %v6252_v34  ;;  %6642 = vmatprep.subr.bf16.mxu1 %v6255_v18  ;;  %v6318_v58 = vmul.f32 %v6297_v12, %v6289_v22 }
 0xfb6   :  { %v6284_v32 = vsel %vm430_vm4, %v12685_v7, %v6281_v14  ;;  %v6290_v36 = vsel %vm430_vm4, %v6281_v14, %v12681_v40  ;;  %6601 = vmatprep.subr.bf16.mxu0 %v6261_v54  ;;  %6643 = vmatpush1.bf16.msra.mxu1 %v6254_v1  ;;  %v6429_v14 = vrot.slane %v6416_v2, %v8845_v16 }
 0xfb7   :  { %6644 = vmatprep.subr.bf16.mxu1 %v6263_v4  ;;  %v6283_v26 = vpop.permute.xlu1 %6282  ;;  %v6323_v62 = vpack.c.bf16 %v6319_v59, %v6315_v38  ;;  %v6316_v40 = vmul.f32 %v6305_v0, %v6284_v32  ;;  %v6317_v21 = vmul.f32 %v6309_v19, %v6290_v36  ;;  %v6322_v50 = vpack.c.bf16 %v6318_v58, %v6314_v13  ;;  %v6478_v13 = vld [vmem:[#allocation8 + $0x20] ss:$8 sm:$0xf] }
 0xfb8   :  { %v6285_v60 = vsel %vm430_vm4, %v12687_v44, %v6283_v26  ;;  %v6291_v7 = vsel %vm430_vm4, %v6283_v26, %v12683_v56  ;;  %v14340_v56 = vpack.c.bf16 %v12521_v45, %v12515_v17  ;;  %v6433_v32 = vrot.slane %v6416_v2, %v8870_v30 }
 0xfb9   :  { %v6320_v47 = vmul.f32 %v6305_v0, %v6285_v60  ;;  %v6321_v52 = vmul.f32 %v6309_v19, %v6291_v7  ;;  %v6335_v41 = vpop.permute.xlu0 %6334  ;;  %6602 = vmatpush1.bf16.msra.mxu0 %v14339_v20  ;;  %v6421_v0 = vrot.slane %v6416_v2, %v8859_v25 }
 0xfba   :  { %v6348_v33 = vsel %vm494_vm5, %v6335_v41, %v12693_v57  ;;  %v6350_v44 = vsel %vm494_vm5, %v12689_v29, %v6335_v41  ;;  %6603 = vmatprep.subr.bf16.mxu0 %v6323_v62  ;;  %6645 = vmatpush1.bf16.msra.mxu1 %v14340_v56  ;;  %v6483_v41 = vrot.slane %v6478_v13, %v8859_v25 }
 0xfbb   :  { %v6324_v31 = vpack.c.bf16 %v6320_v47, %v6316_v40  ;;  %v6337_v5 = vpop.permute.xlu1 %6336  ;;  %v6325_v35 = vpack.c.bf16 %v6321_v52, %v6317_v21  ;;  %v6376_v6 = vmul.f32 %v6359_v37, %v6350_v44  ;;  %v6377_v49 = vmul.f32 %v6363_v23, %v6348_v33 }
 0xfbc   :  { %v6349_v39 = vsel %vm494_vm5, %v6337_v5, %v12695_v46  ;;  %v6351_v48 = vsel %vm494_vm5, %v12691_v51, %v6337_v5  ;;  %v14342_v5 = vld [vmem:[#allocation24_spill] sm:$0xff] }
 0xfbd   :  { %v6380_v17 = vmul.f32 %v6359_v37, %v6351_v48  ;;  %v6381_v45 = vmul.f32 %v6363_v23, %v6349_v39  ;;  %v6343_v53 = vpop.permute.xlu0 %6342  ;;  %6604 = vmatpush1.bf16.msra.mxu0 %v6322_v50  ;;  %6646 = vmatprep.subr.bf16.mxu1 %v6325_v35  ;;  %v14341_v50 = vld [vmem:[#allocation38_spill] sm:$0xff]  ;;  %v14344_v48 = vld [vmem:[#allocation37_spill] sm:$0xff] }
 0xfbe   :  { %v6346_v61 = vsel %vm494_vm5, %v12693_v57, %v6343_v53  ;;  %v6352_v27 = vsel %vm494_vm5, %v6343_v53, %v12689_v29  ;;  %6647 = vmatpush1.bf16.msra.mxu1 %v6324_v31  ;;  %v6425_v57 = vrot.slane %v6416_v2, %v8837_v11 }
 0xfbf   :  { %v6384_v54 = vpack.c.bf16 %v6380_v17, %v6376_v6  ;;  %v6345_v4 = vpop.permute.xlu1 %6344  ;;  %v6385_v34 = vpack.c.bf16 %v6381_v45, %v6377_v49  ;;  %v6378_v18 = vmul.f32 %v6367_v24, %v6346_v61  ;;  %v6379_v1 = vmul.f32 %v6371_v9, %v6352_v27  ;;  %v14343_v6 = vld [vmem:[#allocation34_spill] sm:$0xff] }
 0xfc0   :  { %v6347_v12 = vsel %vm494_vm5, %v12695_v46, %v6345_v4  ;;  %v6353_v8 = vsel %vm494_vm5, %v6345_v4, %v12691_v51  ;;  %v6491_v49 = vrot.slane %v6478_v13, %v8845_v16  ;;  %v6495_v17 = vrot.slane %v6478_v13, %v8870_v30 }
 0xfc1   :  { %v6382_v3 = vmul.f32 %v6367_v24, %v6347_v12  ;;  %v6383_v29 = vmul.f32 %v6371_v9, %v6353_v8  ;;  %v6397_v22 = vpop.permute.xlu0 %6396  ;;  %6605 = vmatprep.subr.bf16.mxu0 %v6385_v34 }
 0xfc2   :  { %v6410_v19 = vsel %vm558_vm6, %v6397_v22, %v12701_v28  ;;  %v6412_v46 = vsel %vm558_vm6, %v12697_v43, %v6397_v22  ;;  %6606 = vmatpush1.bf16.msra.mxu0 %v6384_v54 }
 0xfc3   :  { %v6386_v51 = vpack.c.bf16 %v6382_v3, %v6378_v18  ;;  %v6399_v55 = vpop.permute.xlu1 %6398  ;;  %v6387_v15 = vpack.c.bf16 %v6383_v29, %v6379_v1  ;;  %v6438_v36 = vmul.f32 %v6421_v0, %v6412_v46  ;;  %v6439_v58 = vmul.f32 %v6425_v57, %v6410_v19  ;;  %v14345_v19 = vld [vmem:[#allocation77_spill] sm:$0xff] }
 0xfc4   :  { %v6411_v38 = vsel %vm558_vm6, %v6399_v55, %v12703_v42  ;;  %v6413_v59 = vsel %vm558_vm6, %v12699_v63, %v6399_v55  ;;  %v8452_v55 = vld [vmem:[#allocation6 + $0x90] ss:$8 sps:$4 sm:$0xff]  }
 0xfc5   :  { %v6442_v26 = vmul.f32 %v6421_v0, %v6413_v59  ;;  %v6443_v37 = vmul.f32 %v6425_v57, %v6411_v38  ;;  %v6405_v62 = vpop.permute.xlu0 %6404  ;;  %6648 = vmatprep.subr.bf16.mxu1 %v6387_v15  ;;  %v14347_v38 = vld [vmem:[#allocation25_spill] sm:$0xff] }
 0xfc6   :  { %v6408_v60 = vsel %vm558_vm6, %v12701_v28, %v6405_v62  ;;  %v6414_v7 = vsel %vm558_vm6, %v6405_v62, %v12697_v43  ;;  %6649 = vmatpush1.bf16.msra.mxu1 %v6386_v51  ;;  %v6487_v28 = vrot.slane %v6478_v13, %v8837_v11  ;;  %v14351_v62 = vld [vmem:[#allocation15_spill] sm:$0xff] }
 0xfc7   :  { %v6446_v23 = vpack.c.bf16 %v6442_v26, %v6438_v36  ;;  %v6407_v40 = vpop.permute.xlu1 %6406  ;;  %v6447_v21 = vpack.c.bf16 %v6443_v37, %v6439_v58  ;;  %v6440_v20 = vmul.f32 %v6429_v14, %v6408_v60  ;;  %v6441_v33 = vmul.f32 %v6433_v32, %v6414_v7  ;;  %v14349_v36 = vld [vmem:[#allocation27_spill] sm:$0xff] }
 0xfc8   :  { %v6409_v47 = vsel %vm558_vm6, %v12703_v42, %v6407_v40  ;;  %v6415_v52 = vsel %vm558_vm6, %v6407_v40, %v12699_v63 }
 0xfc9   :  { %v6444_v44 = vmul.f32 %v6429_v14, %v6409_v47  ;;  %v6445_v43 = vmul.f32 %v6433_v32, %v6415_v52  ;;  %v6459_v56 = vpop.permute.xlu0 %6458  ;;  %6607 = vmatprep.subr.bf16.mxu0 %v6447_v21  ;;  %v14355_v47 = vld [vmem:[#allocation29_spill] sm:$0xff] }
 0xfca   :  { %v6472_v31 = vsel %vm622_vm7, %v6459_v56, %v14341_v50  ;;  %v6474_v42 = vsel %vm622_vm7, %v14342_v5, %v6459_v56  ;;  %6608 = vmatpush1.bf16.msra.mxu0 %v6446_v23  ;;  %v14353_v23 = vld [vmem:[#allocation16_spill] sm:$0xff] }
 0xfcb   :  { %v6448_v63 = vpack.c.bf16 %v6444_v44, %v6440_v20  ;;  %v6461_v24 = vpop.permute.xlu1 %6460  ;;  %v6449_v35 = vpack.c.bf16 %v6445_v43, %v6441_v33  ;;  %v6500_v45 = vmul.f32 %v6483_v41, %v6474_v42  ;;  %v6501_v53 = vmul.f32 %v6487_v28, %v6472_v31  ;;  %v14359_v20 = vld [vmem:[#allocation26_spill] sm:$0xff]  ;;  %v14361_v44 = vld [vmem:[#allocation28_spill] sm:$0xff] }
 0xfcc   :  { %v6473_v39 = vsel %vm622_vm7, %v6461_v24, %v14343_v6  ;;  %v6475_v9 = vsel %vm622_vm7, %v14344_v48, %v6461_v24 }
 0xfcd   :  { %v6504_v2 = vmul.f32 %v6483_v41, %v6475_v9  ;;  %v6505_v61 = vmul.f32 %v6487_v28, %v6473_v39  ;;  %v6467_v27 = vpop.permute.xlu0 %6466  ;;  %6650 = vmatprep.subr.bf16.mxu1 %v6449_v35  ;;  %v14357_v41 = vld [vmem:[#allocation30_spill] sm:$0xff] }
 0xfce   :  { %v6470_v54 = vsel %vm622_vm7, %v14341_v50, %v6467_v27  ;;  %v6476_v4 = vsel %vm622_vm7, %v6467_v27, %v14342_v5  ;;  %6651 = vmatpush1.bf16.msra.mxu1 %v6448_v63  ;;  %v8457_v5 = vld [vmem:[#allocation6 + $0xa4] ss:$8 sps:$4 sm:$0xff]  }
 0xfcf   :  { %v6508_v34 = vpack.c.bf16 %v6504_v2, %v6500_v45  ;;  %v6469_v12 = vpop.permute.xlu1 %6468  ;;  %v6509_v8 = vpack.c.bf16 %v6505_v61, %v6501_v53  ;;  %v6502_v18 = vmul.f32 %v6491_v49, %v6470_v54  ;;  %v6503_v1 = vmul.f32 %v6495_v17, %v6476_v4 }
 0xfd0   :  { %v6471_v0 = vsel %vm622_vm7, %v14343_v6, %v6469_v12  ;;  %v6477_v57 = vsel %vm622_vm7, %v6469_v12, %v14344_v48 }
 0xfd1   :  { %v6506_v3 = vmul.f32 %v6491_v49, %v6471_v0  ;;  %v6507_v29 = vmul.f32 %v6495_v17, %v6477_v57  ;;  %6609 = vmatprep.subr.bf16.mxu0 %v6509_v8 }
 0xfd2   :  { %6610 = vmatpush1.bf16.msra.mxu0 %v6508_v34 }
 0xfd3   :  { %v6510_v22 = vpack.c.bf16 %v6506_v3, %v6502_v18  ;;  %8369 = vmatprep.subr.msk.bf16.mxu0 %vm9269_vm10, %v14345_v19  ;;  %v6511_v51 = vpack.c.bf16 %v6507_v29, %v6503_v1 }
 0xfd5   :  { %6652 = vmatprep.subr.bf16.mxu1 %v6511_v51 }
 0xfd6   :  { %8372 = vmatpush1.bf16.msk.msra.mxu0 %vm9269_vm10, %v14345_v19  ;;  %6653 = vmatpush1.bf16.msra.mxu1 %v6510_v22 }
 0xfd7   :  { %8375 = vmatprep.subr.msk.bf16.mxu1 %vm9269_vm10, %v14345_v19 }
 0xfd9   :  { %6626 = vmatmul.mubr.bf16.vlgmr.msra.gmra.mrb[36].mxu0 %v8452_v55 }
 0xfda   :  { %8378 = vmatpush1.bf16.msk.msra.mxu1 %vm9269_vm10, %v14345_v19  ;;  %7292 = vmatprep.mubr.bf16.mxu0 %v8457_v5 }
 0xfdd   :  { %6669 = vmatmul.mubr.bf16.vlgmr.msra.gmra.mrb[36].mxu1 %v8452_v55  ;;  %v6703_v55 = vld [vmem:[#allocation8] ss:$8 sm:$0xf] }
 0xfde   :  { %7335 = vmatprep.mubr.bf16.mxu1 %v8457_v5 }
0x10ac   :  { %v6627_v15 = vpop.f32.mrb[36].mxu0 }
0x10ad   :  { %v12952_v59 = vadd.f32 %v6627_v15, %v14347_v38  ;;  %v6629_v14 = vpop.f32.mrb[37].mxu0  ;;  %v6712_v38 = vrot.slane %v6703_v55, %v8837_v11 }
0x10ae   :  { %v6631_v32 = vpop.f32.mrb[38].mxu0  ;;  %v13026_v52 = vadd.f32 %v6629_v14, %v14355_v47  ;;  %v6765_v47 = vld [vmem:[#allocation8 + $0x1] ss:$8 sm:$0xf] }
0x10af   :  { %14348 = vst [vmem:[#allocation36_spill] sm:$0xff] %v12952_v59  ;;  %v12955_v58 = vadd.f32 %v6631_v32, %v14349_v36  ;;  %v6633_v26 = vpop.f32.mrb[39].mxu0  ;;  %6679 = vrot.lane.b32.xlu0 %v12952_v59, %s8619_s6 }
0x10b0   :  { %v6670_v37 = vpop.f32.mrb[36].mxu1  ;;  %14356 = vst [vmem:[#allocation32_spill] sm:$0xff] %v13026_v52  ;;  %v13031_v28 = vadd.f32 %v6633_v26, %v14357_v41  ;;  %v6716_v41 = vrot.slane %v6703_v55, %v8845_v16 }
0x10b1   :  { %14350 = vst [vmem:[#allocation41_spill] sm:$0xff] %v12955_v58  ;;  %v12960_v13 = vadd.f32 %v6670_v37, %v14351_v62  ;;  %v6672_v60 = vpop.f32.mrb[37].mxu1  ;;  %6681 = vrot.lane.b32.xlu1 %v12955_v58, %s8619_s6  ;;  %v6708_v37 = vrot.slane %v6703_v55, %v8859_v25 }
0x10b2   :  { %v6674_v7 = vpop.f32.mrb[38].mxu1  ;;  %14358 = vst [vmem:[#allocation42_spill] sm:$0xff] %v13031_v28  ;;  %v13036_v33 = vadd.f32 %v6672_v60, %v14359_v20 }
0x10b3   :  { %14352 = vst [vmem:[#allocation43_spill] sm:$0xff] %v12960_v13  ;;  %v12965_v40 = vadd.f32 %v6674_v7, %v14353_v23  ;;  %v6676_v21 = vpop.f32.mrb[39].mxu1  ;;  %6687 = vrot.lane.b32.xlu0 %v12960_v13, %s8619_s6  ;;  %v6720_v23 = vrot.slane %v6703_v55, %v8870_v30  ;;  %v6774_v55 = vrot.slane %v6765_v47, %v8837_v11 }
0x10b4   :  { %14360 = vst [vmem:[#allocation44_spill] sm:$0xff] %v13036_v33  ;;  %v13041_v43 = vadd.f32 %v6676_v21, %v14361_v44 }
0x10b5   :  { %14354 = vst [vmem:[#allocation31_spill] sm:$0xff] %v12965_v40  ;;  %6689 = vrot.lane.b32.xlu1 %v12965_v40, %s8619_s6 }
0x10b6   :  { %14362 = vst [vmem:[#allocation45_spill] sm:$0xff] %v13041_v43 }
0x10b7   :  { %6741 = vrot.lane.b32.xlu0 %v12952_v59, %s8620_s2 }
0x10b9   :  { %6743 = vrot.lane.b32.xlu1 %v12955_v58, %s8620_s2 }
0x10bb   :  { %6749 = vrot.lane.b32.xlu0 %v12960_v13, %s8620_s2 }
0x10bd   :  { %6751 = vrot.lane.b32.xlu1 %v12965_v40, %s8620_s2 }
0x10bf   :  { %6803 = vrot.lane.b32.xlu0 %v12952_v59, %s8621_s7 }
0x10c1   :  { %6805 = vrot.lane.b32.xlu1 %v12955_v58, %s8621_s7 }
0x10c3   :  { %6811 = vrot.lane.b32.xlu0 %v12960_v13, %s8621_s7 }
0x10c5   :  { %6813 = vrot.lane.b32.xlu1 %v12965_v40, %s8621_s7 }
0x10c7   :  { %6865 = vrot.lane.b32.xlu0 %v12952_v59, %s8622_s8 }
0x10c9   :  { %6867 = vrot.lane.b32.xlu1 %v12955_v58, %s8622_s8 }
0x10cb   :  { %6873 = vrot.lane.b32.xlu0 %v12960_v13, %s8622_s8 }
0x10cd   :  { %6875 = vrot.lane.b32.xlu1 %v12965_v40, %s8622_s8 }
0x10cf   :  { %6935 = vrot.lane.b32.xlu0 %v12952_v59, %s8623_s9 }
0x10d1   :  { %6937 = vrot.lane.b32.xlu1 %v12955_v58, %s8623_s9 }
0x10d3   :  { %6943 = vrot.lane.b32.xlu0 %v12960_v13, %s8623_s9 }
0x10d5   :  { %6945 = vrot.lane.b32.xlu1 %v12965_v40, %s8623_s9 }
0x10d7   :  { %6997 = vrot.lane.b32.xlu0 %v12952_v59, %s8624_s10 }
0x10d9   :  { %6999 = vrot.lane.b32.xlu1 %v12955_v58, %s8624_s10 }
0x10db   :  { %7005 = vrot.lane.b32.xlu0 %v12960_v13, %s8624_s10 }
0x10dd   :  { %7007 = vrot.lane.b32.xlu1 %v12965_v40, %s8624_s10 }
0x10df   :  { %7059 = vrot.lane.b32.xlu0 %v12952_v59, %s8625_s11 }
0x10e1   :  { %7061 = vrot.lane.b32.xlu1 %v12955_v58, %s8625_s11 }
0x10e3   :  { %7067 = vrot.lane.b32.xlu0 %v12960_v13, %s8625_s11 }
0x10e5   :  { %7069 = vrot.lane.b32.xlu1 %v12965_v40, %s8625_s11 }
0x10e7   :  { %7121 = vrot.lane.b32.xlu0 %v12952_v59, %s8626_s12 }
0x10e9   :  { %7123 = vrot.lane.b32.xlu1 %v12955_v58, %s8626_s12 }
0x10eb   :  { %7129 = vrot.lane.b32.xlu0 %v12960_v13, %s8626_s12 }
0x10ed   :  { %7131 = vrot.lane.b32.xlu1 %v12965_v40, %s8626_s12 }
0x10ef   :  { %6683 = vrot.lane.b32.xlu0 %v13026_v52, %s8619_s6 }
0x10f1   :  { %6685 = vrot.lane.b32.xlu1 %v13031_v28, %s8619_s6 }
0x10f3   :  { %6691 = vrot.lane.b32.xlu0 %v13036_v33, %s8619_s6 }
0x10f5   :  { %6693 = vrot.lane.b32.xlu1 %v13041_v43, %s8619_s6 }
0x10f7   :  { %6745 = vrot.lane.b32.xlu0 %v13026_v52, %s8620_s2 }
0x10f9   :  { %6747 = vrot.lane.b32.xlu1 %v13031_v28, %s8620_s2 }
0x10fb   :  { %6753 = vrot.lane.b32.xlu0 %v13036_v33, %s8620_s2 }
0x10fd   :  { %6755 = vrot.lane.b32.xlu1 %v13041_v43, %s8620_s2 }
0x10ff   :  { %6807 = vrot.lane.b32.xlu0 %v13026_v52, %s8621_s7 }
0x1101   :  { %6809 = vrot.lane.b32.xlu1 %v13031_v28, %s8621_s7 }
0x1103   :  { %6815 = vrot.lane.b32.xlu0 %v13036_v33, %s8621_s7 }
0x1105   :  { %6817 = vrot.lane.b32.xlu1 %v13041_v43, %s8621_s7 }
0x1107   :  { %6869 = vrot.lane.b32.xlu0 %v13026_v52, %s8622_s8 }
0x1109   :  { %6871 = vrot.lane.b32.xlu1 %v13031_v28, %s8622_s8 }
0x110b   :  { %6877 = vrot.lane.b32.xlu0 %v13036_v33, %s8622_s8 }
0x110d   :  { %6879 = vrot.lane.b32.xlu1 %v13041_v43, %s8622_s8 }
0x110f   :  { %6939 = vrot.lane.b32.xlu0 %v13026_v52, %s8623_s9 }
0x1111   :  { %6941 = vrot.lane.b32.xlu1 %v13031_v28, %s8623_s9 }
0x1113   :  { %6947 = vrot.lane.b32.xlu0 %v13036_v33, %s8623_s9 }
0x1115   :  { %6949 = vrot.lane.b32.xlu1 %v13041_v43, %s8623_s9 }
0x1117   :  { %7001 = vrot.lane.b32.xlu0 %v13026_v52, %s8624_s10 }
0x1119   :  { %7003 = vrot.lane.b32.xlu1 %v13031_v28, %s8624_s10 }
0x111b   :  { %7009 = vrot.lane.b32.xlu0 %v13036_v33, %s8624_s10 }
0x111d   :  { %7011 = vrot.lane.b32.xlu1 %v13041_v43, %s8624_s10 }
0x111f   :  { %7063 = vrot.lane.b32.xlu0 %v13026_v52, %s8625_s11 }
0x1121   :  { %7065 = vrot.lane.b32.xlu1 %v13031_v28, %s8625_s11  ;;  %v6680_v56 = vpop.permute.xlu0 %6679 }
0x1123   :  { %v6682_v50 = vpop.permute.xlu1 %6681  ;;  %7071 = vrot.lane.b32.xlu0 %v13036_v33, %s8625_s11 }
0x1125   :  { %7073 = vrot.lane.b32.xlu1 %v13041_v43, %s8625_s11  ;;  %v6688_v31 = vpop.permute.xlu0 %6687 }
0x1127   :  { %v6690_v42 = vpop.permute.xlu1 %6689  ;;  %7125 = vrot.lane.b32.xlu0 %v13026_v52, %s8626_s12 }
0x1129   :  { %7127 = vrot.lane.b32.xlu1 %v13031_v28, %s8626_s12  ;;  %v13099_v63 = vpop.permute.xlu0 %6741 }
0x112b   :  { %v13101_v24 = vpop.permute.xlu1 %6743  ;;  %7133 = vrot.lane.b32.xlu0 %v13036_v33, %s8626_s12 }
0x112d   :  { %7135 = vrot.lane.b32.xlu1 %v13041_v43, %s8626_s12  ;;  %v13107_v35 = vpop.permute.xlu0 %6749 }
0x112f   :  { %v13109_v6 = vpop.permute.xlu1 %6751 }
0x1131   :  { %v13111_v39 = vpop.permute.xlu0 %6803 }
0x1133   :  { %v13113_v48 = vpop.permute.xlu1 %6805 }
0x1135   :  { %v13115_v9 = vpop.permute.xlu0 %6811 }
0x1137   :  { %v13117_v49 = vpop.permute.xlu1 %6813 }
0x1139   :  { %v13119_v17 = vpop.permute.xlu0 %6865 }
0x113b   :  { %v13121_v45 = vpop.permute.xlu1 %6867 }
0x113d   :  { %v13123_v53 = vpop.permute.xlu0 %6873 }
0x113f   :  { %v13125_v2 = vpop.permute.xlu1 %6875 }
0x1141   :  { %v13127_v61 = vpop.permute.xlu0 %6935 }
0x1143   :  { %v13129_v27 = vpop.permute.xlu1 %6937 }
0x1145   :  { %v13131_v54 = vpop.permute.xlu0 %6943 }
0x1147   :  { %v13133_v4 = vpop.permute.xlu1 %6945 }
0x1149   :  { %v13135_v34 = vpop.permute.xlu0 %6997 }
0x114b   :  { %v13137_v12 = vpop.permute.xlu1 %6999 }
0x114d   :  { %v13139_v8 = vpop.permute.xlu0 %7005 }
0x114f   :  { %v13141_v0 = vpop.permute.xlu1 %7007 }
0x1151   :  { %v13143_v57 = vpop.permute.xlu0 %7059 }
0x1153   :  { %v13145_v18 = vpop.permute.xlu1 %7061 }
0x1155   :  { %v13147_v1 = vpop.permute.xlu0 %7067 }
0x1157   :  { %v13149_v3 = vpop.permute.xlu1 %7069 }
0x1159   :  { %v13151_v29 = vpop.permute.xlu0 %7121 }
0x115a   :  { %14363 = vst [vmem:[#allocation47_spill] sm:$0xff] %v13151_v29 }
0x115b   :  { %v13153_v22 = vpop.permute.xlu1 %7123 }
0x115c   :  { %14364 = vst [vmem:[#allocation39_spill] sm:$0xff] %v13153_v22 }
0x115d   :  { %v13155_v51 = vpop.permute.xlu0 %7129 }
0x115f   :  { %v13157_v15 = vpop.permute.xlu1 %7131 }
0x1160   :  { %14365 = vst [vmem:[#allocation40_spill] sm:$0xff] %v13157_v15 }
0x1161   :  { %v6684_v14 = vpop.permute.xlu0 %6683 }
0x1162   :  { %v6699_v32 = vsel %vm167_vm0, %v6680_v56, %v6684_v14  ;;  %v6697_v5 = vsel %vm167_vm0, %v6684_v14, %v6688_v31 }
0x1163   :  { %v6686_v36 = vpop.permute.xlu1 %6685  ;;  %v6726_v62 = vmul.f32 %v6712_v38, %v6699_v32 }
0x1164   :  { %v6700_v26 = vsel %vm167_vm0, %v6682_v50, %v6686_v36  ;;  %v6698_v60 = vsel %vm167_vm0, %v6686_v36, %v6690_v42 }
0x1165   :  { %v6730_v7 = vmul.f32 %v6712_v38, %v6700_v26  ;;  %v6692_v21 = vpop.permute.xlu0 %6691  ;;  %v6731_v19 = vmul.f32 %v6716_v41, %v6698_v60 }
0x1166   :  { %v6695_v20 = vsel %vm167_vm0, %v6688_v31, %v6692_v21  ;;  %v6701_v44 = vsel %vm167_vm0, %v6692_v21, %v6680_v56  ;;  %v6727_v21 = vmul.f32 %v6716_v41, %v6697_v5 }
0x1167   :  { %v6694_v32 = vpop.permute.xlu1 %6693  ;;  %v6734_v46 = vpack.c.bf16 %v6730_v7, %v6726_v62  ;;  %v6725_v26 = vmul.f32 %v6708_v37, %v6701_v44  ;;  %v6728_v22 = vmul.f32 %v6720_v23, %v6695_v20  ;;  %v6770_v7 = vrot.slane %v6765_v47, %v8859_v25  ;;  %v6827_v20 = vld [vmem:[#allocation8 + $0x2] ss:$8 sm:$0xf] }
0x1168   :  { %v6696_v38 = vsel %vm167_vm0, %v6690_v42, %v6694_v32  ;;  %v6702_v36 = vsel %vm167_vm0, %v6694_v32, %v6682_v50  ;;  %v6735_v42 = vpack.c.bf16 %v6731_v19, %v6727_v21  ;;  %v6778_v19 = vrot.slane %v6765_v47, %v8845_v16 }
0x1169   :  { %v6729_v15 = vmul.f32 %v6708_v37, %v6702_v36  ;;  %v6732_v29 = vmul.f32 %v6720_v23, %v6696_v38  ;;  %7260 = vmatprep.subr.bf16.mxu0 %v6734_v46  ;;  %v6746_v56 = vpop.permute.xlu0 %6745  ;;  %v6782_v37 = vrot.slane %v6765_v47, %v8870_v30 }
0x116a   :  { %v6761_v31 = vsel %vm230_vm1, %v13099_v63, %v6746_v56  ;;  %v6759_v44 = vsel %vm230_vm1, %v6746_v56, %v13107_v35 }
0x116b   :  { %v6733_v14 = vpack.c.bf16 %v6729_v15, %v6725_v26  ;;  %v6748_v62 = vpop.permute.xlu1 %6747  ;;  %v6736_v60 = vpack.c.bf16 %v6732_v29, %v6728_v22  ;;  %v6788_v23 = vmul.f32 %v6774_v55, %v6761_v31 }
0x116c   :  { %v6762_v50 = vsel %vm230_vm1, %v13101_v24, %v6748_v62  ;;  %v6760_v46 = vsel %vm230_vm1, %v6748_v62, %v13109_v6 }
0x116d   :  { %v6792_v41 = vmul.f32 %v6774_v55, %v6762_v50  ;;  %7261 = vmatpush1.bf16.msra.mxu0 %v6733_v14  ;;  %7303 = vmatprep.subr.bf16.mxu1 %v6736_v60  ;;  %v6754_v15 = vpop.permute.xlu0 %6753  ;;  %v6793_v38 = vmul.f32 %v6778_v19, %v6760_v46  ;;  %v6836_v55 = vrot.slane %v6827_v20, %v8837_v11 }
0x116e   :  { %v6757_v29 = vsel %vm230_vm1, %v13107_v35, %v6754_v15  ;;  %v6763_v22 = vsel %vm230_vm1, %v6754_v15, %v13099_v63  ;;  %7304 = vmatpush1.bf16.msra.mxu1 %v6735_v42  ;;  %v6789_v35 = vmul.f32 %v6778_v19, %v6759_v44  ;;  %v6832_v50 = vrot.slane %v6827_v20, %v8859_v25  ;;  %v6889_v15 = vld [vmem:[#allocation8 + $0x3] ss:$8 sm:$0xf] }
0x116f   :  { %v6756_v5 = vpop.permute.xlu1 %6755  ;;  %v6796_v32 = vpack.c.bf16 %v6792_v41, %v6788_v23  ;;  %v6787_v26 = vmul.f32 %v6770_v7, %v6763_v22  ;;  %v6790_v63 = vmul.f32 %v6782_v37, %v6757_v29  ;;  %v6840_v19 = vrot.slane %v6827_v20, %v8845_v16 }
0x1170   :  { %v6758_v47 = vsel %vm230_vm1, %v13109_v6, %v6756_v5  ;;  %v6764_v36 = vsel %vm230_vm1, %v6756_v5, %v13101_v24  ;;  %v6797_v42 = vpack.c.bf16 %v6793_v38, %v6789_v35 }
0x1171   :  { %v6791_v21 = vmul.f32 %v6770_v7, %v6764_v36  ;;  %v6794_v31 = vmul.f32 %v6782_v37, %v6758_v47  ;;  %7262 = vmatprep.subr.bf16.mxu0 %v6796_v32  ;;  %v6808_v14 = vpop.permute.xlu0 %6807  ;;  %v6844_v7 = vrot.slane %v6827_v20, %v8870_v30  ;;  %v6898_v36 = vrot.slane %v6889_v15, %v8837_v11 }
0x1172   :  { %v6823_v56 = vsel %vm294_vm2, %v13111_v39, %v6808_v14  ;;  %v6821_v44 = vsel %vm294_vm2, %v6808_v14, %v13115_v9 }
0x1173   :  { %v6795_v62 = vpack.c.bf16 %v6791_v21, %v6787_v26  ;;  %v6810_v60 = vpop.permute.xlu1 %6809  ;;  %v6798_v6 = vpack.c.bf16 %v6794_v31, %v6790_v63  ;;  %v6850_v37 = vmul.f32 %v6836_v55, %v6823_v56 }
0x1174   :  { %v6824_v24 = vsel %vm294_vm2, %v13113_v48, %v6810_v60  ;;  %v6822_v23 = vsel %vm294_vm2, %v6810_v60, %v13117_v49  ;;  %v6906_v60 = vrot.slane %v6889_v15, %v8870_v30 }
0x1175   :  { %v6854_v46 = vmul.f32 %v6836_v55, %v6824_v24  ;;  %7263 = vmatpush1.bf16.msra.mxu0 %v6795_v62  ;;  %7305 = vmatprep.subr.bf16.mxu1 %v6798_v6  ;;  %v6816_v41 = vpop.permute.xlu0 %6815  ;;  %v6855_v38 = vmul.f32 %v6840_v19, %v6822_v23  ;;  %v6894_v62 = vrot.slane %v6889_v15, %v8859_v25 }
0x1176   :  { %v6819_v29 = vsel %vm294_vm2, %v13115_v9, %v6816_v41  ;;  %v6825_v22 = vsel %vm294_vm2, %v6816_v41, %v13111_v39  ;;  %7306 = vmatpush1.bf16.msra.mxu1 %v6797_v42  ;;  %v6851_v9 = vmul.f32 %v6840_v19, %v6821_v44 }
0x1177   :  { %v6818_v5 = vpop.permute.xlu1 %6817  ;;  %v6858_v32 = vpack.c.bf16 %v6854_v46, %v6850_v37  ;;  %v6849_v55 = vmul.f32 %v6832_v50, %v6825_v22  ;;  %v6852_v39 = vmul.f32 %v6844_v7, %v6819_v29  ;;  %v6902_v37 = vrot.slane %v6889_v15, %v8845_v16 }
0x1178   :  { %v6820_v20 = vsel %vm294_vm2, %v13117_v49, %v6818_v5  ;;  %v6826_v47 = vsel %vm294_vm2, %v6818_v5, %v13113_v48  ;;  %v6859_v56 = vpack.c.bf16 %v6855_v38, %v6851_v9 }
0x1179   :  { %v6853_v26 = vmul.f32 %v6832_v50, %v6826_v47  ;;  %v6856_v63 = vmul.f32 %v6844_v7, %v6820_v20  ;;  %7264 = vmatprep.subr.bf16.mxu0 %v6858_v32  ;;  %v6870_v21 = vpop.permute.xlu0 %6869  ;;  %v6959_v7 = vld [vmem:[#allocation8 + $0x5] ss:$8 sm:$0xf] }
0x117a   :  { %v6885_v31 = vsel %vm358_vm3, %v13119_v17, %v6870_v21  ;;  %v6883_v41 = vsel %vm358_vm3, %v6870_v21, %v13123_v53  ;;  %v6968_v5 = vrot.slane %v6959_v7, %v8837_v11  ;;  %v6972_v21 = vrot.slane %v6959_v7, %v8845_v16 }
0x117b   :  { %v6857_v14 = vpack.c.bf16 %v6853_v26, %v6849_v55  ;;  %v6872_v35 = vpop.permute.xlu1 %6871  ;;  %v6860_v49 = vpack.c.bf16 %v6856_v63, %v6852_v39  ;;  %v6912_v6 = vmul.f32 %v6898_v36, %v6885_v31  ;;  %v6930_v55 = vpack.c.bf16 %v13041_v43, %v13036_v33 }
0x117c   :  { %v6886_v48 = vsel %vm358_vm3, %v13121_v45, %v6872_v35  ;;  %v6884_v42 = vsel %vm358_vm3, %v6872_v35, %v13125_v2  ;;  %v6964_v39 = vrot.slane %v6959_v7, %v8859_v25  ;;  %v6976_v35 = vrot.slane %v6959_v7, %v8870_v30 }
0x117d   :  { %v6916_v24 = vmul.f32 %v6898_v36, %v6886_v48  ;;  %7265 = vmatpush1.bf16.msra.mxu0 %v6857_v14  ;;  %7307 = vmatprep.subr.bf16.mxu1 %v6860_v49  ;;  %v6878_v50 = vpop.permute.xlu0 %6877  ;;  %v6917_v22 = vmul.f32 %v6902_v37, %v6884_v42  ;;  %v7021_v49 = vld [vmem:[#allocation8 + $0x6] ss:$8 sm:$0xf] }
0x117e   :  { %v6881_v23 = vsel %vm358_vm3, %v13123_v53, %v6878_v50  ;;  %v6887_v46 = vsel %vm358_vm3, %v6878_v50, %v13119_v17  ;;  %7308 = vmatpush1.bf16.msra.mxu1 %v6859_v56  ;;  %v6913_v53 = vmul.f32 %v6902_v37, %v6883_v41  ;;  %v7026_v37 = vrot.slane %v7021_v49, %v8859_v25 }
0x117f   :  { %v6880_v19 = vpop.permute.xlu1 %6879  ;;  %v6920_v29 = vpack.c.bf16 %v6916_v24, %v6912_v6  ;;  %v6911_v32 = vmul.f32 %v6894_v62, %v6887_v46  ;;  %v6914_v17 = vmul.f32 %v6906_v60, %v6881_v23  ;;  %v6927_v24 = vpack.c.bf16 %v12955_v58, %v12952_v59  ;;  %v7440_v59 = vld [vmem:[#allocation8 + $0x1] ss:$8 sm:$0xf] }
0x1180   :  { %v6882_v15 = vsel %vm358_vm3, %v13125_v2, %v6880_v19  ;;  %v6888_v44 = vsel %vm358_vm3, %v6880_v19, %v13121_v45  ;;  %v6928_v2 = vpack.c.bf16 %v13031_v28, %v13026_v52  ;;  %v6921_v9 = vpack.c.bf16 %v6917_v22, %v6913_v53 }
0x1181   :  { %v6915_v38 = vmul.f32 %v6894_v62, %v6888_v44  ;;  %v6918_v20 = vmul.f32 %v6906_v60, %v6882_v15  ;;  %7266 = vmatprep.subr.bf16.mxu0 %v6920_v29  ;;  %v6940_v47 = vpop.permute.xlu0 %6939  ;;  %v6929_v46 = vpack.c.bf16 %v12965_v40, %v12960_v13  ;;  %v7030_v19 = vrot.slane %v7021_v49, %v8837_v11 }
0x1182   :  { %v6953_v36 = vsel %vm430_vm4, %v6940_v47, %v13131_v54  ;;  %v6955_v56 = vsel %vm430_vm4, %v13127_v61, %v6940_v47  ;;  %v7034_v47 = vrot.slane %v7021_v49, %v8845_v16 }
0x1183   :  { %v6919_v45 = vpack.c.bf16 %v6915_v38, %v6911_v32  ;;  %v6942_v26 = vpop.permute.xlu1 %6941  ;;  %v6922_v63 = vpack.c.bf16 %v6918_v20, %v6914_v17  ;;  %v6982_v48 = vmul.f32 %v6968_v5, %v6953_v36  ;;  %v6981_v41 = vmul.f32 %v6964_v39, %v6955_v56 }
0x1184   :  { %v6954_v31 = vsel %vm430_vm4, %v6942_v26, %v13133_v4  ;;  %v6956_v14 = vsel %vm430_vm4, %v13129_v27, %v6942_v26 }
0x1185   :  { %v6986_v62 = vmul.f32 %v6968_v5, %v6954_v31  ;;  %7267 = vmatpush1.bf16.msra.mxu0 %v6919_v45  ;;  %7309 = vmatprep.subr.bf16.mxu1 %v6922_v63  ;;  %v6948_v60 = vpop.permute.xlu0 %6947  ;;  %v6985_v50 = vmul.f32 %v6964_v39, %v6956_v14 }
0x1186   :  { %v6951_v6 = vsel %vm430_vm4, %v13131_v54, %v6948_v60  ;;  %v6957_v42 = vsel %vm430_vm4, %v6948_v60, %v13127_v61  ;;  %7268 = vmatprep.subr.bf16.mxu0 %v6928_v2  ;;  %7310 = vmatpush1.bf16.msra.mxu1 %v6921_v9 }
0x1187   :  { %v6950_v7 = vpop.permute.xlu1 %6949  ;;  %7311 = vmatprep.subr.bf16.mxu1 %v6930_v55  ;;  %v6990_v23 = vpack.c.bf16 %v6986_v62, %v6982_v48  ;;  %v6983_v29 = vmul.f32 %v6972_v21, %v6951_v6  ;;  %v6984_v22 = vmul.f32 %v6976_v35, %v6957_v42  ;;  %v6989_v17 = vpack.c.bf16 %v6985_v50, %v6981_v41 }
0x1188   :  { %v6952_v54 = vsel %vm430_vm4, %v13133_v4, %v6950_v7  ;;  %v6958_v61 = vsel %vm430_vm4, %v6950_v7, %v13129_v27  ;;  %v7038_v55 = vrot.slane %v7021_v49, %v8870_v30 }
0x1189   :  { %v6987_v15 = vmul.f32 %v6972_v21, %v6952_v54  ;;  %v6988_v44 = vmul.f32 %v6976_v35, %v6958_v61  ;;  %v7002_v5 = vpop.permute.xlu0 %7001  ;;  %7269 = vmatpush1.bf16.msra.mxu0 %v6927_v24  ;;  %v7083_v21 = vld [vmem:[#allocation8 + $0x7] ss:$8 sm:$0xf] }
0x118a   :  { %v7015_v32 = vsel %vm494_vm5, %v7002_v5, %v13139_v8  ;;  %v7017_v4 = vsel %vm494_vm5, %v13135_v34, %v7002_v5  ;;  %7270 = vmatprep.subr.bf16.mxu0 %v6990_v23  ;;  %7312 = vmatpush1.bf16.msra.mxu1 %v6929_v46  ;;  %v7088_v62 = vrot.slane %v7083_v21, %v8859_v25 }
0x118b   :  { %v6991_v27 = vpack.c.bf16 %v6987_v15, %v6983_v29  ;;  %v7004_v38 = vpop.permute.xlu1 %7003  ;;  %v6992_v20 = vpack.c.bf16 %v6988_v44, %v6984_v22  ;;  %v7043_v53 = vmul.f32 %v7026_v37, %v7017_v4  ;;  %v7044_v45 = vmul.f32 %v7030_v19, %v7015_v32  ;;  %v7145_v44 = vld [vmem:[#allocation8 + $0x20] ss:$8 sm:$0xf] }
0x118c   :  { %v7016_v36 = vsel %vm494_vm5, %v7004_v38, %v13141_v0  ;;  %v7018_v2 = vsel %vm494_vm5, %v13137_v12, %v7004_v38  ;;  %v7096_v41 = vrot.slane %v7083_v21, %v8845_v16  ;;  %v7100_v54 = vrot.slane %v7083_v21, %v8870_v30 }
0x118d   :  { %v7047_v39 = vmul.f32 %v7026_v37, %v7018_v2  ;;  %v7048_v26 = vmul.f32 %v7030_v19, %v7016_v36  ;;  %7313 = vmatprep.subr.bf16.mxu1 %v6992_v20  ;;  %v7010_v63 = vpop.permute.xlu0 %7009  ;;  %7271 = vmatpush1.bf16.msra.mxu0 %v6989_v17 }
0x118e   :  { %v7013_v9 = vsel %vm494_vm5, %v13139_v8, %v7010_v63  ;;  %v7019_v31 = vsel %vm494_vm5, %v7010_v63, %v13135_v34  ;;  %7314 = vmatpush1.bf16.msra.mxu1 %v6991_v27  ;;  %v7092_v8 = vrot.slane %v7083_v21, %v8837_v11  ;;  %v14367_v21 = vld [vmem:[#allocation40_spill] sm:$0xff] }
0x118f   :  { %v7051_v14 = vpack.c.bf16 %v7047_v39, %v7043_v53  ;;  %v7012_v35 = vpop.permute.xlu1 %7011  ;;  %v7052_v56 = vpack.c.bf16 %v7048_v26, %v7044_v45  ;;  %v7045_v60 = vmul.f32 %v7034_v47, %v7013_v9  ;;  %v7046_v6 = vmul.f32 %v7038_v55, %v7019_v31  ;;  %v14366_v39 = vld [vmem:[#allocation47_spill] sm:$0xff] }
0x1190   :  { %v7014_v49 = vsel %vm494_vm5, %v13141_v0, %v7012_v35  ;;  %v7020_v48 = vsel %vm494_vm5, %v7012_v35, %v13137_v12  ;;  %v14368_v31 = vld [vmem:[#allocation39_spill] sm:$0xff]  ;;  %v7158_v35 = vrot.slane %v7145_v44, %v8845_v16 }
0x1191   :  { %v7049_v42 = vmul.f32 %v7034_v47, %v7014_v49  ;;  %v7050_v34 = vmul.f32 %v7038_v55, %v7020_v48  ;;  %v7064_v24 = vpop.permute.xlu0 %7063  ;;  %7272 = vmatprep.subr.bf16.mxu0 %v7052_v56  ;;  %v7150_v47 = vrot.slane %v7145_v44, %v8859_v25  ;;  %v7162_v56 = vrot.slane %v7145_v44, %v8870_v30 }
0x1192   :  { %v7077_v50 = vsel %vm558_vm6, %v7064_v24, %v13147_v1  ;;  %v7079_v0 = vsel %vm558_vm6, %v13143_v57, %v7064_v24  ;;  %7273 = vmatpush1.bf16.msra.mxu0 %v7051_v14 }
0x1193   :  { %v7053_v12 = vpack.c.bf16 %v7049_v42, %v7045_v60  ;;  %v7066_v7 = vpop.permute.xlu1 %7065  ;;  %v7054_v37 = vpack.c.bf16 %v7050_v34, %v7046_v6  ;;  %v7105_v61 = vmul.f32 %v7088_v62, %v7079_v0  ;;  %v7106_v19 = vmul.f32 %v7092_v8, %v7077_v50 }
0x1194   :  { %v7078_v23 = vsel %vm558_vm6, %v7066_v7, %v13149_v3  ;;  %v7080_v46 = vsel %vm558_vm6, %v13145_v18, %v7066_v7 }
0x1195   :  { %v7109_v29 = vmul.f32 %v7088_v62, %v7080_v46  ;;  %v7110_v22 = vmul.f32 %v7092_v8, %v7078_v23  ;;  %7315 = vmatprep.subr.bf16.mxu1 %v7054_v37  ;;  %v7072_v15 = vpop.permute.xlu0 %7071 }
0x1196   :  { %v7075_v5 = vsel %vm558_vm6, %v13147_v1, %v7072_v15  ;;  %v7081_v32 = vsel %vm558_vm6, %v7072_v15, %v13143_v57  ;;  %7316 = vmatpush1.bf16.msra.mxu1 %v7053_v12  ;;  %v7154_v1 = vrot.slane %v7145_v44, %v8837_v11 }
0x1197   :  { %v7113_v4 = vpack.c.bf16 %v7109_v29, %v7105_v61  ;;  %v7074_v17 = vpop.permute.xlu1 %7073  ;;  %v7114_v27 = vpack.c.bf16 %v7110_v22, %v7106_v19  ;;  %v7107_v53 = vmul.f32 %v7096_v41, %v7075_v5  ;;  %v7108_v36 = vmul.f32 %v7100_v54, %v7081_v32  ;;  %v8455_v19 = vld [vmem:[#allocation6 + $0xa0] ss:$8 sps:$4 sm:$0xff]  }
0x1198   :  { %v7076_v38 = vsel %vm558_vm6, %v13149_v3, %v7074_v17  ;;  %v7082_v20 = vsel %vm558_vm6, %v7074_v17, %v13145_v18 }
0x1199   :  { %v7111_v2 = vmul.f32 %v7096_v41, %v7076_v38  ;;  %v7112_v57 = vmul.f32 %v7100_v54, %v7082_v20  ;;  %v7126_v55 = vpop.permute.xlu0 %7125  ;;  %7274 = vmatprep.subr.bf16.mxu0 %v7114_v27  ;;  %v14369_v41 = vld [vmem:[#allocation77_spill] sm:$0xff] }
0x119a   :  { %v7139_v45 = vsel %vm622_vm7, %v7126_v55, %v13155_v51  ;;  %v7141_v3 = vsel %vm622_vm7, %v14366_v39, %v7126_v55  ;;  %7275 = vmatpush1.bf16.msra.mxu0 %v7113_v4 }
0x119b   :  { %v7115_v18 = vpack.c.bf16 %v7111_v2, %v7107_v53  ;;  %v7128_v26 = vpop.permute.xlu1 %7127  ;;  %v7116_v63 = vpack.c.bf16 %v7112_v57, %v7108_v36  ;;  %v7167_v49 = vmul.f32 %v7150_v47, %v7141_v3  ;;  %v7168_v48 = vmul.f32 %v7154_v1, %v7139_v45 }
0x119c   :  { %v7140_v9 = vsel %vm622_vm7, %v7128_v26, %v14367_v21  ;;  %v7142_v14 = vsel %vm622_vm7, %v14368_v31, %v7128_v26 }
0x119d   :  { %v7171_v62 = vmul.f32 %v7150_v47, %v7142_v14  ;;  %v7172_v8 = vmul.f32 %v7154_v1, %v7140_v9  ;;  %7317 = vmatprep.subr.bf16.mxu1 %v7116_v63  ;;  %v7134_v60 = vpop.permute.xlu0 %7133 }
0x119e   :  { %v7137_v6 = vsel %vm622_vm7, %v13155_v51, %v7134_v60  ;;  %v7143_v42 = vsel %vm622_vm7, %v7134_v60, %v14366_v39  ;;  %7318 = vmatpush1.bf16.msra.mxu1 %v7115_v18  ;;  %v8460_v18 = vld [vmem:[#allocation6 + $0xb4] ss:$8 sps:$4 sm:$0xff]  }
0x119f   :  { %v7175_v34 = vpack.c.bf16 %v7171_v62, %v7167_v49  ;;  %v7136_v24 = vpop.permute.xlu1 %7135  ;;  %v7176_v50 = vpack.c.bf16 %v7172_v8, %v7168_v48  ;;  %v7169_v7 = vmul.f32 %v7158_v35, %v7137_v6  ;;  %v7170_v37 = vmul.f32 %v7162_v56, %v7143_v42 }
0x11a0   :  { %v7138_v0 = vsel %vm622_vm7, %v14367_v21, %v7136_v24  ;;  %v7144_v12 = vsel %vm622_vm7, %v7136_v24, %v14368_v31 }
0x11a1   :  { %v7173_v23 = vmul.f32 %v7158_v35, %v7138_v0  ;;  %v7174_v51 = vmul.f32 %v7162_v56, %v7144_v12  ;;  %7276 = vmatprep.subr.bf16.mxu0 %v7176_v50 }
0x11a2   :  { %7277 = vmatpush1.bf16.msra.mxu0 %v7175_v34 }
0x11a3   :  { %v7177_v46 = vpack.c.bf16 %v7173_v23, %v7169_v7  ;;  %8381 = vmatprep.subr.msk.bf16.mxu0 %vm9269_vm10, %v14369_v41  ;;  %v7178_v61 = vpack.c.bf16 %v7174_v51, %v7170_v37 }
0x11a5   :  { %7319 = vmatprep.subr.bf16.mxu1 %v7178_v61 }
0x11a6   :  { %8384 = vmatpush1.bf16.msk.msra.mxu0 %vm9269_vm10, %v14369_v41  ;;  %7320 = vmatpush1.bf16.msra.mxu1 %v7177_v46 }
0x11a7   :  { %8387 = vmatprep.subr.msk.bf16.mxu1 %vm9269_vm10, %v14369_v41 }
0x11a9   :  { %7293 = vmatmul.mubr.bf16.vlgmr.msra.gmra.mrb[40].mxu0 %v8455_v19 }
0x11aa   :  { %8390 = vmatpush1.bf16.msk.msra.mxu1 %vm9269_vm10, %v14369_v41  ;;  %7967 = vmatprep.mubr.bf16.mxu0 %v8460_v18 }
0x11ad   :  { %7336 = vmatmul.mubr.bf16.vlgmr.msra.gmra.mrb[40].mxu1 %v8455_v19 }
0x11ae   :  { %8010 = vmatprep.mubr.bf16.mxu1 %v8460_v18 }
0x127c   :  { %v7294_v29 = vpop.f32.mrb[40].mxu0 }
0x127d   :  { %v13395_v22 = vmax.f32 %v7294_v29, 0.0  ;;  %v7296_v15 = vpop.f32.mrb[41].mxu0 }
0x127e   :  { %v7298_v44 = vpop.f32.mrb[42].mxu0  ;;  %v13469_v36 = vmax.f32 %v7296_v15, 0.0  ;;  %v7378_v15 = vld [vmem:[#allocation8] ss:$8 sm:$0xf] }
0x127f   :  { %v13397_v5 = vmax.f32 %v7298_v44, 0.0  ;;  %7354 = vrot.lane.b32.xlu0 %v13395_v22, %s8619_s6  ;;  %v7300_v32 = vpop.f32.mrb[43].mxu0  ;;  %v7383_v43 = vrot.slane %v7378_v15, %v8859_v25  ;;  %v7395_v33 = vrot.slane %v7378_v15, %v8870_v30 }
0x1280   :  { %v7337_v4 = vpop.f32.mrb[40].mxu1  ;;  %v13473_v2 = vmax.f32 %v7300_v32, 0.0  ;;  %v7387_v32 = vrot.slane %v7378_v15, %v8837_v11 }
0x1281   :  { %v13401_v17 = vmax.f32 %v7337_v4, 0.0  ;;  %v7339_v27 = vpop.f32.mrb[41].mxu1  ;;  %7356 = vrot.lane.b32.xlu1 %v13397_v5, %s8619_s6  ;;  %v7391_v4 = vrot.slane %v7378_v15, %v8845_v16 }
0x1282   :  { %v7341_v20 = vpop.f32.mrb[42].mxu1  ;;  %v13477_v57 = vmax.f32 %v7339_v27, 0.0 }
0x1283   :  { %v13407_v47 = vmax.f32 %v7341_v20, 0.0  ;;  %v7343_v1 = vpop.f32.mrb[43].mxu1  ;;  %7362 = vrot.lane.b32.xlu0 %v13401_v17, %s8619_s6 }
0x1284   :  { %v13481_v55 = vmax.f32 %v7343_v1, 0.0 }
0x1285   :  { %7364 = vrot.lane.b32.xlu1 %v13407_v47, %s8619_s6 }
0x1287   :  { %7416 = vrot.lane.b32.xlu0 %v13395_v22, %s8620_s2 }
0x1289   :  { %7418 = vrot.lane.b32.xlu1 %v13397_v5, %s8620_s2 }
0x128b   :  { %7424 = vrot.lane.b32.xlu0 %v13401_v17, %s8620_s2 }
0x128d   :  { %7426 = vrot.lane.b32.xlu1 %v13407_v47, %s8620_s2 }
0x128f   :  { %7478 = vrot.lane.b32.xlu0 %v13395_v22, %s8621_s7 }
0x1291   :  { %7480 = vrot.lane.b32.xlu1 %v13397_v5, %s8621_s7 }
0x1293   :  { %7486 = vrot.lane.b32.xlu0 %v13401_v17, %s8621_s7 }
0x1295   :  { %7488 = vrot.lane.b32.xlu1 %v13407_v47, %s8621_s7 }
0x1297   :  { %7540 = vrot.lane.b32.xlu0 %v13395_v22, %s8622_s8 }
0x1299   :  { %7542 = vrot.lane.b32.xlu1 %v13397_v5, %s8622_s8 }
0x129b   :  { %7548 = vrot.lane.b32.xlu0 %v13401_v17, %s8622_s8 }
0x129d   :  { %7550 = vrot.lane.b32.xlu1 %v13407_v47, %s8622_s8 }
0x129f   :  { %7610 = vrot.lane.b32.xlu0 %v13395_v22, %s8623_s9 }
0x12a1   :  { %7612 = vrot.lane.b32.xlu1 %v13397_v5, %s8623_s9 }
0x12a3   :  { %7618 = vrot.lane.b32.xlu0 %v13401_v17, %s8623_s9 }
0x12a5   :  { %7620 = vrot.lane.b32.xlu1 %v13407_v47, %s8623_s9 }
0x12a7   :  { %7672 = vrot.lane.b32.xlu0 %v13395_v22, %s8624_s10 }
0x12a9   :  { %7674 = vrot.lane.b32.xlu1 %v13397_v5, %s8624_s10 }
0x12ab   :  { %7680 = vrot.lane.b32.xlu0 %v13401_v17, %s8624_s10 }
0x12ad   :  { %7682 = vrot.lane.b32.xlu1 %v13407_v47, %s8624_s10 }
0x12af   :  { %7734 = vrot.lane.b32.xlu0 %v13395_v22, %s8625_s11 }
0x12b1   :  { %7736 = vrot.lane.b32.xlu1 %v13397_v5, %s8625_s11 }
0x12b3   :  { %7742 = vrot.lane.b32.xlu0 %v13401_v17, %s8625_s11 }
0x12b5   :  { %7744 = vrot.lane.b32.xlu1 %v13407_v47, %s8625_s11 }
0x12b7   :  { %7796 = vrot.lane.b32.xlu0 %v13395_v22, %s8626_s12 }
0x12b9   :  { %7798 = vrot.lane.b32.xlu1 %v13397_v5, %s8626_s12 }
0x12bb   :  { %7804 = vrot.lane.b32.xlu0 %v13401_v17, %s8626_s12 }
0x12bd   :  { %7806 = vrot.lane.b32.xlu1 %v13407_v47, %s8626_s12 }
0x12bf   :  { %7358 = vrot.lane.b32.xlu0 %v13469_v36, %s8619_s6 }
0x12c1   :  { %7360 = vrot.lane.b32.xlu1 %v13473_v2, %s8619_s6 }
0x12c3   :  { %7366 = vrot.lane.b32.xlu0 %v13477_v57, %s8619_s6 }
0x12c5   :  { %7368 = vrot.lane.b32.xlu1 %v13481_v55, %s8619_s6 }
0x12c7   :  { %7420 = vrot.lane.b32.xlu0 %v13469_v36, %s8620_s2 }
0x12c9   :  { %7422 = vrot.lane.b32.xlu1 %v13473_v2, %s8620_s2 }
0x12cb   :  { %7428 = vrot.lane.b32.xlu0 %v13477_v57, %s8620_s2 }
0x12cd   :  { %7430 = vrot.lane.b32.xlu1 %v13481_v55, %s8620_s2 }
0x12cf   :  { %7482 = vrot.lane.b32.xlu0 %v13469_v36, %s8621_s7 }
0x12d1   :  { %7484 = vrot.lane.b32.xlu1 %v13473_v2, %s8621_s7 }
0x12d3   :  { %7490 = vrot.lane.b32.xlu0 %v13477_v57, %s8621_s7 }
0x12d5   :  { %7492 = vrot.lane.b32.xlu1 %v13481_v55, %s8621_s7 }
0x12d7   :  { %7544 = vrot.lane.b32.xlu0 %v13469_v36, %s8622_s8 }
0x12d9   :  { %7546 = vrot.lane.b32.xlu1 %v13473_v2, %s8622_s8 }
0x12db   :  { %7552 = vrot.lane.b32.xlu0 %v13477_v57, %s8622_s8 }
0x12dd   :  { %7554 = vrot.lane.b32.xlu1 %v13481_v55, %s8622_s8 }
0x12df   :  { %7614 = vrot.lane.b32.xlu0 %v13469_v36, %s8623_s9 }
0x12e1   :  { %7616 = vrot.lane.b32.xlu1 %v13473_v2, %s8623_s9 }
0x12e3   :  { %7622 = vrot.lane.b32.xlu0 %v13477_v57, %s8623_s9 }
0x12e5   :  { %7624 = vrot.lane.b32.xlu1 %v13481_v55, %s8623_s9 }
0x12e7   :  { %7676 = vrot.lane.b32.xlu0 %v13469_v36, %s8624_s10 }
0x12e9   :  { %7678 = vrot.lane.b32.xlu1 %v13473_v2, %s8624_s10 }
0x12eb   :  { %7684 = vrot.lane.b32.xlu0 %v13477_v57, %s8624_s10 }
0x12ed   :  { %7686 = vrot.lane.b32.xlu1 %v13481_v55, %s8624_s10 }
0x12ef   :  { %7738 = vrot.lane.b32.xlu0 %v13469_v36, %s8625_s11 }
0x12f1   :  { %v7355_v45 = vpop.permute.xlu0 %7354  ;;  %7740 = vrot.lane.b32.xlu1 %v13473_v2, %s8625_s11 }
0x12f3   :  { %7746 = vrot.lane.b32.xlu0 %v13477_v57, %s8625_s11  ;;  %v13533_v39 = vpop.permute.xlu1 %7356 }
0x12f5   :  { %v7363_v3 = vpop.permute.xlu0 %7362  ;;  %7748 = vrot.lane.b32.xlu1 %v13481_v55, %s8625_s11 }
0x12f7   :  { %7800 = vrot.lane.b32.xlu0 %v13469_v36, %s8626_s12  ;;  %v7365_v26 = vpop.permute.xlu1 %7364 }
0x12f9   :  { %v13539_v63 = vpop.permute.xlu0 %7416  ;;  %7802 = vrot.lane.b32.xlu1 %v13473_v2, %s8626_s12 }
0x12fb   :  { %7808 = vrot.lane.b32.xlu0 %v13477_v57, %s8626_s12  ;;  %v13545_v21 = vpop.permute.xlu1 %7418 }
0x12fd   :  { %v13547_v9 = vpop.permute.xlu0 %7424  ;;  %7810 = vrot.lane.b32.xlu1 %v13481_v55, %s8626_s12 }
0x12ff   :  { %v13551_v31 = vpop.permute.xlu1 %7426 }
0x1301   :  { %v13553_v14 = vpop.permute.xlu0 %7478 }
0x1303   :  { %v13555_v35 = vpop.permute.xlu1 %7480 }
0x1305   :  { %v13557_v56 = vpop.permute.xlu0 %7486 }
0x1307   :  { %v13559_v49 = vpop.permute.xlu1 %7488 }
0x1309   :  { %v13561_v48 = vpop.permute.xlu0 %7540 }
0x130b   :  { %v13563_v62 = vpop.permute.xlu1 %7542 }
0x130d   :  { %v13565_v8 = vpop.permute.xlu0 %7548 }
0x130f   :  { %v13567_v60 = vpop.permute.xlu1 %7550 }
0x1311   :  { %v13569_v6 = vpop.permute.xlu0 %7610 }
0x1313   :  { %v13571_v42 = vpop.permute.xlu1 %7612 }
0x1315   :  { %v13573_v34 = vpop.permute.xlu0 %7618 }
0x1317   :  { %v13575_v24 = vpop.permute.xlu1 %7620 }
0x1319   :  { %v13577_v50 = vpop.permute.xlu0 %7672 }
0x131b   :  { %v13579_v0 = vpop.permute.xlu1 %7674 }
0x131d   :  { %v13581_v12 = vpop.permute.xlu0 %7680 }
0x131f   :  { %v13583_v7 = vpop.permute.xlu1 %7682 }
0x1321   :  { %v13585_v37 = vpop.permute.xlu0 %7734 }
0x1323   :  { %v13587_v23 = vpop.permute.xlu1 %7736 }
0x1325   :  { %v13589_v51 = vpop.permute.xlu0 %7742 }
0x1327   :  { %v13591_v46 = vpop.permute.xlu1 %7744 }
0x1329   :  { %v13593_v61 = vpop.permute.xlu0 %7796 }
0x132b   :  { %v13595_v19 = vpop.permute.xlu1 %7798 }
0x132c   :  { %14371 = vst [vmem:[#allocation51_spill] sm:$0xff] %v13595_v19 }
0x132d   :  { %v13597_v29 = vpop.permute.xlu0 %7804 }
0x132f   :  { %v13599_v44 = vpop.permute.xlu1 %7806 }
0x1330   :  { %14372 = vst [vmem:[#allocation52_spill] sm:$0xff] %v13599_v44 }
0x1331   :  { %v7359_v27 = vpop.permute.xlu0 %7358 }
0x1332   :  { %v7372_v20 = vsel %vm167_vm0, %v7359_v27, %v7363_v3  ;;  %v7374_v1 = vsel %vm167_vm0, %v7355_v45, %v7359_v27 }
0x1333   :  { %v7361_v18 = vpop.permute.xlu1 %7360  ;;  %v7401_v40 = vmul.f32 %v7387_v32, %v7374_v1  ;;  %v7402_v13 = vmul.f32 %v7391_v4, %v7372_v20 }
0x1334   :  { %v7373_v53 = vsel %vm167_vm0, %v7361_v18, %v7365_v26  ;;  %v7375_v38 = vsel %vm167_vm0, %v13533_v39, %v7361_v18 }
0x1335   :  { %v7405_v28 = vmul.f32 %v7387_v32, %v7375_v38  ;;  %v7406_v52 = vmul.f32 %v7391_v4, %v7373_v53  ;;  %v7367_v58 = vpop.permute.xlu0 %7366  ;;  %v7449_v38 = vrot.slane %v7440_v59, %v8837_v11  ;;  %v7453_v53 = vrot.slane %v7440_v59, %v8845_v16 }
0x1336   :  { %v7370_v27 = vsel %vm167_vm0, %v7363_v3, %v7367_v58  ;;  %v7376_v54 = vsel %vm167_vm0, %v7367_v58, %v7355_v45 }
0x1337   :  { %v7410_v41 = vpack.c.bf16 %v7406_v52, %v7402_v13  ;;  %v7369_v19 = vpop.permute.xlu1 %7368  ;;  %v7409_v44 = vpack.c.bf16 %v7405_v28, %v7401_v40  ;;  %v7400_v32 = vmul.f32 %v7383_v43, %v7376_v54  ;;  %v7403_v4 = vmul.f32 %v7395_v33, %v7370_v27 }
0x1338   :  { %v7371_v18 = vsel %vm167_vm0, %v7365_v26, %v7369_v19  ;;  %v7377_v15 = vsel %vm167_vm0, %v7369_v19, %v13533_v39  ;;  %v7445_v28 = vrot.slane %v7440_v59, %v8859_v25  ;;  %v7457_v54 = vrot.slane %v7440_v59, %v8870_v30 }
0x1339   :  { %v7404_v3 = vmul.f32 %v7383_v43, %v7377_v15  ;;  %v7407_v20 = vmul.f32 %v7395_v33, %v7371_v18  ;;  %v7421_v1 = vpop.permute.xlu0 %7420  ;;  %7935 = vmatprep.subr.bf16.mxu0 %v7409_v44  ;;  %v7502_v18 = vld [vmem:[#allocation8 + $0x2] ss:$8 sm:$0xf] }
0x133a   :  { %v7434_v58 = vsel %vm230_vm1, %v7421_v1, %v13547_v9  ;;  %v7436_v13 = vsel %vm230_vm1, %v13539_v63, %v7421_v1 }
0x133b   :  { %v7408_v40 = vpack.c.bf16 %v7404_v3, %v7400_v32  ;;  %v7423_v52 = vpop.permute.xlu1 %7422  ;;  %v7411_v45 = vpack.c.bf16 %v7407_v20, %v7403_v4  ;;  %v7463_v39 = vmul.f32 %v7449_v38, %v7436_v13  ;;  %v7464_v26 = vmul.f32 %v7453_v53, %v7434_v58 }
0x133c   :  { %v7435_v33 = vsel %vm230_vm1, %v7423_v52, %v13551_v31  ;;  %v7437_v43 = vsel %vm230_vm1, %v13545_v21, %v7423_v52 }
0x133d   :  { %v7467_v19 = vmul.f32 %v7449_v38, %v7437_v43  ;;  %v7468_v44 = vmul.f32 %v7453_v53, %v7435_v33  ;;  %v7429_v27 = vpop.permute.xlu0 %7428  ;;  %7936 = vmatpush1.bf16.msra.mxu0 %v7408_v40  ;;  %7978 = vmatprep.subr.bf16.mxu1 %v7411_v45  ;;  %v7511_v53 = vrot.slane %v7502_v18, %v8837_v11 }
0x133e   :  { %v7432_v15 = vsel %vm230_vm1, %v13547_v9, %v7429_v27  ;;  %v7438_v32 = vsel %vm230_vm1, %v7429_v27, %v13539_v63  ;;  %7979 = vmatpush1.bf16.msra.mxu1 %v7410_v41  ;;  %v7515_v9 = vrot.slane %v7502_v18, %v8845_v16  ;;  %v7507_v45 = vrot.slane %v7502_v18, %v8859_v25 }
0x133f   :  { %v7472_v4 = vpack.c.bf16 %v7468_v44, %v7464_v26  ;;  %v7431_v3 = vpop.permute.xlu1 %7430  ;;  %v7471_v20 = vpack.c.bf16 %v7467_v19, %v7463_v39  ;;  %v7462_v1 = vmul.f32 %v7445_v28, %v7438_v32  ;;  %v7465_v58 = vmul.f32 %v7457_v54, %v7432_v15  ;;  %v7564_v15 = vld [vmem:[#allocation8 + $0x3] ss:$8 sm:$0xf] }
0x1340   :  { %v7433_v59 = vsel %vm230_vm1, %v13551_v31, %v7431_v3  ;;  %v7439_v38 = vsel %vm230_vm1, %v7431_v3, %v13545_v21 }
0x1341   :  { %v7466_v13 = vmul.f32 %v7445_v28, %v7439_v38  ;;  %v7469_v63 = vmul.f32 %v7457_v54, %v7433_v59  ;;  %v7483_v41 = vpop.permute.xlu0 %7482  ;;  %7937 = vmatprep.subr.bf16.mxu0 %v7471_v20  ;;  %v7519_v54 = vrot.slane %v7502_v18, %v8870_v30 }
0x1342   :  { %v7496_v40 = vsel %vm294_vm2, %v7483_v41, %v13557_v56  ;;  %v7498_v31 = vsel %vm294_vm2, %v13553_v14, %v7483_v41 }
0x1343   :  { %v7470_v52 = vpack.c.bf16 %v7466_v13, %v7462_v1  ;;  %v7485_v21 = vpop.permute.xlu1 %7484  ;;  %v7473_v39 = vpack.c.bf16 %v7469_v63, %v7465_v58  ;;  %v7525_v33 = vmul.f32 %v7511_v53, %v7498_v31  ;;  %v7526_v26 = vmul.f32 %v7515_v9, %v7496_v40 }
0x1344   :  { %v7497_v28 = vsel %vm294_vm2, %v7485_v21, %v13559_v49  ;;  %v7499_v43 = vsel %vm294_vm2, %v13555_v35, %v7485_v21  ;;  %v7569_v40 = vrot.slane %v7564_v15, %v8859_v25 }
0x1345   :  { %v7529_v19 = vmul.f32 %v7511_v53, %v7499_v43  ;;  %v7530_v44 = vmul.f32 %v7515_v9, %v7497_v28  ;;  %v7491_v27 = vpop.permute.xlu0 %7490  ;;  %7938 = vmatpush1.bf16.msra.mxu0 %v7470_v52  ;;  %7980 = vmatprep.subr.bf16.mxu1 %v7473_v39  ;;  %v7573_v9 = vrot.slane %v7564_v15, %v8837_v11 }
0x1346   :  { %v7494_v32 = vsel %vm294_vm2, %v13557_v56, %v7491_v27  ;;  %v7500_v3 = vsel %vm294_vm2, %v7491_v27, %v13553_v14  ;;  %7981 = vmatpush1.bf16.msra.mxu1 %v7472_v4  ;;  %v7577_v56 = vrot.slane %v7564_v15, %v8845_v16  ;;  %v7581_v39 = vrot.slane %v7564_v15, %v8870_v30 }
0x1347   :  { %v7534_v20 = vpack.c.bf16 %v7530_v44, %v7526_v26  ;;  %v7493_v59 = vpop.permute.xlu1 %7492  ;;  %v7533_v38 = vpack.c.bf16 %v7529_v19, %v7525_v33  ;;  %v7524_v1 = vmul.f32 %v7507_v45, %v7500_v3  ;;  %v7527_v58 = vmul.f32 %v7519_v54, %v7494_v32  ;;  %v7634_v26 = vld [vmem:[#allocation8 + $0x5] ss:$8 sm:$0xf] }
0x1348   :  { %v7495_v18 = vsel %vm294_vm2, %v13559_v49, %v7493_v59  ;;  %v7501_v53 = vsel %vm294_vm2, %v7493_v59, %v13555_v35 }
0x1349   :  { %v7528_v13 = vmul.f32 %v7507_v45, %v7501_v53  ;;  %v7531_v14 = vmul.f32 %v7519_v54, %v7495_v18  ;;  %v7545_v4 = vpop.permute.xlu0 %7544  ;;  %7939 = vmatprep.subr.bf16.mxu0 %v7533_v38  ;;  %v7643_v38 = vrot.slane %v7634_v26, %v8837_v11 }
0x134a   :  { %v7558_v63 = vsel %vm358_vm3, %v7545_v4, %v13565_v8  ;;  %v7560_v49 = vsel %vm358_vm3, %v13561_v48, %v7545_v4 }
0x134b   :  { %v7532_v41 = vpack.c.bf16 %v7528_v13, %v7524_v1  ;;  %v7547_v35 = vpop.permute.xlu1 %7546  ;;  %v7535_v31 = vpack.c.bf16 %v7531_v14, %v7527_v58  ;;  %v7587_v52 = vmul.f32 %v7573_v9, %v7560_v49  ;;  %v7588_v33 = vmul.f32 %v7577_v56, %v7558_v63 }
0x134c   :  { %v7559_v21 = vsel %vm358_vm3, %v7547_v35, %v13567_v60  ;;  %v7561_v45 = vsel %vm358_vm3, %v13563_v62, %v7547_v35  ;;  %v7639_v1 = vrot.slane %v7634_v26, %v8859_v25  ;;  %v7605_v13 = vpack.c.bf16 %v13481_v55, %v13477_v57 }
0x134d   :  { %v7591_v28 = vmul.f32 %v7573_v9, %v7561_v45  ;;  %v7592_v43 = vmul.f32 %v7577_v56, %v7559_v21  ;;  %v7553_v54 = vpop.permute.xlu0 %7552  ;;  %7940 = vmatpush1.bf16.msra.mxu0 %v7532_v41  ;;  %7982 = vmatprep.subr.bf16.mxu1 %v7535_v31  ;;  %v7647_v63 = vrot.slane %v7634_v26, %v8845_v16 }
0x134e   :  { %v7556_v19 = vsel %vm358_vm3, %v13565_v8, %v7553_v54  ;;  %v7562_v44 = vsel %vm358_vm3, %v7553_v54, %v13561_v48  ;;  %7983 = vmatpush1.bf16.msra.mxu1 %v7534_v20  ;;  %v7603_v20 = vpack.c.bf16 %v13473_v2, %v13469_v36  ;;  %v7651_v36 = vrot.slane %v7634_v26, %v8870_v30  ;;  %v7696_v2 = vld [vmem:[#allocation8 + $0x6] ss:$8 sm:$0xf] }
0x134f   :  { %v7596_v27 = vpack.c.bf16 %v7592_v43, %v7588_v33  ;;  %v7555_v32 = vpop.permute.xlu1 %7554  ;;  %v7595_v3 = vpack.c.bf16 %v7591_v28, %v7587_v52  ;;  %v7586_v18 = vmul.f32 %v7569_v40, %v7562_v44  ;;  %v7589_v8 = vmul.f32 %v7581_v39, %v7556_v19 }
0x1350   :  { %v7557_v15 = vsel %vm358_vm3, %v13567_v60, %v7555_v32  ;;  %v7563_v59 = vsel %vm358_vm3, %v7555_v32, %v13563_v62  ;;  %v7701_v21 = vrot.slane %v7696_v2, %v8859_v25  ;;  %v7705_v28 = vrot.slane %v7696_v2, %v8837_v11 }
0x1351   :  { %v7590_v53 = vmul.f32 %v7569_v40, %v7563_v59  ;;  %v7593_v9 = vmul.f32 %v7581_v39, %v7557_v15  ;;  %v7615_v56 = vpop.permute.xlu0 %7614  ;;  %7941 = vmatprep.subr.bf16.mxu0 %v7595_v3  ;;  %v14373_v44 = vpack.c.bf16 %v13397_v5, %v13395_v22  ;;  %v7709_v59 = vrot.slane %v7696_v2, %v8845_v16 }
0x1352   :  { %v7628_v48 = vsel %vm430_vm4, %v7615_v56, %v13573_v34  ;;  %v7630_v49 = vsel %vm430_vm4, %v13569_v6, %v7615_v56  ;;  %v7758_v56 = vld [vmem:[#allocation8 + $0x7] ss:$8 sm:$0xf] }
0x1353   :  { %v7594_v60 = vpack.c.bf16 %v7590_v53, %v7586_v18  ;;  %v7617_v58 = vpop.permute.xlu1 %7616  ;;  %v7597_v62 = vpack.c.bf16 %v7593_v9, %v7589_v8  ;;  %v7657_v41 = vmul.f32 %v7643_v38, %v7628_v48  ;;  %v7656_v39 = vmul.f32 %v7639_v1, %v7630_v49 }
0x1354   :  { %v7629_v14 = vsel %vm430_vm4, %v7617_v58, %v13575_v24  ;;  %v7631_v4 = vsel %vm430_vm4, %v13571_v42, %v7617_v58  ;;  %v7713_v8 = vrot.slane %v7696_v2, %v8870_v30 }
0x1355   :  { %v7661_v35 = vmul.f32 %v7643_v38, %v7629_v14  ;;  %v7623_v57 = vpop.permute.xlu0 %7622  ;;  %7942 = vmatpush1.bf16.msra.mxu0 %v7594_v60  ;;  %7984 = vmatprep.subr.bf16.mxu1 %v7597_v62  ;;  %v7660_v31 = vmul.f32 %v7639_v1, %v7631_v4  ;;  %v7763_v14 = vrot.slane %v7758_v56, %v8859_v25 }
0x1356   :  { %v7626_v55 = vsel %vm430_vm4, %v13573_v34, %v7623_v57  ;;  %v7632_v40 = vsel %vm430_vm4, %v7623_v57, %v13569_v6  ;;  %7943 = vmatprep.subr.bf16.mxu0 %v7603_v20  ;;  %7985 = vmatpush1.bf16.msra.mxu1 %v7596_v27 }
0x1357   :  { %7986 = vmatprep.subr.bf16.mxu1 %v7605_v13  ;;  %v7625_v52 = vpop.permute.xlu1 %7624  ;;  %v7665_v45 = vpack.c.bf16 %v7661_v35, %v7657_v41  ;;  %v7658_v6 = vmul.f32 %v7647_v63, %v7626_v55  ;;  %v7659_v43 = vmul.f32 %v7651_v36, %v7632_v40  ;;  %v7664_v32 = vpack.c.bf16 %v7660_v31, %v7656_v39 }
0x1358   :  { %v7627_v33 = vsel %vm430_vm4, %v13575_v24, %v7625_v52  ;;  %v7633_v34 = vsel %vm430_vm4, %v7625_v52, %v13571_v42  ;;  %v14374_v42 = vpack.c.bf16 %v13407_v47, %v13401_v17  ;;  %v7771_v40 = vrot.slane %v7758_v56, %v8845_v16 }
0x1359   :  { %v7662_v54 = vmul.f32 %v7647_v63, %v7627_v33  ;;  %v7663_v26 = vmul.f32 %v7651_v36, %v7633_v34  ;;  %v7677_v19 = vpop.permute.xlu0 %7676  ;;  %7944 = vmatpush1.bf16.msra.mxu0 %v14373_v44  ;;  %v7775_v31 = vrot.slane %v7758_v56, %v8870_v30  ;;  %v7820_v34 = vld [vmem:[#allocation8 + $0x20] ss:$8 sm:$0xf] }
0x135a   :  { %v7690_v27 = vsel %vm494_vm5, %v7677_v19, %v13581_v12  ;;  %v7692_v24 = vsel %vm494_vm5, %v13577_v50, %v7677_v19  ;;  %7945 = vmatprep.subr.bf16.mxu0 %v7665_v45  ;;  %7987 = vmatpush1.bf16.msra.mxu1 %v14374_v42 }
0x135b   :  { %v7666_v3 = vpack.c.bf16 %v7662_v54, %v7658_v6  ;;  %v7679_v15 = vpop.permute.xlu1 %7678  ;;  %v7667_v22 = vpack.c.bf16 %v7663_v26, %v7659_v43  ;;  %v7718_v5 = vmul.f32 %v7701_v21, %v7692_v24  ;;  %v7719_v53 = vmul.f32 %v7705_v28, %v7690_v27 }
0x135c   :  { %v7691_v38 = vsel %vm494_vm5, %v7679_v15, %v13583_v7  ;;  %v7693_v18 = vsel %vm494_vm5, %v13579_v0, %v7679_v15  ;;  %v7825_v27 = vrot.slane %v7820_v34, %v8859_v25 }
0x135d   :  { %v7722_v17 = vmul.f32 %v7701_v21, %v7693_v18  ;;  %v7723_v47 = vmul.f32 %v7705_v28, %v7691_v38  ;;  %v7685_v9 = vpop.permute.xlu0 %7684  ;;  %7946 = vmatpush1.bf16.msra.mxu0 %v7664_v32  ;;  %7988 = vmatprep.subr.bf16.mxu1 %v7667_v22  ;;  %v14375_v22 = vld [vmem:[#allocation52_spill] sm:$0xff]  ;;  %v7833_v18 = vrot.slane %v7820_v34, %v8845_v16 }
0x135e   :  { %v7688_v48 = vsel %vm494_vm5, %v13581_v12, %v7685_v9  ;;  %v7694_v20 = vsel %vm494_vm5, %v7685_v9, %v13577_v50  ;;  %7989 = vmatpush1.bf16.msra.mxu1 %v7666_v3  ;;  %v7767_v12 = vrot.slane %v7758_v56, %v8837_v11 }
0x135f   :  { %v7726_v60 = vpack.c.bf16 %v7722_v17, %v7718_v5  ;;  %v7687_v1 = vpop.permute.xlu1 %7686  ;;  %v7727_v58 = vpack.c.bf16 %v7723_v47, %v7719_v53  ;;  %v7720_v4 = vmul.f32 %v7709_v59, %v7688_v48  ;;  %v7721_v63 = vmul.f32 %v7713_v8, %v7694_v20  ;;  %v14376_v5 = vld [vmem:[#allocation51_spill] sm:$0xff] }
0x1360   :  { %v7689_v62 = vsel %vm494_vm5, %v13583_v7, %v7687_v1  ;;  %v7695_v13 = vsel %vm494_vm5, %v7687_v1, %v13579_v0 }
0x1361   :  { %v7724_v36 = vmul.f32 %v7709_v59, %v7689_v62  ;;  %v7725_v50 = vmul.f32 %v7713_v8, %v7695_v13  ;;  %v7739_v2 = vpop.permute.xlu0 %7738  ;;  %7947 = vmatprep.subr.bf16.mxu0 %v7727_v58  ;;  %v7837_v8 = vrot.slane %v7820_v34, %v8870_v30 }
0x1362   :  { %v7752_v49 = vsel %vm558_vm6, %v7739_v2, %v13589_v51  ;;  %v7754_v7 = vsel %vm558_vm6, %v13585_v37, %v7739_v2  ;;  %7948 = vmatpush1.bf16.msra.mxu0 %v7726_v60  ;;  %v8028_v2 = vld [vmem:[%s13893_s4 + $0x8] sm:$0xff] }
0x1363   :  { %v7728_v0 = vpack.c.bf16 %v7724_v36, %v7720_v4  ;;  %v7741_v41 = vpop.permute.xlu1 %7740  ;;  %v7729_v35 = vpack.c.bf16 %v7725_v50, %v7721_v63  ;;  %v7780_v52 = vmul.f32 %v7763_v14, %v7754_v7  ;;  %v7781_v21 = vmul.f32 %v7767_v12, %v7752_v49  ;;  %v8458_v36 = vld [vmem:[#allocation6 + $0xb0] ss:$8 sps:$4 sm:$0xff]   ;;  %v8027_v50 = vld [vmem:[%s13893_s4] sm:$0xff]  ;;  %8036 = vperm.xlu1 %8424, %v8028_v2  }
0x1364   :  { %v7753_v57 = vsel %vm558_vm6, %v7741_v41, %v13591_v46  ;;  %v7755_v55 = vsel %vm558_vm6, %v13587_v23, %v7741_v41  ;;  %8031 = vperm.xlu0 %8423, %v8027_v50   ;;  %v14379_v41 = vld [vmem:[#allocation36_spill] sm:$0xff] }
0x1365   :  { %v7784_v45 = vmul.f32 %v7763_v14, %v7755_v55  ;;  %v7785_v39 = vmul.f32 %v7767_v12, %v7753_v57  ;;  %v7747_v33 = vpop.permute.xlu0 %7746  ;;  %7990 = vmatprep.subr.bf16.mxu1 %v7729_v35  ;;  %v14380_v57 = vld [vmem:[#allocation41_spill] sm:$0xff] }
0x1366   :  { %v7750_v28 = vsel %vm558_vm6, %v13589_v51, %v7747_v33  ;;  %v7756_v6 = vsel %vm558_vm6, %v7747_v33, %v13585_v37  ;;  %7991 = vmatpush1.bf16.msra.mxu1 %v7728_v0  ;;  %v7829_v51 = vrot.slane %v7820_v34, %v8837_v11 }
0x1367   :  { %v7788_v43 = vpack.c.bf16 %v7784_v45, %v7780_v52  ;;  %v7749_v54 = vpop.permute.xlu1 %7748  ;;  %v7789_v26 = vpack.c.bf16 %v7785_v39, %v7781_v21  ;;  %v7782_v24 = vmul.f32 %v7771_v40, %v7750_v28  ;;  %v7783_v42 = vmul.f32 %v7775_v31, %v7756_v6  ;;  %v14382_v21 = vld [vmem:[#allocation42_spill] sm:$0xff] }
0x1368   :  { %v7751_v19 = vsel %vm558_vm6, %v13591_v46, %v7749_v54  ;;  %v7757_v44 = vsel %vm558_vm6, %v7749_v54, %v13587_v23 }
0x1369   :  { %v7786_v32 = vmul.f32 %v7771_v40, %v7751_v19  ;;  %v7787_v37 = vmul.f32 %v7775_v31, %v7757_v44  ;;  %v7801_v3 = vpop.permute.xlu0 %7800  ;;  %7949 = vmatprep.subr.bf16.mxu0 %v7789_v26  ;;  %v14381_v31 = vld [vmem:[#allocation32_spill] sm:$0xff]  ;;  %v14384_v26 = vld [vmem:[#allocation31_spill] sm:$0xff] }
0x136a   :  { %v7814_v15 = vsel %vm622_vm7, %v7801_v3, %v13597_v29  ;;  %v7816_v46 = vsel %vm622_vm7, %v13593_v61, %v7801_v3  ;;  %7950 = vmatpush1.bf16.msra.mxu0 %v7788_v43  ;;  %v14383_v43 = vld [vmem:[#allocation43_spill] sm:$0xff] }
0x136b   :  { %v7790_v23 = vpack.c.bf16 %v7786_v32, %v7782_v24  ;;  %v7803_v59 = vpop.permute.xlu1 %7802  ;;  %v7791_v25 = vpack.c.bf16 %v7787_v37, %v7783_v42  ;;  %v7842_v53 = vmul.f32 %v7825_v27, %v7816_v46  ;;  %v7843_v17 = vmul.f32 %v7829_v51, %v7814_v15  ;;  %v14386_v24 = vld [vmem:[#allocation45_spill] sm:$0xff] }
0x136c   :  { %v7815_v11 = vsel %vm622_vm7, %v7803_v59, %v14375_v22  ;;  %v7817_v38 = vsel %vm622_vm7, %v14376_v5, %v7803_v59  ;;  %v8461_v32 = vld [vmem:[%s13892_s3] sm:$0xff]   ;;  %s8631_s3 = smov [#allocation9]  }
0x136d   :  { %v7846_v47 = vmul.f32 %v7825_v27, %v7817_v38  ;;  %v7847_v9 = vmul.f32 %v7829_v51, %v7815_v11  ;;  %v7809_v56 = vpop.permute.xlu0 %7808  ;;  %7992 = vmatprep.subr.bf16.mxu1 %v7791_v25  ;;  %v14385_v27 = vld [vmem:[#allocation44_spill] sm:$0xff]  ;;  %s8211_s19 = sshll.u32 %s8631_s3, 4  ;;  %s8212_s19 = int_to_ptr.vmem [resolvable:$true] %s8211_s19 }
0x136e   :  { %v7812_v48 = vsel %vm622_vm7, %v13597_v29, %v7809_v56  ;;  %v7818_v20 = vsel %vm622_vm7, %v7809_v56, %v13593_v61  ;;  %7993 = vmatpush1.bf16.msra.mxu1 %v7790_v23  ;;  %v14377_v61 = vld [vmem:[#allocation77_spill] sm:$0xff]  ;;  %s8584_s20 = scalar_lea.vmem %s8212_s19, 1024  ;;  %p8589_p11 = scmp.lt.s32.totalorder %s8212_s19, %s8212_s19 }
0x136f   :  { %v7850_v60 = vpack.c.bf16 %v7846_v47, %v7842_v53  ;;  %v7811_v1 = vpop.permute.xlu1 %7810  ;;  %v7851_v16 = vpack.c.bf16 %v7847_v9, %v7843_v17  ;;  %v7844_v62 = vmul.f32 %v7833_v18, %v7812_v48  ;;  %v7845_v13 = vmul.f32 %v7837_v8, %v7818_v20  ;;  %p8585_p10 = scmp.ne.s32.totalorder %s8212_s19, %s8584_s20  ;;  %p8590_p12 = scmp.lt.s32.totalorder %s8584_s20, %s8584_s20 }
0x1370   :  { %v7813_v30 = vsel %vm622_vm7, %v14375_v22, %v7811_v1  ;;  %v7819_v58 = vsel %vm622_vm7, %v7811_v1, %v14376_v5 }
0x1371   :  { %v7848_v14 = vmul.f32 %v7833_v18, %v7813_v30  ;;  %v7849_v29 = vmul.f32 %v7837_v8, %v7819_v58  ;;  %7951 = vmatprep.subr.bf16.mxu0 %v7851_v16  ;;  %p8591_p13 = por %p8590_p12, %p8589_p11 }
0x1372   :  { %7952 = vmatpush1.bf16.msra.mxu0 %v7850_v60 }
0x1373   :  { %v7852_v12 = vpack.c.bf16 %v7848_v14, %v7844_v62  ;;  %8393 = vmatprep.subr.msk.bf16.mxu0 %vm9269_vm10, %v14377_v61  ;;  %v7853_v63 = vpack.c.bf16 %v7849_v29, %v7845_v13  ;;  %p8592_p0 = pnand %p8591_p13, %p8585_p10 }
0x1375   :  { %7994 = vmatprep.subr.bf16.mxu1 %v7853_v63 }
0x1376   :  { %8396 = vmatpush1.bf16.msk.msra.mxu0 %vm9269_vm10, %v14377_v61  ;;  %7995 = vmatpush1.bf16.msra.mxu1 %v7852_v12 }
0x1377   :  { %8399 = vmatprep.subr.msk.bf16.mxu1 %vm9269_vm10, %v14377_v61 }
0x1379   :  { %7968 = vmatmul.mubr.bf16.vlgmr.msra.gmra.mrb[44].mxu0 %v8458_v36 }
0x137a   :  { %8402 = vmatpush1.bf16.msk.msra.mxu1 %vm9269_vm10, %v14377_v61  ;;  %8080 = vmatprep.mubr.bf16.mxu0 %v8630_v10 }
0x137d   :  { %8011 = vmatmul.mubr.bf16.vlgmr.msra.gmra.mrb[44].mxu1 %v8458_v36 }
0x137e   :  { %8123 = vmatprep.mubr.bf16.mxu1 %v8630_v10 }
0x13e2   :  { %v8037_v23 = vpop.permute.xlu1 %8036 }
0x13e3   :  { %v8032_v15 = vpop.permute.xlu0 %8031 }
0x144c   :  { %v7969_v49 = vpop.f32.mrb[44].mxu0 }
0x144d   :  { %v7971_v7 = vpop.f32.mrb[45].mxu0  ;;  %v7970_v35 = vadd.f32 %v7969_v49, %v14379_v41 }
0x144e   :  { %v7973_v0 = vpop.f32.mrb[46].mxu0  ;;  %v7972_v52 = vadd.f32 %v7971_v7, %v14381_v31  ;;  %v14388_v31 = vld [vmem:[#allocation89_spill] sm:$0xff] }
0x144f   :  { %v7974_v55 = vadd.f32 %v7973_v0, %v14380_v57  ;;  %v7975_v40 = vpop.f32.mrb[47].mxu0 }
0x1450   :  { %v7976_v45 = vadd.f32 %v7975_v40, %v14382_v21  ;;  %v8012_v39 = vpop.f32.mrb[44].mxu1  ;;  %v14387_v40 = vld [vmem:[#allocation92_spill] sm:$0xff] }
0x1451   :  { %v8023_v33 = vpack.c.bf16 %v7974_v55, %v7970_v35  ;;  %v8014_v34 = vpop.f32.mrb[45].mxu1  ;;  %v8013_v54 = vadd.f32 %v8012_v39, %v14383_v43  ;;  %v14390_v39 = vld [vmem:[#allocation90_spill] sm:$0xff] }
0x1452   :  { %v8024_v28 = vpack.c.bf16 %v7976_v45, %v7972_v52  ;;  %v8016_v6 = vpop.f32.mrb[46].mxu1  ;;  %v8015_v51 = vadd.f32 %v8014_v34, %v14385_v27  ;;  %v4140_v52 = vadd.f32 %v14388_v31, %v14387_v40  ;;  %v14389_v45 = vld [vmem:[#allocation85_spill] sm:$0xff] }
0x1453   :  { %v8017_v19 = vadd.f32 %v8016_v6, %v14384_v26  ;;  %v8018_v44 = vpop.f32.mrb[47].mxu1  ;;  %v14392_v6 = vld [vmem:[#allocation88_spill] sm:$0xff] }
0x1454   :  { %v8019_v42 = vadd.f32 %v8018_v44, %v14386_v24  ;;  %8048 = vmatprep.subr.bf16.mxu0 %v8024_v28  ;;  %v14391_v28 = vld [vmem:[#allocation91_spill] sm:$0xff] }
0x1455   :  { %v8025_v37 = vpack.c.bf16 %v8017_v19, %v8013_v54  ;;  %8049 = vmatpush1.bf16.msra.mxu0 %v8023_v33  ;;  %v4142_v33 = vadd.f32 %v14390_v39, %v14389_v45  ;;  %v4144_v43 = vadd.f32 %v14392_v6, %v14391_v28  ;;  %v14393_v19 = vld [vmem:[#allocation83_spill] sm:$0xff] }
0x1456   :  { %v8026_v3 = vpack.c.bf16 %v8019_v42, %v8015_v51  ;;  %v14394_v44 = vld [vmem:[#allocation87_spill] sm:$0xff]  ;;  %v14395_v42 = vld [vmem:[#allocation94_spill] sm:$0xff] }
0x1457   :  { %v4146_v27 = vadd.f32 %v14394_v44, %v14393_v19 }
0x1458   :  { %8249 = vmatmul.mubr.msk.bf16.vlgmr.msra.gmra.mrb[48].mxu0 %vm8044_vm11, %v8461_v32  ;;  %8091 = vmatprep.subr.bf16.mxu1 %v8026_v3  ;;  %v8510_v3 = vld [vmem:[#allocation3] sm:$0xff] }
0x1459   :  { %8092 = vmatpush1.bf16.msra.mxu1 %v8025_v37 }
0x145c   :  { %8250 = vmatmul.mubr.msk.bf16.vlgmr.msra.gmra.mrb[48].mxu1 %vm8044_vm11, %v8461_v32  ;;  %v14396_v32 = vld [vmem:[#allocation14_spill] sm:$0xff] }
0x145d   :  { %v4183_v37 = vadd.f32 %v14396_v32, %v14395_v42 }
0x152b   :  { %v8082_v46 = vpop.f32.mrb[48].mxu0 }
0x152c   :  { %v8083_v59 = vadd.f32 %v8082_v46, %v8032_v15  ;;  %v8084_v25 = vpop.f32.mrb[49].mxu0 }
0x152d   :  { %v8085_v22 = vadd.f32 %v8084_v25, %v8032_v15  ;;  %v8086_v11 = vpop.f32.mrb[50].mxu0  ;;  %v14398_v25 = vld [vmem:[#allocation13_spill] sm:$0xff] }
0x152e   :  { %v8251_v5 = vmul.f32 -1.442695, %v8083_v59  ;;  %v8087_v38 = vadd.f32 %v8086_v11, %v8037_v23  ;;  %v8088_v18 = vpop.f32.mrb[51].mxu0  ;;  %v14397_v59 = vld [vmem:[#allocation86_spill] sm:$0xff] }
0x152f   :  { %v8252_v8 = vmul.f32 -1.442695, %v8085_v22  ;;  %v8089_v53 = vadd.f32 %v8088_v18, %v8037_v23  ;;  %v8125_v17 = vpop.f32.mrb[48].mxu1  ;;  %v4185_v22 = vadd.f32 %v14398_v25, %v14397_v59  ;;  %v8511_v11 = vld [vmem:[#allocation3 + $0x8] sm:$0xff] }
0x1530   :  { %8462 = vpow2.f32 %v8251_v5  ;;  %v8255_v47 = vmul.f32 -1.442695, %v8087_v38  ;;  %v8126_v9 = vadd.f32 %v8125_v17, %v8032_v15  ;;  %v8127_v56 = vpop.f32.mrb[49].mxu1 }
0x1531   :  { %8464 = vpow2.f32 %v8252_v8  ;;  %v8256_v48 = vmul.f32 -1.442695, %v8089_v53  ;;  %v8128_v20 = vadd.f32 %v8127_v56, %v8032_v15  ;;  %v8129_v60 = vpop.f32.mrb[50].mxu1  ;;  %v14399_v8 = vld [vmem:[#allocation93_spill] sm:$0xff] }
0x1532   :  { %8466 = vpow2.f32 %v8255_v47  ;;  %v8253_v1 = vmul.f32 -1.442695, %v8126_v9  ;;  %v8130_v16 = vadd.f32 %v8129_v60, %v8037_v23  ;;  %v8131_v30 = vpop.f32.mrb[51].mxu1  ;;  %v14400_v53 = vld [vmem:[#allocation17_spill] sm:$0xff]  ;;  %v14402_v60 = vld [vmem:[#allocation18_spill] sm:$0xff] }
0x1533   :  { %8468 = vpow2.f32 %v8256_v48  ;;  %v8254_v58 = vmul.f32 -1.442695, %v8128_v20  ;;  %v8132_v62 = vadd.f32 %v8131_v30, %v8037_v23  ;;  %v4187_v17 = vadd.f32 %v14400_v53, %v14399_v8  ;;  %v8512_v47 = vld [vmem:[#allocation3 + $0x20] sm:$0xff]  ;;  %v14401_v20 = vld [vmem:[#allocation84_spill] sm:$0xff] }
0x1534   :  { %8470 = vpow2.f32 %v8253_v1  ;;  %v8257_v13 = vmul.f32 -1.442695, %v8130_v16  ;;  %v4189_v1 = vadd.f32 %v14402_v60, %v14401_v20  ;;  %v8513_v16 = vld [vmem:[#allocation3 + $0x28] sm:$0xff] }
0x1535   :  { %8472 = vpow2.f32 %v8254_v58  ;;  %v8258_v14 = vmul.f32 -1.442695, %v8132_v62 }
0x1536   :  { %8474 = vpow2.f32 %v8257_v13  ;;  %v8514_v13 = vld [vmem:[#allocation3 + $0x10] sm:$0xff] }
0x1537   :  { %8476 = vpow2.f32 %v8258_v14 }
0x153a   :  { %v8463_v29 = vpop.eup %8462 }
0x153b   :  { %v8465_v12 = vpop.eup %8464  ;;  %v8158_v61 = vadd.f32 1.0, %v8463_v29 }
0x153c   :  { %v8467_v4 = vpop.eup %8466  ;;  %v8159_v63 = vadd.f32 1.0, %v8465_v12  ;;  %v8515_v12 = vld [vmem:[#allocation3 + $0x18] sm:$0xff] }
0x153d   :  { %v8469_v36 = vpop.eup %8468  ;;  %8478 = vrcp.f32 %v8158_v61  ;;  %v8162_v10 = vadd.f32 1.0, %v8467_v4 }
0x153e   :  { %v8471_v50 = vpop.eup %8470  ;;  %8480 = vrcp.f32 %v8159_v63  ;;  %v8163_v2 = vadd.f32 1.0, %v8469_v36  ;;  %v8516_v63 = vld [vmem:[#allocation3 + $0x30] sm:$0xff] }
0x153f   :  { %v8473_v49 = vpop.eup %8472  ;;  %8482 = vrcp.f32 %v8162_v10  ;;  %v8160_v7 = vadd.f32 1.0, %v8471_v50  ;;  %v8517_v10 = vld [vmem:[#allocation3 + $0x38] sm:$0xff] }
0x1540   :  { %v8475_v0 = vpop.eup %8474  ;;  %8484 = vrcp.f32 %v8163_v2  ;;  %v8161_v41 = vadd.f32 1.0, %v8473_v49 }
0x1541   :  { %v8477_v35 = vpop.eup %8476  ;;  %8486 = vrcp.f32 %v8160_v7  ;;  %v8164_v57 = vadd.f32 1.0, %v8475_v0 }
0x1542   :  { %8488 = vrcp.f32 %v8161_v41  ;;  %v8165_v55 = vadd.f32 1.0, %v8477_v35 }
0x1543   :  { %8490 = vrcp.f32 %v8164_v57 }
0x1544   :  { %8492 = vrcp.f32 %v8165_v55 }
0x1547   :  { %v8479_v21 = vpop.eup %8478 }
0x1548   :  { %v8481_v34 = vpop.eup %8480  ;;  %v8182_v54 = vmul.f32 %v8479_v21, %v4140_v52 }
0x1549   :  { %v8483_v26 = vpop.eup %8482  ;;  %v8183_v51 = vmul.f32 %v8481_v34, %v4142_v33 }
0x154a   :  { %v8485_v24 = vpop.eup %8484  ;;  %v8190_v15 = vadd.f32 %v8510_v3, %v8182_v54  ;;  %v8186_v46 = vmul.f32 %v8483_v26, %v4144_v43 }
0x154b   :  { %v8487_v23 = vpop.eup %8486  ;;  %v8191_v5 = vadd.f32 %v8511_v11, %v8183_v51  ;;  %v8187_v38 = vmul.f32 %v8485_v24, %v4146_v27 }
0x154c   :  { %v8489_v18 = vpop.eup %8488  ;;  %8198 = vst [vmem:[#allocation9] sm:$0xff] %v8190_v15  ;;  %v8194_v9 = vadd.f32 %v8512_v47, %v8186_v46  ;;  %v8184_v56 = vmul.f32 %v8487_v23, %v4183_v37 }
0x154d   :  { %v8491_v48 = vpop.eup %8490  ;;  %8199 = vst [vmem:[#allocation9 + $0x8] sm:$0xff] %v8191_v5  ;;  %v8195_v30 = vadd.f32 %v8513_v16, %v8187_v38  ;;  %v8185_v58 = vmul.f32 %v8489_v18, %v4185_v22 }
0x154e   :  { %v8493_v62 = vpop.eup %8492  ;;  %8202 = vst [vmem:[#allocation9 + $0x20] sm:$0xff] %v8194_v9  ;;  %v8192_v14 = vadd.f32 %v8514_v13, %v8184_v56  ;;  %v8188_v29 = vmul.f32 %v8491_v48, %v4187_v17 }
0x154f   :  { %8203 = vst [vmem:[#allocation9 + $0x28] sm:$0xff] %v8195_v30  ;;  %v8193_v61 = vadd.f32 %v8515_v12, %v8185_v58  ;;  %v8189_v4 = vmul.f32 %v8493_v62, %v4189_v1 }
0x1550   :  { %8200 = vst [vmem:[#allocation9 + $0x10] sm:$0xff] %v8192_v14  ;;  %v8196_v36 = vadd.f32 %v8516_v63, %v8188_v29 }
0x1551   :  { %8201 = vst [vmem:[#allocation9 + $0x18] sm:$0xff] %v8193_v61  ;;  %v8197_v50 = vadd.f32 %v8517_v10, %v8189_v4 }
0x1552   :  { %8204 = vst [vmem:[#allocation9 + $0x30] sm:$0xff] %v8196_v36 }
0x1553   :  { %8205 = vst [vmem:[#allocation9 + $0x38] sm:$0xff] %v8197_v50 }
0x1554   :  { %8595 = shalt.err (!%p8592_p0)
}
0x1555   :  { %s8596_s23 = scalar_lea.hbm %s13894_s5, 1024 }
0x1556   :  { %p8597_p1 = scmp.ne.s32.totalorder %s13894_s5, %s8596_s23  ;;  %p8600_p2 = scmp.lt.u32.totalorder %s8596_s23, %s13894_s5 }
0x1558   :  { %p8602_p3 = pnand %p8600_p2, %p8597_p1 }
0x155a   :  { %8605 = shalt.err (!%p8602_p3)
}
0x155b   :  { %8217 = dma.vmem_to_hbm [thread:$0]  %s8212_s19, 1024, %s13894_s5, [#allocation5], %s8616_s1, %s8616_s1, %s8617_s17  }
0x155c   :  { %8610 = dma.done.wait [#allocation5], 1024  }
0x155d   :  { %8611 = vsyncadd [#allocation5], 4294966272 }
0x155e   :  { %8221 = vsyncpa [#allocation4], 1 }
0x155f   :  { %8222 = vsyncpa [#allocation7], 1 }
0x1560   :  { %8223 = vsyncpa [#allocation5], 1 }

</bundles_post_ra>
